<compile_context>
chip_gen: v6e
topology: v6e:2x2x1
jax: 0.10.0
libtpu: 0.0.40
codegen_flags: <defaults>
</compile_context>

<pallas_src>
import math
from functools import partial

import jax
import jax.numpy as jnp
import numpy as np
from jax.experimental import pallas as pl
from jax.experimental.pallas import tpu as pltpu

_LANE_W = 1024          # lane-dense last dim (multiple of 128) -> full-width vst
_MAX_TILE_ROWS = 512    # 512 x 1024 x 4B = 2 MiB per f32 block (fits v5e default scoped VMEM)
_SUBLANE = {4: 8, 2: 16, 1: 32}   # sublane packing per itemsize


def _round_up(x, m):
    return ((x + m - 1) // m) * m


def _device_kind():
    try:
        return jax.devices()[0].device_kind.lower()
    except Exception:
        return ""


def _num_tensorcores():
    # v7x has 2 TensorCores per chip; v5e/v6e have 1.
    return 2 if "v7" in _device_kind() else 1


def _bf16_vector_ok():
    # v5e has no bf16 VPU/EUP -> widen to f32 there; v6e/v7x can stay in bf16.
    kind = _device_kind()
    if not kind:
        return False
    return not ("v5e" in kind or "v5 lite" in kind or "v5lite" in kind)


def _apply_act(x, name):
    """Elementwise activation in x's dtype."""
    name = name.lower()
    if name == "tanh":
        return jnp.tanh(x)
    if name == "srelu":
        return jnp.maximum(x, 0.0) * jnp.maximum(1.0 - x, 0.0)
    if name == "s2relu":
        return (jnp.maximum(x, 0.0) * jnp.maximum(1.0 - x, 0.0)
                * jnp.sin(2.0 * np.pi * x))
    return x  # 'linear'


# ---------------------------------------------------------------------------
# Standalone my_actFunc kernel (elementwise activation over any-shape tensor).
# ---------------------------------------------------------------------------
def _act_kernel(x_ref, o_ref, *, act_name, compute_dtype):
    x = x_ref[...].astype(compute_dtype)
    o_ref[...] = _apply_act(x, act_name).astype(o_ref.dtype)


def my_act_func(x: jax.Array, act_name: str = "linear") -> jax.Array:
    """Pallas implementation of my_actFunc.forward."""
    name = str(act_name).lower()
    if name not in ("tanh", "srelu", "s2relu"):
        return x  # 'linear' / unknown -> identity, no kernel / HBM traffic

    orig_shape = x.shape
    dtype = x.dtype
    n = int(np.prod(orig_shape)) if len(orig_shape) else 1
    if n == 0:
        return x
    itemsize = jnp.dtype(dtype).itemsize
    sub = _SUBLANE.get(itemsize, 8)

    # Keep the math in bf16 on chips with a bf16 VPU/EUP; widen to f32 on v5e.
    if dtype == jnp.bfloat16 and _bf16_vector_ok():
        compute_dtype = jnp.bfloat16
    else:
        compute_dtype = jnp.float32

    # Pick a lane width that divides n exactly so the reshape is a free bitcast
    # (no pad and no post-slice -> no extra HBM passes around a mem-bound kernel).
    lane_w = next((w for w in (_LANE_W, 512, 256, 128) if n % w == 0), None)
    padded = False
    if lane_w is None:
        # Ragged total element count (rare): pad the flat tail once.
        # TODO(synk): handle the ragged tail with a masked final block instead of padding.
        lane_w = 128
        rows = _round_up(pl.cdiv(n, lane_w), sub)
        flat = jnp.pad(x.reshape(-1), (0, rows * lane_w - n))
        slab = flat.reshape(rows, lane_w)
        padded = True
    else:
        rows = n // lane_w
        slab = x.reshape(rows, lane_w)

    if rows <= _MAX_TILE_ROWS:
        tile_rows = rows           # single step; full-dim block (exempt from 8-row rule)
    else:
        tile_rows = _MAX_TILE_ROWS  # multiple of 8/16/32; ragged boundary block is masked

    cost = pl.CostEstimate(flops=5 * n, transcendentals=n,
                           bytes_accessed=2 * n * itemsize)

    out = pl.pallas_call(
        partial(_act_kernel, act_name=name, compute_dtype=compute_dtype),
        out_shape=jax.ShapeDtypeStruct((rows, lane_w), dtype),
        grid_spec=pl.GridSpec(
            grid=(pl.cdiv(rows, tile_rows),),
            in_specs=[pl.BlockSpec((tile_rows, lane_w), lambda i: (i, 0))],
            out_specs=pl.BlockSpec((tile_rows, lane_w), lambda i: (i, 0)),
        ),
        compiler_params=pltpu.CompilerParams(dimension_semantics=("parallel",)),
        cost_estimate=cost,
    )(slab)

    if padded:
        return out.reshape(-1)[:n].reshape(orig_shape)
    return out.reshape(orig_shape)


# ---------------------------------------------------------------------------
# Fused MscaleDNN forward kernel: all layers computed in VMEM per batch tile.
# Transposed layout: batch is the lane (last) dim everywhere.
# ---------------------------------------------------------------------------
def _make_mscale_kernel(hidden_units, act_in, act_mid, act_out):
    n_hidden = len(hidden_units)

    def kernel(*refs):
        x_ref, mix_ref = refs[0], refs[1]
        o_ref = refs[-1]
        wb = refs[2:-1]
        ws = wb[0::2]
        bs = wb[1::2]

        def dense(w_ref, b_ref, rhs):
            # w_ref holds W^T: (out_features, in_features); rhs: (in_features, tile_n).
            lhs = w_ref[...]
            if rhs.dtype != lhs.dtype:
                rhs = rhs.astype(lhs.dtype)   # keep native-dtype MXU path (bf16 stays bf16)
            acc = jnp.dot(lhs, rhs, preferred_element_type=jnp.float32)
            return acc + b_ref[...].astype(jnp.float32)   # (out,1) broadcasts along lanes

        # Input layer + scale mixing + input activation (activation math in f32).
        h = dense(ws[0], bs[0], x_ref[...])
        h = _apply_act(h * mix_ref[...].astype(jnp.float32), act_in)

        # Hidden layers with residual connections when widths match.
        hidden_record = hidden_units[0]
        for i in range(n_hidden - 1):
            h_pre = h
            h = dense(ws[i + 1], bs[i + 1], h)
            h = _apply_act(h, act_mid)
            if hidden_units[i + 1] == hidden_record:
                h = h + h_pre
            hidden_record = hidden_units[i + 1]

        # Output layer + output activation.
        h = dense(ws[-1], bs[-1], h)
        h = _apply_act(h, act_out)
        o_ref[...] = h.astype(o_ref.dtype)

    return kernel


def _choose_batch_tiling(n, num_tc, max_tile=512):
    """Pick (tile_n, padded_n): single step when small, >=2 parallel steps on v7x."""
    padded = _round_up(max(n, 128), 128)
    if num_tc >= 2:
        padded = _round_up(padded, 256)
        tile = min(max_tile, padded // 2)    # both TensorCores get work
    else:
        tile = min(max_tile, padded)         # avoid pure per-step overhead on 1-TC chips
    padded = _round_up(padded, tile)
    return tile, padded


def mscale_dnn_forward(x, weights, biases, scale, hidden_units,
                       act_in="s2relu", act="s2relu", act_out="linear",
                       tile_n=None):
    """Pallas implementation of MscaleDNN.forward.

    x:        (N, indim)
    weights:  list of (in_features, out_features) arrays
    biases:   list of (out_features,) arrays
    scale:    sequence of scales; len(scale) must divide hidden_units[0]
    """
    n, indim = x.shape
    outdim = int(weights[-1].shape[1])
    hidden_units = tuple(int(h) for h in hidden_units)
    if hidden_units[0] % len(scale) != 0:
        raise ValueError(
            f"len(scale)={len(scale)} must divide hidden_units[0]={hidden_units[0]}")

    unit_num = hidden_units[0] // len(scale)
    mixcoe = np.repeat(np.asarray(scale, dtype=np.float32), unit_num)
    mix = jnp.asarray(mixcoe, dtype=jnp.float32).reshape(hidden_units[0], 1)

    num_tc = _num_tensorcores()
    if tile_n is None:
        tile_n, padded_n = _choose_batch_tiling(n, num_tc)
    else:
        tile_n = max(128, _round_up(int(tile_n), 128))
        padded_n = _round_up(max(n, tile_n), tile_n)

    # Transposed ("batch on lanes") layout: x -> (indim, padded_n).  Padded batch
    # columns produce garbage after bias/activation but are sliced off below;
    # do NOT add in-kernel reductions across the batch without masking them.
    x_t = jnp.pad(x.T, ((0, 0), (0, padded_n - n)))

    # Output sublane dim padded to 8 so output stores are full-vreg
    # (lane dim = batch is already dense and a multiple of 128).
    outdim_pad = _round_up(outdim, 8)

    in_specs = [
        pl.BlockSpec((indim, tile_n), lambda i: (0, i)),        # batch tile of inputs
        pl.BlockSpec((hidden_units[0], 1), lambda i: (0, 0)),   # mixcoe (resident)
    ]
    args = [x_t, mix]
    flops = 0
    n_layers = len(weights)
    for li, (w, b) in enumerate(zip(weights, biases)):
        w_t = jnp.asarray(w).T                       # (out_features, in_features)
        b_c = jnp.asarray(b).reshape(-1, 1)          # (out_features, 1)
        if li == n_layers - 1 and outdim_pad != outdim:
            w_t = jnp.pad(w_t, ((0, outdim_pad - outdim), (0, 0)))
            b_c = jnp.pad(b_c, ((0, outdim_pad - outdim), (0, 0)))
        # NOTE(v7x): constant-index weight/bias blocks are still double-buffered by
        # the pipeliner; with realistic multi-MB layers, single-buffer them
        # (pipeline_mode=pl.Buffered(1)) or add a K/N tiling axis to respect the
        # 64 MiB VMEM.  Left at the default here since these layers are tiny.
        in_specs.append(pl.BlockSpec(tuple(w_t.shape), lambda i: (0, 0)))   # full weight
        in_specs.append(pl.BlockSpec(tuple(b_c.shape), lambda i: (0, 0)))   # full bias
        args += [w_t, b_c]
        flops += 2 * padded_n * int(w.shape[0]) * int(w.shape[1])

    kernel = _make_mscale_kernel(hidden_units, act_in, act, act_out)
    param_elems = (sum(int(np.prod(w.shape)) for w in weights)
                   + sum(int(np.prod(b.shape)) for b in biases))
    cost = pl.CostEstimate(
        flops=flops,
        transcendentals=2 * padded_n * sum(hidden_units),
        bytes_accessed=4 * (indim * padded_n + param_elems + outdim_pad * padded_n),
    )

    out_t = pl.pallas_call(
        kernel,
        out_shape=jax.ShapeDtypeStruct((outdim_pad, padded_n), x.dtype),
        grid_spec=pl.GridSpec(
            grid=(padded_n // tile_n,),
            in_specs=in_specs,
            out_specs=pl.BlockSpec((outdim_pad, tile_n), lambda i: (0, i)),
        ),
        compiler_params=pltpu.CompilerParams(dimension_semantics=("parallel",)),
        cost_estimate=cost,
    )(*args)

    return out_t[:outdim, :n].T


# ---------------------------------------------------------------------------
# Pure-JAX references.
# ---------------------------------------------------------------------------
def _ref_act(x, name):
    return _apply_act(x.astype(jnp.float32), name).astype(x.dtype)


def _ref_forward(x, weights, biases, scale, hidden_units,
                 act_in="s2relu", act="s2relu", act_out="linear"):
    unit_num = int(hidden_units[0] // len(scale))
    mixcoe = jnp.asarray(np.repeat(np.asarray(scale, np.float32), unit_num))
    h = x.astype(jnp.float32) @ weights[0] + biases[0].reshape(1, -1)
    h = _apply_act(h * mixcoe, act_in)
    hidden_record = hidden_units[0]
    for i in range(len(hidden_units) - 1):
        h_pre = h
        h = h @ weights[i + 1] + biases[i + 1].reshape(1, -1)
        h = _apply_act(h, act)
        if hidden_units[i + 1] == hidden_record:
            h = h + h_pre
        hidden_record = hidden_units[i + 1]
    h = h @ weights[-1] + biases[-1].reshape(1, -1)
    return _apply_act(h, act_out).astype(x.dtype)


if __name__ == "__main__":
    key = jax.random.PRNGKey(0)

    # Small config consistent with the PyTorch module (indim=2, outdim=1).
    indim, outdim = 2, 1
    hidden_units = (32, 32, 32)
    scale = (1.0, 2.0, 4.0, 8.0)
    n_points = 512

    dims = (indim,) + hidden_units + (outdim,)
    n_layers = len(dims) - 1
    keys = jax.random.split(key, 2 * n_layers + 1)

    weights, biases = [], []
    for li in range(n_layers):
        fan_in, fan_out = dims[li], dims[li + 1]
        std = math.sqrt(2.0 / (fan_in + fan_out))  # xavier normal
        w = std * jax.random.normal(keys[2 * li], (fan_in, fan_out), jnp.float32)
        b = jax.random.uniform(keys[2 * li + 1], (fan_out,), jnp.float32, -1.0, 1.0)
        weights.append(w)
        biases.append(b)

    x = jax.random.uniform(keys[-1], (n_points, indim), jnp.float32, -1.0, 1.0)

    ok = True

    # 1) Fused full MscaleDNN forward vs pure-JAX reference.
    y = jax.block_until_ready(
        mscale_dnn_forward(x, weights, biases, scale, hidden_units,
                           act_in="s2relu", act="s2relu", act_out="linear"))
    y_ref = _ref_forward(x, weights, biases, scale, hidden_units)
    if not np.allclose(np.asarray(y), np.asarray(y_ref), atol=2e-2, rtol=2e-2):
        ok = False
        print("MISMATCH for fused MscaleDNN forward; max abs err =",
              float(np.max(np.abs(np.asarray(y) - np.asarray(y_ref)))))

    # 1b) Non-128-aligned batch size (exercise batch padding / slicing).
    x_odd = x[:333]
    y_odd = jax.block_until_ready(
        mscale_dnn_forward(x_odd, weights, biases, scale, hidden_units))
    y_odd_ref = _ref_forward(x_odd, weights, biases, scale, hidden_units)
    if not np.allclose(np.asarray(y_odd), np.asarray(y_odd_ref), atol=2e-2, rtol=2e-2):
        ok = False
        print("MISMATCH for fused forward with N=333")

    # 2) Standalone activation kernel (my_actFunc) on an NCHW-like tensor.
    x_act = jax.random.normal(jax.random.PRNGKey(1), (2, 4, 16, 16), jnp.float32)
    for act in ("linear", "tanh", "srelu", "s2relu"):
        ya = jax.block_until_ready(my_act_func(x_act, act))
        ya_ref = _ref_act(x_act, act)
        if not np.allclose(np.asarray(ya), np.asarray(ya_ref), atol=1e-5, rtol=1e-5):
            ok = False
            print(f"MISMATCH for act={act}")

    # 2b) Multi-step tiled path (rows > _MAX_TILE_ROWS) without any padding.
    x_big = jax.random.normal(jax.random.PRNGKey(2), (1024, 1024), jnp.float32)
    yb_big = jax.block_until_ready(my_act_func(x_big, "srelu"))
    if not np.allclose(np.asarray(yb_big), np.asarray(_ref_act(x_big, "srelu")),
                       atol=1e-5, rtol=1e-5):
        ok = False
        print("MISMATCH for tiled srelu (1024x1024)")

    # 2c) Ragged total element count (pad fallback path).
    x_rag = jax.random.normal(jax.random.PRNGKey(3), (3, 5, 7), jnp.float32)
    yr = jax.block_until_ready(my_act_func(x_rag, "tanh"))
    if not np.allclose(np.asarray(yr), np.asarray(_ref_act(x_rag, "tanh")),
                       atol=1e-5, rtol=1e-5):
        ok = False
        print("MISMATCH for ragged tanh (3,5,7)")

    # 3) Native bf16 I/O path (bf16 compute on v6e/v7x, f32 widen on v5e).
    x_bf16 = x_act.astype(jnp.bfloat16)
    yb = jax.block_until_ready(my_act_func(x_bf16, "s2relu"))
    yb_ref = _ref_act(x_bf16, "s2relu")
    if not np.allclose(np.asarray(yb, dtype=np.float32),
                       np.asarray(yb_ref, dtype=np.float32), atol=2e-2, rtol=2e-2):
        ok = False
        print("MISMATCH for bf16 s2relu")

    if ok:
        print("KERNEL_OK")
</pallas_src>

<mosaic_0001>
module attributes {stable_mosaic.version = 11 : i64} {
  func.func @kernel(%arg0: i32, %arg1: memref<2x512xf32, #tpu.memory_space<vmem>>, %arg2: memref<32x1xf32, #tpu.memory_space<vmem>>, %arg3: memref<32x2xf32, #tpu.memory_space<vmem>>, %arg4: memref<32x1xf32, #tpu.memory_space<vmem>>, %arg5: memref<32x32xf32, #tpu.memory_space<vmem>>, %arg6: memref<32x1xf32, #tpu.memory_space<vmem>>, %arg7: memref<32x32xf32, #tpu.memory_space<vmem>>, %arg8: memref<32x1xf32, #tpu.memory_space<vmem>>, %arg9: memref<8x32xf32, #tpu.memory_space<vmem>>, %arg10: memref<8x1xf32, #tpu.memory_space<vmem>>, %arg11: memref<8x512xf32, #tpu.memory_space<vmem>>) attributes {dimension_semantics = [#tpu.dimension_semantics<parallel>], iteration_bounds = array<i64: 1>, scalar_prefetch = 0 : i64, scratch_operands = 0 : i64, tpu.core_type = #tpu.core_type<tc>, window_params = [{transform_indices = @transform_0, window_bounds = array<i64: 2, 512>}, {pipeline_mode = #tpu.pipeline_mode<synchronous>, transform_indices = @transform_1, window_bounds = array<i64: 32, 1>}, {pipeline_mode = #tpu.pipeline_mode<synchronous>, transform_indices = @transform_2, window_bounds = array<i64: 32, 2>}, {pipeline_mode = #tpu.pipeline_mode<synchronous>, transform_indices = @transform_3, window_bounds = array<i64: 32, 1>}, {pipeline_mode = #tpu.pipeline_mode<synchronous>, transform_indices = @transform_4, window_bounds = array<i64: 32, 32>}, {pipeline_mode = #tpu.pipeline_mode<synchronous>, transform_indices = @transform_5, window_bounds = array<i64: 32, 1>}, {pipeline_mode = #tpu.pipeline_mode<synchronous>, transform_indices = @transform_6, window_bounds = array<i64: 32, 32>}, {pipeline_mode = #tpu.pipeline_mode<synchronous>, transform_indices = @transform_7, window_bounds = array<i64: 32, 1>}, {pipeline_mode = #tpu.pipeline_mode<synchronous>, transform_indices = @transform_8, window_bounds = array<i64: 8, 32>}, {pipeline_mode = #tpu.pipeline_mode<synchronous>, transform_indices = @transform_9, window_bounds = array<i64: 8, 1>}, {transform_indices = @transform_10, window_bounds = array<i64: 8, 512>}]} {
    %c0 = arith.constant 0 : index
    %c0_0 = arith.constant 0 : index
    %0 = vector.load %arg1[%c0, %c0_0] : memref<2x512xf32, #tpu.memory_space<vmem>>, vector<2x512xf32>
    %c0_1 = arith.constant 0 : index
    %c0_2 = arith.constant 0 : index
    %1 = vector.load %arg3[%c0_1, %c0_2] : memref<32x2xf32, #tpu.memory_space<vmem>>, vector<32x2xf32>
    %cst = arith.constant dense<0.000000e+00> : vector<32x512xf32>
    %2 = tpu.matmul %1, %0, %cst {dimension_numbers = #tpu.dot_dimension_numbers<[1], [0], [0], [1], [0, 0, 1, 1], [], []>} : vector<32x2xf32>, vector<2x512xf32>, vector<32x512xf32> -> vector<32x512xf32>
    %c0_3 = arith.constant 0 : index
    %c0_4 = arith.constant 0 : index
    %3 = vector.load %arg4[%c0_3, %c0_4] : memref<32x1xf32, #tpu.memory_space<vmem>>, vector<32x1xf32>
    %4 = vector.broadcast %3 : vector<32x1xf32> to vector<32x512xf32>
    %5 = arith.addf %2, %4 : vector<32x512xf32>
    %c0_5 = arith.constant 0 : index
    %c0_6 = arith.constant 0 : index
    %6 = vector.load %arg2[%c0_5, %c0_6] : memref<32x1xf32, #tpu.memory_space<vmem>>, vector<32x1xf32>
    %7 = vector.broadcast %6 : vector<32x1xf32> to vector<32x512xf32>
    %8 = arith.mulf %5, %7 : vector<32x512xf32>
    %cst_7 = arith.constant 0.000000e+00 : f32
    %9 = vector.broadcast %cst_7 : f32 to vector<32x512xf32>
    %10 = arith.maximumf %8, %9 : vector<32x512xf32>
    %cst_8 = arith.constant 1.000000e+00 : f32
    %11 = vector.broadcast %cst_8 : f32 to vector<32x512xf32>
    %12 = arith.subf %11, %8 : vector<32x512xf32>
    %cst_9 = arith.constant 0.000000e+00 : f32
    %13 = vector.broadcast %cst_9 : f32 to vector<32x512xf32>
    %14 = arith.maximumf %12, %13 : vector<32x512xf32>
    %15 = arith.mulf %10, %14 : vector<32x512xf32>
    %cst_10 = arith.constant 6.28318548 : f32
    %16 = vector.broadcast %cst_10 : f32 to vector<32x512xf32>
    %17 = arith.mulf %16, %8 : vector<32x512xf32>
    %18 = math.sin %17 : vector<32x512xf32>
    %19 = arith.mulf %15, %18 : vector<32x512xf32>
    %c0_11 = arith.constant 0 : index
    %c0_12 = arith.constant 0 : index
    %20 = vector.load %arg5[%c0_11, %c0_12] : memref<32x32xf32, #tpu.memory_space<vmem>>, vector<32x32xf32>
    %cst_13 = arith.constant dense<0.000000e+00> : vector<32x512xf32>
    %21 = tpu.matmul %20, %19, %cst_13 {dimension_numbers = #tpu.dot_dimension_numbers<[1], [0], [0], [1], [0, 0, 1, 1], [], []>} : vector<32x32xf32>, vector<32x512xf32>, vector<32x512xf32> -> vector<32x512xf32>
    %c0_14 = arith.constant 0 : index
    %c0_15 = arith.constant 0 : index
    %22 = vector.load %arg6[%c0_14, %c0_15] : memref<32x1xf32, #tpu.memory_space<vmem>>, vector<32x1xf32>
    %23 = vector.broadcast %22 : vector<32x1xf32> to vector<32x512xf32>
    %24 = arith.addf %21, %23 : vector<32x512xf32>
    %cst_16 = arith.constant 0.000000e+00 : f32
    %25 = vector.broadcast %cst_16 : f32 to vector<32x512xf32>
    %26 = arith.maximumf %24, %25 : vector<32x512xf32>
    %cst_17 = arith.constant 1.000000e+00 : f32
    %27 = vector.broadcast %cst_17 : f32 to vector<32x512xf32>
    %28 = arith.subf %27, %24 : vector<32x512xf32>
    %cst_18 = arith.constant 0.000000e+00 : f32
    %29 = vector.broadcast %cst_18 : f32 to vector<32x512xf32>
    %30 = arith.maximumf %28, %29 : vector<32x512xf32>
    %31 = arith.mulf %26, %30 : vector<32x512xf32>
    %cst_19 = arith.constant 6.28318548 : f32
    %32 = vector.broadcast %cst_19 : f32 to vector<32x512xf32>
    %33 = arith.mulf %32, %24 : vector<32x512xf32>
    %34 = math.sin %33 : vector<32x512xf32>
    %35 = arith.mulf %31, %34 : vector<32x512xf32>
    %36 = arith.addf %35, %19 : vector<32x512xf32>
    %c0_20 = arith.constant 0 : index
    %c0_21 = arith.constant 0 : index
    %37 = vector.load %arg7[%c0_20, %c0_21] : memref<32x32xf32, #tpu.memory_space<vmem>>, vector<32x32xf32>
    %cst_22 = arith.constant dense<0.000000e+00> : vector<32x512xf32>
    %38 = tpu.matmul %37, %36, %cst_22 {dimension_numbers = #tpu.dot_dimension_numbers<[1], [0], [0], [1], [0, 0, 1, 1], [], []>} : vector<32x32xf32>, vector<32x512xf32>, vector<32x512xf32> -> vector<32x512xf32>
    %c0_23 = arith.constant 0 : index
    %c0_24 = arith.constant 0 : index
    %39 = vector.load %arg8[%c0_23, %c0_24] : memref<32x1xf32, #tpu.memory_space<vmem>>, vector<32x1xf32>
    %40 = vector.broadcast %39 : vector<32x1xf32> to vector<32x512xf32>
    %41 = arith.addf %38, %40 : vector<32x512xf32>
    %cst_25 = arith.constant 0.000000e+00 : f32
    %42 = vector.broadcast %cst_25 : f32 to vector<32x512xf32>
    %43 = arith.maximumf %41, %42 : vector<32x512xf32>
    %cst_26 = arith.constant 1.000000e+00 : f32
    %44 = vector.broadcast %cst_26 : f32 to vector<32x512xf32>
    %45 = arith.subf %44, %41 : vector<32x512xf32>
    %cst_27 = arith.constant 0.000000e+00 : f32
    %46 = vector.broadcast %cst_27 : f32 to vector<32x512xf32>
    %47 = arith.maximumf %45, %46 : vector<32x512xf32>
    %48 = arith.mulf %43, %47 : vector<32x512xf32>
    %cst_28 = arith.constant 6.28318548 : f32
    %49 = vector.broadcast %cst_28 : f32 to vector<32x512xf32>
    %50 = arith.mulf %49, %41 : vector<32x512xf32>
    %51 = math.sin %50 : vector<32x512xf32>
    %52 = arith.mulf %48, %51 : vector<32x512xf32>
    %53 = arith.addf %52, %36 : vector<32x512xf32>
    %c0_29 = arith.constant 0 : index
    %c0_30 = arith.constant 0 : index
    %54 = vector.load %arg9[%c0_29, %c0_30] : memref<8x32xf32, #tpu.memory_space<vmem>>, vector<8x32xf32>
    %cst_31 = arith.constant dense<0.000000e+00> : vector<8x512xf32>
    %55 = tpu.matmul %54, %53, %cst_31 {dimension_numbers = #tpu.dot_dimension_numbers<[1], [0], [0], [1], [0, 0, 1, 1], [], []>} : vector<8x32xf32>, vector<32x512xf32>, vector<8x512xf32> -> vector<8x512xf32>
    %c0_32 = arith.constant 0 : index
    %c0_33 = arith.constant 0 : index
    %56 = vector.load %arg10[%c0_32, %c0_33] : memref<8x1xf32, #tpu.memory_space<vmem>>, vector<8x1xf32>
    %57 = vector.broadcast %56 : vector<8x1xf32> to vector<8x512xf32>
    %58 = arith.addf %55, %57 : vector<8x512xf32>
    %c0_34 = arith.constant 0 : index
    %c0_35 = arith.constant 0 : index
    %59 = vector.load %arg11[%c0_34, %c0_35] : memref<8x512xf32, #tpu.memory_space<vmem>>, vector<8x512xf32>
    tpu.vector_store %arg11[%c0_34, %c0_35], %58 {strides = array<i32>} : memref<8x512xf32, #tpu.memory_space<vmem>>, vector<8x512xf32>,
    return
  }
  func.func @transform_0(%arg0: i32) -> (i32, i32) {
    %c0_i32 = arith.constant 0 : i32
    %c0_i32_0 = arith.constant 0 : i32
    return %c0_i32, %arg0 : i32, i32
  }
  func.func @transform_1(%arg0: i32) -> (i32, i32) {
    %c0_i32 = arith.constant 0 : i32
    %c0_i32_0 = arith.constant 0 : i32
    %c0_i32_1 = arith.constant 0 : i32
    return %c0_i32, %c0_i32_0 : i32, i32
  }
  func.func @transform_2(%arg0: i32) -> (i32, i32) {
    %c0_i32 = arith.constant 0 : i32
    %c0_i32_0 = arith.constant 0 : i32
    %c0_i32_1 = arith.constant 0 : i32
    return %c0_i32, %c0_i32_0 : i32, i32
  }
  func.func @transform_3(%arg0: i32) -> (i32, i32) {
    %c0_i32 = arith.constant 0 : i32
    %c0_i32_0 = arith.constant 0 : i32
    %c0_i32_1 = arith.constant 0 : i32
    return %c0_i32, %c0_i32_0 : i32, i32
  }
  func.func @transform_4(%arg0: i32) -> (i32, i32) {
    %c0_i32 = arith.constant 0 : i32
    %c0_i32_0 = arith.constant 0 : i32
    %c0_i32_1 = arith.constant 0 : i32
    return %c0_i32, %c0_i32_0 : i32, i32
  }
  func.func @transform_5(%arg0: i32) -> (i32, i32) {
    %c0_i32 = arith.constant 0 : i32
    %c0_i32_0 = arith.constant 0 : i32
    %c0_i32_1 = arith.constant 0 : i32
    return %c0_i32, %c0_i32_0 : i32, i32
  }
  func.func @transform_6(%arg0: i32) -> (i32, i32) {
    %c0_i32 = arith.constant 0 : i32
    %c0_i32_0 = arith.constant 0 : i32
    %c0_i32_1 = arith.constant 0 : i32
    return %c0_i32, %c0_i32_0 : i32, i32
  }
  func.func @transform_7(%arg0: i32) -> (i32, i32) {
    %c0_i32 = arith.constant 0 : i32
    %c0_i32_0 = arith.constant 0 : i32
    %c0_i32_1 = arith.constant 0 : i32
    return %c0_i32, %c0_i32_0 : i32, i32
  }
  func.func @transform_8(%arg0: i32) -> (i32, i32) {
    %c0_i32 = arith.constant 0 : i32
    %c0_i32_0 = arith.constant 0 : i32
    %c0_i32_1 = arith.constant 0 : i32
    return %c0_i32, %c0_i32_0 : i32, i32
  }
  func.func @transform_9(%arg0: i32) -> (i32, i32) {
    %c0_i32 = arith.constant 0 : i32
    %c0_i32_0 = arith.constant 0 : i32
    %c0_i32_1 = arith.constant 0 : i32
    return %c0_i32, %c0_i32_0 : i32, i32
  }
  func.func @transform_10(%arg0: i32) -> (i32, i32) {
    %c0_i32 = arith.constant 0 : i32
    %c0_i32_0 = arith.constant 0 : i32
    return %c0_i32, %arg0 : i32, i32
  }
}

</mosaic_0001>

<bundles_post_ra>
// kernel: tpu_custom_call.1
= control target key start
LH: loop header
LB: loop body
LE: loop exit
PB: predicated region body
PF: predicated region fallthrough
CT: control target
= control target key end

     0   :  { %v70_v1 = vlaneseq  ;;  %v6883_v2 = vmov 1983009808   ;;  %v12453_v4 = vmov 0.0   ;;  %v6885_v6 = vmov 0   ;;  %s12442_s0 = inlined_call_operand.vmem [shape: f32[2,512], index: 0, kind: input, shape index: {}]   ;;  %s12443_s1 = inlined_call_operand.vmem [shape: f32[32,1], index: 1, kind: input, shape index: {}]   ;;  %s12444_s2 = inlined_call_operand.vmem [shape: f32[32,2], index: 2, kind: input, shape index: {}]   ;;  %s12445_s3 = inlined_call_operand.vmem [shape: f32[32,1], index: 3, kind: input, shape index: {}]   ;;  %s12446_s4 = inlined_call_operand.vmem [shape: f32[32,32], index: 4, kind: input, shape index: {}]   ;;  %s12447_s5 = inlined_call_operand.vmem [shape: f32[32,1], index: 5, kind: input, shape index: {}]   ;;  %s12448_s6 = inlined_call_operand.vmem [shape: f32[32,32], index: 6, kind: input, shape index: {}]   ;;  %s12449_s7 = inlined_call_operand.vmem [shape: f32[32,1], index: 7, kind: input, shape index: {}]   ;;  %s12450_s8 = inlined_call_operand.vmem [shape: f32[8,32], index: 8, kind: input, shape index: {}]   ;;  %s12451_s9 = inlined_call_operand.vmem [shape: f32[8,1], index: 9, kind: input, shape index: {}]   ;;  %s12452_s10 = inlined_call_operand.hbm [shape: f32[8,512], index: 10, kind: output, shape index: {}]  }
   0x1   :  { %v36_v0 = vld [vmem:[%s12442_s0] sm:$0xff]  ;;  %v68_v3 = vunpack.c.l.s4 %v6883_v2  ;;  %169 = vmatprep.mubr.f32.mxu0 %v12453_v4  ;;  %258 = vmatprep.mubr.f32.mxu1 %v12453_v4  ;;  %v44_v7 = vld [vmem:[%s12445_s3 + $0x18] sm:$0xff]  ;;  %v43_v11 = vld [vmem:[%s12445_s3 + $0x10] sm:$0xff] }
   0x2   :  { %v71_v5 = vshrl.u32 %v70_v1, 7  ;;  %6666 = vset.pattern.permute.xlu0 %v6885_v6  ;;  %6667 = vset.pattern.permute.xlu1 %v6885_v6  ;;  %v286_v8 = vld [vmem:[%s12443_s1 + $0x18] sm:$0xff]  ;;  %v66_v10 = vcombine.high %v36_v0, %v36_v0  ;;  %v42_v12 = vld [vmem:[%s12445_s3 + $0x8] sm:$0xff] }
   0x3   :  { %v69_v9 = vunpack.c.0.s8 %v68_v3  ;;  %62 = vperm.xlu0 %6666, %v44_v7   ;;  %304 = vperm.xlu1 %6667, %v286_v8  }
   0x5   :  { %v72_v13 = vsub.s32 %v69_v9, %v71_v5 }
   0x7   :  { %v73_v14 = vrot.slane %v36_v0, %v72_v13  ;;  %v80_v15 = vrot.slane %v66_v10, %v72_v13  ;;  %57 = vperm.xlu0 %6666, %v43_v11   ;;  %52 = vperm.xlu1 %6667, %v42_v12  }
   0x8   :  { %15 = vsyncpa [#allocation3], 0  ;;  %vm96_vm0 = vcmask 1041408   ;;  %v37_v18 = vld [vmem:[%s12444_s2] sm:$0xff]  ;;  %vm83_vm1 = vcmask 15360   ;;  %v285_v19 = vld [vmem:[%s12443_s1 + $0x10] sm:$0xff] }
   0x9   :  { %v81_v16 = vcombine.high %v73_v14, %v73_v14  ;;  %v82_v17 = vcombine.high %v80_v15, %v80_v15  ;;  %v41_v20 = vld [vmem:[%s12445_s3] sm:$0xff]  ;;  %v38_v21 = vld [vmem:[%s12444_s2 + $0x8] sm:$0xff]  ;;  %v39_v24 = vld [vmem:[%s12444_s2 + $0x10] sm:$0xff]  ;;  %v12470_v62 = vmov 683565275  }
   0xa   :  { %v284_v22 = vld [vmem:[%s12443_s1 + $0x8] sm:$0xff]  ;;  %v283_v23 = vld [vmem:[%s12443_s1] sm:$0xff]  ;;  %v2090_v25 = vld [vmem:[%s12447_s5 + $0x18] sm:$0xff]  ;;  %v12467_v0 = vmov 2475754826  }
   0xb   :  { %6242 = vmatprep.subr.msk.mxu0 %vm96_vm0, %v81_v16  ;;  %6248 = vmatprep.subr.msk.mxu1 %vm96_vm0, %v82_v17  ;;  %v2089_v26 = vld [vmem:[%s12447_s5 + $0x10] sm:$0xff]  ;;  %v40_v27 = vld [vmem:[%s12444_s2 + $0x18] sm:$0xff]  ;;  %v2088_v28 = vld [vmem:[%s12447_s5 + $0x8] sm:$0xff]  ;;  %v12465_v5 = vmov 2131351028  }
   0xc   :  { %6243 = vmatpush1.msk.msra.mxu0 %vm96_vm0, %v73_v14  ;;  %6249 = vmatpush1.msk.msra.mxu1 %vm96_vm0, %v80_v15  ;;  %v2087_v29 = vld [vmem:[%s12447_s5] sm:$0xff]  ;;  %v4085_v30 = vld [vmem:[%s12449_s7 + $0x18] sm:$0xff]  ;;  %v4084_v31 = vld [vmem:[%s12449_s7 + $0x10] sm:$0xff]  ;;  %v12459_v8 = vmov 2102212464  }
   0xd   :  { %6244 = vmatmul.mubr.msk.f32.vlgmr.msra.gmra.mxu0 %vm83_vm1, %v37_v18  ;;  %6250 = vmatmul.mubr.msk.f32.vlgmr.msra.gmra.mxu1 %vm83_vm1, %v37_v18  ;;  %v4083_v32 = vld [vmem:[%s12449_s7 + $0x8] sm:$0xff]  ;;  %v4082_v33 = vld [vmem:[%s12449_s7] sm:$0xff]  ;;  %v12463_v11 = vmov 920167782   ;;  %v12461_v14 = vmov 1326507024  }
   0xe   :  { %175 = vmatprep.mubr.f32.mxu0 %v12453_v4  ;;  %264 = vmatprep.mubr.f32.mxu1 %v12453_v4  ;;  %v6073_v34 = vld [vmem:[%s12451_s9] sm:$0xff] }
   0xf   :  { %299 = vperm.xlu0 %6666, %v285_v19   ;;  %47 = vperm.xlu1 %6667, %v41_v20  }
  0x11   :  { %6245 = vmatmul.mubr.msk.f32.gmra.mxu0 %vm83_vm1, %v38_v21  ;;  %6251 = vmatmul.mubr.msk.f32.gmra.mxu1 %vm83_vm1, %v38_v21 }
  0x12   :  { %181 = vmatprep.mubr.f32.mxu0 %v12453_v4  ;;  %270 = vmatprep.mubr.f32.mxu1 %v12453_v4 }
  0x13   :  { %294 = vperm.xlu0 %6666, %v284_v22   ;;  %289 = vperm.xlu1 %6667, %v283_v23  }
  0x15   :  { %6246 = vmatmul.mubr.msk.f32.gmra.mxu0 %vm83_vm1, %v39_v24  ;;  %6252 = vmatmul.mubr.msk.f32.gmra.mxu1 %vm83_vm1, %v39_v24 }
  0x16   :  { %187 = vmatprep.mubr.f32.mxu0 %v12453_v4  ;;  %276 = vmatprep.mubr.f32.mxu1 %v12453_v4 }
  0x17   :  { %2108 = vperm.xlu0 %6666, %v2090_v25   ;;  %2103 = vperm.xlu1 %6667, %v2089_v26  }
  0x19   :  { %6247 = vmatmul.mubr.msk.f32.gmra.mxu0 %vm83_vm1, %v40_v27  ;;  %6253 = vmatmul.mubr.msk.f32.gmra.mxu1 %vm83_vm1, %v40_v27 }
  0x1a   :  { %2188 = vmatprep.mubr.f32.mxu0 %v12453_v4  ;;  %2277 = vmatprep.mubr.f32.mxu1 %v12453_v4 }
  0x1b   :  { %2098 = vperm.xlu0 %6666, %v2088_v28   ;;  %2093 = vperm.xlu1 %6667, %v2087_v29  }
  0x1f   :  { %4103 = vperm.xlu0 %6666, %v4085_v30   ;;  %4098 = vperm.xlu1 %6667, %v4084_v31  }
  0x23   :  { %4093 = vperm.xlu0 %6666, %v4083_v32   ;;  %4088 = vperm.xlu1 %6667, %v4082_v33  }
  0x27   :  { %6076 = vperm.xlu0 %6666, %v6073_v34  }
  0x7e   :  { %v7032_v35 = vpop.permute.xlu1 %304  ;;  %v7057_v57 = vpop.permute.xlu0 %62 }
  0x82   :  { %v7034_v36 = vpop.permute.xlu1 %52  ;;  %v7073_v16 = vpop.permute.xlu0 %57 }
  0x8a   :  { %v7036_v37 = vpop.permute.xlu1 %47 }
  0x8e   :  { %v7040_v42 = vpop.permute.xlu1 %289 }
  0xcd   :  { %v171_v38 = vpop.f32.mrf.mxu0  ;;  %v260_v39 = vpop.f32.mrf.mxu1 }
  0xce   :  { %v172_v40 = vadd.f32 %v171_v38, %v7036_v37  ;;  %v261_v41 = vadd.f32 %v260_v39, %v7036_v37  ;;  %v7097_v38 = vpop.permute.xlu0 %299 }
  0xcf   :  { %v173_v26 = vpop.f32.mrf.mxu0 }
  0xd0   :  { %v7043_v43 = vmul.f32 %v7040_v42, %v172_v40  ;;  %v7046_v44 = vmul.f32 %v7040_v42, %v261_v41 }
  0xd2   :  { %12649 = vst [vmem:[#allocation5_spill] sm:$0xff] %v7043_v43  ;;  %12650 = vst [vmem:[#allocation6_spill] sm:$0xff] %v7046_v44  ;;  %v7049_v45 = vmul.f32 6.2831855, %v7043_v43  ;;  %v7052_v46 = vmul.f32 6.2831855, %v7046_v44 }
  0xd4   :  { %12651 = vst [vmem:[#allocation7_spill] sm:$0xff] %v7049_v45  ;;  %12652 = vst [vmem:[#allocation8_spill] sm:$0xff] %v7052_v46  ;;  %v406_v47 = vand.u32 2139095040, %v7049_v45  ;;  %v614_v48 = vand.u32 2139095040, %v7052_v46  ;;  %v12456_v55 = vand.u32 2147483647, %v7049_v45 }
  0xd6   :  { %v407_v49 = vshrl.u32 %v406_v47, 23  ;;  %v615_v50 = vshrl.u32 %v614_v48, 23  ;;  %v410_v59 = vand.u32 8388607, %v12456_v55  ;;  %v177_v48 = vpop.f32.mrf.mxu0 }
  0xd8   :  { %v6254_v51 = vadd.s32 4294967169, %v407_v49  ;;  %v6262_v52 = vadd.s32 4294967169, %v615_v50  ;;  %v411_v17 = vor.u32 8388608, %v410_v59 }
  0xda   :  { %v413_v53 = vadd.s32 1, %v6254_v51  ;;  %v621_v54 = vadd.s32 1, %v6262_v52  ;;  %v451_v31 = vshll.u32 %v411_v17, 8  ;;  %v178_v52 = vadd.f32 %v177_v48, %v7034_v36 }
  0xdb   :  { %v174_v48 = vadd.f32 %v173_v26, %v7036_v37 }
  0xdc   :  { %vm414_vm2 = vcmp.gt.s32.totalorder %v413_v53, 0  ;;  %vm622_vm3 = vcmp.gt.s32.totalorder %v621_v54, 0 }
  0xdd   :  { %v415_v56 = vsel %vm414_vm2, %v413_v53, 0  ;;  %v623_v2 = vsel %vm622_vm3, %v621_v54, 0  ;;  %v12455_v53 = vand.u32 2147483647, %v7052_v46  ;;  %v7177_v26 = vmul.f32 %v7040_v42, %v174_v48 }
  0xde   :  { %v417_v58 = vand.u32 31, %v415_v56  ;;  %v7061_v61 = vshrl.u32 %v415_v56, 5  ;;  %v625_v23 = vand.u32 31, %v623_v2  ;;  %v7113_v54 = vshrl.u32 %v623_v2, 5 }
  0xdf   :  { %12654 = vst [vmem:[#allocation10_spill] sm:$0xff] %v7177_v26 }
  0xe0   :  { %v418_v60 = vsub.s32 32, %v417_v58  ;;  %v420_v63 = vshll.u32 %v12470_v62, %v417_v58  ;;  %v423_v1 = vshll.u32 %v12467_v0, %v417_v58  ;;  %v426_v7 = vshll.u32 %v12465_v5, %v417_v58 }
  0xe1   :  { %v429_v10 = vshll.u32 %v12459_v8, %v417_v58  ;;  %v432_v13 = vshll.u32 %v12463_v11, %v417_v58  ;;  %vm435_vm4 = vcmp.lt.s32.totalorder %v7061_v61, 1  ;;  %vm438_vm5 = vcmp.lt.s32.totalorder %v7061_v61, 4 }
  0xe2   :  { %v421_v3 = vshrl.u32 %v12467_v0, %v418_v60  ;;  %v424_v6 = vshrl.u32 %v12465_v5, %v418_v60  ;;  %v427_v9 = vshrl.u32 %v12459_v8, %v418_v60  ;;  %v430_v12 = vshrl.u32 %v12463_v11, %v418_v60 }
  0xe3   :  { %v433_v15 = vshrl.u32 %v12461_v14, %v418_v60  ;;  %vm437_vm6 = vcmp.lt.s32.totalorder %v7061_v61, 3  ;;  %vm436_vm7 = vcmp.lt.s32.totalorder %v7061_v61, 2  ;;  %v7095_v34 = vsub.s32 32, %v625_v23 }
  0xe4   :  { %v422_v18 = vor.u32 %v421_v3, %v420_v63  ;;  %v425_v19 = vor.u32 %v424_v6, %v423_v1  ;;  %v428_v20 = vor.u32 %v427_v9, %v426_v7  ;;  %v431_v21 = vor.u32 %v430_v12, %v429_v10  ;;  %v7124_v1 = vpop.permute.xlu0 %294 }
  0xe5   :  { %v434_v22 = vor.u32 %v433_v15, %v432_v13  ;;  %v419_v50 = vshrl.u32 %v12470_v62, %v418_v60  ;;  %v638_v51 = vshrl.u32 %v12463_v11, %v7095_v34  ;;  %v641_v56 = vshrl.u32 %v12461_v14, %v7095_v34 }
  0xe6   :  { %v443_v24 = vsel %vm435_vm4, %v422_v18, %v425_v19  ;;  %v447_v25 = vsel %vm435_vm4, %v425_v19, %v428_v20  ;;  %v444_v27 = vsel %vm438_vm5, %v431_v21, 920167782  ;;  %v440_v49 = vsel %vm438_vm5, %v428_v20, 2102212464 }
  0xe7   :  { %v448_v28 = vsel %vm438_vm5, %v434_v22, 1326507024  ;;  %v445_v29 = vsel %vm437_vm6, %v428_v20, %v444_v27  ;;  %v439_v58 = vsel %vm435_vm4, %v419_v50, %v422_v18  ;;  %v441_v59 = vsel %vm437_vm6, %v425_v19, %v440_v49  ;;  %v262_v27 = vpop.f32.mrf.mxu1 }
  0xe8   :  { %v449_v30 = vsel %vm437_vm6, %v431_v21, %v448_v28  ;;  %v446_v32 = vsel %vm436_vm7, %v443_v24, %v445_v29  ;;  %v629_v60 = vshrl.u32 %v12467_v0, %v7095_v34  ;;  %v637_v63 = vshll.u32 %v12459_v8, %v625_v23 }
  0xe9   :  { %v450_v33 = vsel %vm436_vm7, %v447_v25, %v449_v30  ;;  %v7102_v41 = vmul.u32.u64.low %v451_v31, %v446_v32  ;;  %v7103_v47 = vmul.u32.u64.high %v451_v31, %v446_v32, %v7102_v41  ;;  %v632_v2 = vshrl.u32 %v12465_v5, %v7095_v34 }
  0xea   :  { %v7099_v39 = vmul.u32.u64.low %v451_v31, %v450_v33  ;;  %v7100_v40 = vmul.u32.u64.high %v451_v31, %v450_v33, %v7099_v39  ;;  %v635_v6 = vshrl.u32 %v12459_v8, %v7095_v34  ;;  %v640_v7 = vshll.u32 %v12463_v11, %v625_v23 }
  0xeb   :  { %v461_v3 = vadd.s32 1, %v7103_v47  ;;  %v628_v9 = vshll.u32 %v12470_v62, %v625_v23  ;;  %v639_v10 = vor.u32 %v638_v51, %v637_v63  ;;  %v7136_v12 = vmul.f32 %v7124_v1, %v178_v52 }
  0xec   :  { %vm460_vm8 = vc.u32 %v7100_v40, %v7102_v41  ;;  %v442_v13 = vsel %vm436_vm7, %v439_v58, %v441_v59  ;;  %v631_v15 = vshll.u32 %v12467_v0, %v625_v23  ;;  %v634_v17 = vshll.u32 %v12465_v5, %v625_v23 }
  0xed   :  { %v642_v18 = vor.u32 %v641_v56, %v640_v7  ;;  %v618_v19 = vand.u32 8388607, %v12455_v53  ;;  %v630_v20 = vor.u32 %v629_v60, %v628_v9  ;;  %v462_v21 = vsel %vm460_vm8, %v461_v3, %v7103_v47  ;;  %v266_v47 = vpop.f32.mrf.mxu1 }
  0xee   :  { %v633_v22 = vor.u32 %v632_v2, %v631_v15  ;;  %v636_v24 = vor.u32 %v635_v6, %v634_v17  ;;  %vm646_vm9 = vcmp.lt.s32.totalorder %v7113_v54, 4  ;;  %v458_v25 = vmul.u32 %v451_v31, %v442_v13 }
  0xef   :  { %v652_v61 = vsel %vm646_vm9, %v639_v10, 920167782  ;;  %v656_v28 = vsel %vm646_vm9, %v642_v18, 1326507024  ;;  %v7151_v23 = vmul.f32 6.2831855, %v7136_v12  ;;  %v267_v59 = vadd.f32 %v266_v47, %v7034_v36 }
  0xf0   :  { %v463_v29 = vadd.s32 %v462_v21, %v458_v25  ;;  %vm643_vm10 = vcmp.lt.s32.totalorder %v7113_v54, 1  ;;  %vm645_vm11 = vcmp.lt.s32.totalorder %v7113_v54, 3  ;;  %v619_v30 = vor.u32 8388608, %v618_v19 }
  0xf1   :  { %12653 = vst [vmem:[#allocation9_spill] sm:$0xff] %v7151_v23  ;;  %v651_v32 = vsel %vm643_vm10, %v630_v20, %v633_v22  ;;  %v653_v31 = vsel %vm645_vm11, %v636_v24, %v652_v61  ;;  %v655_v33 = vsel %vm643_vm10, %v633_v22, %v636_v24  ;;  %v657_v39 = vsel %vm645_vm11, %v639_v10, %v656_v28 }
  0xf2   :  { %vm644_vm12 = vcmp.lt.s32.totalorder %v7113_v54, 2  ;;  %v822_v49 = vand.u32 2139095040, %v7151_v23  ;;  %v464_v50 = vadd.s32 536870912, %v463_v29  ;;  %v659_v56 = vshll.u32 %v619_v30, 8 }
  0xf3   :  { %v654_v51 = vsel %vm644_vm12, %v651_v32, %v653_v31  ;;  %v658_v52 = vsel %vm644_vm12, %v655_v33, %v657_v39  ;;  %v263_v60 = vadd.f32 %v262_v27, %v7036_v37  ;;  %v648_v7 = vsel %vm646_vm9, %v636_v24, 2102212464 }
  0xf4   :  { %v823_v58 = vshrl.u32 %v822_v49, 23  ;;  %v7172_v63 = vmul.u32.u64.low %v659_v56, %v654_v51  ;;  %v7173_v3 = vmul.u32.u64.high %v659_v56, %v654_v51, %v7172_v63  ;;  %v7179_v6 = vshrl.u32 %v464_v50, 30 }
  0xf5   :  { %v7183_v9 = vmul.u32.u64.low %v659_v56, %v658_v52  ;;  %v7184_v10 = vmul.u32.u64.high %v659_v56, %v658_v52, %v7183_v9  ;;  %v627_v13 = vshrl.u32 %v12470_v62, %v7095_v34  ;;  %v7189_v15 = vmul.f32 %v7124_v1, %v267_v59 }
  0xf6   :  { %v6270_v2 = vadd.s32 4294967169, %v823_v58  ;;  %12655 = vst [vmem:[#allocation11_spill] sm:$0xff] %v7179_v6  ;;  %v649_v18 = vsel %vm645_vm11, %v633_v22, %v648_v7  ;;  %v7196_v19 = vmul.f32 6.2831855, %v7177_v26  ;;  %v466_v21 = vshll.u32 %v7179_v6, 30 }
  0xf7   :  { %12656 = vst [vmem:[#allocation12_spill] sm:$0xff] %v7189_v15  ;;  %v647_v17 = vsel %vm643_vm10, %v627_v13, %v630_v20  ;;  %v7200_v24 = vmul.f32 %v7040_v42, %v263_v60  ;;  %v12458_v34 = vand.u32 2147483647, %v7151_v23  ;;  %v7204_v27 = vmul.f32 6.2831855, %v7189_v15 }
  0xf8   :  { %v829_v37 = vadd.s32 1, %v6270_v2  ;;  %12657 = vst [vmem:[#allocation13_spill] sm:$0xff] %v7196_v19  ;;  %v650_v20 = vsel %vm644_vm12, %v647_v17, %v649_v18  ;;  %v669_v22 = vadd.s32 1, %v7173_v3  ;;  %v510_v28 = vand.u32 2139095040, %v7196_v19 }
  0xf9   :  { %12658 = vst [vmem:[#allocation14_spill] sm:$0xff] %v7200_v24  ;;  %12659 = vst [vmem:[#allocation15_spill] sm:$0xff] %v7204_v27  ;;  %v7210_v32 = vsub.s32 %v463_v29, %v466_v21  ;;  %vm668_vm14 = vc.u32 %v7184_v10, %v7172_v63  ;;  %v7215_v42 = vmul.f32 6.2831855, %v7200_v24  ;;  %v826_v31 = vand.u32 8388607, %v12458_v34 }
  0xfa   :  { %vm830_vm13 = vcmp.gt.s32.totalorder %v829_v37, 0  ;;  %v666_v33 = vmul.u32 %v659_v56, %v650_v20  ;;  %v1030_v47 = vand.u32 2139095040, %v7204_v27  ;;  %v670_v51 = vsel %vm668_vm14, %v669_v22, %v7173_v3 }
  0xfb   :  { %v831_v25 = vsel %vm830_vm13, %v829_v37, 0  ;;  %12660 = vst [vmem:[#allocation16_spill] sm:$0xff] %v7210_v32  ;;  %12661 = vst [vmem:[#allocation17_spill] sm:$0xff] %v7215_v42  ;;  %v469_v59 = vsub.s32 0, %v7210_v32  ;;  %v827_v60 = vor.u32 8388608, %v826_v31  ;;  %v511_v18 = vshrl.u32 %v510_v28, 23 }
  0xfc   :  { %v833_v61 = vand.u32 31, %v831_v25  ;;  %v832_v52 = vshrl.u32 %v831_v25, 5  ;;  %v718_v21 = vand.u32 2139095040, %v7215_v42  ;;  %v1031_v3 = vshrl.u32 %v1030_v47, 23 }
  0xfd   :  { %v7233_v25 = vadd.s32 %v670_v51, %v666_v33  ;;  %v12457_v22 = vand.u32 2147483647, %v7204_v27  ;;  %v6255_v31 = vmin.u32 %v469_v59, %v7210_v32 }
  0xfe   :  { %v834_v30 = vsub.s32 32, %v833_v61  ;;  %v836_v48 = vshll.u32 %v12470_v62, %v833_v61  ;;  %v839_v29 = vshll.u32 %v12467_v0, %v833_v61  ;;  %v842_v58 = vshll.u32 %v12465_v5, %v833_v61 }
  0xff   :  { %v845_v56 = vshll.u32 %v12459_v8, %v833_v61  ;;  %v848_v37 = vshll.u32 %v12463_v11, %v833_v61  ;;  %vm851_vm15 = vcmp.lt.s32.totalorder %v832_v52, 1  ;;  %vm854_vm0 = vcmp.lt.s32.totalorder %v832_v52, 4 }
 0x100   :  { %v837_v54 = vshrl.u32 %v12467_v0, %v834_v30  ;;  %v840_v39 = vshrl.u32 %v12465_v5, %v834_v30  ;;  %v843_v49 = vshrl.u32 %v12459_v8, %v834_v30  ;;  %v846_v50 = vshrl.u32 %v12463_v11, %v834_v30 }
 0x101   :  { %v849_v17 = vshrl.u32 %v12461_v14, %v834_v30  ;;  %vm853_vm1 = vcmp.lt.s32.totalorder %v832_v52, 3  ;;  %vm852_vm2 = vcmp.lt.s32.totalorder %v832_v52, 2  ;;  %v6278_v47 = vadd.s32 4294967169, %v1031_v3 }
 0x102   :  { %v838_v2 = vor.u32 %v837_v54, %v836_v48  ;;  %v841_v7 = vor.u32 %v840_v39, %v839_v29  ;;  %v844_v9 = vor.u32 %v843_v49, %v842_v58  ;;  %v847_v13 = vor.u32 %v846_v50, %v845_v56 }
 0x103   :  { %v850_v20 = vor.u32 %v849_v17, %v848_v37  ;;  %v867_v39 = vshll.u32 %v827_v60, 8  ;;  %v835_v48 = vshrl.u32 %v12470_v62, %v834_v30  ;;  %v1034_v58 = vand.u32 8388607, %v12457_v22  ;;  %v179_v30 = vpop.f32.mrf.mxu0 }
 0x104   :  { %v859_v54 = vsel %vm851_vm15, %v838_v2, %v841_v7  ;;  %v856_v61 = vsel %vm854_vm0, %v844_v9, 2102212464  ;;  %v860_v29 = vsel %vm854_vm0, %v847_v13, 920167782  ;;  %v863_v49 = vsel %vm851_vm15, %v841_v7, %v844_v9 }
 0x105   :  { %v861_v28 = vsel %vm853_vm1, %v844_v9, %v860_v29  ;;  %v855_v33 = vsel %vm851_vm15, %v835_v48, %v838_v2  ;;  %v864_v51 = vsel %vm854_vm0, %v850_v20, 1326507024  ;;  %v857_v56 = vsel %vm853_vm1, %v841_v7, %v856_v61 }
 0x106   :  { %v862_v50 = vsel %vm852_vm2, %v859_v54, %v861_v28  ;;  %v865_v59 = vsel %vm853_vm1, %v847_v13, %v864_v51  ;;  %v6258_v17 = vadd.s32 4294967169, %v511_v18  ;;  %v719_v29 = vshrl.u32 %v718_v21, 23 }
 0x107   :  { %v7241_v37 = vmul.u32.u64.low %v867_v39, %v862_v50  ;;  %v7242_v60 = vmul.u32.u64.high %v867_v39, %v862_v50, %v7241_v37  ;;  %v866_v4 = vsel %vm852_vm2, %v863_v49, %v865_v59  ;;  %v1037_v2 = vadd.s32 1, %v6278_v47  ;;  %v183_v50 = vpop.f32.mrf.mxu0 }
 0x108   :  { %v7246_v9 = vmul.u32.u64.low %v867_v39, %v866_v4  ;;  %v7247_v3 = vmul.u32.u64.high %v867_v39, %v866_v4, %v7246_v9  ;;  %v471_v54 = vclz %v6255_v31  ;;  %v672_v20 = vadd.s32 536870912, %v7233_v25 }
 0x109   :  { %v858_v48 = vsel %vm852_vm2, %v855_v33, %v857_v56  ;;  %v180_v7 = vadd.f32 %v179_v30, %v7034_v36  ;;  %v877_v13 = vadd.s32 1, %v7242_v60  ;;  %v1035_v61 = vor.u32 8388608, %v1034_v58 }
 0x10a   :  { %vm1038_vm3 = vcmp.gt.s32.totalorder %v1037_v2, 0  ;;  %v517_v28 = vadd.s32 1, %v6258_v17  ;;  %v6266_v49 = vadd.s32 4294967169, %v719_v29  ;;  %v874_v21 = vmul.u32 %v867_v39, %v858_v48 }
 0x10b   :  { %v1039_v18 = vsel %vm1038_vm3, %v1037_v2, 0  ;;  %vm876_vm4 = vc.u32 %v7247_v3, %v7241_v37  ;;  %v7255_v31 = vadd.s32 4294967294, %v471_v54  ;;  %v7257_v47 = vshrl.u32 %v672_v20, 30 }
 0x10c   :  { %v1041_v4 = vand.u32 31, %v1039_v18  ;;  %v878_v52 = vsel %vm876_vm4, %v877_v13, %v7242_v60  ;;  %v7261_v33 = vmul.f32 %v7124_v1, %v180_v7  ;;  %v7263_v56 = vshll.u32 %v1035_v61, 8 }
 0x10d   :  { %12662 = vst [vmem:[#allocation18_spill] sm:$0xff] %v7257_v47  ;;  %v879_v51 = vadd.s32 %v878_v52, %v874_v21  ;;  %v184_v59 = vadd.f32 %v183_v50, %v7073_v16  ;;  %vm518_vm5 = vcmp.gt.s32.totalorder %v517_v28, 0  ;;  %v1040_v39 = vshrl.u32 %v1039_v18, 5 }
 0x10e   :  { %12663 = vst [vmem:[#allocation19_spill] sm:$0xff] %v7261_v33  ;;  %v1042_v58 = vsub.s32 32, %v1041_v4  ;;  %v1044_v30 = vshll.u32 %v12470_v62, %v1041_v4  ;;  %v1047_v17 = vshll.u32 %v12467_v0, %v1041_v4  ;;  %v1050_v29 = vshll.u32 %v12465_v5, %v1041_v4 }
 0x10f   :  { %v880_v9 = vadd.s32 536870912, %v879_v51  ;;  %v1053_v54 = vshll.u32 %v12459_v8, %v1041_v4  ;;  %v1056_v7 = vshll.u32 %v12463_v11, %v1041_v4  ;;  %vm1059_vm6 = vcmp.lt.s32.totalorder %v1040_v39, 1 }
 0x110   :  { %v1045_v60 = vshrl.u32 %v12467_v0, %v1042_v58  ;;  %v1048_v2 = vshrl.u32 %v12465_v5, %v1042_v58  ;;  %v1051_v20 = vshrl.u32 %v12459_v8, %v1042_v58  ;;  %v1054_v48 = vshrl.u32 %v12463_v11, %v1042_v58 }
 0x111   :  { %v1057_v13 = vshrl.u32 %v12461_v14, %v1042_v58  ;;  %v7276_v61 = vshrl.u32 %v880_v9, 30  ;;  %v1043_v18 = vshrl.u32 %v12470_v62, %v1042_v58  ;;  %vm1061_vm7 = vcmp.lt.s32.totalorder %v1040_v39, 3 }
 0x112   :  { %v1046_v50 = vor.u32 %v1045_v60, %v1044_v30  ;;  %v1049_v21 = vor.u32 %v1048_v2, %v1047_v17  ;;  %v1052_v52 = vor.u32 %v1051_v20, %v1050_v29  ;;  %v1055_v53 = vor.u32 %v1054_v48, %v1053_v54  ;;  %v268_v48 = vpop.f32.mrf.mxu1 }
 0x113   :  { %12664 = vst [vmem:[#allocation20_spill] sm:$0xff] %v7276_v61  ;;  %v1058_v55 = vor.u32 %v1057_v13, %v1056_v7  ;;  %v882_v22 = vshll.u32 %v7276_v61, 30  ;;  %vm1062_vm8 = vcmp.lt.s32.totalorder %v1040_v39, 4  ;;  %vm1060_vm9 = vcmp.lt.s32.totalorder %v1040_v39, 2 }
 0x114   :  { %v1067_v34 = vsel %vm1059_vm6, %v1046_v50, %v1049_v21  ;;  %v1064_v8 = vsel %vm1062_vm8, %v1052_v52, 2102212464  ;;  %v1068_v4 = vsel %vm1062_vm8, %v1055_v53, 920167782  ;;  %v1071_v14 = vsel %vm1059_vm6, %v1049_v21, %v1052_v52 }
 0x115   :  { %v1072_v9 = vsel %vm1062_vm8, %v1058_v55, 1326507024  ;;  %v7282_v11 = vsub.s32 %v879_v51, %v882_v22  ;;  %v1069_v58 = vsel %vm1061_vm7, %v1052_v52, %v1068_v4  ;;  %v674_v17 = vshll.u32 %v7257_v47, 30 }
 0x116   :  { %v1073_v30 = vsel %vm1061_vm7, %v1055_v53, %v1072_v9  ;;  %v1070_v29 = vsel %vm1060_vm9, %v1067_v34, %v1069_v58  ;;  %v7290_v2 = vmul.f32 6.2831855, %v7261_v33  ;;  %v1063_v54 = vsel %vm1059_vm6, %v1043_v18, %v1046_v50  ;;  %v272_v58 = vpop.f32.mrf.mxu1 }
 0x117   :  { %v1074_v60 = vsel %vm1060_vm9, %v1071_v14, %v1073_v30  ;;  %v1065_v55 = vsel %vm1061_vm7, %v1049_v21, %v1064_v8  ;;  %v7299_v20 = vmul.u32.u64.low %v7263_v56, %v1070_v29  ;;  %v7300_v53 = vmul.u32.u64.high %v7263_v56, %v1070_v29, %v7299_v20 }
 0x118   :  { %12665 = vst [vmem:[#allocation21_spill] sm:$0xff] %v7290_v2  ;;  %v7295_v22 = vmul.u32.u64.low %v7263_v56, %v1074_v60  ;;  %v7296_v51 = vmul.u32.u64.high %v7263_v56, %v1074_v60, %v7295_v22  ;;  %vm6257_vm10 = vcmp.lt.s32.totalorder %v7255_v31, 0  ;;  %v519_v14 = vsel %vm518_vm5, %v517_v28, 0 }
 0x119   :  { %v885_v34 = vsub.s32 0, %v7282_v11  ;;  %v7307_v7 = vmul.f32 %v7097_v38, %v184_v59  ;;  %v7310_v8 = vsub.s32 %v7233_v25, %v674_v17  ;;  %v725_v13 = vadd.s32 1, %v6266_v49 }
 0x11a   :  { %v343_v18 = vsub.f32 1.0, %v7136_v12  ;;  %v1066_v50 = vsel %vm1060_vm9, %v1063_v54, %v1065_v55  ;;  %vm1084_vm11 = vc.u32 %v7296_v51, %v7299_v20  ;;  %v926_v21 = vand.u32 2139095040, %v7290_v2 }
 0x11b   :  { %12666 = vst [vmem:[#allocation22_spill] sm:$0xff] %v7310_v8  ;;  %v269_v28 = vadd.f32 %v268_v48, %v7034_v36  ;;  %v7319_v52 = vsel %vm6257_vm10, 0, %v7255_v31  ;;  %v327_v59 = vmax.f32 %v7136_v12, 0.0  ;;  %v1085_v25 = vadd.s32 1, %v7300_v53 }
 0x11c   :  { %12667 = vst [vmem:[#allocation23_spill] sm:$0xff] %v7319_v52  ;;  %v7323_v4 = vand.u32 31, %v519_v14  ;;  %v6271_v49 = vmin.u32 %v885_v34, %v7282_v11  ;;  %v1082_v39 = vmul.u32 %v7263_v56, %v1066_v50  ;;  %v7328_v9 = vmul.f32 6.2831855, %v7307_v7 }
 0x11d   :  { %v677_v30 = vsub.s32 0, %v7310_v8  ;;  %vm726_vm12 = vcmp.gt.s32.totalorder %v725_v13, 0  ;;  %v359_v36 = vmax.f32 %v343_v18, 0.0  ;;  %v1086_v31 = vsel %vm1084_vm11, %v1085_v25, %v7300_v53 }
 0x11e   :  { %12668 = vst [vmem:[#allocation24_spill] sm:$0xff] %v7323_v4  ;;  %v479_v12 = vsub.s32 4294967266, %v7319_v52  ;;  %v1087_v17 = vadd.s32 %v1086_v31, %v1082_v39  ;;  %v927_v29 = vshrl.u32 %v926_v21, 23  ;;  %v7334_v60 = vmul.f32 %v7124_v1, %v269_v28 }
 0x11f   :  { %v459_v56 = vadd.s32 %v7102_v41, %v7100_v40  ;;  %v7338_v54 = vshrl.u32 %v519_v14, 5  ;;  %v1238_v55 = vand.u32 2139095040, %v7328_v9  ;;  %v273_v22 = vadd.f32 %v272_v58, %v7073_v16 }
 0x120   :  { %12669 = vst [vmem:[#allocation25_spill] sm:$0xff] %v7334_v60  ;;  %v7344_v48 = vadd.s32 %v7172_v63, %v7184_v10  ;;  %v727_v53 = vsel %vm726_vm12, %v725_v13, 0  ;;  %v887_v34 = vclz %v6271_v49  ;;  %v1088_v18 = vadd.s32 536870912, %v1087_v17 }
 0x121   :  { %12670 = vst [vmem:[#allocation26_spill] sm:$0xff] %v7338_v54  ;;  %v6263_v50 = vmin.u32 %v677_v30, %v7310_v8  ;;  %v7348_v1 = vsub.s32 32, %v7323_v4  ;;  %v7350_v21 = vmul.f32 %v359_v36, %v327_v59  ;;  %v1239_v40 = vshrl.u32 %v1238_v55, 23 }
 0x122   :  { %12671 = vst [vmem:[#allocation27_spill] sm:$0xff] %v7344_v48  ;;  %v480_v41 = vadd.s32 127, %v479_v12  ;;  %v7352_v14 = vshrl.u32 %v1088_v18, 30  ;;  %v6274_v28 = vadd.s32 4294967169, %v927_v29  ;;  %v7355_v25 = vmul.f32 6.2831855, %v7334_v60 }
 0x123   :  { %12672 = vst [vmem:[#allocation28_spill] sm:$0xff] %v7348_v1  ;;  %12673 = vst [vmem:[#allocation29_spill] sm:$0xff] %v7350_v21  ;;  %v7357_v63 = vand.u32 31, %v727_v53  ;;  %v12469_v10 = vand.u32 2147483647, %v7328_v9  ;;  %v6286_v13 = vadd.s32 4294967169, %v1239_v40  ;;  %v7361_v49 = vmul.f32 %v7097_v38, %v273_v22 }
 0x124   :  { %12674 = vst [vmem:[#allocation30_spill] sm:$0xff] %v7352_v14  ;;  %12675 = vst [vmem:[#allocation31_spill] sm:$0xff] %v7355_v25  ;;  %v7363_v39 = vshrl.u32 %v727_v53, 5  ;;  %v6272_v59 = vadd.s32 4294967294, %v887_v34  ;;  %v345_v58 = vsub.f32 1.0, %v7189_v15  ;;  %v1090_v30 = vshll.u32 %v7352_v14, 30 }
 0x125   :  { %12676 = vst [vmem:[#allocation32_spill] sm:$0xff] %v7357_v63  ;;  %v475_v36 = vsub.s32 32, %v7319_v52  ;;  %v679_v31 = vclz %v6263_v50  ;;  %v1245_v29 = vadd.s32 1, %v6286_v13  ;;  %v481_v55 = vshll.u32 %v480_v41, 23 }
 0x126   :  { %12677 = vst [vmem:[#allocation33_spill] sm:$0xff] %v7363_v39  ;;  %v7369_v18 = vsub.s32 %v1087_v17, %v1090_v30  ;;  %v933_v40 = vadd.s32 1, %v6274_v28  ;;  %v1134_v22 = vand.u32 2139095040, %v7355_v25  ;;  %v7373_v53 = vsub.s32 32, %v7357_v63 }
 0x127   :  { %v1242_v34 = vand.u32 8388607, %v12469_v10  ;;  %vm1246_vm13 = vcmp.gt.s32.totalorder %v1245_v29, 0  ;;  %v7378_v5 = vmul.f32 6.2831855, %v7361_v49  ;;  %vm6273_vm14 = vcmp.lt.s32.totalorder %v6272_v59, 0 }
 0x128   :  { %12678 = vst [vmem:[#allocation34_spill] sm:$0xff] %v7373_v53  ;;  %v7380_v50 = vmax.f32 %v345_v58, 0.0  ;;  %v1093_v41 = vsub.s32 0, %v7369_v18  ;;  %v1247_v17 = vsel %vm1246_vm13, %v1245_v29, 0  ;;  %v7385_v13 = vshrl.u32 %v459_v56, %v475_v36 }
 0x129   :  { %12679 = vst [vmem:[#allocation35_spill] sm:$0xff] %v7378_v5  ;;  %v1249_v12 = vand.u32 31, %v1247_v17  ;;  %v7388_v0 = vor.u32 4788187, %v481_v55  ;;  %v7390_v10 = vadd.s32 4294967294, %v679_v31  ;;  %vm934_vm15 = vcmp.gt.s32.totalorder %v933_v40, 0 }
 0x12a   :  { %12680 = vst [vmem:[#allocation36_spill] sm:$0xff] %v7380_v50  ;;  %12681 = vst [vmem:[#allocation37_spill] sm:$0xff] %v7385_v13  ;;  %v1135_v62 = vshrl.u32 %v1134_v22, 23  ;;  %v7392_v44 = vsel %vm6273_vm14, 0, %v6272_v59  ;;  %v1243_v58 = vor.u32 8388608, %v1242_v34  ;;  %v6279_v47 = vmin.u32 %v1093_v41, %v7369_v18  ;;  %v185_v34 = vpop.f32.mrf.mxu0 }
 0x12b   :  { %12682 = vst [vmem:[#allocation38_spill] sm:$0xff] %v7388_v0  ;;  %12683 = vst [vmem:[#allocation39_spill] sm:$0xff] %v7390_v10  ;;  %v1250_v24 = vsub.s32 32, %v1249_v12  ;;  %v12684_v28 = vmov 683565275   ;;  %v1446_v30 = vand.u32 2139095040, %v7378_v5  ;;  %v186_v1 = vadd.f32 %v185_v34, %v7073_v16 }
 0x12c   :  { %v1252_v56 = vshll.u32 %v12684_v28, %v1249_v12  ;;  %v12685_v36 = vmov 2475754826   ;;  %v12686_v31 = vmov 2131351028   ;;  %v12687_v59 = vmov 2102212464  }
 0x12d   :  { %v1255_v43 = vshll.u32 %v12685_v36, %v1249_v12  ;;  %v1253_v55 = vshrl.u32 %v12685_v36, %v1250_v24  ;;  %v1256_v26 = vshrl.u32 %v12686_v31, %v1250_v24  ;;  %v1258_v22 = vshll.u32 %v12686_v31, %v1249_v12 }
 0x12e   :  { %v1259_v46 = vshrl.u32 %v12687_v59, %v1250_v24  ;;  %v1248_v6 = vshrl.u32 %v1247_v17, 5  ;;  %v1261_v29 = vshll.u32 %v12687_v59, %v1249_v12  ;;  %v12688_v8 = vmov 920167782  }
 0x12f   :  { %v1262_v41 = vshrl.u32 %v12688_v8, %v1250_v24  ;;  %v12689_v48 = vmov 1326507024   ;;  %v1254_v39 = vor.u32 %v1253_v55, %v1252_v56  ;;  %v1257_v53 = vor.u32 %v1256_v26, %v1255_v43 }
 0x130   :  { %v1265_v45 = vshrl.u32 %v12689_v48, %v1250_v24  ;;  %v1260_v63 = vor.u32 %v1259_v46, %v1258_v22  ;;  %v1264_v21 = vshll.u32 %v12688_v8, %v1249_v12  ;;  %v7408_v42 = vsel %vm934_vm15, %v933_v40, 0 }
 0x131   :  { %v6282_v54 = vadd.s32 4294967169, %v1135_v62  ;;  %v1263_v4 = vor.u32 %v1262_v41, %v1261_v29  ;;  %v895_v17 = vsub.s32 4294967266, %v7392_v44  ;;  %v1095_v19 = vclz %v6279_v47 }
 0x132   :  { %v1266_v14 = vor.u32 %v1265_v45, %v1264_v21  ;;  %v1447_v60 = vshrl.u32 %v1446_v30, 23  ;;  %vm1267_vm0 = vcmp.lt.s32.totalorder %v1248_v6, 1  ;;  %vm1270_vm1 = vcmp.lt.s32.totalorder %v1248_v6, 4 }
 0x133   :  { %v1283_v33 = vshll.u32 %v1243_v58, 8  ;;  %v12690_v43 = vand.u32 2147483647, %v7378_v5  ;;  %vm1269_vm2 = vcmp.lt.s32.totalorder %v1248_v6, 3  ;;  %v1272_v26 = vsel %vm1270_vm1, %v1260_v63, 2102212464 }
 0x134   :  { %v1275_v12 = vsel %vm1267_vm0, %v1254_v39, %v1257_v53  ;;  %v1276_v40 = vsel %vm1270_vm1, %v1263_v4, 920167782  ;;  %v1251_v62 = vshrl.u32 %v12684_v28, %v1250_v24  ;;  %vm1268_vm3 = vcmp.lt.s32.totalorder %v1248_v6, 2 }
 0x135   :  { %v1450_v46 = vand.u32 8388607, %v12690_v43  ;;  %v1277_v29 = vsel %vm1269_vm2, %v1260_v63, %v1276_v40  ;;  %v1279_v56 = vsel %vm1267_vm0, %v1257_v53, %v1260_v63  ;;  %v6280_v47 = vadd.s32 4294967294, %v1095_v19 }
 0x136   :  { %v1278_v45 = vsel %vm1268_vm3, %v1275_v12, %v1277_v29  ;;  %v1280_v21 = vsel %vm1270_vm1, %v1266_v14, 1326507024  ;;  %v6294_v30 = vadd.s32 4294967169, %v1447_v60  ;;  %v7418_v58 = vadd.s32 127, %v895_v17 }
 0x137   :  { %v1271_v55 = vsel %vm1267_vm0, %v1251_v62, %v1254_v39  ;;  %v1273_v22 = vsel %vm1269_vm2, %v1257_v53, %v1272_v26  ;;  %v1281_v34 = vsel %vm1269_vm2, %v1263_v4, %v1280_v21  ;;  %v7428_v19 = vadd.s32 %v7241_v37, %v7247_v3  ;;  %v274_v3 = vpop.f32.mrf.mxu1 }
 0x138   :  { %v1282_v41 = vsel %vm1268_vm3, %v1279_v56, %v1281_v34  ;;  %v7422_v43 = vmul.u32.u64.low %v1283_v33, %v1278_v45  ;;  %v7423_v0 = vmul.u32.u64.high %v1283_v33, %v1278_v45, %v7422_v43  ;;  %v1453_v24 = vadd.s32 1, %v6294_v30 }
 0x139   :  { %v7430_v63 = vmul.u32.u64.low %v1283_v33, %v1282_v41  ;;  %v7431_v14 = vmul.u32.u64.high %v1283_v33, %v1282_v41, %v7430_v63  ;;  %v1451_v60 = vor.u32 8388608, %v1450_v46  ;;  %vm6281_vm4 = vcmp.lt.s32.totalorder %v6280_v47, 0 }
 0x13a   :  { %v1274_v39 = vsel %vm1268_vm3, %v1271_v55, %v1273_v22  ;;  %vm1454_vm5 = vcmp.gt.s32.totalorder %v1453_v24, 0  ;;  %v7435_v4 = vmul.f32 %v7097_v38, %v186_v1  ;;  %v7439_v17 = vshrl.u32 %v7408_v42, 5 }
 0x13b   :  { %v1455_v37 = vsel %vm1454_vm5, %v1453_v24, 0  ;;  %v7443_v40 = vadd.s32 1, %v6282_v54  ;;  %v1293_v6 = vadd.s32 1, %v7423_v0  ;;  %v7446_v62 = vsel %vm6281_vm4, 0, %v6280_v47 }
 0x13c   :  { %12691 = vst [vmem:[#allocation40_spill] sm:$0xff] %v7435_v4  ;;  %12692 = vst [vmem:[#allocation41_spill] sm:$0xff] %v7439_v17  ;;  %v1457_v46 = vand.u32 31, %v1455_v37  ;;  %v1290_v1 = vmul.u32 %v1283_v33, %v1274_v39  ;;  %vm1292_vm6 = vc.u32 %v7431_v14, %v7422_v43  ;;  %v7450_v29 = vshll.u32 %v1451_v60, 8 }
 0x13d   :  { %v1294_v56 = vsel %vm1292_vm6, %v1293_v6, %v7423_v0  ;;  %v7454_v21 = vmul.f32 6.2831855, %v7435_v4  ;;  %v275_v54 = vadd.f32 %v274_v3, %v7073_v16  ;;  %v1456_v55 = vshrl.u32 %v1455_v37, 5 }
 0x13e   :  { %v1458_v45 = vsub.s32 32, %v1457_v46  ;;  %v1295_v30 = vadd.s32 %v1294_v56, %v1290_v1  ;;  %v1460_v22 = vshll.u32 %v12684_v28, %v1457_v46  ;;  %v1463_v47 = vshll.u32 %v12685_v36, %v1457_v46 }
 0x13f   :  { %v1466_v41 = vshll.u32 %v12686_v31, %v1457_v46  ;;  %v1469_v63 = vshll.u32 %v12687_v59, %v1457_v46  ;;  %v1472_v16 = vshll.u32 %v12688_v8, %v1457_v46  ;;  %vm1475_vm7 = vcmp.lt.s32.totalorder %v1456_v55, 1 }
 0x140   :  { %v1461_v33 = vshrl.u32 %v12685_v36, %v1458_v45  ;;  %v1464_v34 = vshrl.u32 %v12686_v31, %v1458_v45  ;;  %v1467_v0 = vshrl.u32 %v12687_v59, %v1458_v45  ;;  %v1296_v24 = vadd.s32 536870912, %v1295_v30 }
 0x141   :  { %v1470_v60 = vshrl.u32 %v12688_v8, %v1458_v45  ;;  %v1473_v6 = vshrl.u32 %v12689_v48, %v1458_v45  ;;  %v1459_v56 = vshrl.u32 %v12684_v28, %v1458_v45  ;;  %vm1476_vm8 = vcmp.lt.s32.totalorder %v1456_v55, 2 }
 0x142   :  { %v1462_v39 = vor.u32 %v1461_v33, %v1460_v22  ;;  %v1465_v37 = vor.u32 %v1464_v34, %v1463_v47  ;;  %v1468_v3 = vor.u32 %v1467_v0, %v1466_v41  ;;  %v7467_v1 = vshrl.u32 %v1296_v24, 30  ;;  %v189_v22 = vpop.f32.mrf.mxu0 }
 0x143   :  { %v1471_v12 = vor.u32 %v1470_v60, %v1469_v63  ;;  %v1474_v26 = vor.u32 %v1473_v6, %v1472_v16  ;;  %vm1477_vm9 = vcmp.lt.s32.totalorder %v1456_v55, 3  ;;  %vm1478_vm10 = vcmp.lt.s32.totalorder %v1456_v55, 4 }
 0x144   :  { %12693 = vst [vmem:[#allocation42_spill] sm:$0xff] %v7467_v1  ;;  %v1298_v53 = vshll.u32 %v7467_v1, 30  ;;  %v1480_v50 = vsel %vm1478_vm10, %v1468_v3, 2102212464  ;;  %v1483_v15 = vsel %vm1475_vm7, %v1462_v39, %v1465_v37  ;;  %v1479_v47 = vsel %vm1475_vm7, %v1459_v56, %v1462_v39 }
 0x145   :  { %v1484_v46 = vsel %vm1478_vm10, %v1471_v12, 920167782  ;;  %v1487_v34 = vsel %vm1475_vm7, %v1465_v37, %v1468_v3  ;;  %v1488_v41 = vsel %vm1478_vm10, %v1474_v26, 1326507024  ;;  %v1481_v24 = vsel %vm1477_vm9, %v1465_v37, %v1480_v50 }
 0x146   :  { %v1485_v33 = vsel %vm1477_vm9, %v1468_v3, %v1484_v46  ;;  %v7471_v0 = vsub.s32 %v1295_v30, %v1298_v53  ;;  %v1489_v63 = vsel %vm1477_vm9, %v1471_v12, %v1488_v41  ;;  %v190_v13 = vadd.f32 %v189_v22, %v7057_v57 }
 0x147   :  { %v1486_v45 = vsel %vm1476_vm8, %v1483_v15, %v1485_v33  ;;  %v1490_v60 = vsel %vm1476_vm8, %v1487_v34, %v1489_v63  ;;  %v1342_v50 = vand.u32 2139095040, %v7454_v21  ;;  %v1083_v15 = vadd.s32 %v7299_v20, %v7296_v51 }
 0x148   :  { %v7476_v16 = vmul.u32.u64.low %v7450_v29, %v1486_v45  ;;  %v7477_v6 = vmul.u32.u64.high %v7450_v29, %v1486_v45, %v7476_v16  ;;  %v1301_v39 = vsub.s32 0, %v7471_v0  ;;  %v1103_v53 = vsub.s32 4294967266, %v7446_v62 }
 0x149   :  { %v7483_v3 = vmul.u32.u64.low %v7450_v29, %v1490_v60  ;;  %v7484_v26 = vmul.u32.u64.high %v7450_v29, %v1490_v60, %v7483_v3  ;;  %v7491_v12 = vand.u32 31, %v7408_v42  ;;  %v1482_v30 = vsel %vm1476_vm8, %v1479_v47, %v1481_v24  ;;  %v278_v24 = vpop.f32.mrf.mxu1 }
 0x14a   :  { %v12695_v37 = vsub.s32 32, %v7392_v44  ;;  %v12696_v46 = vsub.f32 1.0, %v7307_v7  ;;  %v6287_v33 = vmin.u32 %v1301_v39, %v7471_v0  ;;  %v7501_v34 = vmul.f32 %v7097_v38, %v275_v54 }
 0x14b   :  { %12694 = vst [vmem:[#allocation43_spill] sm:$0xff] %v7491_v12  ;;  %v892_v51 = vshll.u32 %v7282_v11, %v7392_v44  ;;  %vm1142_vm11 = vcmp.gt.s32.totalorder %v7443_v40, 0  ;;  %v1501_v42 = vadd.s32 1, %v7477_v6  ;;  %v7508_v20 = vmul.f32 %v7032_v35, %v190_v13 }
 0x14c   :  { %v893_v56 = vshrl.u32 %v7428_v19, %v12695_v37  ;;  %v363_v22 = vmax.f32 %v12696_v46, 0.0  ;;  %12697 = vst [vmem:[#allocation44_spill] sm:$0xff] %v7501_v34  ;;  %v12698_v19 = vshll.u32 %v7418_v58, 23  ;;  %v1498_v47 = vmul.u32 %v7450_v29, %v1482_v30 }
 0x14d   :  { %vm1500_vm12 = vc.u32 %v7484_v26, %v7476_v16  ;;  %v1343_v38 = vshrl.u32 %v1342_v50, 23  ;;  %v1099_v54 = vsub.s32 32, %v7446_v62  ;;  %v1104_v41 = vadd.s32 127, %v1103_v53 }
 0x14e   :  { %v898_v55 = vor.u32 4788187, %v12698_v19  ;;  %v1303_v44 = vclz %v6287_v33  ;;  %v1502_v11 = vsel %vm1500_vm12, %v1501_v42, %v7477_v6  ;;  %v894_v45 = vor.u32 %v893_v56, %v892_v51 }
 0x14f   :  { %v349_v13 = vsub.f32 1.0, %v7361_v49  ;;  %v1503_v63 = vadd.s32 %v1502_v11, %v1498_v47  ;;  %v7519_v58 = vmul.f32 6.2831855, %v7501_v34  ;;  %v7522_v29 = vsub.s32 32, %v7491_v12 }
 0x150   :  { %v1143_v60 = vsel %vm1142_vm11, %v7443_v40, 0  ;;  %v331_v39 = vmax.f32 %v7307_v7, 0.0  ;;  %v7529_v3 = vmul.f32 6.2831855, %v7508_v20  ;;  %v899_v6 = vand.u32 2147483647, %v898_v55 }
 0x151   :  { %12699 = vst [vmem:[#allocation45_spill] sm:$0xff] %v7522_v29  ;;  %v1504_v50 = vadd.s32 536870912, %v1503_v63  ;;  %v6290_v53 = vadd.s32 4294967169, %v1343_v38  ;;  %v279_v30 = vadd.f32 %v278_v24, %v7057_v57  ;;  %v1101_v37 = vshrl.u32 %v1083_v15, %v1099_v54 }
 0x152   :  { %v1105_v56 = vshll.u32 %v1104_v41, 23  ;;  %v6288_v46 = vadd.s32 4294967294, %v1303_v44  ;;  %v333_v33 = vmax.f32 %v7361_v49, 0.0  ;;  %v901_v51 = vcvt.s32.f32 %v894_v45 }
 0x153   :  { %v7533_v42 = vmul.f32 %v363_v22, %v331_v39  ;;  %v365_v19 = vmax.f32 %v349_v13, 0.0  ;;  %v1550_v40 = vand.u32 2139095040, %v7519_v58  ;;  %v1100_v7 = vshll.u32 %v7369_v18, %v7446_v62 }
 0x154   :  { %v7538_v47 = vand.u32 31, %v1143_v60  ;;  %v12508_v55 = vand.u32 2147483647, %v7529_v3  ;;  %v1654_v38 = vand.u32 2139095040, %v7529_v3  ;;  %v7542_v15 = vmul.f32 %v901_v51, %v899_v6 }
 0x155   :  { %12700 = vst [vmem:[#allocation46_spill] sm:$0xff] %v7533_v42  ;;  %v7544_v54 = vshrl.u32 %v1504_v50, 30  ;;  %v1349_v49 = vadd.s32 1, %v6290_v53  ;;  %v7547_v22 = vmul.f32 %v7032_v35, %v279_v30  ;;  %v7549_v41 = vor.u32 %v1101_v37, %v1100_v7 }
 0x156   :  { %12701 = vst [vmem:[#allocation47_spill] sm:$0xff] %v7538_v47  ;;  %12702 = vst [vmem:[#allocation48_spill] sm:$0xff] %v7542_v15  ;;  %v7551_v44 = vor.u32 4788187, %v1105_v56  ;;  %vm6289_vm13 = vcmp.lt.s32.totalorder %v6288_v46, 0  ;;  %v1655_v18 = vshrl.u32 %v1654_v38, 23  ;;  %v7555_v11 = vmul.f32 %v365_v19, %v333_v33  ;;  %v191_v38 = vpop.f32.mrf.mxu0 }
 0x157   :  { %12703 = vst [vmem:[#allocation49_spill] sm:$0xff] %v7544_v54  ;;  %12704 = vst [vmem:[#allocation50_spill] sm:$0xff] %v7549_v41  ;;  %v7553_v62 = vshrl.u32 %v1143_v60, 5  ;;  %v1551_v24 = vshrl.u32 %v1550_v40, 23  ;;  %v351_v45 = vsub.f32 1.0, %v7508_v20  ;;  %v7559_v13 = vsub.s32 32, %v7538_v47 }
 0x158   :  { %12705 = vst [vmem:[#allocation51_spill] sm:$0xff] %v7551_v44  ;;  %12707 = vst [vmem:[#allocation53_spill] sm:$0xff] %v7555_v11  ;;  %v6302_v6 = vadd.s32 4294967169, %v1655_v18  ;;  %v1658_v50 = vand.u32 8388607, %v12508_v55  ;;  %v7564_v53 = vsel %vm6289_vm13, 0, %v6288_v46  ;;  %v7575_v19 = vadd.s32 %v7422_v43, %v7431_v14  ;;  %v280_v11 = vpop.f32.mrf.mxu1 }
 0x159   :  { %12706 = vst [vmem:[#allocation52_spill] sm:$0xff] %v7553_v62  ;;  %12708 = vst [vmem:[#allocation54_spill] sm:$0xff] %v7559_v13  ;;  %v1506_v30 = vshll.u32 %v7544_v54, 30  ;;  %vm1350_vm14 = vcmp.gt.s32.totalorder %v1349_v49, 0  ;;  %v7568_v60 = vmul.f32 6.2831855, %v7547_v22  ;;  %v7585_v43 = vadd.s32 %v7476_v16, %v7484_v26 }
 0x15a   :  { %v1661_v51 = vadd.s32 1, %v6302_v6  ;;  %v6298_v40 = vadd.s32 4294967169, %v1551_v24  ;;  %v367_v7 = vmax.f32 %v351_v45, 0.0  ;;  %v1311_v18 = vsub.s32 4294967266, %v7564_v53 }
 0x15b   :  { %v1351_v39 = vsel %vm1350_vm14, %v1349_v49, 0  ;;  %v1659_v55 = vor.u32 8388608, %v1658_v50  ;;  %v7579_v37 = vsub.s32 %v1503_v63, %v1506_v30  ;;  %v335_v56 = vmax.f32 %v7508_v20, 0.0 }
 0x15c   :  { %vm1662_vm15 = vcmp.gt.s32.totalorder %v1661_v51, 0  ;;  %v1862_v6 = vand.u32 2139095040, %v7568_v60  ;;  %v192_v45 = vadd.f32 %v191_v38, %v7057_v57  ;;  %v7589_v46 = vshrl.u32 %v1351_v39, 5 }
 0x15d   :  { %v1663_v33 = vsel %vm1662_vm15, %v1661_v51, 0  ;;  %v7591_v49 = vand.u32 31, %v1351_v39  ;;  %v1557_v63 = vadd.s32 1, %v6298_v40  ;;  %v7593_v50 = vmul.f32 %v367_v7, %v335_v56 }
 0x15e   :  { %v1665_v14 = vand.u32 31, %v1663_v33  ;;  %v1307_v20 = vsub.s32 32, %v7564_v53  ;;  %v7596_v30 = vadd.s32 127, %v1311_v18  ;;  %v7598_v52 = vshll.u32 %v1659_v55, 8 }
 0x15f   :  { %v1509_v16 = vsub.s32 0, %v7579_v37  ;;  %v1664_v26 = vshrl.u32 %v1663_v33, 5  ;;  %v1863_v38 = vshrl.u32 %v1862_v6, 23  ;;  %vm1558_vm0 = vcmp.gt.s32.totalorder %v1557_v63, 0 }
 0x160   :  { %v1666_v51 = vsub.s32 32, %v1665_v14  ;;  %v1668_v32 = vshll.u32 %v12684_v28, %v1665_v14  ;;  %v1671_v56 = vshll.u32 %v12685_v36, %v1665_v14  ;;  %v1674_v7 = vshll.u32 %v12686_v31, %v1665_v14 }
 0x161   :  { %v1677_v18 = vshll.u32 %v12687_v59, %v1665_v14  ;;  %v1680_v33 = vshll.u32 %v12688_v8, %v1665_v14  ;;  %v6295_v10 = vmin.u32 %v1509_v16, %v7579_v37  ;;  %v12709_v13 = vand.u32 2147483647, %v7568_v60 }
 0x162   :  { %v1669_v39 = vshrl.u32 %v12685_v36, %v1666_v51  ;;  %v1672_v40 = vshrl.u32 %v12686_v31, %v1666_v51  ;;  %v1675_v55 = vshrl.u32 %v12687_v59, %v1666_v51  ;;  %v1678_v27 = vshrl.u32 %v12688_v8, %v1666_v51 }
 0x163   :  { %v1681_v61 = vshrl.u32 %v12689_v48, %v1666_v51  ;;  %v1866_v47 = vand.u32 8388607, %v12709_v13  ;;  %v7616_v42 = vmul.f32 %v7032_v35, %v192_v45  ;;  %v6310_v12 = vadd.s32 4294967169, %v1863_v38 }
 0x164   :  { %v1670_v24 = vor.u32 %v1669_v39, %v1668_v32  ;;  %v1673_v6 = vor.u32 %v1672_v40, %v1671_v56  ;;  %v1676_v62 = vor.u32 %v1675_v55, %v1674_v7  ;;  %v1679_v25 = vor.u32 %v1678_v27, %v1677_v18 }
 0x165   :  { %v1682_v17 = vor.u32 %v1681_v61, %v1680_v33  ;;  %v281_v14 = vadd.f32 %v280_v11, %v7057_v57  ;;  %v1667_v32 = vshrl.u32 %v12684_v28, %v1666_v51  ;;  %vm1683_vm1 = vcmp.lt.s32.totalorder %v1664_v26, 1 }
 0x166   :  { %vm1684_vm2 = vcmp.lt.s32.totalorder %v1664_v26, 2  ;;  %vm1686_vm3 = vcmp.lt.s32.totalorder %v1664_v26, 4  ;;  %vm1685_vm4 = vcmp.lt.s32.totalorder %v1664_v26, 3  ;;  %v1691_v16 = vsel %vm1683_vm1, %v1670_v24, %v1673_v6 }
 0x167   :  { %v1688_v39 = vsel %vm1686_vm3, %v1676_v62, 2102212464  ;;  %v1692_v56 = vsel %vm1686_vm3, %v1679_v25, 920167782  ;;  %v1687_v40 = vsel %vm1683_vm1, %v1667_v32, %v1670_v24  ;;  %v1695_v55 = vsel %vm1683_vm1, %v1673_v6, %v1676_v62 }
 0x168   :  { %v1689_v7 = vsel %vm1685_vm4, %v1673_v6, %v1688_v39  ;;  %v1693_v13 = vsel %vm1685_vm4, %v1676_v62, %v1692_v56  ;;  %v1511_v45 = vclz %v6295_v10  ;;  %v1696_v61 = vsel %vm1686_vm3, %v1682_v17, 1326507024 }
 0x169   :  { %v1694_v27 = vsel %vm1684_vm2, %v1691_v16, %v1693_v13  ;;  %v1869_v38 = vadd.s32 1, %v6310_v12  ;;  %v1697_v18 = vsel %vm1685_vm4, %v1679_v25, %v1696_v61  ;;  %v1867_v51 = vor.u32 8388608, %v1866_v47 }
 0x16a   :  { %v7622_v57 = vmul.u32.u64.low %v7598_v52, %v1694_v27  ;;  %v7623_v11 = vmul.u32.u64.high %v7598_v52, %v1694_v27, %v7622_v57  ;;  %v1690_v33 = vsel %vm1684_vm2, %v1687_v40, %v1689_v7  ;;  %v1698_v29 = vsel %vm1684_vm2, %v1695_v55, %v1697_v18 }
 0x16b   :  { %vm1870_vm5 = vcmp.gt.s32.totalorder %v1869_v38, 0  ;;  %v7629_v24 = vmul.f32 6.2831855, %v7616_v42  ;;  %v7634_v17 = vmul.u32.u64.low %v7598_v52, %v1698_v29  ;;  %v7635_v25 = vmul.u32.u64.high %v7598_v52, %v1698_v29, %v7634_v17 }
 0x16c   :  { %v1871_v12 = vsel %vm1870_vm5, %v1869_v38, 0  ;;  %v1309_v62 = vshrl.u32 %v7575_v19, %v1307_v20  ;;  %v1313_v47 = vshll.u32 %v7596_v30, 23  ;;  %v7640_v6 = vsel %vm1558_vm0, %v1557_v63, 0 }
 0x16d   :  { %v1873_v26 = vand.u32 31, %v1871_v12  ;;  %v7642_v32 = vadd.s32 4294967294, %v1511_v45  ;;  %v1706_v39 = vmul.u32 %v7598_v52, %v1690_v33  ;;  %v1709_v16 = vadd.s32 1, %v7623_v11 }
 0x16e   :  { %v7646_v56 = vshll.u32 %v1867_v51, 8  ;;  %v1872_v40 = vshrl.u32 %v1871_v12, 5  ;;  %v1758_v7 = vand.u32 2139095040, %v7629_v24  ;;  %v7650_v19 = vmul.f32 %v7032_v35, %v281_v14 }
 0x16f   :  { %v1874_v29 = vsub.s32 32, %v1873_v26  ;;  %vm1708_vm6 = vc.u32 %v7635_v25, %v7622_v57  ;;  %v1876_v63 = vshll.u32 %v12684_v28, %v1873_v26  ;;  %v1879_v20 = vshll.u32 %v12685_v36, %v1873_v26 }
 0x170   :  { %v1882_v52 = vshll.u32 %v12686_v31, %v1873_v26  ;;  %v1710_v30 = vsel %vm1708_vm6, %v1709_v16, %v7623_v11  ;;  %v1885_v45 = vshll.u32 %v12687_v59, %v1873_v26  ;;  %v1888_v51 = vshll.u32 %v12688_v8, %v1873_v26 }
 0x171   :  { %v1877_v13 = vshrl.u32 %v12685_v36, %v1874_v29  ;;  %v1880_v55 = vshrl.u32 %v12686_v31, %v1874_v29  ;;  %v1711_v27 = vadd.s32 %v1710_v30, %v1706_v39  ;;  %v1875_v35 = vshrl.u32 %v12684_v28, %v1874_v29 }
 0x172   :  { %v1883_v14 = vshrl.u32 %v12687_v59, %v1874_v29  ;;  %v1886_v61 = vshrl.u32 %v12688_v8, %v1874_v29  ;;  %v1889_v33 = vshrl.u32 %v12689_v48, %v1874_v29  ;;  %vm1891_vm7 = vcmp.lt.s32.totalorder %v1872_v40, 1 }
 0x173   :  { %v1878_v38 = vor.u32 %v1877_v13, %v1876_v63  ;;  %v1881_v18 = vor.u32 %v1880_v55, %v1879_v20  ;;  %v1712_v11 = vadd.s32 536870912, %v1711_v27  ;;  %vm1892_vm8 = vcmp.lt.s32.totalorder %v1872_v40, 2 }
 0x174   :  { %v1884_v17 = vor.u32 %v1883_v14, %v1882_v52  ;;  %v1887_v12 = vor.u32 %v1886_v61, %v1885_v45  ;;  %v1890_v16 = vor.u32 %v1889_v33, %v1888_v51  ;;  %vm1893_vm9 = vcmp.lt.s32.totalorder %v1872_v40, 3 }
 0x175   :  { %vm1894_vm10 = vcmp.lt.s32.totalorder %v1872_v40, 4  ;;  %v7666_v39 = vshrl.u32 %v1712_v11, 30  ;;  %v1899_v10 = vsel %vm1891_vm7, %v1878_v38, %v1881_v18  ;;  %v1895_v41 = vsel %vm1891_vm7, %v1875_v35, %v1878_v38 }
 0x176   :  { %v1896_v30 = vsel %vm1894_vm10, %v1884_v17, 2102212464  ;;  %v1900_v2 = vsel %vm1894_vm10, %v1887_v12, 920167782  ;;  %v1903_v20 = vsel %vm1891_vm7, %v1881_v18, %v1884_v17  ;;  %v1904_v13 = vsel %vm1894_vm10, %v1890_v16, 1326507024 }
 0x177   :  { %v1901_v63 = vsel %vm1893_vm9, %v1884_v17, %v1900_v2  ;;  %v1714_v26 = vshll.u32 %v7666_v39, 30  ;;  %v1897_v29 = vsel %vm1893_vm9, %v1881_v18, %v1896_v30  ;;  %v1905_v55 = vsel %vm1893_vm9, %v1887_v12, %v1904_v13 }
 0x178   :  { %v1902_v52 = vsel %vm1892_vm8, %v1899_v10, %v1901_v63  ;;  %v1906_v45 = vsel %vm1892_vm8, %v1903_v20, %v1905_v55  ;;  %v12529_v51 = vand.u32 2147483647, %v7629_v24  ;;  %v1759_v38 = vshrl.u32 %v1758_v7, 23 }
 0x179   :  { %v7672_v14 = vmul.u32.u64.low %v7646_v56, %v1902_v52  ;;  %v7673_v61 = vmul.u32.u64.high %v7646_v56, %v1902_v52, %v7672_v14  ;;  %v7677_v33 = vsub.s32 %v1711_v27, %v1714_v26  ;;  %v1314_v18 = vor.u32 4788187, %v1313_v47 }
 0x17a   :  { %v7680_v2 = vmul.u32.u64.low %v7646_v56, %v1906_v45  ;;  %v7681_v35 = vmul.u32.u64.high %v7646_v56, %v1906_v45, %v7680_v2  ;;  %v7684_v10 = vsub.s32 32, %v7591_v49  ;;  %v1898_v11 = vsel %vm1892_vm8, %v1895_v41, %v1897_v29 }
 0x17b   :  { %v7688_v17 = vmul.f32 6.2831855, %v7650_v19  ;;  %v12710_v12 = vshll.u32 %v7471_v0, %v7564_v53  ;;  %v7694_v27 = vand.u32 31, %v7640_v6  ;;  %v1717_v30 = vsub.s32 0, %v7677_v33 }
 0x17c   :  { %v6306_v63 = vadd.s32 4294967169, %v1759_v38  ;;  %vm6297_vm11 = vcmp.lt.s32.totalorder %v7642_v32, 0  ;;  %v1917_v47 = vadd.s32 1, %v7673_v61  ;;  %v1762_v41 = vand.u32 8388607, %v12529_v51 }
 0x17d   :  { %v1310_v16 = vor.u32 %v1309_v62, %v12710_v12  ;;  %v1966_v40 = vand.u32 2139095040, %v7688_v17  ;;  %v6303_v7 = vmin.u32 %v1717_v30, %v7677_v33  ;;  %v1914_v0 = vmul.u32 %v7646_v56, %v1898_v11 }
 0x17e   :  { %vm1916_vm12 = vc.u32 %v7681_v35, %v7672_v14  ;;  %v1765_v53 = vadd.s32 1, %v6306_v63  ;;  %v1315_v62 = vand.u32 2147483647, %v1314_v18  ;;  %v353_v20 = vsub.f32 1.0, %v7547_v22 }
 0x17f   :  { %v1918_v13 = vsel %vm1916_vm12, %v1917_v47, %v7673_v61  ;;  %v1967_v26 = vshrl.u32 %v1966_v40, 23  ;;  %v1317_v29 = vcvt.s32.f32 %v1310_v16  ;;  %v1719_v52 = vclz %v6303_v7 }
 0x180   :  { %v1919_v55 = vadd.s32 %v1918_v13, %v1914_v0  ;;  %vm1766_vm13 = vcmp.gt.s32.totalorder %v1765_v53, 0  ;;  %v7711_v45 = vsel %vm6297_vm11, 0, %v7642_v32  ;;  %v1763_v38 = vor.u32 8388608, %v1762_v41 }
 0x181   :  { %v1767_v56 = vsel %vm1766_vm13, %v1765_v53, 0  ;;  %v6314_v2 = vadd.s32 4294967169, %v1967_v26  ;;  %v7714_v11 = vshrl.u32 %v7640_v6, 5  ;;  %v6304_v18 = vadd.s32 4294967294, %v1719_v52 }
 0x182   :  { %v1920_v12 = vadd.s32 536870912, %v1919_v55  ;;  %v1769_v30 = vand.u32 31, %v1767_v56  ;;  %v7716_v61 = vmul.f32 %v1317_v29, %v1315_v62  ;;  %v7719_v16 = vsub.s32 32, %v7694_v27 }
 0x183   :  { %v7721_v63 = vmax.f32 %v353_v20, 0.0  ;;  %v1973_v47 = vadd.s32 1, %v6314_v2  ;;  %vm6305_vm14 = vcmp.lt.s32.totalorder %v6304_v18, 0  ;;  %v1519_v6 = vsub.s32 4294967266, %v7711_v45 }
 0x184   :  { %v7724_v40 = vshrl.u32 %v1920_v12, 30  ;;  %v1770_v41 = vsub.s32 32, %v1769_v30  ;;  %v1707_v7 = vadd.s32 %v7622_v57, %v7635_v25  ;;  %v1722_v0 = vsel %vm6305_vm14, 0, %v6304_v18 }
 0x185   :  { %v7729_v53 = vshll.u32 %v1763_v38, 8  ;;  %v1723_v62 = vsub.s32 32, %v1722_v0  ;;  %v1727_v13 = vsub.s32 4294967266, %v1722_v0  ;;  %vm1974_vm15 = vcmp.gt.s32.totalorder %v1973_v47, 0 }
 0x186   :  { %v1922_v20 = vshll.u32 %v7724_v40, 30  ;;  %v1768_v26 = vshrl.u32 %v1767_v56, 5  ;;  %v1773_v29 = vshrl.u32 %v12685_v36, %v1770_v41  ;;  %v1776_v52 = vshrl.u32 %v12686_v31, %v1770_v41 }
 0x187   :  { %v1728_v12 = vadd.s32 127, %v1727_v13  ;;  %v1772_v57 = vshll.u32 %v12684_v28, %v1769_v30  ;;  %v1775_v25 = vshll.u32 %v12685_v36, %v1769_v30  ;;  %v1725_v38 = vshrl.u32 %v1707_v7, %v1723_v62 }
 0x188   :  { %v7735_v51 = vsub.s32 %v1919_v55, %v1922_v20  ;;  %v1975_v18 = vsel %vm1974_vm15, %v1973_v47, 0  ;;  %v1778_v32 = vshll.u32 %v12686_v31, %v1769_v30  ;;  %v1779_v44 = vshrl.u32 %v12687_v59, %v1770_v41 }
 0x189   :  { %v1724_v56 = vshll.u32 %v7677_v33, %v1722_v0  ;;  %v1729_v34 = vshll.u32 %v1728_v12, 23  ;;  %v1774_v4 = vor.u32 %v1773_v29, %v1772_v57  ;;  %v1777_v2 = vor.u32 %v1776_v52, %v1775_v25 }
 0x18a   :  { %v1925_v15 = vsub.s32 0, %v7735_v51  ;;  %v1780_v13 = vor.u32 %v1779_v44, %v1778_v32  ;;  %v1781_v55 = vshll.u32 %v12687_v59, %v1769_v30  ;;  %v1782_v20 = vshrl.u32 %v12688_v8, %v1770_v41 }
 0x18b   :  { %v1977_v7 = vand.u32 31, %v1975_v18  ;;  %v1784_v47 = vshll.u32 %v12688_v8, %v1769_v30  ;;  %v1785_v62 = vshrl.u32 %v12689_v48, %v1770_v41  ;;  %v1726_v5 = vor.u32 %v1725_v38, %v1724_v56 }
 0x18c   :  { %v6311_v54 = vmin.u32 %v1925_v15, %v7735_v51  ;;  %v1730_v23 = vor.u32 4788187, %v1729_v34  ;;  %v1771_v33 = vshrl.u32 %v12684_v28, %v1770_v41  ;;  %v1783_v0 = vor.u32 %v1782_v20, %v1781_v55 }
 0x18d   :  { %v1786_v29 = vor.u32 %v1785_v62, %v1784_v47  ;;  %vm1787_vm0 = vcmp.lt.s32.totalorder %v1768_v26, 1  ;;  %vm1790_vm1 = vcmp.lt.s32.totalorder %v1768_v26, 4  ;;  %vm1789_vm2 = vcmp.lt.s32.totalorder %v1768_v26, 3 }
 0x18e   :  { %v1927_v12 = vclz %v6311_v54  ;;  %v1792_v44 = vsel %vm1790_vm1, %v1780_v13, 2102212464  ;;  %v1795_v32 = vsel %vm1787_vm0, %v1774_v4, %v1777_v2  ;;  %v1796_v52 = vsel %vm1790_vm1, %v1783_v0, 920167782 }
 0x18f   :  { %v7749_v15 = vsub.s32 32, %v1977_v7  ;;  %vm1788_vm3 = vcmp.lt.s32.totalorder %v1768_v26, 2  ;;  %v1797_v30 = vsel %vm1789_vm2, %v1780_v13, %v1796_v52  ;;  %v1731_v25 = vand.u32 2147483647, %v1730_v23 }
 0x190   :  { %v6312_v57 = vadd.s32 4294967294, %v1927_v12  ;;  %v1798_v38 = vsel %vm1788_vm3, %v1795_v32, %v1797_v30  ;;  %v1799_v34 = vsel %vm1787_vm0, %v1777_v2, %v1780_v13  ;;  %v1800_v56 = vsel %vm1790_vm1, %v1786_v29, 1326507024 }
 0x191   :  { %v1791_v41 = vsel %vm1787_vm0, %v1771_v33, %v1774_v4  ;;  %v1793_v54 = vsel %vm1789_vm2, %v1777_v2, %v1792_v44  ;;  %v1801_v55 = vsel %vm1789_vm2, %v1783_v0, %v1800_v56  ;;  %v1516_v12 = vshll.u32 %v7579_v37, %v7711_v45 }
 0x192   :  { %vm6313_vm4 = vcmp.lt.s32.totalorder %v6312_v57, 0  ;;  %v1802_v47 = vsel %vm1788_vm3, %v1799_v34, %v1801_v55  ;;  %v7754_v62 = vmul.u32.u64.low %v7729_v53, %v1798_v38  ;;  %v7755_v1 = vmul.u32.u64.high %v7729_v53, %v1798_v38, %v7754_v62 }
 0x193   :  { %v1930_v20 = vsel %vm6313_vm4, 0, %v6312_v57  ;;  %v12711_v23 = vsub.s32 32, %v7711_v45  ;;  %v7765_v29 = vadd.s32 127, %v1519_v6  ;;  %v1733_v2 = vcvt.s32.f32 %v1726_v5 }
 0x194   :  { %v1935_v4 = vsub.s32 4294967266, %v1930_v20  ;;  %v1915_v33 = vadd.s32 %v7672_v14, %v7681_v35  ;;  %v7770_v0 = vmul.u32.u64.low %v7729_v53, %v1802_v47  ;;  %v7771_v44 = vmul.u32.u64.high %v7729_v53, %v1802_v47, %v7770_v0 }
 0x195   :  { %v7763_v13 = vshrl.u32 %v7585_v43, %v12711_v23  ;;  %v7773_v32 = vshrl.u32 %v1975_v18, 5  ;;  %v1794_v52 = vsel %vm1788_vm3, %v1791_v41, %v1793_v54  ;;  %v12712_v57 = vand.u32 2147483647, %v7688_v17 }
 0x196   :  { %v1981_v43 = vshrl.u32 %v12685_v36, %v7749_v15  ;;  %v1734_v6 = vmul.f32 %v1733_v2, %v1731_v25  ;;  %v1813_v5 = vadd.s32 1, %v7755_v1  ;;  %v1980_v38 = vshll.u32 %v12684_v28, %v1977_v7 }
 0x197   :  { %v1970_v30 = vand.u32 8388607, %v12712_v57  ;;  %v1984_v14 = vshrl.u32 %v12686_v31, %v7749_v15  ;;  %v1936_v35 = vadd.s32 127, %v1935_v4  ;;  %v1983_v18 = vshll.u32 %v12685_v36, %v1977_v7 }
 0x198   :  { %v1986_v26 = vshll.u32 %v12686_v31, %v1977_v7  ;;  %v1987_v34 = vshrl.u32 %v12687_v59, %v7749_v15  ;;  %v1931_v56 = vsub.s32 32, %v1930_v20  ;;  %v1810_v41 = vmul.u32 %v7729_v53, %v1794_v52 }
 0x199   :  { %vm1812_vm5 = vc.u32 %v7771_v44, %v7754_v62  ;;  %v1982_v25 = vor.u32 %v1981_v43, %v1980_v38  ;;  %vm1653_vm6 = vcmp.lt.s32.totalorder %v7529_v3, 0  ;;  %v1985_v55 = vor.u32 %v1984_v14, %v1983_v18 }
 0x19a   :  { %v1814_v54 = vsel %vm1812_vm5, %v1813_v5, %v7755_v1  ;;  %v1988_v47 = vor.u32 %v1987_v34, %v1986_v26  ;;  %v1989_v23 = vshll.u32 %v12687_v59, %v1977_v7  ;;  %v1990_v2 = vshrl.u32 %v12688_v8, %v7749_v15 }
 0x19b   :  { %v1815_v4 = vadd.s32 %v1814_v54, %v1810_v41  ;;  %v1992_v0 = vshll.u32 %v12688_v8, %v1977_v7  ;;  %v1993_v53 = vshrl.u32 %v12689_v48, %v7749_v15  ;;  %v1521_v52 = vshll.u32 %v7765_v29, 23 }
 0x19c   :  { %v1735_v57 = vxor.u32 2147483648, %v1734_v6  ;;  %v1932_v43 = vshll.u32 %v7735_v51, %v1930_v20  ;;  %v1937_v38 = vshll.u32 %v1936_v35, 23  ;;  %v1933_v1 = vshrl.u32 %v1915_v33, %v1931_v56 }
 0x19d   :  { %v1816_v5 = vadd.s32 536870912, %v1815_v4  ;;  %v1991_v14 = vor.u32 %v1990_v2, %v1989_v23  ;;  %v1994_v18 = vor.u32 %v1993_v53, %v1992_v0  ;;  %v1971_v26 = vor.u32 8388608, %v1970_v30 }
 0x19e   :  { %vm1995_vm7 = vcmp.lt.s32.totalorder %v7773_v32, 1  ;;  %vm1997_vm8 = vcmp.lt.s32.totalorder %v7773_v32, 3  ;;  %vm1998_vm9 = vcmp.lt.s32.totalorder %v7773_v32, 4  ;;  %vm1237_vm10 = vcmp.lt.s32.totalorder %v7328_v9, 0 }
 0x19f   :  { %v1817_v7 = vshrl.u32 %v1816_v5, 30  ;;  %v2003_v34 = vsel %vm1995_vm7, %v1982_v25, %v1985_v55  ;;  %v2004_v29 = vsel %vm1998_vm9, %v1991_v14, 920167782  ;;  %v2007_v51 = vsel %vm1995_vm7, %v1985_v55, %v1988_v47 }
 0x1a0   :  { %v1938_v20 = vor.u32 4788187, %v1937_v38  ;;  %v1979_v33 = vshrl.u32 %v12684_v28, %v7749_v15  ;;  %v2005_v30 = vsel %vm1997_vm8, %v1988_v47, %v2004_v29  ;;  %v2008_v35 = vsel %vm1998_vm9, %v1994_v18, 1326507024 }
 0x1a1   :  { %v1934_v56 = vor.u32 %v1933_v1, %v1932_v43  ;;  %v1818_v41 = vshll.u32 %v1817_v7, 30  ;;  %vm1996_vm11 = vcmp.lt.s32.totalorder %v7773_v32, 2  ;;  %v2009_v54 = vsel %vm1997_vm8, %v1991_v14, %v2008_v35 }
 0x1a2   :  { %v2000_v23 = vsel %vm1998_vm9, %v1988_v47, 2102212464  ;;  %v2006_v2 = vsel %vm1996_vm11, %v2003_v34, %v2005_v30  ;;  %v2010_v0 = vsel %vm1996_vm11, %v2007_v51, %v2009_v54  ;;  %v2011_v53 = vshll.u32 %v1971_v26, 8 }
 0x1a3   :  { %v1319_v15 = vxor.u32 2147483648, %v7716_v61  ;;  %v1518_v43 = vor.u32 %v7763_v13, %v1516_v12  ;;  %v1736_v38 = vsel %vm1653_vm6, %v1735_v57, %v1734_v6  ;;  %v7827_v1 = vsub.s32 %v1815_v4, %v1818_v41 }
 0x1a4   :  { %v1939_v47 = vand.u32 2147483647, %v1938_v20  ;;  %v1999_v5 = vsel %vm1995_vm7, %v1979_v33, %v1982_v25  ;;  %v7831_v14 = vmul.u32.u64.low %v2011_v53, %v2010_v0  ;;  %v7832_v18 = vmul.u32.u64.high %v2011_v53, %v2010_v0, %v7831_v14 }
 0x1a5   :  { %v1821_v26 = vsub.s32 0, %v7827_v1  ;;  %v2001_v34 = vsel %vm1997_vm8, %v1985_v55, %v2000_v23  ;;  %v7837_v37 = vmul.u32.u64.low %v2011_v53, %v2006_v2  ;;  %v7838_v45 = vmul.u32.u64.high %v2011_v53, %v2006_v2, %v7837_v37 }
 0x1a6   :  { %v1522_v12 = vor.u32 4788187, %v1521_v52  ;;  %v12713_v13 = vmax.f32 %v7547_v22, 0.0  ;;  %v1941_v4 = vcvt.s32.f32 %v1934_v56  ;;  %v1737_v25 = vsub.s32 4, %v7666_v39 }
 0x1a7   :  { %vm1861_vm12 = vcmp.lt.s32.totalorder %v7568_v60, 0  ;;  %v336_v57 = vmax.f32 %v7616_v42, 0.0  ;;  %v6307_v29 = vmin.u32 %v1821_v26, %v7827_v1  ;;  %v1841_v55 = vsub.s32 4, %v1817_v7 }
 0x1a8   :  { %v7844_v6 = vmul.f32 %v7721_v63, %v12713_v13  ;;  %v12714_v51 = vand.u32 2147483647, %v7529_v3  ;;  %v1942_v22 = vmul.f32 %v1941_v4, %v1939_v47  ;;  %v352_v63 = vsub.f32 1.0, %v7616_v42 }
 0x1a9   :  { %v2002_v52 = vsel %vm1996_vm11, %v1999_v5, %v2001_v34  ;;  %v7865_v30 = vsel %vm1237_vm10, %v1319_v15, %v7716_v61  ;;  %v1525_v35 = vcvt.s32.f32 %v1518_v43  ;;  %v1823_v56 = vclz %v6307_v29 }
 0x1aa   :  { %vm7852_vm13 = vcmp.le.f32.partialorder %v12714_v51, 0.7853982  ;;  %vm2020_vm14 = vc.u32 %v7832_v18, %v7837_v37  ;;  %v1523_v41 = vand.u32 2147483647, %v1522_v12  ;;  %vm1757_vm15 = vcmp.lt.s32.totalorder %v7629_v24, 0 }
 0x1ab   :  { %v1739_v33 = vsel %vm7852_vm13, %v7529_v3, %v1736_v38  ;;  %v2021_v42 = vadd.s32 1, %v7838_v45  ;;  %v1738_v32 = vsel %vm1653_vm6, %v1737_v25, %v7666_v39  ;;  %v6308_v54 = vadd.s32 4294967294, %v1823_v56 }
 0x1ac   :  { %v1842_v23 = vsel %vm1757_vm15, %v1841_v55, %v1817_v7  ;;  %v2018_v61 = vmul.u32 %v2011_v53, %v2002_v52  ;;  %6669 = vcosq.f32 %v1739_v33  ;;  %v1943_v2 = vxor.u32 2147483648, %v1942_v22 }
 0x1ad   :  { %v354_v0 = vsub.f32 1.0, %v7650_v19  ;;  %v2022_v15 = vsel %vm2020_vm14, %v2021_v42, %v7838_v45  ;;  %6671 = vsinq.f32 %v1739_v33  ;;  %v12717_v43 = vand.u32 2147483647, %v7629_v24 }
 0x1ae   :  { %vm6309_vm1 = vcmp.lt.s32.totalorder %v6308_v54, 0  ;;  %v2023_v39 = vadd.s32 %v2022_v15, %v2018_v61  ;;  %v1740_v47 = vsel %vm7852_vm13, 0, %v1738_v32  ;;  %v7886_v7 = vmul.f32 %v1525_v35, %v1523_v41 }
 0x1af   :  { %vm7880_vm0 = vcmp.le.f32.partialorder %v12717_v43, 0.7853982  ;;  %v1811_v53 = vadd.s32 %v7754_v62, %v7771_v44  ;;  %v1826_v5 = vsel %vm6309_vm1, 0, %v6308_v54  ;;  %v1945_v12 = vsub.s32 4, %v7724_v40 }
 0x1b0   :  { %v1844_v14 = vsel %vm7880_vm0, 0, %v1842_v23  ;;  %v1827_v26 = vsub.s32 32, %v1826_v5  ;;  %v1831_v34 = vsub.s32 4294967266, %v1826_v5  ;;  %v2024_v45 = vadd.s32 536870912, %v2023_v39 }
 0x1b1   :  { %v1944_v13 = vsel %vm1861_vm12, %v1943_v2, %v1942_v22  ;;  %v368_v4 = vmax.f32 %v352_v63, 0.0  ;;  %v370_v25 = vmax.f32 %v354_v0, 0.0  ;;  %v1744_v29 = vadd.s32 3, %v1740_v47 }
 0x1b2   :  { %v1828_v55 = vshll.u32 %v7827_v1, %v1826_v5  ;;  %v1829_v51 = vshrl.u32 %v1811_v53, %v1827_v26  ;;  %v1832_v20 = vadd.s32 127, %v1831_v34  ;;  %v2025_v62 = vshrl.u32 %v2024_v45, 30 }
 0x1b3   :  { %v338_v44 = vmax.f32 %v7650_v19, 0.0  ;;  %v1848_v52 = vadd.s32 3, %v1844_v14  ;;  %v12720_v33 = vand.u32 2147483647, %v7568_v60  ;;  %v1339_v56 = vand.u32 2147483647, %v7454_v21 }
 0x1b4   :  { %v1830_v22 = vor.u32 %v1829_v51, %v1828_v55  ;;  %v1833_v63 = vshll.u32 %v1832_v20, 23  ;;  %v2026_v41 = vshll.u32 %v2025_v62, 30  ;;  %v1946_v1 = vsel %vm1861_vm12, %v1945_v12, %v7724_v40 }
 0x1b5   :  { %vm7899_vm2 = vcmp.le.f32.partialorder %v12720_v33, 0.7853982  ;;  %v1527_v42 = vxor.u32 2147483648, %v7886_v7  ;;  %v7908_v32 = vmul.f32 %v368_v4, %v336_v57  ;;  %v7910_v19 = vand.u32 3, %v1744_v29 }
 0x1b6   :  { %v1947_v54 = vsel %vm7899_vm2, %v7568_v60, %v1944_v13  ;;  %v1834_v23 = vor.u32 4788187, %v1833_v63  ;;  %v7915_v61 = vmul.f32 %v370_v25, %v338_v44  ;;  %vm1965_vm3 = vcmp.lt.s32.totalorder %v7688_v17, 0 }
 0x1b7   :  { %v7918_v2 = vsub.s32 %v2023_v39, %v2026_v41  ;;  %v7920_v0 = vand.u32 3, %v1848_v52  ;;  %v2019_v40 = vadd.s32 %v7837_v37, %v7832_v18  ;;  %v1948_v57 = vsel %vm7899_vm2, 0, %v1946_v1 }
 0x1b8   :  { %v7928_v15 = vand.u32 8388607, %v1339_v56  ;;  %v1835_v43 = vand.u32 2147483647, %v1834_v23  ;;  %v1837_v47 = vcvt.s32.f32 %v1830_v22  ;;  %6673 = vcosq.f32 %v1947_v54 }
 0x1b9   :  { %v2029_v53 = vsub.s32 0, %v7918_v2  ;;  %v6670_v5 = vpop.eup %6669  ;;  %v2049_v39 = vsub.s32 4, %v2025_v62  ;;  %vm1747_vm4 = vcmp.eq.s32.totalorder %v7910_v19, 0  ;;  %vm1750_vm5 = vcmp.eq.s32.totalorder %v7910_v19, 2 }
 0x1ba   :  { %v1357_v18 = vshrl.u32 %v12685_v36, %v7684_v10  ;;  %v6672_v37 = vpop.eup %6671  ;;  %v1838_v14 = vmul.f32 %v1837_v47, %v1835_v43  ;;  %6675 = vsinq.f32 %v1947_v54  ;;  %v7936_v34 = vadd.s32 3, %v1948_v57 }
 0x1bb   :  { %v6315_v26 = vmin.u32 %v2029_v53, %v7918_v2  ;;  %v1347_v45 = vor.u32 8388608, %v7928_v15  ;;  %v1355_v12 = vshrl.u32 %v12684_v28, %v7684_v10  ;;  %v1356_v13 = vshll.u32 %v12684_v28, %v7591_v49 }
 0x1bc   :  { %v1359_v4 = vshll.u32 %v12685_v36, %v7591_v49  ;;  %v1839_v25 = vxor.u32 2147483648, %v1838_v14  ;;  %v1360_v55 = vshrl.u32 %v12686_v31, %v7684_v10  ;;  %v1363_v51 = vshrl.u32 %v12687_v59, %v7684_v10 }
 0x1bd   :  { %v2031_v29 = vclz %v6315_v26  ;;  %v7951_v20 = vsel %vm1965_vm3, %v2049_v39, %v2025_v62  ;;  %v1748_v44 = vxor.u32 2147483648, %v6672_v37  ;;  %v1751_v52 = vxor.u32 2147483648, %v6670_v5 }
 0x1be   :  { %v1358_v33 = vor.u32 %v1357_v18, %v1356_v13  ;;  %v1840_v35 = vsel %vm1757_vm15, %v1839_v25, %v1838_v14  ;;  %v1362_v63 = vshll.u32 %v12686_v31, %v7591_v49  ;;  %v1366_v41 = vshrl.u32 %v12688_v8, %v7684_v10 }
 0x1bf   :  { %v6316_v22 = vadd.s32 4294967294, %v2031_v29  ;;  %v1843_v1 = vsel %vm7880_vm0, %v7629_v24, %v1840_v35  ;;  %v12723_v62 = vand.u32 2147483647, %v7688_v17  ;;  %vm1746_vm7 = vcmp.lt.s32.totalorder %v7910_v19, 2 }
 0x1c0   :  { %v1365_v23 = vshll.u32 %v12687_v59, %v7591_v49  ;;  %v1368_v57 = vshll.u32 %v12688_v8, %v7591_v49  ;;  %v1369_v15 = vshrl.u32 %v12689_v48, %v7684_v10  ;;  %6677 = vcosq.f32 %v1843_v1 }
 0x1c1   :  { %vm7964_vm6 = vcmp.le.f32.partialorder %v12723_v62, 0.7853982  ;;  %vm6317_vm8 = vcmp.lt.s32.totalorder %v6316_v22, 0  ;;  %v1361_v38 = vor.u32 %v1360_v55, %v1359_v4  ;;  %v1364_v43 = vor.u32 %v1363_v51, %v1362_v63 }
 0x1c2   :  { %6679 = vsinq.f32 %v1843_v1  ;;  %v2034_v47 = vsel %vm6317_vm8, 0, %v6316_v22  ;;  %v1367_v53 = vor.u32 %v1366_v41, %v1365_v23  ;;  %v1370_v39 = vor.u32 %v1369_v15, %v1368_v57 }
 0x1c3   :  { %v2035_v18 = vsub.s32 32, %v2034_v47  ;;  %v2039_v14 = vsub.s32 4294967266, %v2034_v47  ;;  %vm1743_vm9 = vweird.f32 %v7529_v3  ;;  %v1749_v26 = vsel %vm1747_vm4, %v6670_v5, %v1748_v44 }
 0x1c4   :  { %v1752_v49 = vsel %vm1750_vm5, %v1751_v52, %v6672_v37  ;;  %v2036_v10 = vshll.u32 %v7918_v2, %v2034_v47  ;;  %vm1371_vm11 = vcmp.lt.s32.totalorder %v7589_v46, 1  ;;  %vm1372_vm12 = vcmp.lt.s32.totalorder %v7589_v46, 2 }
 0x1c5   :  { %vm1374_vm13 = vcmp.lt.s32.totalorder %v7589_v46, 4  ;;  %v2037_v13 = vshrl.u32 %v2019_v40, %v2035_v18  ;;  %v2040_v4 = vadd.s32 127, %v2039_v14  ;;  %v1379_v29 = vsel %vm1371_vm11, %v1358_v33, %v1361_v38  ;;  %v7984_v55 = vpop.eup %6673 }
 0x1c6   :  { %v1376_v25 = vsel %vm1374_vm13, %v1364_v43, 2102212464  ;;  %vm1373_vm14 = vcmp.lt.s32.totalorder %v7589_v46, 3  ;;  %v1380_v5 = vsel %vm1374_vm13, %v1367_v53, 920167782  ;;  %v1383_v51 = vsel %vm1371_vm11, %v1361_v38, %v1364_v43 }
 0x1c7   :  { %v1384_v44 = vsel %vm1374_vm13, %v1370_v39, 1326507024  ;;  %v2038_v37 = vor.u32 %v2037_v13, %v2036_v10  ;;  %v2041_v52 = vshll.u32 %v2040_v4, 23  ;;  %v1375_v2 = vsel %vm1371_vm11, %v1355_v12, %v1358_v33  ;;  %v7987_v22 = vpop.eup %6675 }
 0x1c8   :  { %v1381_v35 = vsel %vm1373_vm14, %v1364_v43, %v1380_v5  ;;  %vm1854_vm15 = vcmp.eq.s32.totalorder %v7920_v0, 2  ;;  %v1377_v63 = vsel %vm1373_vm14, %v1361_v38, %v1376_v25  ;;  %v1385_v41 = vsel %vm1373_vm14, %v1367_v53, %v1384_v44 }
 0x1c9   :  { %v1382_v40 = vsel %vm1372_vm12, %v1379_v29, %v1381_v35  ;;  %v1387_v1 = vshll.u32 %v1347_v45, 8  ;;  %vm1851_vm0 = vcmp.eq.s32.totalorder %v7920_v0, 0  ;;  %v2042_v62 = vor.u32 4788187, %v2041_v52 }
 0x1ca   :  { %v2052_v23 = vsel %vm7964_vm6, 0, %v7951_v20  ;;  %v1753_v12 = vsel %vm1746_vm7, %v1749_v26, %v1752_v49  ;;  %v1386_v33 = vsel %vm1372_vm12, %v1383_v51, %v1385_v41  ;;  %vm1850_vm1 = vcmp.lt.s32.totalorder %v7920_v0, 2 }
 0x1cb   :  { %v8001_v57 = vmul.u32.u64.low %v1387_v1, %v1386_v33  ;;  %v8002_v15 = vmul.u32.u64.high %v1387_v1, %v1386_v33, %v8001_v57  ;;  %v8004_v38 = vmul.u32.u64.low %v1387_v1, %v1382_v40  ;;  %v8005_v45 = vmul.u32.u64.high %v1387_v1, %v1382_v40, %v8004_v38 }
 0x1cc   :  { %vm1847_vm2 = vweird.f32 %v7629_v24  ;;  %v2043_v43 = vand.u32 2147483647, %v2042_v62  ;;  %v2045_v47 = vcvt.s32.f32 %v2038_v37  ;;  %v1378_v19 = vsel %vm1372_vm12, %v1375_v2, %v1377_v63 }
 0x1cd   :  { %v1547_v20 = vand.u32 2147483647, %v7519_v58  ;;  %v8012_v53 = vadd.s32 3, %v2052_v23  ;;  %v1754_v39 = vsel %vm1743_vm9, nan, %v1753_v12  ;;  %v8017_v18 = vand.u32 3, %v7936_v34  ;;  %v6678_v13 = vpop.eup %6677 }
 0x1ce   :  { %v1565_v14 = vshrl.u32 %v12685_v36, %v7719_v16  ;;  %v2046_v26 = vmul.f32 %v2045_v47, %v2043_v43  ;;  %v1564_v49 = vshll.u32 %v12684_v28, %v7694_v27  ;;  %v1567_v46 = vshll.u32 %v12685_v36, %v7694_v27 }
 0x1cf   :  { %v1568_v10 = vshrl.u32 %v12686_v31, %v7719_v16  ;;  %v1394_v4 = vmul.u32 %v1387_v1, %v1378_v19  ;;  %vm1396_vm4 = vc.u32 %v8002_v15, %v8004_v38  ;;  %v1397_v3 = vadd.s32 1, %v8005_v45  ;;  %v6680_v25 = vpop.eup %6679 }
 0x1d0   :  { %v1554_v34 = vand.u32 8388607, %v1547_v20  ;;  %v1855_v29 = vxor.u32 2147483648, %v6678_v13  ;;  %v2047_v5 = vxor.u32 2147483648, %v2046_v26  ;;  %v1566_v51 = vor.u32 %v1565_v14, %v1564_v49 }
 0x1d1   :  { %v1569_v44 = vor.u32 %v1568_v10, %v1567_v46  ;;  %v1852_v37 = vxor.u32 2147483648, %v6680_v25  ;;  %v1398_v52 = vsel %vm1396_vm4, %v1397_v3, %v8005_v45  ;;  %v1570_v2 = vshll.u32 %v12686_v31, %v7694_v27 }
 0x1d2   :  { %v1571_v35 = vshrl.u32 %v12687_v59, %v7719_v16  ;;  %v1856_v63 = vsel %vm1854_vm15, %v1855_v29, %v6680_v25  ;;  %v2048_v40 = vsel %vm1965_vm3, %v2047_v5, %v2046_v26  ;;  %v1399_v41 = vadd.s32 %v1398_v52, %v1394_v4 }
 0x1d3   :  { %v1573_v1 = vshll.u32 %v12687_v59, %v7694_v27  ;;  %v1853_v62 = vsel %vm1851_vm0, %v6678_v13, %v1852_v37  ;;  %v2051_v23 = vsel %vm7964_vm6, %v7688_v17, %v2048_v40  ;;  %v1574_v33 = vshrl.u32 %v12688_v8, %v7719_v16 }
 0x1d4   :  { %v1572_v12 = vor.u32 %v1571_v35, %v1570_v2  ;;  %v1857_v57 = vsel %vm1850_vm1, %v1853_v62, %v1856_v63  ;;  %6681 = vcosq.f32 %v2051_v23  ;;  %v1400_v45 = vadd.s32 536870912, %v1399_v41 }
 0x1d5   :  { %v1576_v43 = vshll.u32 %v12688_v8, %v7694_v27  ;;  %v1858_v47 = vsel %vm1847_vm2, nan, %v1857_v57  ;;  %6683 = vsinq.f32 %v2051_v23  ;;  %vm1955_vm3 = vcmp.eq.s32.totalorder %v8017_v18, 0 }
 0x1d6   :  { %vm1958_vm5 = vcmp.eq.s32.totalorder %v8017_v18, 2  ;;  %v1575_v54 = vor.u32 %v1574_v33, %v1573_v1  ;;  %v1577_v19 = vshrl.u32 %v12689_v48, %v7719_v16  ;;  %v8061_v0 = vmul.f32 %v1858_v47, %v7908_v32 }
 0x1d7   :  { %v8064_v14 = vmul.f32 %v1754_v39, %v7593_v50  ;;  %v1959_v27 = vxor.u32 2147483648, %v7984_v55  ;;  %v8067_v26 = vshrl.u32 %v1400_v45, 30  ;;  %v1956_v24 = vxor.u32 2147483648, %v7987_v22 }
 0x1d8   :  { %12726 = vst [vmem:[#allocation55_spill] sm:$0xff] %v8061_v0  ;;  %v1555_v49 = vor.u32 8388608, %v1554_v34  ;;  %v1578_v46 = vor.u32 %v1577_v19, %v1576_v43  ;;  %vm1579_vm6 = vcmp.lt.s32.totalorder %v7714_v11, 1  ;;  %2148 = vmatprep.subr.mxu0 %v8061_v0  ;;  %vm1581_vm7 = vcmp.lt.s32.totalorder %v7714_v11, 3 }
 0x1d9   :  { %12727 = vst [vmem:[#allocation56_spill] sm:$0xff] %v8064_v14  ;;  %v1402_v10 = vshll.u32 %v8067_v26, 30  ;;  %vm1582_vm8 = vcmp.lt.s32.totalorder %v7714_v11, 4  ;;  %v1587_v50 = vsel %vm1579_vm6, %v1566_v51, %v1569_v44  ;;  %2149 = vmatpush1.msra.mxu0 %v8064_v14  ;;  %v1591_v13 = vsel %vm1579_vm6, %v1569_v44, %v1572_v12 }
 0x1da   :  { %v1584_v32 = vsel %vm1582_vm8, %v1572_v12, 2102212464  ;;  %v1588_v39 = vsel %vm1582_vm8, %v1575_v54, 920167782  ;;  %v1592_v4 = vsel %vm1582_vm8, %v1578_v46, 1326507024  ;;  %v1563_v34 = vshrl.u32 %v12684_v28, %v7719_v16 }
 0x1db   :  { %v8080_v3 = vsub.s32 %v1399_v41, %v1402_v10  ;;  %vm1580_vm9 = vcmp.lt.s32.totalorder %v7714_v11, 2  ;;  %v1589_v25 = vsel %vm1581_vm7, %v1572_v12, %v1588_v39  ;;  %v2057_v29 = vand.u32 3, %v8012_v53  ;;  %v12733_v46 = vld [vmem:[#allocation35_spill] sm:$0xff] }
 0x1dc   :  { %v1590_v5 = vsel %vm1580_vm9, %v1587_v50, %v1589_v25  ;;  %v1593_v37 = vsel %vm1581_vm7, %v1575_v54, %v1592_v4  ;;  %v1595_v52 = vshll.u32 %v1555_v49, 8  ;;  %vm1951_vm11 = vweird.f32 %v7568_v60  ;;  %v12732_v54 = vld [vmem:[#allocation9_spill] sm:$0xff] }
 0x1dd   :  { %v1405_v2 = vsub.s32 0, %v8080_v3  ;;  %v1583_v16 = vsel %vm1579_vm6, %v1563_v34, %v1566_v51  ;;  %v1585_v35 = vsel %vm1581_vm7, %v1569_v44, %v1584_v32  ;;  %v1594_v53 = vsel %vm1580_vm9, %v1591_v13, %v1593_v37 }
 0x1de   :  { %v8100_v63 = vmul.u32.u64.low %v1595_v52, %v1594_v53  ;;  %v8101_v40 = vmul.u32.u64.high %v1595_v52, %v1594_v53, %v8100_v63  ;;  %v8103_v41 = vmul.u32.u64.low %v1595_v52, %v1590_v5  ;;  %v8104_v1 = vmul.u32.u64.high %v1595_v52, %v1590_v5, %v8103_v41 }
 0x1df   :  { %vm2055_vm12 = vweird.f32 %v7688_v17  ;;  %v1957_v62 = vsel %vm1955_vm3, %v7984_v55, %v1956_v24  ;;  %v1960_v51 = vsel %vm1958_vm5, %v1959_v27, %v7987_v22  ;;  %vm1341_vm13 = vcmp.lt.s32.totalorder %v7454_v21, 0  ;;  %v12731_v55 = vld [vmem:[#allocation42_spill] sm:$0xff] }
 0x1e0   :  { %v6291_v44 = vmin.u32 %v1405_v2, %v8080_v3  ;;  %vm1954_vm14 = vcmp.lt.s32.totalorder %v8017_v18, 2  ;;  %v1586_v23 = vsel %vm1580_vm9, %v1583_v16, %v1585_v35  ;;  %v12728_v12 = vand.u32 2147483647, %v7328_v9 }
 0x1e1   :  { %v1321_v57 = vsub.s32 4, %v12731_v55  ;;  %vm2058_vm0 = vcmp.lt.s32.totalorder %v2057_v29, 2  ;;  %vm2059_vm1 = vcmp.eq.s32.totalorder %v2057_v29, 0  ;;  %v6682_v18 = vpop.eup %6681  ;;  %vm2062_vm2 = vcmp.eq.s32.totalorder %v2057_v29, 2 }
 0x1e2   :  { %vm8121_vm15 = vcmp.le.f32.partialorder %v12728_v12, 0.7853982  ;;  %v1407_v22 = vclz %v6291_v44  ;;  %v1961_v11 = vsel %vm1954_vm14, %v1957_v62, %v1960_v51  ;;  %vm1604_vm4 = vc.u32 %v8101_v40, %v8103_v41  ;;  %v6684_v47 = vpop.eup %6683  ;;  %v12738_v62 = vld [vmem:[#allocation49_spill] sm:$0xff]  ;;  %v12739_v44 = vld [vmem:[#allocation40_spill] sm:$0xff] }
 0x1e3   :  { %v1323_v45 = vsel %vm8121_vm15, %v7328_v9, %v7865_v30  ;;  %v1605_v43 = vadd.s32 1, %v8104_v1  ;;  %vm821_vm3 = vcmp.lt.s32.totalorder %v12732_v54, 0  ;;  %v2063_v19 = vxor.u32 2147483648, %v6682_v18 }
 0x1e4   :  { %v6292_v27 = vadd.s32 4294967294, %v1407_v22  ;;  %v1425_v24 = vsub.s32 4, %v8067_v26  ;;  %v1602_v49 = vmul.u32 %v1595_v52, %v1586_v23  ;;  %vm1445_vm5 = vcmp.lt.s32.totalorder %v12733_v46, 0  ;;  %v12743_v22 = vld [vmem:[#allocation44_spill] sm:$0xff] }
 0x1e5   :  { %v2060_v10 = vxor.u32 2147483648, %v6684_v47  ;;  %v1606_v30 = vsel %vm1604_vm4, %v1605_v43, %v8104_v1  ;;  %v1322_v50 = vsel %vm1237_vm10, %v1321_v57, %v12731_v55  ;;  %6685 = vcosq.f32 %v1323_v45  ;;  %v12745_v43 = vld [vmem:[#allocation51_spill] sm:$0xff] }
 0x1e6   :  { %v2064_v32 = vsel %vm2062_vm2, %v2063_v19, %v6684_v47  ;;  %vm6293_vm6 = vcmp.lt.s32.totalorder %v6292_v27, 0  ;;  %v1607_v39 = vadd.s32 %v1606_v30, %v1602_v49  ;;  %6687 = vsinq.f32 %v1323_v45  ;;  %v12747_v19 = vld [vmem:[#allocation50_spill] sm:$0xff] }
 0x1e7   :  { %v2061_v13 = vsel %vm2059_vm1, %v6682_v18, %v2060_v10  ;;  %v1962_v4 = vsel %vm1951_vm11, nan, %v1961_v11  ;;  %v1395_v34 = vadd.s32 %v8004_v38, %v8002_v15  ;;  %v1410_v25 = vsel %vm6293_vm6, 0, %v6292_v27 }
 0x1e8   :  { %v2065_v5 = vsel %vm2058_vm0, %v2061_v13, %v2064_v32  ;;  %v1411_v37 = vsub.s32 32, %v1410_v25  ;;  %v1415_v52 = vsub.s32 4294967266, %v1410_v25  ;;  %v1324_v2 = vsel %vm8121_vm15, 0, %v1322_v50 }
 0x1e9   :  { %v2066_v16 = vsel %vm2055_vm12, nan, %v2065_v5  ;;  %vm8152_vm10 = vcmp.le.f32.partialorder %v1339_v56, 0.7853982  ;;  %v1426_v60 = vsel %vm1341_vm13, %v1425_v24, %v8067_v26  ;;  %v1608_v15 = vadd.s32 536870912, %v1607_v39 }
 0x1ea   :  { %v8160_v38 = vmul.f32 %v2066_v16, %v7915_v61  ;;  %v1412_v29 = vshll.u32 %v8080_v3, %v1410_v25  ;;  %v1413_v53 = vshrl.u32 %v1395_v34, %v1411_v37  ;;  %v1416_v63 = vadd.s32 127, %v1415_v52  ;;  %v12741_v3 = vld [vmem:[#allocation48_spill] sm:$0xff] }
 0x1eb   :  { %v8164_v17 = vmul.f32 %v1962_v4, %v7844_v6  ;;  %v1609_v1 = vshrl.u32 %v1608_v15, 30  ;;  %v1328_v56 = vadd.s32 3, %v1324_v2  ;;  %v1529_v51 = vsub.s32 4, %v12738_v62 }
 0x1ec   :  { %12736 = vst [vmem:[#allocation42_spill] sm:$0xff] %v8160_v38  ;;  %v12740_v23 = vsub.f32 1.0, %v12739_v44  ;;  %2237 = vmatprep.subr.mxu1 %v8160_v38  ;;  %v1414_v26 = vor.u32 %v1413_v53, %v1412_v29  ;;  %v1417_v33 = vshll.u32 %v1416_v63, 23  ;;  %v1428_v61 = vsel %vm8152_vm10, 0, %v1426_v60 }
 0x1ed   :  { %12737 = vst [vmem:[#allocation9_spill] sm:$0xff] %v8164_v17  ;;  %v12742_v55 = vxor.u32 2147483648, %v12741_v3  ;;  %v332_v57 = vmax.f32 %v12739_v44, 0.0  ;;  %v12744_v45 = vsub.f32 1.0, %v12743_v22  ;;  %2238 = vmatpush1.msra.mxu1 %v8164_v17  ;;  %v1610_v11 = vshll.u32 %v1609_v1, 30 }
 0x1ee   :  { %v364_v12 = vmax.f32 %v12740_v23, 0.0  ;;  %v12746_v47 = vand.u32 2147483647, %v12745_v43  ;;  %v12748_v27 = vcvt.s32.f32 %v12747_v19  ;;  %v1528_v49 = vsel %vm1445_vm5, %v1527_v42, %v7886_v7 }
 0x1ef   :  { %v8177_v6 = vsel %vm821_vm3, %v12742_v55, %v12741_v3  ;;  %v366_v18 = vmax.f32 %v12744_v45, 0.0  ;;  %v334_v10 = vmax.f32 %v12743_v22, 0.0  ;;  %v1418_v30 = vor.u32 4788187, %v1417_v33 }
 0x1f0   :  { %v8187_v24 = vmul.f32 %v12748_v27, %v12746_v47  ;;  %v1432_v50 = vadd.s32 3, %v1428_v61  ;;  %v8195_v32 = vsub.s32 %v1607_v39, %v1610_v11  ;;  %v8197_v13 = vand.u32 3, %v1328_v56  ;;  %v12755_v61 = vld [vmem:[#allocation45_spill] sm:$0xff]  ;;  %v12756_v11 = vld [vmem:[#allocation43_spill] sm:$0xff] }
 0x1f1   :  { %v1530_v4 = vsel %vm1445_vm5, %v1529_v51, %v12738_v62  ;;  %v8202_v34 = vmul.f32 %v364_v12, %v332_v57  ;;  %v1419_v25 = vand.u32 2147483647, %v1418_v30  ;;  %v1421_v5 = vcvt.s32.f32 %v1414_v26 }
 0x1f2   :  { %v12749_v37 = vand.u32 2147483647, %v12733_v46  ;;  %v8210_v42 = vmul.f32 %v366_v18, %v334_v10  ;;  %v1613_v39 = vsub.s32 0, %v8195_v32  ;;  %v1633_v52 = vsub.s32 4, %v1609_v1  ;;  %v6686_v16 = vpop.eup %6685 }
 0x1f3   :  { %v1422_v60 = vmul.f32 %v1421_v5, %v1419_v25  ;;  %vm8218_vm8 = vcmp.le.f32.partialorder %v1547_v20, 0.7853982  ;;  %vm1549_vm9 = vcmp.lt.s32.totalorder %v7519_v58, 0  ;;  %v6688_v53 = vpop.eup %6687  ;;  %v8225_v63 = vand.u32 3, %v1432_v50  ;;  %v12754_v20 = vld [vmem:[#allocation21_spill] sm:$0xff] }
 0x1f4   :  { %vm8206_vm7 = vcmp.le.f32.partialorder %v12749_v37, 0.7853982  ;;  %v1603_v56 = vadd.s32 %v8103_v41, %v8101_v40  ;;  %v6299_v62 = vmin.u32 %v1613_v39, %v8195_v32  ;;  %vm1331_vm11 = vcmp.eq.s32.totalorder %v8197_v13, 0 }
 0x1f5   :  { %v1531_v2 = vsel %vm8206_vm7, %v12733_v46, %v1528_v49  ;;  %v1532_v29 = vsel %vm8206_vm7, 0, %v1530_v4  ;;  %v1423_v51 = vxor.u32 2147483648, %v1422_v60  ;;  %vm1334_vm12 = vcmp.eq.s32.totalorder %v8197_v13, 2 }
 0x1f6   :  { %6689 = vcosq.f32 %v1531_v2  ;;  %v923_v44 = vand.u32 2147483647, %v12754_v20  ;;  %v1615_v23 = vclz %v6299_v62  ;;  %v8235_v12 = vsel %vm1549_vm9, %v1633_v52, %v1609_v1 }
 0x1f7   :  { %vm1330_vm14 = vcmp.lt.s32.totalorder %v8197_v13, 2  ;;  %6691 = vsinq.f32 %v1531_v2  ;;  %v8238_v26 = vadd.s32 3, %v1532_v29  ;;  %v1424_v40 = vsel %vm1341_vm13, %v1423_v51, %v1422_v60 }
 0x1f8   :  { %v1332_v41 = vxor.u32 2147483648, %v6688_v53  ;;  %v1335_v33 = vxor.u32 2147483648, %v6686_v16  ;;  %v941_v3 = vshrl.u32 %v12685_v36, %v12755_v61  ;;  %v1427_v55 = vsel %vm8152_vm10, %v7454_v21, %v1424_v40 }
 0x1f9   :  { %v6300_v57 = vadd.s32 4294967294, %v1615_v23  ;;  %v939_v1 = vshrl.u32 %v12684_v28, %v12755_v61  ;;  %v944_v22 = vshrl.u32 %v12686_v31, %v12755_v61  ;;  %6693 = vcosq.f32 %v1427_v55 }
 0x1fa   :  { %v1636_v45 = vsel %vm8218_vm8, 0, %v8235_v12  ;;  %v930_v18 = vand.u32 8388607, %v923_v44  ;;  %v940_v43 = vshll.u32 %v12684_v28, %v12756_v11  ;;  %6695 = vsinq.f32 %v1427_v55  ;;  %v12761_v12 = vld [vmem:[#allocation47_spill] sm:$0xff] }
 0x1fb   :  { %vm6301_vm13 = vcmp.lt.s32.totalorder %v6300_v57, 0  ;;  %v943_v35 = vshll.u32 %v12685_v36, %v12756_v11  ;;  %v947_v47 = vshrl.u32 %v12687_v59, %v12755_v61  ;;  %v1333_v27 = vsel %vm1331_vm11, %v6686_v16, %v1332_v41  ;;  %v12757_v41 = vld [vmem:[#allocation41_spill] sm:$0xff] }
 0x1fc   :  { %v1618_v19 = vsel %vm6301_vm13, 0, %v6300_v57  ;;  %v1336_v49 = vsel %vm1334_vm12, %v1335_v33, %v6688_v53  ;;  %v942_v10 = vor.u32 %v941_v3, %v940_v43  ;;  %vm1327_vm15 = vweird.f32 %v7328_v9 }
 0x1fd   :  { %v1619_v30 = vsub.s32 32, %v1618_v19  ;;  %v1623_v50 = vsub.s32 4294967266, %v1618_v19  ;;  %v945_v4 = vor.u32 %v944_v22, %v943_v35  ;;  %v946_v25 = vshll.u32 %v12686_v31, %v12756_v11 }
 0x1fe   :  { %v949_v5 = vshll.u32 %v12687_v59, %v12756_v11  ;;  %v950_v37 = vshrl.u32 %v12688_v8, %v12755_v61  ;;  %v952_v7 = vshll.u32 %v12688_v8, %v12756_v11  ;;  %v953_v39 = vshrl.u32 %v12689_v48, %v12755_v61 }
 0x1ff   :  { %v1620_v52 = vshll.u32 %v8195_v32, %v1618_v19  ;;  %v1621_v2 = vshrl.u32 %v1603_v56, %v1619_v30  ;;  %v1624_v16 = vadd.s32 127, %v1623_v50  ;;  %v948_v60 = vor.u32 %v947_v47, %v946_v25 }
 0x200   :  { %v1337_v29 = vsel %vm1330_vm14, %v1333_v27, %v1336_v49  ;;  %v931_v53 = vor.u32 8388608, %v930_v18  ;;  %v951_v62 = vor.u32 %v950_v37, %v949_v5  ;;  %v954_v51 = vor.u32 %v953_v39, %v952_v7 }
 0x201   :  { %v1622_v23 = vor.u32 %v1621_v2, %v1620_v52  ;;  %v1625_v40 = vshll.u32 %v1624_v16, 23  ;;  %vm955_vm0 = vcmp.lt.s32.totalorder %v12757_v41, 1  ;;  %vm956_vm1 = vcmp.lt.s32.totalorder %v12757_v41, 2  ;;  %v12758_v52 = vld [vmem:[#allocation31_spill] sm:$0xff] }
 0x202   :  { %vm1435_vm2 = vcmp.eq.s32.totalorder %v8225_v63, 0  ;;  %vm957_vm4 = vcmp.lt.s32.totalorder %v12757_v41, 3  ;;  %vm958_vm5 = vcmp.lt.s32.totalorder %v12757_v41, 4  ;;  %v959_v32 = vsel %vm955_vm0, %v939_v1, %v942_v10 }
 0x203   :  { %v963_v56 = vsel %vm955_vm0, %v942_v10, %v945_v4  ;;  %v8285_v33 = vpop.eup %6689  ;;  %vm1434_vm6 = vcmp.lt.s32.totalorder %v8225_v63, 2  ;;  %v1626_v13 = vor.u32 4788187, %v1625_v40  ;;  %v960_v61 = vsel %vm958_vm5, %v948_v60, 2102212464 }
 0x204   :  { %v964_v3 = vsel %vm958_vm5, %v951_v62, 920167782  ;;  %v967_v55 = vsel %vm955_vm0, %v945_v4, %v948_v60  ;;  %v8288_v57 = vpop.eup %6691  ;;  %vm1431_vm10 = vweird.f32 %v7454_v21  ;;  %v961_v22 = vsel %vm957_vm4, %v945_v4, %v960_v61 }
 0x205   :  { %v965_v18 = vsel %vm957_vm4, %v948_v60, %v964_v3  ;;  %v968_v1 = vsel %vm958_vm5, %v954_v51, 1326507024  ;;  %v971_v11 = vshll.u32 %v931_v53, 8  ;;  %v1627_v43 = vand.u32 2147483647, %v1626_v13  ;;  %v12759_v53 = vld [vmem:[#allocation46_spill] sm:$0xff] }
 0x206   :  { %v1629_v35 = vcvt.s32.f32 %v1622_v23  ;;  %v966_v47 = vsel %vm956_vm1, %v963_v56, %v965_v18  ;;  %v969_v19 = vsel %vm957_vm4, %v951_v62, %v968_v1  ;;  %v1338_v27 = vsel %vm1327_vm15, nan, %v1337_v29  ;;  %v6694_v50 = vpop.eup %6693  ;;  %v12762_v18 = vld [vmem:[#allocation54_spill] sm:$0xff] }
 0x207   :  { %v970_v49 = vsel %vm956_vm1, %v967_v55, %v969_v19  ;;  %v8303_v10 = vmul.u32.u64.low %v971_v11, %v966_v47  ;;  %v8304_v30 = vmul.u32.u64.high %v971_v11, %v966_v47, %v8303_v10  ;;  %v962_v25 = vsel %vm956_vm1, %v959_v32, %v961_v22  ;;  %v6696_v7 = vpop.eup %6695 }
 0x208   :  { %v1630_v4 = vmul.f32 %v1629_v35, %v1627_v43  ;;  %v8309_v5 = vmul.u32.u64.low %v971_v11, %v970_v49  ;;  %v8310_v37 = vmul.u32.u64.high %v971_v11, %v970_v49, %v8309_v5  ;;  %vm1438_vm7 = vcmp.eq.s32.totalorder %v8225_v63, 2 }
 0x209   :  { %v1439_v9 = vxor.u32 2147483648, %v6694_v50  ;;  %v8314_v39 = vand.u32 3, %v8238_v26  ;;  %v1131_v2 = vand.u32 2147483647, %v12758_v52  ;;  %v1436_v16 = vxor.u32 2147483648, %v6696_v7 }
 0x20a   :  { %v1631_v60 = vxor.u32 2147483648, %v1630_v4  ;;  %v1640_v29 = vadd.s32 3, %v1636_v45  ;;  %v8322_v62 = vmul.f32 %v1338_v27, %v12759_v53  ;;  %v1543_v23 = vxor.u32 2147483648, %v8285_v33  ;;  %v12764_v53 = vld [vmem:[#allocation52_spill] sm:$0xff] }
 0x20b   :  { %v1440_v51 = vsel %vm1438_vm7, %v1439_v9, %v6696_v7  ;;  %v978_v40 = vmul.u32 %v971_v11, %v962_v25  ;;  %v981_v41 = vadd.s32 1, %v8304_v30  ;;  %v1437_v26 = vsel %vm1435_vm2, %v6694_v50, %v1436_v16 }
 0x20c   :  { %12760 = vst [vmem:[#allocation35_spill] sm:$0xff] %v8322_v62  ;;  %v1632_v32 = vsel %vm1549_vm9, %v1631_v60, %v1630_v4  ;;  %vm980_vm11 = vc.u32 %v8310_v37, %v8303_v10  ;;  %v1148_v45 = vshll.u32 %v12684_v28, %v12761_v12  ;;  %v1441_v56 = vsel %vm1434_vm6, %v1437_v26, %v1440_v51 }
 0x20d   :  { %v1635_v13 = vsel %vm8218_vm8, %v7519_v58, %v1632_v32  ;;  %vm1539_vm12 = vcmp.eq.s32.totalorder %v8314_v39, 0  ;;  %v982_v61 = vsel %vm980_vm11, %v981_v41, %v8304_v30  ;;  %v1138_v3 = vand.u32 8388607, %v1131_v2 }
 0x20e   :  { %v1442_v55 = vsel %vm1431_vm10, nan, %v1441_v56  ;;  %6697 = vcosq.f32 %v1635_v13  ;;  %v983_v22 = vadd.s32 %v982_v61, %v978_v40  ;;  %v1149_v63 = vshrl.u32 %v12685_v36, %v12762_v18 }
 0x20f   :  { %v8348_v1 = vmul.f32 %v1442_v55, %v8202_v34  ;;  %6699 = vsinq.f32 %v1635_v13  ;;  %v1151_v15 = vshll.u32 %v12685_v36, %v12761_v12  ;;  %v1152_v11 = vshrl.u32 %v12686_v31, %v12762_v18 }
 0x210   :  { %v1540_v43 = vxor.u32 2147483648, %v8288_v57  ;;  %v984_v35 = vadd.s32 536870912, %v983_v22  ;;  %v1154_v21 = vshll.u32 %v12686_v31, %v12761_v12  ;;  %v1155_v47 = vshrl.u32 %v12687_v59, %v12762_v18 }
 0x211   :  { %12763 = vst [vmem:[#allocation49_spill] sm:$0xff] %v8348_v1  ;;  %2150 = vmatprep.subr.mxu0 %v8348_v1  ;;  %v1150_v34 = vor.u32 %v1149_v63, %v1148_v45  ;;  %v1153_v19 = vor.u32 %v1152_v11, %v1151_v15  ;;  %v1157_v27 = vshll.u32 %v12687_v59, %v12761_v12  ;;  %v1641_v5 = vand.u32 3, %v1640_v29 }
 0x212   :  { %v1158_v49 = vshrl.u32 %v12688_v8, %v12762_v18  ;;  %2151 = vmatpush1.msra.mxu0 %v8322_v62  ;;  %v8365_v30 = vshrl.u32 %v984_v35, 30  ;;  %v1156_v50 = vor.u32 %v1155_v47, %v1154_v21  ;;  %v1160_v4 = vshll.u32 %v12688_v8, %v12761_v12 }
 0x213   :  { %v1161_v25 = vshrl.u32 %v12689_v48, %v12762_v18  ;;  %vm1542_vm8 = vcmp.eq.s32.totalorder %v8314_v39, 2  ;;  %v1139_v7 = vor.u32 8388608, %v1138_v3  ;;  %vm1163_vm9 = vcmp.lt.s32.totalorder %v12764_v53, 1 }
 0x214   :  { %v1159_v9 = vor.u32 %v1158_v49, %v1157_v27  ;;  %v986_v16 = vshll.u32 %v8365_v30, 30  ;;  %vm1166_vm14 = vcmp.lt.s32.totalorder %v12764_v53, 4  ;;  %vm1535_vm13 = vweird.f32 %v12733_v46 }
 0x215   :  { %v1162_v60 = vor.u32 %v1161_v25, %v1160_v4  ;;  %v1544_v51 = vsel %vm1542_vm8, %v1543_v23, %v8288_v57  ;;  %vm1165_vm15 = vcmp.lt.s32.totalorder %v12764_v53, 3  ;;  %v1171_v29 = vsel %vm1163_vm9, %v1150_v34, %v1153_v19  ;;  %v12769_v25 = vld [vmem:[#allocation20_spill] sm:$0xff] }
 0x216   :  { %v1172_v40 = vsel %vm1166_vm14, %v1159_v9, 920167782  ;;  %v1541_v41 = vsel %vm1539_vm12, %v8285_v33, %v1540_v43  ;;  %v8383_v26 = vsub.s32 %v983_v22, %v986_v16  ;;  %v1175_v12 = vsel %vm1163_vm9, %v1153_v19, %v1156_v50  ;;  %v12765_v22 = vld [vmem:[#allocation39_spill] sm:$0xff] }
 0x217   :  { %v1173_v32 = vsel %vm1165_vm15, %v1156_v50, %v1172_v40  ;;  %v1147_v57 = vshrl.u32 %v12684_v28, %v12762_v18  ;;  %vm1164_vm0 = vcmp.lt.s32.totalorder %v12764_v53, 2  ;;  %v1168_v23 = vsel %vm1166_vm14, %v1156_v50, 2102212464 }
 0x218   :  { %v1176_v45 = vsel %vm1166_vm14, %v1162_v60, 1326507024  ;;  %vm1639_vm1 = vweird.f32 %v7519_v58  ;;  %v989_v56 = vsub.s32 0, %v8383_v26  ;;  %v1174_v33 = vsel %vm1164_vm0, %v1171_v29, %v1173_v32  ;;  %v12770_v29 = vld [vmem:[#allocation15_spill] sm:$0xff] }
 0x219   :  { %v1177_v13 = vsel %vm1165_vm15, %v1159_v9, %v1176_v45  ;;  %v1179_v61 = vshll.u32 %v1139_v7, 8  ;;  %vm1642_vm2 = vcmp.lt.s32.totalorder %v1641_v5, 2  ;;  %vm1538_vm4 = vcmp.lt.s32.totalorder %v8314_v39, 2 }
 0x21a   :  { %v1167_v3 = vsel %vm1163_vm9, %v1147_v57, %v1150_v34  ;;  %v1178_v55 = vsel %vm1164_vm0, %v1175_v12, %v1177_v13  ;;  %vm6265_vm5 = vcmp.lt.s32.totalorder %v12765_v22, 0  ;;  %vm925_vm6 = vcmp.lt.s32.totalorder %v12754_v20, 0 }
 0x21b   :  { %v6275_v18 = vmin.u32 %v989_v56, %v8383_v26  ;;  %v1169_v63 = vsel %vm1165_vm15, %v1153_v19, %v1168_v23  ;;  %v8408_v15 = vmul.u32.u64.low %v1179_v61, %v1178_v55  ;;  %v8409_v11 = vmul.u32.u64.high %v1179_v61, %v1178_v55, %v8408_v15  ;;  %v6698_v43 = vpop.eup %6697 }
 0x21c   :  { %vm1643_vm10 = vcmp.eq.s32.totalorder %v1641_v5, 0  ;;  %v1545_v39 = vsel %vm1538_vm4, %v1541_v41, %v1544_v51  ;;  %v8411_v35 = vmul.u32.u64.low %v1179_v61, %v1174_v33  ;;  %v8412_v21 = vmul.u32.u64.high %v1179_v61, %v1174_v33, %v8411_v35  ;;  %v6700_v47 = vpop.eup %6699  ;;  %v12775_v15 = vld [vmem:[#allocation23_spill] sm:$0xff] }
 0x21d   :  { %vm1646_vm7 = vcmp.eq.s32.totalorder %v1641_v5, 2  ;;  %v1647_v34 = vxor.u32 2147483648, %v6698_v43  ;;  %v991_v27 = vclz %v6275_v18  ;;  %v12766_v49 = vand.u32 2147483647, %v12732_v54 }
 0x21e   :  { %v1644_v19 = vxor.u32 2147483648, %v6700_v47  ;;  %v1170_v4 = vsel %vm1164_vm0, %v1167_v3, %v1169_v63  ;;  %v905_v7 = vsub.s32 4, %v12769_v25  ;;  %v1546_v60 = vsel %vm1535_vm13, nan, %v1545_v39  ;;  %v12777_v39 = vld [vmem:[#allocation37_spill] sm:$0xff] }
 0x21f   :  { %vm8417_vm11 = vcmp.le.f32.partialorder %v12766_v49, 0.7853982  ;;  %v1648_v16 = vsel %vm1646_vm7, %v1647_v34, %v6700_v47  ;;  %v6276_v51 = vadd.s32 4294967294, %v991_v27  ;;  %vm1188_vm12 = vc.u32 %v8409_v11, %v8411_v35  ;;  %v12780_v34 = vld [vmem:[#allocation12_spill] sm:$0xff] }
 0x220   :  { %v907_v9 = vsel %vm8417_vm11, %v12732_v54, %v8177_v6  ;;  %vm1029_vm8 = vcmp.lt.s32.totalorder %v12770_v29, 0  ;;  %v1645_v53 = vsel %vm1643_vm10, %v6698_v43, %v1644_v19  ;;  %v1009_v40 = vsub.s32 4, %v8365_v30  ;;  %v12782_v49 = vld [vmem:[#allocation36_spill] sm:$0xff] }
 0x221   :  { %v1189_v41 = vadd.s32 1, %v8412_v21  ;;  %6701 = vcosq.f32 %v907_v9  ;;  %v1649_v32 = vsel %vm1642_vm2, %v1645_v53, %v1648_v16  ;;  %vm6277_vm9 = vcmp.lt.s32.totalorder %v6276_v51, 0 }
 0x222   :  { %v1186_v6 = vmul.u32 %v1179_v61, %v1170_v4  ;;  %6703 = vsinq.f32 %v907_v9  ;;  %v1650_v46 = vsel %vm1639_vm1, nan, %v1649_v32  ;;  %v994_v12 = vsel %vm6277_vm9, 0, %v6276_v51  ;;  %v12772_v61 = vld [vmem:[#allocation53_spill] sm:$0xff]  ;;  %v12784_v9 = vld [vmem:[#allocation19_spill] sm:$0xff] }
 0x223   :  { %v1190_v57 = vsel %vm1188_vm12, %v1189_v41, %v8412_v21  ;;  %v906_v23 = vsel %vm821_vm3, %v905_v7, %v12769_v25  ;;  %v8444_v45 = vmul.f32 %v1650_v46, %v8210_v42  ;;  %v979_v5 = vadd.s32 %v8303_v10, %v8310_v37  ;;  %v12774_v37 = vld [vmem:[#allocation16_spill] sm:$0xff]  ;;  %v12783_v25 = vld [vmem:[#allocation38_spill] sm:$0xff] }
 0x224   :  { %v995_v56 = vsub.s32 32, %v994_v12  ;;  %v999_v33 = vsub.s32 4294967266, %v994_v12  ;;  %v1111_v13 = vxor.u32 2147483648, %v8187_v24  ;;  %v8450_v58 = vmul.f32 %v1546_v60, %v12772_v61  ;;  %v12800_v61 = vld [vmem:[#allocation32_spill] sm:$0xff] }
 0x225   :  { %12771 = vst [vmem:[#allocation40_spill] sm:$0xff] %v8444_v45  ;;  %v1010_v3 = vsel %vm925_vm6, %v1009_v40, %v8365_v30  ;;  %v1191_v55 = vadd.s32 %v1190_v57, %v1186_v6  ;;  %2239 = vmatprep.subr.mxu1 %v8444_v45  ;;  %v996_v42 = vshll.u32 %v8383_v26, %v994_v12  ;;  %v908_v10 = vsel %vm8417_vm11, 0, %v906_v23  ;;  %v12785_v40 = vld [vmem:[#allocation25_spill] sm:$0xff] }
 0x226   :  { %12773 = vst [vmem:[#allocation48_spill] sm:$0xff] %v8450_v58  ;;  %v997_v18 = vshrl.u32 %v979_v5, %v995_v56  ;;  %v1000_v63 = vadd.s32 127, %v999_v33  ;;  %v12776_v43 = vshll.u32 %v12774_v37, %v12775_v15  ;;  %v8466_v47 = vsel %vm6265_vm5, 0, %v12765_v22  ;;  %2240 = vmatpush1.msra.mxu1 %v8450_v58 }
 0x227   :  { %vm8471_vm3 = vcmp.le.f32.partialorder %v923_v44, 0.7853982  ;;  %v1192_v26 = vadd.s32 536870912, %v1191_v55  ;;  %v12781_v27 = vmax.f32 %v12780_v34, 0.0  ;;  %v483_v7 = vand.u32 2147483647, %v12783_v25 }
 0x228   :  { %v478_v21 = vor.u32 %v12777_v39, %v12776_v43  ;;  %v998_v19 = vor.u32 %v997_v18, %v996_v42  ;;  %v1001_v4 = vshll.u32 %v1000_v63, 23  ;;  %v1012_v22 = vsel %vm8471_vm3, 0, %v1010_v3  ;;  %v12790_v3 = vld [vmem:[#allocation30_spill] sm:$0xff] }
 0x229   :  { %v8478_v50 = vmul.f32 %v12782_v49, %v12781_v27  ;;  %v328_v16 = vmax.f32 %v12784_v9, 0.0  ;;  %v8484_v60 = vshrl.u32 %v1192_v26, 30  ;;  %v912_v44 = vadd.s32 3, %v908_v10 }
 0x22a   :  { %v687_v51 = vsub.s32 4294967266, %v8466_v47  ;;  %v1112_v53 = vsel %vm1029_vm8, %v1111_v13, %v8187_v24  ;;  %v346_v41 = vsub.f32 1.0, %v12785_v40  ;;  %v1002_v32 = vor.u32 4788187, %v1001_v4  ;;  %v12791_v4 = vld [vmem:[#allocation13_spill] sm:$0xff] }
 0x22b   :  { %v485_v6 = vcvt.s32.f32 %v478_v21  ;;  %v12786_v46 = vsub.f32 1.0, %v12784_v9  ;;  %v1016_v57 = vadd.s32 3, %v1012_v22  ;;  %v1194_v23 = vshll.u32 %v8484_v60, 30  ;;  %v12792_v9 = vld [vmem:[#allocation28_spill] sm:$0xff] }
 0x22c   :  { %v1003_v5 = vand.u32 2147483647, %v1002_v32  ;;  %v1005_v56 = vcvt.s32.f32 %v998_v19  ;;  %v12787_v33 = vand.u32 2147483647, %v12770_v29  ;;  %v1113_v24 = vsub.s32 4, %v12790_v3 }
 0x22d   :  { %v360_v12 = vmax.f32 %v12786_v46, 0.0  ;;  %v683_v13 = vsub.s32 32, %v8466_v47  ;;  %v8502_v42 = vsub.s32 %v1191_v55, %v1194_v23  ;;  %v913_v18 = vand.u32 3, %v912_v44  ;;  %v12793_v46 = vld [vmem:[#allocation24_spill] sm:$0xff] }
 0x22e   :  { %vm8496_vm14 = vcmp.le.f32.partialorder %v12787_v33, 0.7853982  ;;  %v6702_v10 = vpop.eup %6701  ;;  %v8507_v37 = vmul.f32 %v485_v6, %v483_v7  ;;  %v8509_v15 = vadd.s32 127, %v687_v51  ;;  %v8511_v43 = vmax.f32 %v346_v41, 0.0 }
 0x22f   :  { %v1115_v63 = vsel %vm8496_vm14, %v12770_v29, %v1112_v53  ;;  %v1006_v39 = vmul.f32 %v1005_v56, %v1003_v5  ;;  %v6704_v21 = vpop.eup %6703  ;;  %v8513_v26 = vmul.f32 %v360_v12, %v328_v16  ;;  %v8515_v34 = vand.u32 3, %v1016_v57 }
 0x230   :  { %v1187_v55 = vadd.s32 %v8411_v35, %v8409_v11  ;;  %v1197_v27 = vsub.s32 0, %v8502_v42  ;;  %vm1133_vm13 = vcmp.lt.s32.totalorder %v12758_v52, 0  ;;  %v8524_v19 = vsel %vm1029_vm8, %v1113_v24, %v12790_v3 }
 0x231   :  { %v1007_v49 = vxor.u32 2147483648, %v1006_v39  ;;  %6705 = vcosq.f32 %v1115_v63  ;;  %v507_v22 = vand.u32 2147483647, %v12791_v4  ;;  %vm914_vm15 = vcmp.lt.s32.totalorder %v913_v18, 2 }
 0x232   :  { %v6283_v25 = vmin.u32 %v1197_v27, %v8502_v42  ;;  %vm915_vm0 = vcmp.eq.s32.totalorder %v913_v18, 0  ;;  %vm918_vm1 = vcmp.eq.s32.totalorder %v913_v18, 2  ;;  %6707 = vsinq.f32 %v1115_v63 }
 0x233   :  { %v1008_v11 = vsel %vm925_vm6, %v1007_v49, %v1006_v39  ;;  %v916_v35 = vxor.u32 2147483648, %v6704_v21  ;;  %v919_v7 = vxor.u32 2147483648, %v6702_v10  ;;  %v525_v16 = vshrl.u32 %v12685_v36, %v12792_v9 }
 0x234   :  { %v1011_v44 = vsel %vm8471_vm3, %v12754_v20, %v1008_v11  ;;  %v1199_v51 = vclz %v6283_v25  ;;  %v1116_v53 = vsel %vm8496_vm14, 0, %v8524_v19  ;;  %v528_v41 = vshrl.u32 %v12686_v31, %v12792_v9 }
 0x235   :  { %6709 = vcosq.f32 %v1011_v44  ;;  %v1217_v32 = vsub.s32 4, %v8484_v60  ;;  %v514_v6 = vand.u32 8388607, %v507_v22  ;;  %v524_v12 = vshll.u32 %v12684_v28, %v12793_v46 }
 0x236   :  { %6711 = vsinq.f32 %v1011_v44  ;;  %v6284_v30 = vadd.s32 4294967294, %v1199_v51  ;;  %v527_v57 = vshll.u32 %v12685_v36, %v12793_v46  ;;  %v531_v23 = vshrl.u32 %v12687_v59, %v12792_v9 }
 0x237   :  { %vm8551_vm2 = vcmp.le.f32.partialorder %v1131_v2, 0.7853982  ;;  %v917_v56 = vsel %vm915_vm0, %v6702_v10, %v916_v35  ;;  %v920_v33 = vsel %vm918_vm1, %v919_v7, %v6704_v21  ;;  %v523_v3 = vshrl.u32 %v12684_v28, %v12792_v9 }
 0x238   :  { %v526_v24 = vor.u32 %v525_v16, %v524_v12  ;;  %vm6285_vm4 = vcmp.lt.s32.totalorder %v6284_v30, 0  ;;  %v529_v63 = vor.u32 %v528_v41, %v527_v57  ;;  %v530_v39 = vshll.u32 %v12686_v31, %v12793_v46  ;;  %v12796_v57 = vld [vmem:[#allocation26_spill] sm:$0xff] }
 0x239   :  { %v534_v27 = vshrl.u32 %v12688_v8, %v12792_v9  ;;  %v1202_v2 = vsel %vm6285_vm4, 0, %v6284_v30  ;;  %vm911_vm5 = vweird.f32 %v12732_v54  ;;  %v533_v10 = vshll.u32 %v12687_v59, %v12793_v46 }
 0x23a   :  { %v536_v21 = vshll.u32 %v12688_v8, %v12793_v46  ;;  %v537_v49 = vshrl.u32 %v12689_v48, %v12792_v9  ;;  %v1203_v25 = vsub.s32 32, %v1202_v2  ;;  %v1207_v11 = vsub.s32 4294967266, %v1202_v2 }
 0x23b   :  { %v1218_v35 = vsel %vm1133_vm13, %v1217_v32, %v8484_v60  ;;  %v532_v7 = vor.u32 %v531_v23, %v530_v39  ;;  %v921_v16 = vsel %vm914_vm15, %v917_v56, %v920_v33  ;;  %v515_v44 = vor.u32 8388608, %v514_v6 }
 0x23c   :  { %v535_v51 = vor.u32 %v534_v27, %v533_v10  ;;  %v538_v41 = vor.u32 %v537_v49, %v536_v21  ;;  %vm1022_vm6 = vcmp.eq.s32.totalorder %v8515_v34, 2  ;;  %v1204_v12 = vshll.u32 %v8502_v42, %v1202_v2 }
 0x23d   :  { %v1205_v46 = vshrl.u32 %v1187_v55, %v1203_v25  ;;  %v1208_v30 = vadd.s32 127, %v1207_v11  ;;  %vm539_vm10 = vcmp.lt.s32.totalorder %v12796_v57, 1  ;;  %vm1019_vm7 = vcmp.eq.s32.totalorder %v8515_v34, 0 }
 0x23e   :  { %vm540_vm11 = vcmp.lt.s32.totalorder %v12796_v57, 2  ;;  %vm541_vm12 = vcmp.lt.s32.totalorder %v12796_v57, 3  ;;  %vm542_vm8 = vcmp.lt.s32.totalorder %v12796_v57, 4  ;;  %v547_v60 = vsel %vm539_vm10, %v526_v24, %v529_v63  ;;  %v8583_v18 = vpop.eup %6705 }
 0x23f   :  { %vm1018_vm9 = vcmp.lt.s32.totalorder %v8515_v34, 2  ;;  %v1206_v42 = vor.u32 %v1205_v46, %v1204_v12  ;;  %v1209_v55 = vshll.u32 %v1208_v30, 23  ;;  %v544_v9 = vsel %vm542_vm8, %v532_v7, 2102212464  ;;  %v8586_v6 = vpop.eup %6707 }
 0x240   :  { %v548_v32 = vsel %vm542_vm8, %v535_v51, 920167782  ;;  %vm1015_vm3 = vweird.f32 %v12754_v20  ;;  %v551_v56 = vsel %vm539_vm10, %v529_v63, %v532_v7  ;;  %v552_v33 = vsel %vm542_vm8, %v538_v41, 1326507024 }
 0x241   :  { %v549_v23 = vsel %vm541_vm12, %v532_v7, %v548_v32  ;;  %v555_v39 = vshll.u32 %v515_v44, 8  ;;  %v1210_v27 = vor.u32 4788187, %v1209_v55  ;;  %v1220_v2 = vsel %vm8551_vm2, 0, %v1218_v35 }
 0x242   :  { %v543_v10 = vsel %vm539_vm10, %v523_v3, %v526_v24  ;;  %v550_v21 = vsel %vm540_vm11, %v547_v60, %v549_v23  ;;  %v545_v49 = vsel %vm541_vm12, %v529_v63, %v544_v9  ;;  %v553_v25 = vsel %vm541_vm12, %v535_v51, %v552_v33  ;;  %v6710_v44 = vpop.eup %6709  ;;  %v12797_v60 = vld [vmem:[#allocation17_spill] sm:$0xff] }
 0x243   :  { %v8603_v11 = vmul.u32.u64.low %v555_v39, %v550_v21  ;;  %v8604_v7 = vmul.u32.u64.high %v555_v39, %v550_v21, %v8603_v11  ;;  %v1211_v41 = vand.u32 2147483647, %v1210_v27  ;;  %v1213_v12 = vcvt.s32.f32 %v1206_v42  ;;  %v6712_v24 = vpop.eup %6711  ;;  %v12798_v23 = vld [vmem:[#allocation29_spill] sm:$0xff] }
 0x244   :  { %v922_v35 = vsel %vm911_vm5, nan, %v921_v16  ;;  %v554_v3 = vsel %vm540_vm11, %v551_v56, %v553_v25  ;;  %v1023_v46 = vxor.u32 2147483648, %v6710_v44  ;;  %v715_v51 = vand.u32 2147483647, %v12797_v60 }
 0x245   :  { %v8611_v30 = vmul.u32.u64.low %v555_v39, %v554_v3  ;;  %v8612_v63 = vmul.u32.u64.high %v555_v39, %v554_v3, %v8611_v30  ;;  %v1020_v55 = vxor.u32 2147483648, %v6712_v24  ;;  %v1214_v9 = vmul.f32 %v1213_v12, %v1211_v41 }
 0x246   :  { %v1120_v42 = vadd.s32 3, %v1116_v53  ;;  %v546_v54 = vsel %vm540_vm11, %v543_v10, %v545_v49  ;;  %v1024_v16 = vsel %vm1022_vm6, %v1023_v46, %v6712_v24  ;;  %v1224_v32 = vadd.s32 3, %v1220_v2  ;;  %v12801_v53 = vld [vmem:[#allocation34_spill] sm:$0xff] }
 0x247   :  { %v8624_v56 = vmul.f32 %v922_v35, %v12798_v23  ;;  %v565_v33 = vadd.s32 1, %v8604_v7  ;;  %v1021_v27 = vsel %vm1019_vm7, %v6710_v44, %v1020_v55  ;;  %v1215_v21 = vxor.u32 2147483648, %v1214_v9 }
 0x248   :  { %v732_v19 = vshll.u32 %v12684_v28, %v12800_v61  ;;  %v733_v57 = vshrl.u32 %v12685_v36, %v12801_v53  ;;  %v1025_v10 = vsel %vm1018_vm9, %v1021_v27, %v1024_v16  ;;  %v562_v49 = vmul.u32 %v555_v39, %v546_v54 }
 0x249   :  { %12799 = vst [vmem:[#allocation44_spill] sm:$0xff] %v8624_v56  ;;  %vm564_vm14 = vc.u32 %v8612_v63, %v8603_v11  ;;  %v722_v2 = vand.u32 8388607, %v715_v51  ;;  %v1026_v25 = vsel %vm1015_vm3, nan, %v1025_v10  ;;  %v1216_v44 = vsel %vm1133_vm13, %v1215_v21, %v1214_v9  ;;  %v12803_v10 = vld [vmem:[#allocation33_spill] sm:$0xff] }
 0x24a   :  { %v566_v41 = vsel %vm564_vm14, %v565_v33, %v8604_v7  ;;  %v734_v12 = vor.u32 %v733_v57, %v732_v19  ;;  %v8645_v35 = vmul.f32 %v1026_v25, %v8513_v26  ;;  %v1219_v34 = vsel %vm8551_vm2, %v12758_v52, %v1216_v44 }
 0x24b   :  { %v567_v39 = vadd.s32 %v566_v41, %v562_v49  ;;  %v735_v3 = vshll.u32 %v12685_v36, %v12800_v61  ;;  %6713 = vcosq.f32 %v1219_v34  ;;  %v736_v20 = vshrl.u32 %v12686_v31, %v12801_v53 }
 0x24c   :  { %12802 = vst [vmem:[#allocation51_spill] sm:$0xff] %v8645_v35  ;;  %v738_v24 = vshll.u32 %v12686_v31, %v12800_v61  ;;  %v739_v7 = vshrl.u32 %v12687_v59, %v12801_v53  ;;  %2152 = vmatprep.subr.mxu0 %v8645_v35  ;;  %6715 = vsinq.f32 %v1219_v34  ;;  %v741_v5 = vshll.u32 %v12687_v59, %v12800_v61 }
 0x24d   :  { %v568_v26 = vadd.s32 536870912, %v567_v39  ;;  %v742_v46 = vshrl.u32 %v12688_v8, %v12801_v53  ;;  %2153 = vmatpush1.msra.mxu0 %v8624_v56  ;;  %v737_v30 = vor.u32 %v736_v20, %v735_v3  ;;  %v744_v9 = vshll.u32 %v12688_v8, %v12800_v61 }
 0x24e   :  { %v740_v55 = vor.u32 %v739_v7, %v738_v24  ;;  %v745_v54 = vshrl.u32 %v12689_v48, %v12801_v53  ;;  %v8668_v16 = vand.u32 3, %v1224_v32  ;;  %v1121_v23 = vand.u32 3, %v1120_v42 }
 0x24f   :  { %v8670_v33 = vshrl.u32 %v568_v26, 30  ;;  %v743_v27 = vor.u32 %v742_v46, %v741_v5  ;;  %v1127_v21 = vxor.u32 2147483648, %v8583_v18  ;;  %v723_v19 = vor.u32 8388608, %v722_v2 }
 0x250   :  { %v746_v57 = vor.u32 %v745_v54, %v744_v9  ;;  %vm747_vm13 = vcmp.lt.s32.totalorder %v12803_v10, 1  ;;  %vm749_vm15 = vcmp.lt.s32.totalorder %v12803_v10, 3  ;;  %vm750_vm0 = vcmp.lt.s32.totalorder %v12803_v10, 4 }
 0x251   :  { %v570_v49 = vshll.u32 %v8670_v33, 30  ;;  %v755_v32 = vsel %vm747_vm13, %v734_v12, %v737_v30  ;;  %v752_v61 = vsel %vm750_vm0, %v740_v55, 2102212464  ;;  %v756_v42 = vsel %vm750_vm0, %v743_v27, 920167782 }
 0x252   :  { %v759_v25 = vsel %vm747_vm13, %v737_v30, %v740_v55  ;;  %v760_v44 = vsel %vm750_vm0, %v746_v57, 1326507024  ;;  %v731_v2 = vshrl.u32 %v12684_v28, %v12801_v53  ;;  %vm748_vm1 = vcmp.lt.s32.totalorder %v12803_v10, 2 }
 0x253   :  { %v8681_v41 = vsub.s32 %v567_v39, %v570_v49  ;;  %v757_v34 = vsel %vm749_vm15, %v740_v55, %v756_v42  ;;  %v1124_v3 = vxor.u32 2147483648, %v8586_v6  ;;  %v761_v24 = vsel %vm749_vm15, %v743_v27, %v760_v44  ;;  %v12804_v27 = vld [vmem:[#allocation7_spill] sm:$0xff] }
 0x254   :  { %v758_v20 = vsel %vm748_vm1, %v755_v32, %v757_v34  ;;  %v763_v7 = vshll.u32 %v723_v19, 8  ;;  %v751_v26 = vsel %vm747_vm13, %v731_v2, %v734_v12  ;;  %v753_v53 = vsel %vm749_vm15, %v737_v30, %v752_v61 }
 0x255   :  { %v573_v39 = vsub.s32 0, %v8681_v41  ;;  %v762_v5 = vsel %vm748_vm1, %v759_v25, %v761_v24  ;;  %vm405_vm2 = vcmp.lt.s32.totalorder %v12804_v27, 0  ;;  %v330_v19 = vmax.f32 %v12785_v40, 0.0 }
 0x256   :  { %v8700_v46 = vmul.u32.u64.low %v763_v7, %v762_v5  ;;  %v8701_v55 = vmul.u32.u64.high %v763_v7, %v762_v5, %v8700_v46  ;;  %v8703_v9 = vmul.u32.u64.low %v763_v7, %v758_v20  ;;  %v8704_v54 = vmul.u32.u64.high %v763_v7, %v758_v20, %v8703_v9 }
 0x257   :  { %vm1123_vm4 = vcmp.eq.s32.totalorder %v1121_v23, 0  ;;  %vm1126_vm5 = vcmp.eq.s32.totalorder %v1121_v23, 2  ;;  %v6259_v12 = vmin.u32 %v573_v39, %v8681_v41  ;;  %v487_v30 = vxor.u32 2147483648, %v8507_v37 }
 0x258   :  { %v1125_v57 = vsel %vm1123_vm4, %v8583_v18, %v1124_v3  ;;  %v1128_v49 = vsel %vm1126_vm5, %v1127_v21, %v8586_v6  ;;  %v754_v32 = vsel %vm748_vm1, %v751_v26, %v753_v53  ;;  %v6714_v61 = vpop.eup %6713  ;;  %v689_v42 = vshll.u32 %v8509_v15, 23 }
 0x259   :  { %v378_v25 = vmul.f32 %v8511_v43, %v330_v19  ;;  %vm1122_vm6 = vcmp.lt.s32.totalorder %v1121_v23, 2  ;;  %v575_v40 = vclz %v6259_v12  ;;  %v6716_v44 = vpop.eup %6715  ;;  %vm1230_vm10 = vcmp.eq.s32.totalorder %v8668_v16, 2 }
 0x25a   :  { %v1231_v2 = vxor.u32 2147483648, %v6714_v61  ;;  %vm772_vm7 = vc.u32 %v8701_v55, %v8703_v9  ;;  %v773_v18 = vadd.s32 1, %v8704_v54  ;;  %v1228_v6 = vxor.u32 2147483648, %v6716_v44 }
 0x25b   :  { %v1129_v21 = vsel %vm1122_vm6, %v1125_v57, %v1128_v49  ;;  %v6260_v10 = vadd.s32 4294967294, %v575_v40  ;;  %v770_v34 = vmul.u32 %v763_v7, %v754_v32  ;;  %vm1227_vm11 = vcmp.eq.s32.totalorder %v8668_v16, 0 }
 0x25c   :  { %v1232_v15 = vsel %vm1230_vm10, %v1231_v2, %v6716_v44  ;;  %vm1119_vm12 = vweird.f32 %v12770_v29  ;;  %v774_v43 = vsel %vm772_vm7, %v773_v18, %v8704_v54  ;;  %vm1226_vm8 = vcmp.lt.s32.totalorder %v8668_v16, 2  ;;  %v12805_v16 = vld [vmem:[#allocation27_spill] sm:$0xff] }
 0x25d   :  { %v1229_v23 = vsel %vm1227_vm11, %v6714_v61, %v1228_v6  ;;  %vm6261_vm9 = vcmp.lt.s32.totalorder %v6260_v10, 0  ;;  %v775_v3 = vadd.s32 %v774_v43, %v770_v34  ;;  %vm1223_vm3 = vweird.f32 %v12758_v52 }
 0x25e   :  { %v1233_v20 = vsel %vm1226_vm8, %v1229_v23, %v1232_v15  ;;  %v1130_v24 = vsel %vm1119_vm12, nan, %v1129_v21  ;;  %v578_v39 = vsel %vm6261_vm9, 0, %v6260_v10  ;;  %v563_v7 = vadd.s32 %v8603_v11, %v8612_v63  ;;  %v12812_v21 = vld [vmem:[#allocation11_spill] sm:$0xff] }
 0x25f   :  { %v1234_v26 = vsel %vm1223_vm3, nan, %v1233_v20  ;;  %v579_v53 = vsub.s32 32, %v578_v39  ;;  %v583_v5 = vsub.s32 4294967266, %v578_v39  ;;  %v488_v29 = vsel %vm405_vm2, %v487_v30, %v8507_v37 }
 0x260   :  { %v685_v46 = vshrl.u32 %v12805_v16, %v683_v13  ;;  %v8734_v54 = vmul.f32 %v1234_v26, %v378_v25  ;;  %v776_v52 = vadd.s32 536870912, %v775_v3  ;;  %v8737_v19 = vmul.f32 %v1130_v24, %v8478_v50  ;;  %v12811_v13 = vld [vmem:[#allocation22_spill] sm:$0xff] }
 0x261   :  { %v580_v12 = vshll.u32 %v8681_v41, %v578_v39  ;;  %v581_v57 = vshrl.u32 %v563_v7, %v579_v53  ;;  %v584_v11 = vadd.s32 127, %v583_v5  ;;  %v690_v63 = vor.u32 4788187, %v689_v42  ;;  %v12821_v26 = vld [vmem:[#allocation18_spill] sm:$0xff] }
 0x262   :  { %12806 = vst [vmem:[#allocation50_spill] sm:$0xff] %v8734_v54  ;;  %12807 = vst [vmem:[#allocation21_spill] sm:$0xff] %v8737_v19  ;;  %2241 = vmatprep.subr.mxu1 %v8734_v54  ;;  %v8741_v49 = vshrl.u32 %v776_v52, 30  ;;  %v12808_v37 = vand.u32 2147483647, %v12804_v27  ;;  %v684_v32 = vshll.u32 %v12811_v13, %v8466_v47  ;;  %v489_v10 = vsub.s32 4, %v12812_v21 }
 0x263   :  { %2242 = vmatpush1.msra.mxu1 %v8737_v19  ;;  %v582_v50 = vor.u32 %v581_v57, %v580_v12  ;;  %v585_v41 = vshll.u32 %v584_v11, 23  ;;  %v691_v44 = vand.u32 2147483647, %v690_v63  ;;  %v593_v24 = vsub.s32 4, %v8670_v33  ;;  %v12815_v52 = vld [vmem:[#allocation8_spill] sm:$0xff] }
 0x264   :  { %vm8745_vm14 = vcmp.le.f32.partialorder %v12808_v37, 0.7853982  ;;  %v778_v42 = vshll.u32 %v8741_v49, 30  ;;  %v686_v25 = vor.u32 %v685_v46, %v684_v32  ;;  %v490_v39 = vsel %vm405_vm2, %v489_v10, %v12812_v21  ;;  %v12816_v32 = vld [vmem:[#allocation10_spill] sm:$0xff] }
 0x265   :  { %v491_v61 = vsel %vm8745_vm14, %v12804_v27, %v488_v29  ;;  %v586_v40 = vor.u32 4788187, %v585_v41  ;;  %v589_v6 = vcvt.s32.f32 %v582_v50  ;;  %vm509_vm13 = vcmp.lt.s32.totalorder %v12791_v4, 0 }
 0x266   :  { %v779_v2 = vsub.s32 %v775_v3, %v778_v42  ;;  %6717 = vcosq.f32 %v491_v61  ;;  %v693_v34 = vcvt.s32.f32 %v686_v25  ;;  %vm8764_vm15 = vcmp.le.f32.partialorder %v507_v22, 0.7853982 }
 0x267   :  { %v587_v18 = vand.u32 2147483647, %v586_v40  ;;  %6719 = vsinq.f32 %v491_v61  ;;  %v492_v29 = vsel %vm8745_vm14, 0, %v490_v39  ;;  %v594_v46 = vsel %vm509_vm13, %v593_v24, %v8670_v33 }
 0x268   :  { %v781_v47 = vsub.s32 0, %v779_v2  ;;  %v694_v23 = vmul.f32 %v693_v34, %v691_v44  ;;  %vm613_vm1 = vcmp.lt.s32.totalorder %v12815_v52, 0  ;;  %v496_v12 = vadd.s32 3, %v492_v29 }
 0x269   :  { %v590_v15 = vmul.f32 %v589_v6, %v587_v18  ;;  %v596_v57 = vsel %vm8764_vm15, 0, %v594_v46  ;;  %v771_v11 = vadd.s32 %v8703_v9, %v8701_v55  ;;  %v340_v50 = vsub.f32 1.0, %v12816_v32 }
 0x26a   :  { %v6267_v43 = vmin.u32 %v781_v47, %v779_v2  ;;  %v695_v16 = vxor.u32 2147483648, %v694_v23  ;;  %v600_v25 = vadd.s32 3, %v596_v57  ;;  %v497_v40 = vand.u32 3, %v496_v12  ;;  %v12820_v47 = vld [vmem:[#allocation5_spill] sm:$0xff] }
 0x26b   :  { %v591_v20 = vxor.u32 2147483648, %v590_v15  ;;  %v12817_v44 = vand.u32 2147483647, %v12815_v52  ;;  %v356_v34 = vmax.f32 %v340_v50, 0.0  ;;  %vm8797_vm6 = vcmp.le.f32.partialorder %v715_v51, 0.7853982 }
 0x26c   :  { %v783_v3 = vclz %v6267_v43  ;;  %v696_v13 = vsel %vm613_vm1, %v695_v16, %v694_v23  ;;  %v324_v43 = vmax.f32 %v12816_v32, 0.0  ;;  %v601_v23 = vand.u32 3, %v600_v25 }
 0x26d   :  { %v592_v7 = vsel %vm509_vm13, %v591_v20, %v590_v15  ;;  %vm8784_vm2 = vcmp.le.f32.partialorder %v12817_v44, 0.7853982  ;;  %vm499_vm4 = vcmp.eq.s32.totalorder %v497_v40, 0  ;;  %vm502_vm5 = vcmp.eq.s32.totalorder %v497_v40, 2 }
 0x26e   :  { %v595_v53 = vsel %vm8764_vm15, %v12791_v4, %v592_v7  ;;  %v6268_v5 = vadd.s32 4294967294, %v783_v3  ;;  %v699_v6 = vsel %vm8784_vm2, %v12815_v52, %v696_v13  ;;  %v697_v7 = vsub.s32 4, %v12821_v26 }
 0x26f   :  { %6721 = vcosq.f32 %v595_v53  ;;  %v372_v16 = vmul.f32 %v356_v34, %v324_v43  ;;  %vm717_vm10 = vcmp.lt.s32.totalorder %v12797_v60, 0  ;;  %vm498_vm7 = vcmp.lt.s32.totalorder %v497_v40, 2  ;;  %v12827_v43 = vld [vmem:[#allocation14_spill] sm:$0xff] }
 0x270   :  { %6723 = vsinq.f32 %v595_v53  ;;  %vm6269_vm0 = vcmp.lt.s32.totalorder %v6268_v5, 0  ;;  %vm606_vm11 = vcmp.eq.s32.totalorder %v601_v23, 2  ;;  %vm603_vm12 = vcmp.eq.s32.totalorder %v601_v23, 0 }
 0x271   :  { %v786_v22 = vsel %vm6269_vm0, 0, %v6268_v5  ;;  %6725 = vcosq.f32 %v699_v6  ;;  %v323_v5 = vmax.f32 %v12820_v47, 0.0  ;;  %v801_v13 = vsub.s32 4, %v8741_v49 }
 0x272   :  { %v787_v63 = vsub.s32 32, %v786_v22  ;;  %v791_v37 = vsub.s32 4294967266, %v786_v22  ;;  %v788_v41 = vshll.u32 %v779_v2, %v786_v22  ;;  %v339_v2 = vsub.f32 1.0, %v12820_v47 }
 0x273   :  { %v6718_v30 = vpop.eup %6717  ;;  %6727 = vsinq.f32 %v699_v6  ;;  %vm602_vm8 = vcmp.lt.s32.totalorder %v601_v23, 2  ;;  %vm495_vm9 = vweird.f32 %v12804_v27  ;;  %vm599_vm3 = vweird.f32 %v12791_v4 }
 0x274   :  { %v6720_v33 = vpop.eup %6719  ;;  %v789_v61 = vshrl.u32 %v771_v11, %v787_v63  ;;  %v792_v42 = vadd.s32 127, %v791_v37  ;;  %v503_v10 = vxor.u32 2147483648, %v6718_v30  ;;  %v355_v29 = vmax.f32 %v339_v2, 0.0 }
 0x275   :  { %v500_v21 = vxor.u32 2147483648, %v6720_v33  ;;  %v802_v27 = vsel %vm717_vm10, %v801_v13, %v8741_v49  ;;  %vm12647_vm14 = vcmask 261120   ;;  %v12826_v49 = vmov 0.0  }
 0x276   :  { %v790_v55 = vor.u32 %v789_v61, %v788_v41  ;;  %v793_v9 = vshll.u32 %v792_v42, 23  ;;  %v504_v3 = vsel %vm502_vm5, %v503_v10, %v6720_v33  ;;  %v698_v33 = vsel %vm613_vm1, %v697_v7, %v12821_v26  ;;  %v2084_v10 = vld [vmem:[%s12446_s4 + $0x8] sm:$0xff] }
 0x277   :  { %v501_v39 = vsel %vm499_vm4, %v6718_v30, %v500_v21  ;;  %v371_v42 = vmul.f32 %v355_v29, %v323_v5  ;;  %v700_v40 = vsel %vm8784_vm2, 0, %v698_v33  ;;  %v804_v18 = vsel %vm8797_vm6, 0, %v802_v27 }
 0x278   :  { %v794_v15 = vor.u32 4788187, %v793_v9  ;;  %v797_v24 = vcvt.s32.f32 %v790_v55  ;;  %v505_v37 = vsel %vm498_vm7, %v501_v39, %v504_v3  ;;  %v2083_v55 = vld [vmem:[%s12446_s4] sm:$0xff]  ;;  %v704_v9 = vadd.s32 3, %v700_v40 }
 0x279   :  { %v506_v61 = vsel %vm495_vm9, nan, %v505_v37  ;;  %v808_v47 = vadd.s32 3, %v804_v18  ;;  %v342_v23 = vsub.f32 1.0, %v12827_v43  ;;  %vm703_vm5 = vweird.f32 %v12815_v52 }
 0x27a   :  { %v795_v20 = vand.u32 2147483647, %v794_v15  ;;  %v8820_v4 = vmul.f32 %v506_v61, %v371_v42  ;;  %v705_v2 = vand.u32 3, %v704_v9 }
 0x27b   :  { %v809_v3 = vand.u32 3, %v808_v47  ;;  %v358_v29 = vmax.f32 %v342_v23, 0.0 }
 0x27c   :  { %v6722_v53 = vpop.eup %6721  ;;  %v798_v46 = vmul.f32 %v797_v24, %v795_v20  ;;  %12825 = vst [vmem:[#allocation43_spill] sm:$0xff] %v8820_v4  ;;  %v2085_v20 = vld [vmem:[%s12446_s4 + $0x10] sm:$0xff]  ;;  %v12828_v24 = vld [vmem:[#allocation6_spill] sm:$0xff]  ;;  %vm707_vm13 = vcmp.eq.s32.totalorder %v705_v2, 0  ;;  %vm710_vm15 = vcmp.eq.s32.totalorder %v705_v2, 2  ;;  %vm706_vm0 = vcmp.lt.s32.totalorder %v705_v2, 2 }
 0x27d   :  { %v6724_v22 = vpop.eup %6723  ;;  %v607_v12 = vxor.u32 2147483648, %v6722_v53  ;;  %v341_v39 = vsub.f32 1.0, %v12828_v24  ;;  %vm814_vm1 = vcmp.eq.s32.totalorder %v809_v3, 2  ;;  %vm811_vm2 = vcmp.eq.s32.totalorder %v809_v3, 0 }
 0x27e   :  { %v604_v11 = vxor.u32 2147483648, %v6724_v22  ;;  %v799_v63 = vxor.u32 2147483648, %v798_v46  ;;  %v6726_v6 = vpop.eup %6725  ;;  %v325_v37 = vmax.f32 %v12828_v24, 0.0  ;;  %vm810_vm4 = vcmp.lt.s32.totalorder %v809_v3, 2 }
 0x27f   :  { %v608_v30 = vsel %vm606_vm11, %v607_v12, %v6724_v22  ;;  %v711_v15 = vxor.u32 2147483648, %v6726_v6  ;;  %v357_v22 = vmax.f32 %v341_v39, 0.0 }
 0x280   :  { %v605_v51 = vsel %vm603_vm12, %v6722_v53, %v604_v11  ;;  %v800_v32 = vsel %vm717_vm10, %v799_v63, %v798_v46  ;;  %v6728_v21 = vpop.eup %6727  ;;  %v2086_v46 = vld [vmem:[%s12446_s4 + $0x18] sm:$0xff]  ;;  %v326_v11 = vmax.f32 %v12827_v43, 0.0 }
 0x281   :  { %v609_v50 = vsel %vm602_vm8, %v605_v51, %v608_v30  ;;  %v803_v41 = vsel %vm8797_vm6, %v12797_v60, %v800_v32  ;;  %v708_v34 = vxor.u32 2147483648, %v6728_v21  ;;  %v712_v7 = vsel %vm710_vm15, %v711_v15, %v6728_v21 }
 0x282   :  { %v610_v25 = vsel %vm599_vm3, nan, %v609_v50  ;;  %6729 = vcosq.f32 %v803_v41  ;;  %v374_v13 = vmul.f32 %v358_v29, %v326_v11  ;;  %vm807_vm6 = vweird.f32 %v12797_v60  ;;  %v8866_v60 = vpop.permute.xlu1 %2103 }
 0x283   :  { %v8815_v44 = vmul.f32 %v610_v25, %v372_v16  ;;  %6731 = vsinq.f32 %v803_v41  ;;  %v709_v26 = vsel %vm707_vm13, %v6726_v6, %v708_v34  ;;  %v373_v32 = vmul.f32 %v357_v22, %v325_v37 }
 0x284   :  { %v713_v57 = vsel %vm706_vm0, %v709_v26, %v712_v7 }
 0x285   :  { %12824 = vst [vmem:[#allocation45_spill] sm:$0xff] %v8815_v44  ;;  %2154 = vmatprep.subr.mxu0 %v8815_v44  ;;  %v714_v51 = vsel %vm703_vm5, nan, %v713_v57 }
 0x286   :  { %2155 = vmatpush1.msra.mxu0 %v8820_v4  ;;  %v8854_v61 = vmul.f32 %v714_v51, %v373_v32  ;;  %v8868_v52 = vpop.permute.xlu1 %2093 }
 0x287   :  { %6318 = vmatmul.mubr.msk.f32.vlgmr.msra.gmra.mxu0 %vm12647_vm14, %v2083_v55 }
 0x288   :  { %2194 = vmatprep.mubr.f32.mxu0 %v12826_v49  ;;  %12830 = vst [vmem:[#allocation31_spill] sm:$0xff] %v8854_v61 }
 0x28b   :  { %6319 = vmatmul.mubr.msk.f32.gmra.mxu0 %vm12647_vm14, %v2084_v10 }
 0x28c   :  { %2200 = vmatprep.mubr.f32.mxu0 %v12826_v49 }
 0x28f   :  { %v6730_v53 = vpop.eup %6729  ;;  %6320 = vmatmul.mubr.msk.f32.gmra.mxu0 %vm12647_vm14, %v2085_v20 }
 0x290   :  { %v6732_v5 = vpop.eup %6731  ;;  %v815_v16 = vxor.u32 2147483648, %v6730_v53  ;;  %2206 = vmatprep.mubr.f32.mxu0 %v12826_v49 }
 0x291   :  { %v812_v12 = vxor.u32 2147483648, %v6732_v5 }
 0x292   :  { %v816_v63 = vsel %vm814_vm1, %v815_v16, %v6732_v5 }
 0x293   :  { %v813_v30 = vsel %vm811_vm2, %v6730_v53, %v812_v12  ;;  %6321 = vmatmul.mubr.msk.f32.gmra.mxu0 %vm12647_vm14, %v2086_v46 }
 0x294   :  { %v817_v33 = vsel %vm810_vm4, %v813_v30, %v816_v63  ;;  %4182 = vmatprep.mubr.f32.mxu0 %v12826_v49 }
 0x295   :  { %v818_v50 = vsel %vm807_vm6, nan, %v817_v33 }
 0x296   :  { %v8852_v41 = vmul.f32 %v818_v50, %v374_v13 }
 0x298   :  { %12829 = vst [vmem:[#allocation41_spill] sm:$0xff] %v8852_v41  ;;  %2243 = vmatprep.subr.mxu1 %v8852_v41 }
 0x299   :  { %2244 = vmatpush1.msra.mxu1 %v8854_v61 }
 0x29a   :  { %6322 = vmatmul.mubr.msk.f32.vlgmr.msra.gmra.mxu1 %vm12647_vm14, %v2083_v55 }
 0x29b   :  { %2283 = vmatprep.mubr.f32.mxu1 %v12826_v49 }
 0x29e   :  { %6323 = vmatmul.mubr.msk.f32.gmra.mxu1 %vm12647_vm14, %v2084_v10 }
 0x29f   :  { %2289 = vmatprep.mubr.f32.mxu1 %v12826_v49 }
 0x2a2   :  { %6324 = vmatmul.mubr.msk.f32.gmra.mxu1 %vm12647_vm14, %v2085_v20 }
 0x2a3   :  { %2295 = vmatprep.mubr.f32.mxu1 %v12826_v49 }
 0x2a6   :  { %6325 = vmatmul.mubr.msk.f32.gmra.mxu1 %vm12647_vm14, %v2086_v46 }
 0x2a7   :  { %4271 = vmatprep.mubr.f32.mxu1 %v12826_v49 }
 0x347   :  { %v2190_v42 = vpop.f32.mrf.mxu0 }
 0x348   :  { %v8871_v25 = vadd.f32 %v2190_v42, %v8868_v52 }
 0x349   :  { %v2192_v40 = vpop.f32.mrf.mxu0 }
 0x34a   :  { %v8874_v27 = vmul.f32 6.2831855, %v8871_v25  ;;  %v8877_v55 = vadd.f32 %v2192_v40, %v8868_v52 }
 0x34c   :  { %v2385_v9 = vand.u32 2139095040, %v8874_v27  ;;  %v12547_v6 = vand.u32 2147483647, %v8874_v27  ;;  %v8882_v18 = vmul.f32 6.2831855, %v8877_v55 }
 0x34e   :  { %12831 = vst [vmem:[#allocation46_spill] sm:$0xff] %v8882_v18  ;;  %v2386_v21 = vshrl.u32 %v2385_v9, 23  ;;  %v2489_v10 = vand.u32 2139095040, %v8882_v18  ;;  %v2389_v2 = vand.u32 8388607, %v12547_v6 }
 0x34f   :  { %v12545_v7 = vand.u32 2147483647, %v8882_v18 }
 0x350   :  { %v6326_v47 = vadd.s32 4294967169, %v2386_v21  ;;  %v2490_v34 = vshrl.u32 %v2489_v10, 23  ;;  %v2390_v23 = vor.u32 8388608, %v2389_v2 }
 0x352   :  { %v2392_v15 = vadd.s32 1, %v6326_v47  ;;  %v6330_v43 = vadd.s32 4294967169, %v2490_v34  ;;  %v2430_v29 = vshll.u32 %v2390_v23, 8 }
 0x354   :  { %vm2393_vm10 = vcmp.gt.s32.totalorder %v2392_v15, 0  ;;  %v2496_v24 = vadd.s32 1, %v6330_v43 }
 0x355   :  { %v2394_v20 = vsel %vm2393_vm10, %v2392_v15, 0 }
 0x356   :  { %v2396_v39 = vand.u32 31, %v2394_v20  ;;  %v2395_v3 = vshrl.u32 %v2394_v20, 5  ;;  %vm2497_vm7 = vcmp.gt.s32.totalorder %v2496_v24, 0 }
 0x357   :  { %v2498_v23 = vsel %vm2497_vm7, %v2496_v24, 0 }
 0x358   :  { %v2397_v26 = vsub.s32 32, %v2396_v39  ;;  %v2399_v53 = vshll.u32 %v12684_v28, %v2396_v39  ;;  %v2402_v5 = vshll.u32 %v12685_v36, %v2396_v39  ;;  %v2405_v22 = vshll.u32 %v12686_v31, %v2396_v39 }
 0x359   :  { %v2408_v11 = vshll.u32 %v12687_v59, %v2396_v39  ;;  %v2411_v37 = vshll.u32 %v12688_v8, %v2396_v39  ;;  %vm2414_vm11 = vcmp.lt.s32.totalorder %v2395_v3, 1  ;;  %vm2417_vm12 = vcmp.lt.s32.totalorder %v2395_v3, 4 }
 0x35a   :  { %v2400_v16 = vshrl.u32 %v12685_v36, %v2397_v26  ;;  %v2403_v46 = vshrl.u32 %v12686_v31, %v2397_v26  ;;  %v2406_v12 = vshrl.u32 %v12687_v59, %v2397_v26  ;;  %v2279_v57 = vpop.f32.mrf.mxu1  ;;  %v2409_v63 = vshrl.u32 %v12688_v8, %v2397_v26 }
 0x35b   :  { %v2412_v30 = vshrl.u32 %v12689_v48, %v2397_v26  ;;  %v8899_v42 = vadd.f32 %v2279_v57, %v8868_v52  ;;  %v2398_v40 = vshrl.u32 %v12684_v28, %v2397_v26  ;;  %vm2415_vm8 = vcmp.lt.s32.totalorder %v2395_v3, 2 }
 0x35c   :  { %v2401_v13 = vor.u32 %v2400_v16, %v2399_v53  ;;  %v2404_v33 = vor.u32 %v2403_v46, %v2402_v5  ;;  %v2407_v51 = vor.u32 %v2406_v12, %v2405_v22  ;;  %v2410_v32 = vor.u32 %v2409_v63, %v2408_v11 }
 0x35d   :  { %v2413_v50 = vor.u32 %v2412_v30, %v2411_v37  ;;  %12832 = vst [vmem:[#allocation47_spill] sm:$0xff] %v8899_v42  ;;  %vm2416_vm9 = vcmp.lt.s32.totalorder %v2395_v3, 3  ;;  %v8906_v5 = vmul.f32 6.2831855, %v8899_v42  ;;  %v2493_v11 = vand.u32 8388607, %v12545_v7 }
 0x35e   :  { %v2419_v9 = vsel %vm2417_vm12, %v2407_v51, 2102212464  ;;  %v2422_v21 = vsel %vm2414_vm11, %v2401_v13, %v2404_v33  ;;  %v2426_v10 = vsel %vm2414_vm11, %v2404_v33, %v2407_v51  ;;  %v2423_v47 = vsel %vm2417_vm12, %v2410_v32, 920167782 }
 0x35f   :  { %v2427_v2 = vsel %vm2417_vm12, %v2413_v50, 1326507024  ;;  %v2418_v34 = vsel %vm2414_vm11, %v2398_v40, %v2401_v13  ;;  %v2424_v15 = vsel %vm2416_vm9, %v2407_v51, %v2423_v47  ;;  %v2420_v20 = vsel %vm2416_vm9, %v2404_v33, %v2419_v9  ;;  %12833 = vst [vmem:[#allocation54_spill] sm:$0xff] %v8906_v5 }
 0x360   :  { %v2428_v43 = vsel %vm2416_vm9, %v2410_v32, %v2427_v2  ;;  %v2425_v39 = vsel %vm2415_vm8, %v2422_v21, %v2424_v15  ;;  %v12546_v12 = vand.u32 2147483647, %v8906_v5  ;;  %v2593_v57 = vand.u32 2139095040, %v8906_v5  ;;  %v2281_v21 = vpop.f32.mrf.mxu1 }
 0x361   :  { %v2429_v53 = vsel %vm2415_vm8, %v2426_v10, %v2428_v43  ;;  %v8911_v46 = vmul.u32.u64.low %v2430_v29, %v2425_v39  ;;  %v8912_v22 = vmul.u32.u64.high %v2430_v29, %v2425_v39, %v8911_v46  ;;  %v2421_v24 = vsel %vm2415_vm8, %v2418_v34, %v2420_v20 }
 0x362   :  { %v8908_v26 = vmul.u32.u64.low %v2430_v29, %v2429_v53  ;;  %v8909_v16 = vmul.u32.u64.high %v2430_v29, %v2429_v53, %v8908_v26  ;;  %v2500_v63 = vand.u32 31, %v2498_v23  ;;  %v2594_v37 = vshrl.u32 %v2593_v57, 23 }
 0x363   :  { %v2440_v30 = vadd.s32 1, %v8912_v22  ;;  %v2597_v13 = vand.u32 8388607, %v12546_v12  ;;  %v2437_v51 = vmul.u32 %v2430_v29, %v2421_v24  ;;  %v2494_v3 = vor.u32 8388608, %v2493_v11 }
 0x364   :  { %vm2439_vm3 = vc.u32 %v8909_v16, %v8911_v46  ;;  %v8923_v33 = vsub.s32 32, %v2500_v63  ;;  %v6334_v32 = vadd.s32 4294967169, %v2594_v37  ;;  %v2503_v43 = vshll.u32 %v12684_v28, %v2500_v63 }
 0x365   :  { %v2441_v50 = vsel %vm2439_vm3, %v2440_v30, %v8912_v22  ;;  %v2598_v10 = vor.u32 8388608, %v2597_v13  ;;  %v8931_v29 = vshll.u32 %v2494_v3, 8  ;;  %v8934_v20 = vadd.f32 %v2281_v21, %v8868_v52 }
 0x366   :  { %v2442_v40 = vadd.s32 %v2441_v50, %v2437_v51  ;;  %v2600_v9 = vadd.s32 1, %v6334_v32  ;;  %v2504_v47 = vshrl.u32 %v12685_v36, %v8923_v33  ;;  %v2507_v34 = vshrl.u32 %v12686_v31, %v8923_v33 }
 0x367   :  { %v8938_v26 = vshrl.u32 %v2498_v23, 5  ;;  %v2506_v22 = vshll.u32 %v12685_v36, %v2500_v63  ;;  %v8942_v57 = vadd.s32 %v8911_v46, %v8909_v16  ;;  %v8944_v24 = vshll.u32 %v2598_v10, 8 }
 0x368   :  { %v2443_v2 = vadd.s32 536870912, %v2442_v40  ;;  %vm2601_vm13 = vcmp.gt.s32.totalorder %v2600_v9, 0  ;;  %v8946_v11 = vor.u32 %v2504_v47, %v2503_v43  ;;  %v2509_v37 = vshll.u32 %v12686_v31, %v2500_v63 }
 0x369   :  { %v2602_v15 = vsel %vm2601_vm13, %v2600_v9, 0  ;;  %v8950_v13 = vor.u32 %v2507_v34, %v2506_v22  ;;  %v2510_v23 = vshrl.u32 %v12687_v59, %v8923_v33  ;;  %v2512_v16 = vshll.u32 %v12687_v59, %v2500_v63 }
 0x36a   :  { %v8936_v39 = vshrl.u32 %v2443_v2, 30  ;;  %v2604_v53 = vand.u32 31, %v2602_v15  ;;  %v2603_v51 = vshrl.u32 %v2602_v15, 5  ;;  %v2513_v46 = vshrl.u32 %v12688_v8, %v8923_v33 }
 0x36b   :  { %v2515_v6 = vshll.u32 %v12688_v8, %v2500_v63  ;;  %v8972_v19 = vor.u32 %v2510_v23, %v2509_v37  ;;  %v2516_v54 = vshrl.u32 %v12689_v48, %v8923_v33  ;;  %vm2518_vm0 = vcmp.lt.s32.totalorder %v8938_v26, 1 }
 0x36c   :  { %v2445_v30 = vshll.u32 %v8936_v39, 30  ;;  %v2605_v52 = vsub.s32 32, %v2604_v53  ;;  %v2607_v32 = vshll.u32 %v12684_v28, %v2604_v53  ;;  %v2610_v9 = vshll.u32 %v12685_v36, %v2604_v53 }
 0x36d   :  { %v2613_v21 = vshll.u32 %v12686_v31, %v2604_v53  ;;  %v2616_v2 = vshll.u32 %v12687_v59, %v2604_v53  ;;  %vm2622_vm15 = vcmp.lt.s32.totalorder %v2603_v51, 1  ;;  %vm2624_vm1 = vcmp.lt.s32.totalorder %v2603_v51, 3 }
 0x36e   :  { %v8958_v50 = vsub.s32 %v2442_v40, %v2445_v30  ;;  %v2608_v3 = vshrl.u32 %v12685_v36, %v2605_v52  ;;  %v2611_v10 = vshrl.u32 %v12686_v31, %v2605_v52  ;;  %v2614_v47 = vshrl.u32 %v12687_v59, %v2605_v52 }
 0x36f   :  { %v2617_v34 = vshrl.u32 %v12688_v8, %v2605_v52  ;;  %v2619_v40 = vshll.u32 %v12688_v8, %v2604_v53  ;;  %v2620_v22 = vshrl.u32 %v12689_v48, %v2605_v52  ;;  %v2606_v58 = vshrl.u32 %v12684_v28, %v2605_v52 }
 0x370   :  { %v2448_v15 = vsub.s32 0, %v8958_v50  ;;  %v2609_v43 = vor.u32 %v2608_v3, %v2607_v32  ;;  %v2612_v30 = vor.u32 %v2611_v10, %v2610_v9  ;;  %v2615_v7 = vor.u32 %v2614_v47, %v2613_v21 }
 0x371   :  { %v2618_v12 = vor.u32 %v2617_v34, %v2616_v2  ;;  %v2621_v41 = vor.u32 %v2620_v22, %v2619_v40  ;;  %v2514_v32 = vor.u32 %v2513_v46, %v2512_v16  ;;  %vm2625_vm2 = vcmp.lt.s32.totalorder %v2603_v51, 4 }
 0x372   :  { %v6327_v61 = vmin.u32 %v2448_v15, %v8958_v50  ;;  %v2630_v3 = vsel %vm2622_vm15, %v2609_v43, %v2612_v30  ;;  %v2627_v9 = vsel %vm2625_vm2, %v2615_v7, 2102212464  ;;  %v2634_v21 = vsel %vm2622_vm15, %v2612_v30, %v2615_v7 }
 0x373   :  { %v2631_v63 = vsel %vm2625_vm2, %v2618_v12, 920167782  ;;  %v2635_v10 = vsel %vm2625_vm2, %v2621_v41, 1326507024  ;;  %vm2623_vm4 = vcmp.lt.s32.totalorder %v2603_v51, 2  ;;  %v2626_v2 = vsel %vm2622_vm15, %v2606_v58, %v2609_v43  ;;  %v8990_v58 = vpop.permute.xlu0 %2108 }
 0x374   :  { %v2450_v53 = vclz %v6327_v61  ;;  %v2632_v37 = vsel %vm2624_vm1, %v2615_v7, %v2631_v63  ;;  %v2636_v23 = vsel %vm2624_vm1, %v2618_v12, %v2635_v10  ;;  %v2628_v34 = vsel %vm2624_vm1, %v2612_v30, %v2627_v9 }
 0x375   :  { %v2633_v52 = vsel %vm2623_vm4, %v2630_v3, %v2632_v37  ;;  %v2637_v16 = vsel %vm2623_vm4, %v2634_v21, %v2636_v23  ;;  %v2517_v15 = vor.u32 %v2516_v54, %v2515_v6  ;;  %vm2519_vm6 = vcmp.lt.s32.totalorder %v8938_v26, 2  ;;  %v2196_v23 = vpop.f32.mrf.mxu0 }
 0x376   :  { %v6328_v47 = vadd.s32 4294967294, %v2450_v53  ;;  %v8981_v61 = vmul.u32.u64.low %v8944_v24, %v2637_v16  ;;  %v8982_v46 = vmul.u32.u64.high %v8944_v24, %v2637_v16, %v8981_v61  ;;  %v2629_v43 = vsel %vm2623_vm4, %v2626_v2, %v2628_v34 }
 0x377   :  { %v8985_v22 = vmul.u32.u64.low %v8944_v24, %v2633_v52  ;;  %v8986_v41 = vmul.u32.u64.high %v8944_v24, %v2633_v52, %v8985_v22  ;;  %vm2521_vm10 = vcmp.lt.s32.totalorder %v8938_v26, 4  ;;  %vm2520_vm7 = vcmp.lt.s32.totalorder %v8938_v26, 3  ;;  %v9028_v16 = vpop.permute.xlu0 %2098 }
 0x378   :  { %vm6329_vm5 = vcmp.lt.s32.totalorder %v6328_v47, 0  ;;  %v2526_v54 = vsel %vm2518_vm0, %v8946_v11, %v8950_v13  ;;  %v2527_v6 = vsel %vm2521_vm10, %v2514_v32, 920167782  ;;  %v2530_v51 = vsel %vm2518_vm0, %v8950_v13, %v8972_v19 }
 0x379   :  { %v2453_v40 = vsel %vm6329_vm5, 0, %v6328_v47  ;;  %vm2647_vm11 = vc.u32 %v8982_v46, %v8985_v22  ;;  %v2648_v9 = vadd.s32 1, %v8986_v41  ;;  %v2528_v63 = vsel %vm2520_vm7, %v8972_v19, %v2527_v6 }
 0x37a   :  { %v2454_v7 = vsub.s32 32, %v2453_v40  ;;  %v2458_v12 = vsub.s32 4294967266, %v2453_v40  ;;  %v2455_v30 = vshll.u32 %v8958_v50, %v2453_v40  ;;  %v2645_v50 = vmul.u32 %v8944_v24, %v2629_v43 }
 0x37b   :  { %v2529_v47 = vsel %vm2519_vm6, %v2526_v54, %v2528_v63  ;;  %v2649_v24 = vsel %vm2647_vm11, %v2648_v9, %v8986_v41  ;;  %v9038_v41 = vadd.f32 %v2196_v23, %v9028_v16  ;;  %v2523_v54 = vsel %vm2521_vm10, %v8972_v19, 2102212464 }
 0x37c   :  { %v2456_v53 = vshrl.u32 %v8942_v57, %v2454_v7  ;;  %v2459_v3 = vadd.s32 127, %v2458_v12  ;;  %v2531_v57 = vsel %vm2521_vm10, %v2517_v15, 1326507024  ;;  %v2650_v15 = vadd.s32 %v2649_v24, %v2645_v50 }
 0x37d   :  { %v2532_v37 = vsel %vm2520_vm7, %v2514_v32, %v2531_v57  ;;  %v9024_v34 = vmul.u32.u64.low %v8931_v29, %v2529_v47  ;;  %v9025_v52 = vmul.u32.u64.high %v8931_v29, %v2529_v47, %v9024_v34  ;;  %v9035_v32 = vmul.f32 6.2831855, %v8934_v20 }
 0x37e   :  { %v2457_v21 = vor.u32 %v2456_v53, %v2455_v30  ;;  %v2460_v10 = vshll.u32 %v2459_v3, 23  ;;  %v2533_v2 = vsel %vm2519_vm6, %v2530_v51, %v2532_v37  ;;  %v2651_v30 = vadd.s32 536870912, %v2650_v15 }
 0x37f   :  { %v9031_v40 = vmul.u32.u64.low %v8931_v29, %v2533_v2  ;;  %v9032_v7 = vmul.u32.u64.high %v8931_v29, %v2533_v2, %v9031_v40  ;;  %12834 = vst [vmem:[#allocation52_spill] sm:$0xff] %v9035_v32  ;;  %v2468_v6 = vsub.s32 4, %v8936_v39  ;;  %v2502_v53 = vshrl.u32 %v12684_v28, %v8923_v33 }
 0x380   :  { %v2461_v61 = vor.u32 4788187, %v2460_v10  ;;  %v2464_v43 = vcvt.s32.f32 %v2457_v21  ;;  %v2697_v3 = vand.u32 2139095040, %v9035_v32  ;;  %v9047_v50 = vshrl.u32 %v2651_v30, 30 }
 0x381   :  { %v2522_v9 = vsel %vm2518_vm0, %v2502_v53, %v8946_v11  ;;  %v2524_v63 = vsel %vm2520_vm7, %v8950_v13, %v2523_v54  ;;  %vm2384_vm12 = vcmp.lt.s32.totalorder %v8874_v27, 0  ;;  %v2544_v21 = vadd.s32 1, %v9025_v52 }
 0x382   :  { %v2462_v12 = vand.u32 2147483647, %v2461_v61  ;;  %v2698_v57 = vshrl.u32 %v2697_v3, 23  ;;  %v9058_v33 = vmul.f32 6.2831855, %v9038_v41  ;;  %v2469_v10 = vsel %vm2384_vm12, %v2468_v6, %v8936_v39 }
 0x383   :  { %v2653_v47 = vshll.u32 %v9047_v50, 30  ;;  %vm2543_vm8 = vc.u32 %v9032_v7, %v9024_v34  ;;  %v12835_v37 = vand.u32 2147483647, %v8874_v27  ;;  %v2525_v24 = vsel %vm2519_vm6, %v2522_v9, %v2524_v63 }
 0x384   :  { %v2465_v51 = vmul.f32 %v2464_v43, %v2462_v12  ;;  %v6338_v11 = vadd.s32 4294967169, %v2698_v57  ;;  %v2545_v40 = vsel %vm2543_vm8, %v2544_v21, %v9025_v52  ;;  %v2801_v12 = vand.u32 2139095040, %v9058_v33 }
 0x385   :  { %vm9066_vm9 = vcmp.le.f32.partialorder %v12835_v37, 0.7853982  ;;  %v9079_v43 = vsub.s32 %v2650_v15, %v2653_v47  ;;  %v2541_v30 = vmul.u32 %v8931_v29, %v2525_v24  ;;  %v2318_v26 = vsub.f32 1.0, %v8871_v25 }
 0x386   :  { %v2466_v19 = vxor.u32 2147483648, %v2465_v51  ;;  %v2704_v2 = vadd.s32 1, %v6338_v11  ;;  %v2471_v61 = vsel %vm9066_vm9, 0, %v2469_v10  ;;  %v2302_v57 = vmax.f32 %v8871_v25, 0.0 }
 0x387   :  { %v2546_v6 = vadd.s32 %v2545_v40, %v2541_v30  ;;  %v2475_v3 = vadd.s32 3, %v2471_v61  ;;  %v2656_v9 = vsub.s32 0, %v9079_v43  ;;  %v2334_v52 = vmax.f32 %v2318_v26, 0.0 }
 0x388   :  { %v2467_v23 = vsel %vm2384_vm12, %v2466_v19, %v2465_v51  ;;  %vm2705_vm3 = vcmp.gt.s32.totalorder %v2704_v2, 0  ;;  %v2802_v51 = vshrl.u32 %v2801_v12, 23  ;;  %v12555_v21 = vand.u32 2147483647, %v9035_v32 }
 0x389   :  { %v2470_v39 = vsel %vm9066_vm9, %v8874_v27, %v2467_v23  ;;  %v2706_v54 = vsel %vm2705_vm3, %v2704_v2, 0  ;;  %v2547_v19 = vadd.s32 536870912, %v2546_v6  ;;  %v2476_v15 = vand.u32 3, %v2475_v3 }
 0x38a   :  { %6733 = vcosq.f32 %v2470_v39  ;;  %v2708_v53 = vand.u32 31, %v2706_v54  ;;  %v6342_v10 = vadd.s32 4294967169, %v2802_v51  ;;  %v6335_v47 = vmin.u32 %v2656_v9, %v9079_v43 }
 0x38b   :  { %6735 = vsinq.f32 %v2470_v39  ;;  %v2350_v23 = vmul.f32 %v2334_v52, %v2302_v57  ;;  %vm2474_vm13 = vweird.f32 %v8874_v27  ;;  %v9097_v25 = vshrl.u32 %v2706_v54, 5 }
 0x38c   :  { %v9084_v63 = vsub.s32 32, %v2708_v53  ;;  %v2720_v13 = vshll.u32 %v12687_v59, %v2708_v53  ;;  %v9102_v2 = vshrl.u32 %v2547_v19, 30  ;;  %v2711_v61 = vshll.u32 %v12684_v28, %v2708_v53 }
 0x38d   :  { %v2714_v40 = vshll.u32 %v12685_v36, %v2708_v53  ;;  %vm2477_vm15 = vcmp.lt.s32.totalorder %v2476_v15, 2  ;;  %v2701_v30 = vand.u32 8388607, %v12555_v21  ;;  %v2717_v26 = vshll.u32 %v12686_v31, %v2708_v53 }
 0x38e   :  { %v2721_v29 = vshrl.u32 %v12688_v8, %v9084_v63  ;;  %v2712_v11 = vshrl.u32 %v12685_v36, %v9084_v63  ;;  %v2715_v37 = vshrl.u32 %v12686_v31, %v9084_v63  ;;  %v2718_v24 = vshrl.u32 %v12687_v59, %v9084_v63  ;;  %12838 = vst [vmem:[#allocation39_spill] sm:$0xff] %v9102_v2 }
 0x38f   :  { %v2724_v54 = vshrl.u32 %v12689_v48, %v9084_v63  ;;  %v2658_v51 = vclz %v6335_v47  ;;  %v2808_v57 = vadd.s32 1, %v6342_v10  ;;  %v2723_v45 = vshll.u32 %v12688_v8, %v2708_v53 }
 0x390   :  { %v2722_v12 = vor.u32 %v2721_v29, %v2720_v13  ;;  %v2713_v9 = vor.u32 %v2712_v11, %v2711_v61  ;;  %v2716_v52 = vor.u32 %v2715_v37, %v2714_v40  ;;  %v2719_v49 = vor.u32 %v2718_v24, %v2717_v26 }
 0x391   :  { %vm2729_vm0 = vcmp.lt.s32.totalorder %v9097_v25, 4  ;;  %vm2481_vm1 = vcmp.eq.s32.totalorder %v2476_v15, 2  ;;  %v2549_v13 = vshll.u32 %v9102_v2, 30  ;;  %vm2478_vm2 = vcmp.eq.s32.totalorder %v2476_v15, 0 }
 0x392   :  { %v2735_v21 = vsel %vm2729_vm0, %v2722_v12, 920167782  ;;  %v2725_v47 = vor.u32 %v2724_v54, %v2723_v45  ;;  %vm2726_vm4 = vcmp.lt.s32.totalorder %v9097_v25, 1  ;;  %v2702_v11 = vor.u32 8388608, %v2701_v30 }
 0x393   :  { %vm2728_vm5 = vcmp.lt.s32.totalorder %v9097_v25, 3  ;;  %v2734_v53 = vsel %vm2726_vm4, %v2713_v9, %v2716_v52  ;;  %v6336_v24 = vadd.s32 4294967294, %v2658_v51  ;;  %vm2809_vm6 = vcmp.gt.s32.totalorder %v2808_v57, 0 }
 0x394   :  { %v2736_v61 = vsel %vm2728_vm5, %v2719_v49, %v2735_v21  ;;  %v9125_v45 = vsub.s32 %v2546_v6, %v2549_v13  ;;  %vm2727_vm10 = vcmp.lt.s32.totalorder %v9097_v25, 2  ;;  %v12839_v40 = vand.u32 2147483647, %v9058_v33  ;;  %v2285_v25 = vpop.f32.mrf.mxu1 }
 0x395   :  { %v2738_v15 = vsel %vm2726_vm4, %v2716_v52, %v2719_v49  ;;  %v2739_v21 = vsel %vm2729_vm0, %v2725_v47, 1326507024  ;;  %v9140_v6 = vshll.u32 %v2702_v11, 8  ;;  %v2810_v54 = vsel %vm2809_vm6, %v2808_v57, 0 }
 0x396   :  { %v2805_v30 = vand.u32 8388607, %v12839_v40  ;;  %v2740_v27 = vsel %vm2728_vm5, %v2722_v12, %v2739_v21  ;;  %vm6337_vm7 = vcmp.lt.s32.totalorder %v6336_v24, 0  ;;  %v2552_v13 = vsub.s32 0, %v9125_v45 }
 0x397   :  { %v6734_v3 = vpop.eup %6733  ;;  %v2710_v12 = vshrl.u32 %v12684_v28, %v9084_v63  ;;  %v2812_v47 = vand.u32 31, %v2810_v54  ;;  %v9154_v57 = vsel %vm6337_vm7, 0, %v6336_v24 }
 0x398   :  { %v6736_v19 = vpop.eup %6735  ;;  %v2482_v39 = vxor.u32 2147483648, %v6734_v3  ;;  %v2666_v40 = vsub.s32 4294967266, %v9154_v57  ;;  %v6331_v63 = vmin.u32 %v2552_v13, %v9125_v45 }
 0x399   :  { %v2479_v29 = vxor.u32 2147483648, %v6736_v19  ;;  %v2815_v24 = vshll.u32 %v12684_v28, %v2812_v47 }
 0x39a   :  { %v2483_v17 = vsel %vm2481_vm1, %v2482_v39, %v6736_v19  ;;  %vm2592_vm1 = vcmp.lt.s32.totalorder %v8906_v5, 0 }
 0x39b   :  { %v2480_v10 = vsel %vm2478_vm2, %v6734_v3, %v2479_v29  ;;  %v2731_v3 = vsel %vm2729_vm0, %v2719_v49, 2102212464  ;;  %v2806_v29 = vor.u32 8388608, %v2805_v30  ;;  %v2730_v49 = vsel %vm2726_vm4, %v2710_v12, %v2713_v9 }
 0x39c   :  { %v2484_v37 = vsel %vm2477_vm15, %v2480_v10, %v2483_v17  ;;  %v2737_v17 = vsel %vm2727_vm10, %v2734_v53, %v2736_v61  ;;  %v2732_v53 = vsel %vm2728_vm5, %v2716_v52, %v2731_v3  ;;  %v2811_v61 = vshrl.u32 %v2810_v54, 5 }
 0x39d   :  { %v2485_v39 = vsel %vm2474_vm13, nan, %v2484_v37  ;;  %v9147_v51 = vmul.u32.u64.low %v9140_v6, %v2737_v17  ;;  %v9148_v19 = vmul.u32.u64.high %v9140_v6, %v2737_v17, %v9147_v51  ;;  %v2813_v37 = vsub.s32 32, %v2812_v47 }
 0x39e   :  { %v9130_v26 = vmul.f32 %v2485_v39, %v2350_v23  ;;  %v2741_v23 = vsel %vm2727_vm10, %v2738_v15, %v2740_v27  ;;  %v9164_v39 = vshll.u32 %v2806_v29, 8  ;;  %v2733_v17 = vsel %vm2727_vm10, %v2730_v49, %v2732_v53 }
 0x39f   :  { %v9157_v10 = vmul.u32.u64.low %v9140_v6, %v2741_v23  ;;  %v9158_v11 = vmul.u32.u64.high %v9140_v6, %v2741_v23, %v9157_v10  ;;  %v2816_v30 = vshrl.u32 %v12685_v36, %v2813_v37  ;;  %v2818_v9 = vshll.u32 %v12685_v36, %v2812_v47 }
 0x3a0   :  { %12840 = vst [vmem:[#allocation20_spill] sm:$0xff] %v9130_v26  ;;  %v2819_v15 = vshrl.u32 %v12686_v31, %v2813_v37  ;;  %v2821_v52 = vshll.u32 %v12686_v31, %v2812_v47  ;;  %v2822_v27 = vshrl.u32 %v12687_v59, %v2813_v37  ;;  %v2824_v54 = vshll.u32 %v12687_v59, %v2812_v47 }
 0x3a1   :  { %v2817_v21 = vor.u32 %v2816_v30, %v2815_v24  ;;  %v2825_v23 = vshrl.u32 %v12688_v8, %v2813_v37  ;;  %v2752_v3 = vadd.s32 1, %v9148_v19  ;;  %vm2830_vm11 = vcmp.lt.s32.totalorder %v2811_v61, 1 }
 0x3a2   :  { %v2820_v29 = vor.u32 %v2819_v15, %v2818_v9  ;;  %vm2832_vm12 = vcmp.lt.s32.totalorder %v2811_v61, 3  ;;  %v2823_v13 = vor.u32 %v2822_v27, %v2821_v52  ;;  %v2827_v10 = vshll.u32 %v12688_v8, %v2812_v47 }
 0x3a3   :  { %v2826_v12 = vor.u32 %v2825_v23, %v2824_v54  ;;  %v2828_v49 = vshrl.u32 %v12689_v48, %v2813_v37  ;;  %vm2751_vm8 = vc.u32 %v9158_v11, %v9147_v51  ;;  %v2814_v53 = vshrl.u32 %v12684_v28, %v2813_v37 }
 0x3a4   :  { %vm2833_vm9 = vcmp.lt.s32.totalorder %v2811_v61, 4  ;;  %v2838_v24 = vsel %vm2830_vm11, %v2817_v21, %v2820_v29  ;;  %v9186_v15 = vadd.f32 %v2285_v25, %v9028_v16  ;;  %v2749_v52 = vmul.u32 %v9140_v6, %v2733_v17 }
 0x3a5   :  { %v2829_v30 = vor.u32 %v2828_v49, %v2827_v10  ;;  %v2835_v38 = vsel %vm2833_vm9, %v2823_v13, 2102212464  ;;  %v2839_v9 = vsel %vm2833_vm9, %v2826_v12, 920167782  ;;  %vm2831_vm3 = vcmp.lt.s32.totalorder %v2811_v61, 2 }
 0x3a6   :  { %12841 = vst [vmem:[#allocation15_spill] sm:$0xff] %v9186_v15  ;;  %v2840_v47 = vsel %vm2832_vm12, %v2823_v13, %v2839_v9  ;;  %v2842_v27 = vsel %vm2830_vm11, %v2820_v29, %v2823_v13  ;;  %v2753_v54 = vsel %vm2751_vm8, %v2752_v3, %v9148_v19  ;;  %v2834_v37 = vsel %vm2830_vm11, %v2814_v53, %v2817_v21 }
 0x3a7   :  { %v2841_v23 = vsel %vm2831_vm3, %v2838_v24, %v2840_v47  ;;  %v2843_v26 = vsel %vm2833_vm9, %v2829_v30, 1326507024  ;;  %v2836_v10 = vsel %vm2832_vm12, %v2820_v29, %v2835_v38  ;;  %v2554_v6 = vclz %v6331_v63  ;;  %v2198_v63 = vpop.f32.mrf.mxu0 }
 0x3a8   :  { %v2844_v49 = vsel %vm2832_vm12, %v2826_v12, %v2843_v26  ;;  %v9197_v25 = vmul.u32.u64.low %v9164_v39, %v2841_v23  ;;  %v9198_v4 = vmul.u32.u64.high %v9164_v39, %v2841_v23, %v9197_v25  ;;  %v9203_v13 = vmul.f32 6.2831855, %v9186_v15 }
 0x3a9   :  { %v2845_v17 = vsel %vm2831_vm3, %v2842_v27, %v2844_v49  ;;  %v2667_v19 = vadd.s32 127, %v2666_v40  ;;  %v2754_v21 = vadd.s32 %v2753_v54, %v2749_v52  ;;  %v2837_v38 = vsel %vm2831_vm3, %v2834_v37, %v2836_v10 }
 0x3aa   :  { %v9206_v3 = vmul.u32.u64.low %v9164_v39, %v2845_v17  ;;  %v9207_v53 = vmul.u32.u64.high %v9164_v39, %v2845_v17, %v9206_v3  ;;  %v2662_v26 = vsub.s32 32, %v9154_v57  ;;  %v2856_v29 = vadd.s32 1, %v9198_v4 }
 0x3ab   :  { %v3009_v12 = vand.u32 2139095040, %v9203_v13  ;;  %v2646_v24 = vadd.s32 %v8985_v22, %v8982_v46  ;;  %v6332_v30 = vadd.s32 4294967294, %v2554_v6  ;;  %v2668_v9 = vshll.u32 %v2667_v19, 23 }
 0x3ac   :  { %v2755_v40 = vadd.s32 536870912, %v2754_v21  ;;  %v2853_v52 = vmul.u32 %v9164_v39, %v2837_v38  ;;  %vm2855_vm13 = vc.u32 %v9207_v53, %v9197_v25  ;;  %v9220_v27 = vadd.f32 %v2198_v63, %v9028_v16 }
 0x3ad   :  { %v2857_v61 = vsel %vm2855_vm13, %v2856_v29, %v9198_v4  ;;  %v3010_v47 = vshrl.u32 %v3009_v12, 23  ;;  %v2664_v54 = vshrl.u32 %v2646_v24, %v2662_v26  ;;  %v2319_v37 = vsub.f32 1.0, %v8877_v55 }
 0x3ae   :  { %v2858_v23 = vadd.s32 %v2857_v61, %v2853_v52  ;;  %v2663_v46 = vshll.u32 %v9079_v43, %v9154_v57  ;;  %v2322_v22 = vsub.f32 1.0, %v9038_v41  ;;  %v2669_v39 = vor.u32 4788187, %v2668_v9 }
 0x3af   :  { %v6350_v10 = vadd.s32 4294967169, %v3010_v47  ;;  %vm6333_vm15 = vcmp.lt.s32.totalorder %v6332_v30, 0  ;;  %v9226_v49 = vshrl.u32 %v2755_v40, 30  ;;  %v9229_v17 = vmul.f32 6.2831855, %v9220_v27 }
 0x3b0   :  { %v2859_v6 = vadd.s32 536870912, %v2858_v23  ;;  %v2665_v19 = vor.u32 %v2664_v54, %v2663_v46  ;;  %v2335_v3 = vmax.f32 %v2319_v37, 0.0  ;;  %v2303_v26 = vmax.f32 %v8877_v55, 0.0 }
 0x3b1   :  { %12842 = vst [vmem:[#allocation53_spill] sm:$0xff] %v9226_v49  ;;  %v3016_v4 = vadd.s32 1, %v6350_v10  ;;  %v9234_v29 = vsel %vm6333_vm15, 0, %v6332_v30  ;;  %v2338_v43 = vmax.f32 %v2322_v22, 0.0  ;;  %v2670_v57 = vand.u32 2147483647, %v2669_v39 }
 0x3b2   :  { %v9231_v38 = vshrl.u32 %v2859_v6, 30  ;;  %v2757_v12 = vshll.u32 %v9226_v49, 30  ;;  %v12559_v24 = vand.u32 2147483647, %v9203_v13  ;;  %v2306_v9 = vmax.f32 %v9038_v41, 0.0 }
 0x3b3   :  { %vm3017_vm0 = vcmp.gt.s32.totalorder %v3016_v4, 0  ;;  %v2905_v52 = vand.u32 2139095040, %v9229_v17  ;;  %v2672_v61 = vcvt.s32.f32 %v2665_v19  ;;  %v9241_v47 = vmul.f32 %v2335_v3, %v2303_v26 }
 0x3b4   :  { %v2861_v63 = vshll.u32 %v9231_v38, 30  ;;  %v3018_v40 = vsel %vm3017_vm0, %v3016_v4, 0  ;;  %v2558_v54 = vsub.s32 32, %v9234_v29  ;;  %v9247_v37 = vmul.f32 %v2338_v43, %v2306_v9 }
 0x3b5   :  { %12843 = vst [vmem:[#allocation16_spill] sm:$0xff] %v9241_v47  ;;  %v3020_v46 = vand.u32 31, %v3018_v40  ;;  %v2673_v41 = vmul.f32 %v2672_v61, %v2670_v57  ;;  %v9251_v39 = vsub.s32 %v2754_v21, %v2757_v12  ;;  %v3013_v6 = vand.u32 8388607, %v12559_v24 }
 0x3b6   :  { %v9243_v55 = vsub.s32 %v2858_v23, %v2861_v63  ;;  %v2542_v23 = vadd.s32 %v9024_v34, %v9032_v7  ;;  %v2906_v19 = vshrl.u32 %v2905_v52, 23  ;;  %v2676_v3 = vsub.s32 4, %v9047_v50 }
 0x3b7   :  { %v3021_v4 = vsub.s32 32, %v3020_v46  ;;  %v2559_v26 = vshll.u32 %v9125_v45, %v9234_v29  ;;  %v2562_v43 = vsub.s32 4294967266, %v9234_v29  ;;  %v2674_v61 = vxor.u32 2147483648, %v2673_v41 }
 0x3b8   :  { %v2864_v21 = vsub.s32 0, %v9243_v55  ;;  %v2560_v57 = vshrl.u32 %v2542_v23, %v2558_v54  ;;  %v2760_v34 = vsub.s32 0, %v9251_v39  ;;  %v3014_v7 = vor.u32 8388608, %v3013_v6 }
 0x3b9   :  { %v3024_v12 = vshrl.u32 %v12685_v36, %v3021_v4  ;;  %v3027_v63 = vshrl.u32 %v12686_v31, %v3021_v4  ;;  %v3030_v9 = vshrl.u32 %v12687_v59, %v3021_v4  ;;  %v3029_v52 = vshll.u32 %v12686_v31, %v3020_v46 }
 0x3ba   :  { %v3019_v10 = vshrl.u32 %v3018_v40, 5  ;;  %v3023_v45 = vshll.u32 %v12684_v28, %v3020_v46  ;;  %v3026_v29 = vshll.u32 %v12685_v36, %v3020_v46  ;;  %v6346_v30 = vadd.s32 4294967169, %v2906_v19 }
 0x3bb   :  { %v6343_v54 = vmin.u32 %v2864_v21, %v9243_v55  ;;  %v3031_v23 = vor.u32 %v3030_v9, %v3029_v52  ;;  %v3032_v24 = vshll.u32 %v12687_v59, %v3020_v46  ;;  %v3033_v22 = vshrl.u32 %v12688_v8, %v3021_v4 }
 0x3bc   :  { %v3025_v44 = vor.u32 %v3024_v12, %v3023_v45  ;;  %v3028_v47 = vor.u32 %v3027_v63, %v3026_v29  ;;  %v3035_v56 = vshll.u32 %v12688_v8, %v3020_v46  ;;  %v3036_v6 = vshrl.u32 %v12689_v48, %v3021_v4 }
 0x3bd   :  { %v2675_v40 = vsel %vm2592_vm1, %v2674_v61, %v2673_v41  ;;  %v9277_v35 = vadd.s32 127, %v2562_v43  ;;  %v9280_v19 = vmin.u32 %v2760_v34, %v9251_v39  ;;  %v3034_v21 = vor.u32 %v3033_v22, %v3032_v24 }
 0x3be   :  { %v3037_v9 = vor.u32 %v3036_v6, %v3035_v56  ;;  %vm3041_vm2 = vcmp.lt.s32.totalorder %v3019_v10, 4  ;;  %v3054_v52 = vshll.u32 %v3014_v7, 8  ;;  %v2912_v62 = vadd.s32 1, %v6346_v30 }
 0x3bf   :  { %v2866_v49 = vclz %v6343_v54  ;;  %v3022_v12 = vshrl.u32 %v12684_v28, %v3021_v4  ;;  %vm3038_vm4 = vcmp.lt.s32.totalorder %v3019_v10, 1  ;;  %v3043_v46 = vsel %vm3041_vm2, %v3031_v23, 2102212464 }
 0x3c0   :  { %vm3040_vm5 = vcmp.lt.s32.totalorder %v3019_v10, 3  ;;  %v3046_v63 = vsel %vm3038_vm4, %v3025_v44, %v3028_v47  ;;  %v3047_v45 = vsel %vm3041_vm2, %v3034_v21, 920167782  ;;  %v3050_v29 = vsel %vm3038_vm4, %v3028_v47, %v3031_v23 }
 0x3c1   :  { %vm3039_vm6 = vcmp.lt.s32.totalorder %v3019_v10, 2  ;;  %v3042_v41 = vsel %vm3038_vm4, %v3022_v12, %v3025_v44  ;;  %v3048_v43 = vsel %vm3040_vm5, %v3031_v23, %v3047_v45  ;;  %v3051_v61 = vsel %vm3041_vm2, %v3037_v9, 1326507024 }
 0x3c2   :  { %v3044_v34 = vsel %vm3040_vm5, %v3028_v47, %v3043_v46  ;;  %v3049_v24 = vsel %vm3039_vm6, %v3046_v63, %v3048_v43  ;;  %v3052_v56 = vsel %vm3040_vm5, %v3034_v21, %v3051_v61  ;;  %vm2913_vm10 = vcmp.gt.s32.totalorder %v2912_v62, 0 }
 0x3c3   :  { %v6344_v22 = vadd.s32 4294967294, %v2866_v49  ;;  %v3053_v30 = vsel %vm3039_vm6, %v3050_v29, %v3052_v56  ;;  %v12568_v4 = vand.u32 2147483647, %v9229_v17  ;;  %v2914_v7 = vsel %vm2913_vm10, %v2912_v62, 0 }
 0x3c4   :  { %v9286_v54 = vmul.u32.u64.low %v3054_v52, %v3053_v30  ;;  %v9287_v6 = vmul.u32.u64.high %v3054_v52, %v3053_v30, %v9286_v54  ;;  %v9289_v0 = vmul.u32.u64.low %v3054_v52, %v3049_v24  ;;  %v9290_v1 = vmul.u32.u64.high %v3054_v52, %v3049_v24, %v9289_v0  ;;  %v2287_v30 = vpop.f32.mrf.mxu1 }
 0x3c5   :  { %v12844_v47 = vand.u32 2147483647, %v8906_v5  ;;  %v3045_v49 = vsel %vm3039_vm6, %v3042_v41, %v3044_v34  ;;  %v2916_v21 = vand.u32 31, %v2914_v7  ;;  %v9304_v62 = vsel %vm2592_vm1, %v2676_v3, %v9047_v50 }
 0x3c6   :  { %v9306_v9 = vor.u32 %v2560_v57, %v2559_v26  ;;  %v2564_v12 = vshll.u32 %v9277_v35, 23  ;;  %v2762_v45 = vclz %v9280_v19  ;;  %v2909_v10 = vand.u32 8388607, %v12568_v4 }
 0x3c7   :  { %vm9296_vm7 = vcmp.le.f32.partialorder %v12844_v47, 0.7853982  ;;  %v9316_v29 = vsub.s32 32, %v2916_v21  ;;  %vm6345_vm11 = vcmp.lt.s32.totalorder %v6344_v22, 0  ;;  %v3061_v50 = vmul.u32 %v3054_v52, %v3045_v49 }
 0x3c8   :  { %v2678_v63 = vsel %vm9296_vm7, %v8906_v5, %v2675_v40  ;;  %vm3063_vm12 = vc.u32 %v9287_v6, %v9289_v0  ;;  %v3064_v35 = vadd.s32 1, %v9290_v1  ;;  %v2919_v3 = vshll.u32 %v12684_v28, %v2916_v21 }
 0x3c9   :  { %v2920_v26 = vshrl.u32 %v12685_v36, %v9316_v29  ;;  %v2922_v57 = vshll.u32 %v12685_v36, %v2916_v21  ;;  %v2923_v40 = vshrl.u32 %v12686_v31, %v9316_v29  ;;  %v2926_v52 = vshrl.u32 %v12687_v59, %v9316_v29 }
 0x3ca   :  { %v3065_v19 = vsel %vm3063_vm12, %v3064_v35, %v9290_v1  ;;  %v2928_v41 = vshll.u32 %v12687_v59, %v2916_v21  ;;  %v2929_v43 = vshrl.u32 %v12688_v8, %v9316_v29  ;;  %v9333_v34 = vshrl.u32 %v2914_v7, 5 }
 0x3cb   :  { %v3066_v61 = vadd.s32 %v3065_v19, %v3061_v50  ;;  %v2921_v24 = vor.u32 %v2920_v26, %v2919_v3  ;;  %v2925_v56 = vshll.u32 %v12686_v31, %v2916_v21  ;;  %v2924_v54 = vor.u32 %v2923_v40, %v2922_v57 }
 0x3cc   :  { %v2930_v47 = vor.u32 %v2929_v43, %v2928_v41  ;;  %v2931_v49 = vshll.u32 %v12688_v8, %v2916_v21  ;;  %v2932_v1 = vshrl.u32 %v12689_v48, %v9316_v29  ;;  %v9340_v35 = vsel %vm6345_vm11, 0, %v6344_v22 }
 0x3cd   :  { %v3067_v4 = vadd.s32 536870912, %v3066_v61  ;;  %v2910_v46 = vor.u32 8388608, %v2909_v10  ;;  %v2927_v44 = vor.u32 %v2926_v52, %v2925_v56  ;;  %6737 = vcosq.f32 %v2678_v63 }
 0x3ce   :  { %v2565_v7 = vor.u32 4788187, %v2564_v12  ;;  %v2933_v50 = vor.u32 %v2932_v1, %v2931_v49  ;;  %v9343_v3 = vadd.f32 %v2287_v30, %v9028_v16  ;;  %v6340_v26 = vadd.s32 4294967294, %v2762_v45 }
 0x3cf   :  { %v9345_v57 = vshrl.u32 %v3067_v4, 30  ;;  %vm2934_vm8 = vcmp.lt.s32.totalorder %v9333_v34, 1  ;;  %vm2937_vm9 = vcmp.lt.s32.totalorder %v9333_v34, 4  ;;  %v2874_v21 = vsub.s32 4294967266, %v9340_v35 }
 0x3d0   :  { %vm2936_vm3 = vcmp.lt.s32.totalorder %v9333_v34, 3  ;;  %v2942_v22 = vsel %vm2934_vm8, %v2921_v24, %v2924_v54  ;;  %v2943_v12 = vsel %vm2937_vm9, %v2930_v47, 920167782  ;;  %vm2935_vm13 = vcmp.lt.s32.totalorder %v9333_v34, 2 }
 0x3d1   :  { %v3069_v16 = vshll.u32 %v9345_v57, 30  ;;  %v2944_v4 = vsel %vm2936_vm3, %v2927_v44, %v2943_v12  ;;  %v9359_v45 = vshll.u32 %v2910_v46, 8  ;;  %v2946_v40 = vsel %vm2934_vm8, %v2924_v54, %v2927_v44 }
 0x3d2   :  { %v2945_v10 = vsel %vm2935_vm13, %v2942_v22, %v2944_v4  ;;  %v2947_v19 = vsel %vm2937_vm9, %v2933_v50, 1326507024  ;;  %v9368_v52 = vmul.f32 6.2831855, %v9343_v3  ;;  %6739 = vsinq.f32 %v2678_v63 }
 0x3d3   :  { %v2566_v41 = vand.u32 2147483647, %v2565_v7  ;;  %v2568_v43 = vcvt.s32.f32 %v9306_v9  ;;  %v2948_v46 = vsel %vm2936_vm3, %v2930_v47, %v2947_v19  ;;  %v2875_v56 = vadd.s32 127, %v2874_v21 }
 0x3d4   :  { %v2949_v30 = vsel %vm2935_vm13, %v2946_v40, %v2948_v46  ;;  %v9376_v49 = vmul.u32.u64.low %v9359_v45, %v2945_v10  ;;  %v9377_v1 = vmul.u32.u64.high %v9359_v45, %v2945_v10, %v9376_v49  ;;  %vm6341_vm15 = vcmp.lt.s32.totalorder %v6340_v26, 0 }
 0x3d5   :  { %v9380_v50 = vsub.s32 %v3066_v61, %v3069_v16  ;;  %v9383_v63 = vmul.u32.u64.low %v9359_v45, %v2949_v30  ;;  %v9384_v7 = vmul.u32.u64.high %v9359_v45, %v2949_v30, %v9383_v63  ;;  %v2679_v9 = vsel %vm9296_vm7, 0, %v9304_v62 }
 0x3d6   :  { %vm2488_vm0 = vcmp.lt.s32.totalorder %v8882_v18, 0  ;;  %v2870_v47 = vsub.s32 32, %v9340_v35  ;;  %v2939_v21 = vsel %vm2937_vm9, %v2927_v44, 2102212464  ;;  %v3113_v22 = vand.u32 2139095040, %v9368_v52 }
 0x3d7   :  { %v12847_v61 = vsub.f32 1.0, %v8899_v42  ;;  %v2569_v16 = vmul.f32 %v2568_v43, %v2566_v41  ;;  %v12849_v4 = vsub.f32 1.0, %v8934_v20  ;;  %v2918_v23 = vshrl.u32 %v12684_v28, %v9316_v29 }
 0x3d8   :  { %v2765_v62 = vsel %vm6341_vm15, 0, %v6340_v26  ;;  %v2854_v40 = vadd.s32 %v9197_v25, %v9207_v53  ;;  %v2876_v19 = vshll.u32 %v2875_v56, 23  ;;  %v3114_v46 = vshrl.u32 %v3113_v22, 23 }
 0x3d9   :  { %v9396_v12 = vmax.f32 %v12847_v61, 0.0  ;;  %v2337_v10 = vmax.f32 %v12849_v4, 0.0  ;;  %v2683_v44 = vadd.s32 3, %v2679_v9  ;;  %v3072_v30 = vsub.s32 0, %v9380_v50 }
 0x3da   :  { %v2938_v63 = vsel %vm2934_vm8, %v2918_v23, %v2921_v24  ;;  %v2940_v41 = vsel %vm2936_vm3, %v2924_v54, %v2939_v21  ;;  %v2305_v43 = vmax.f32 %v8934_v20, 0.0  ;;  %v2872_v61 = vshrl.u32 %v2854_v40, %v2870_v47  ;;  %v9411_v4 = vpop.eup %6737  ;;  %v2202_v40 = vpop.f32.mrf.mxu0 }
 0x3db   :  { %12848 = vst [vmem:[#allocation23_spill] sm:$0xff] %v9396_v12  ;;  %v2960_v29 = vadd.s32 1, %v9377_v1  ;;  %v6354_v26 = vadd.s32 4294967169, %v3114_v46  ;;  %v2570_v25 = vxor.u32 2147483648, %v2569_v16  ;;  %v2766_v53 = vsub.s32 32, %v2765_v62 }
 0x3dc   :  { %v2770_v56 = vsub.s32 4294967266, %v2765_v62  ;;  %vm2959_vm1 = vc.u32 %v9384_v7, %v9376_v49  ;;  %v2871_v24 = vshll.u32 %v9243_v55, %v9340_v35  ;;  %v2877_v9 = vor.u32 4788187, %v2876_v19 }
 0x3dd   :  { %v2941_v54 = vsel %vm2935_vm13, %v2938_v63, %v2940_v41  ;;  %v3120_v20 = vadd.s32 1, %v6354_v26  ;;  %v9419_v47 = vand.u32 3, %v2683_v44  ;;  %v9421_v21 = vmul.f32 %v2337_v10, %v2305_v43 }
 0x3de   :  { %v2750_v22 = vadd.s32 %v9147_v51, %v9158_v11  ;;  %v6351_v23 = vmin.u32 %v3072_v30, %v9380_v50  ;;  %v2873_v46 = vor.u32 %v2872_v61, %v2871_v24  ;;  %v2324_v12 = vsub.f32 1.0, %v9186_v15 }
 0x3df   :  { %12850 = vst [vmem:[#allocation37_spill] sm:$0xff] %v9421_v21  ;;  %v2961_v55 = vsel %vm2959_vm1, %v2960_v29, %v9377_v1  ;;  %vm3121_vm2 = vcmp.gt.s32.totalorder %v3120_v20, 0  ;;  %v9430_v34 = vsel %vm2488_vm0, %v2570_v25, %v2569_v16  ;;  %v2957_v19 = vmul.u32 %v9359_v45, %v2941_v54  ;;  %v9434_v44 = vpop.eup %6739 }
 0x3e0   :  { %12851 = vst [vmem:[#allocation12_spill] sm:$0xff] %v9430_v34  ;;  %v2768_v35 = vshrl.u32 %v2750_v22, %v2766_v53  ;;  %v2771_v51 = vadd.s32 127, %v2770_v56  ;;  %v2878_v11 = vand.u32 2147483647, %v2877_v9  ;;  %v3122_v30 = vsel %vm3121_vm2, %v3120_v20, 0 }
 0x3e1   :  { %v9437_v63 = vadd.f32 %v2202_v40, %v8866_v60  ;;  %v2767_v1 = vshll.u32 %v9251_v39, %v2765_v62  ;;  %v3074_v41 = vclz %v6351_v23  ;;  %v9440_v43 = vadd.s32 %v2961_v55, %v2957_v19 }
 0x3e2   :  { %v12569_v16 = vand.u32 2147483647, %v9368_v52  ;;  %v2880_v61 = vcvt.s32.f32 %v2873_v46  ;;  %v9443_v29 = vmax.f32 %v2324_v12, 0.0  ;;  %v12853_v45 = vsub.f32 1.0, %v9220_v27 }
 0x3e3   :  { %v3124_v25 = vand.u32 31, %v3122_v30  ;;  %v2690_v56 = vxor.u32 2147483648, %v9411_v4  ;;  %v9451_v24 = vor.u32 %v2768_v35, %v2767_v1  ;;  %v2884_v39 = vsub.s32 4, %v9231_v38 }
 0x3e4   :  { %12852 = vst [vmem:[#allocation36_spill] sm:$0xff] %v9443_v29  ;;  %v9447_v26 = vmax.f32 %v12853_v45, 0.0  ;;  %v2772_v62 = vshll.u32 %v2771_v51, 23  ;;  %v2881_v9 = vmul.f32 %v2880_v61, %v2878_v11  ;;  %v9455_v20 = vmul.f32 6.2831855, %v9437_v63 }
 0x3e5   :  { %v3125_v54 = vsub.s32 32, %v3124_v25  ;;  %v6352_v12 = vadd.s32 4294967294, %v3074_v41  ;;  %v2963_v22 = vadd.s32 536870912, %v9440_v43  ;;  %v3117_v23 = vand.u32 8388607, %v12569_v16 }
 0x3e6   :  { %v3123_v40 = vshrl.u32 %v3122_v30, 5  ;;  %v3127_v46 = vshll.u32 %v12684_v28, %v3124_v25  ;;  %v3130_v35 = vshll.u32 %v12685_v36, %v3124_v25  ;;  %vm2800_vm4 = vcmp.lt.s32.totalorder %v9058_v33, 0 }
 0x3e7   :  { %v3128_v55 = vshrl.u32 %v12685_v36, %v3125_v54  ;;  %v3131_v19 = vshrl.u32 %v12686_v31, %v3125_v54  ;;  %v3133_v51 = vshll.u32 %v12686_v31, %v3124_v25  ;;  %v3134_v11 = vshrl.u32 %v12687_v59, %v3125_v54 }
 0x3e8   :  { %v3136_v1 = vshll.u32 %v12687_v59, %v3124_v25  ;;  %v3137_v41 = vshrl.u32 %v12688_v8, %v3125_v54  ;;  %v3139_v45 = vshll.u32 %v12688_v8, %v3124_v25  ;;  %v3140_v10 = vshrl.u32 %v12689_v48, %v3125_v54 }
 0x3e9   :  { %v3129_v61 = vor.u32 %v3128_v55, %v3127_v46  ;;  %v3132_v30 = vor.u32 %v3131_v19, %v3130_v35  ;;  %vm2689_vm5 = vcmp.eq.s32.totalorder %v9419_v47, 2  ;;  %v2773_v16 = vor.u32 4788187, %v2772_v62 }
 0x3ea   :  { %vm6353_vm6 = vcmp.lt.s32.totalorder %v6352_v12, 0  ;;  %v3135_v53 = vor.u32 %v3134_v11, %v3133_v51  ;;  %v3138_v21 = vor.u32 %v3137_v41, %v3136_v1  ;;  %v2882_v42 = vxor.u32 2147483648, %v2881_v9 }
 0x3eb   :  { %v3141_v29 = vor.u32 %v3140_v10, %v3139_v45  ;;  %vm3142_vm10 = vcmp.lt.s32.totalorder %v3123_v40, 1  ;;  %v3217_v15 = vand.u32 2139095040, %v9455_v20  ;;  %v12854_v5 = vand.u32 2147483647, %v9058_v33 }
 0x3ec   :  { %v9479_v25 = vshrl.u32 %v2963_v22, 30  ;;  %v3118_v55 = vor.u32 8388608, %v3117_v23  ;;  %vm3145_vm11 = vcmp.lt.s32.totalorder %v3123_v40, 4  ;;  %v3150_v62 = vsel %vm3142_vm10, %v3129_v61, %v3132_v30 }
 0x3ed   :  { %vm9475_vm7 = vcmp.le.f32.partialorder %v12854_v5, 0.7853982  ;;  %v9482_v35 = vsel %vm6353_vm6, 0, %v6352_v12  ;;  %vm3144_vm12 = vcmp.lt.s32.totalorder %v3123_v40, 3  ;;  %v3151_v19 = vsel %vm3145_vm11, %v3138_v21, 920167782 }
 0x3ee   :  { %12857 = vst [vmem:[#allocation38_spill] sm:$0xff] %v9479_v25  ;;  %v3154_v10 = vsel %vm3142_vm10, %v3132_v30, %v3135_v53  ;;  %vm3143_vm8 = vcmp.lt.s32.totalorder %v3123_v40, 2  ;;  %v3147_v51 = vsel %vm3145_vm11, %v3135_v53, 2102212464  ;;  %v3152_v11 = vsel %vm3144_vm12, %v3135_v53, %v3151_v19  ;;  %v2291_v40 = vpop.f32.mrf.mxu1 }
 0x3ef   :  { %v3155_v5 = vsel %vm3145_vm11, %v3141_v29, 1326507024  ;;  %v3126_v1 = vshrl.u32 %v12684_v28, %v3125_v54  ;;  %v3153_v22 = vsel %vm3143_vm8, %v3150_v62, %v3152_v11  ;;  %v3218_v41 = vshrl.u32 %v3217_v15, 23 }
 0x3f0   :  { %v3156_v23 = vsel %vm3144_vm12, %v3138_v21, %v3155_v5  ;;  %vm2686_vm9 = vcmp.eq.s32.totalorder %v9419_v47, 0  ;;  %v3082_v12 = vsub.s32 4294967266, %v9482_v35  ;;  %v2965_v45 = vshll.u32 %v9479_v25, 30 }
 0x3f1   :  { %v3157_v34 = vsel %vm3143_vm8, %v3154_v10, %v3156_v23  ;;  %v3158_v2 = vshll.u32 %v3118_v55, 8  ;;  %v2774_v18 = vand.u32 2147483647, %v2773_v16  ;;  %v2885_v29 = vsel %vm2800_vm4, %v2884_v39, %v9231_v38 }
 0x3f2   :  { %v3146_v53 = vsel %vm3142_vm10, %v3126_v1, %v3129_v61  ;;  %v3148_v54 = vsel %vm3144_vm12, %v3132_v30, %v3147_v51  ;;  %v9508_v55 = vsel %vm2689_vm5, %v2690_v56, %v9434_v44  ;;  %v2883_v16 = vsel %vm2800_vm4, %v2882_v42, %v2881_v9 }
 0x3f3   :  { %v9498_v21 = vmul.u32.u64.low %v3158_v2, %v3157_v34  ;;  %v9499_v15 = vmul.u32.u64.high %v3158_v2, %v3157_v34, %v9498_v21  ;;  %v9501_v62 = vmul.u32.u64.low %v3158_v2, %v3153_v22  ;;  %v9502_v19 = vmul.u32.u64.high %v3158_v2, %v3153_v22, %v9501_v62 }
 0x3f4   :  { %v3078_v38 = vsub.s32 32, %v9482_v35  ;;  %v6358_v39 = vadd.s32 4294967169, %v3218_v41  ;;  %v2776_v61 = vcvt.s32.f32 %v9451_v24  ;;  %v3083_v30 = vadd.s32 127, %v3082_v12 }
 0x3f5   :  { %v9515_v34 = vsub.s32 %v9440_v43, %v2965_v45  ;;  %v3149_v10 = vsel %vm3143_vm8, %v3146_v53, %v3148_v54  ;;  %v2887_v51 = vsel %vm9475_vm7, 0, %v2885_v29  ;;  %v3062_v56 = vadd.s32 %v9289_v0, %v9287_v6 }
 0x3f6   :  { %v2325_v11 = vsub.f32 1.0, %v9343_v3  ;;  %v3224_v42 = vadd.s32 1, %v6358_v39  ;;  %v9523_v9 = vmul.f32 %v2776_v61, %v2774_v18  ;;  %v2886_v24 = vsel %vm9475_vm7, %v9058_v33, %v2883_v16 }
 0x3f7   :  { %vm3167_vm3 = vc.u32 %v9499_v15, %v9501_v62  ;;  %v3168_v43 = vadd.s32 1, %v9502_v19  ;;  %v3080_v5 = vshrl.u32 %v3062_v56, %v3078_v38  ;;  %v3165_v1 = vmul.u32 %v3158_v2, %v3149_v10 }
 0x3f8   :  { %v12578_v22 = vand.u32 2147483647, %v9455_v20  ;;  %vm3225_vm13 = vcmp.gt.s32.totalorder %v3224_v42, 0  ;;  %vm3008_vm15 = vcmp.lt.s32.totalorder %v9203_v13, 0  ;;  %v3084_v0 = vshll.u32 %v3083_v30, 23 }
 0x3f9   :  { %v2968_v18 = vsub.s32 0, %v9515_v34  ;;  %v3169_v6 = vsel %vm3167_vm3, %v3168_v43, %v9502_v19  ;;  %v3226_v46 = vsel %vm3225_vm13, %v3224_v42, 0  ;;  %v12858_v23 = vxor.u32 2147483648, %v9434_v44 }
 0x3fa   :  { %v3170_v12 = vadd.s32 %v3169_v6, %v3165_v1  ;;  %v3228_v2 = vand.u32 31, %v3226_v46  ;;  %v9543_v45 = vadd.f32 %v2291_v40, %v8866_v60  ;;  %v9546_v53 = vadd.s32 3, %v2887_v51 }
 0x3fb   :  { %v9540_v41 = vsel %vm2686_vm9, %v9411_v4, %v12858_v23  ;;  %v3079_v54 = vshll.u32 %v9380_v50, %v9482_v35  ;;  %v9550_v21 = vmax.f32 %v2325_v11, 0.0  ;;  %6741 = vcosq.f32 %v2886_v24 }
 0x3fc   :  { %v3092_v44 = vsub.s32 4, %v9345_v57  ;;  %v3171_v19 = vadd.s32 536870912, %v3170_v12  ;;  %v3229_v4 = vsub.s32 32, %v3228_v2  ;;  %v3085_v38 = vor.u32 4788187, %v3084_v0 }
 0x3fd   :  { %v3081_v16 = vor.u32 %v3080_v5, %v3079_v54  ;;  %v6347_v39 = vmin.u32 %v2968_v18, %v9515_v34  ;;  %v3221_v61 = vand.u32 8388607, %v12578_v22  ;;  %v3231_v30 = vshll.u32 %v12684_v28, %v3228_v2 }
 0x3fe   :  { %v3232_v10 = vshrl.u32 %v12685_v36, %v3229_v4  ;;  %v3234_v50 = vshll.u32 %v12685_v36, %v3228_v2  ;;  %v9560_v35 = vmul.f32 6.2831855, %v9543_v45  ;;  %v3235_v51 = vshrl.u32 %v12686_v31, %v3229_v4 }
 0x3ff   :  { %v3238_v56 = vshrl.u32 %v12687_v59, %v3229_v4  ;;  %v3240_v11 = vshll.u32 %v12687_v59, %v3228_v2  ;;  %v3241_v42 = vshrl.u32 %v12688_v8, %v3229_v4  ;;  %6743 = vsinq.f32 %v2886_v24 }
 0x400   :  { %12859 = vst [vmem:[#allocation19_spill] sm:$0xff] %v9560_v35  ;;  %v9566_v43 = vshrl.u32 %v3171_v19, 30  ;;  %v3227_v40 = vshrl.u32 %v3226_v46, 5  ;;  %v3237_v5 = vshll.u32 %v12686_v31, %v3228_v2  ;;  %v12861_v1 = vand.u32 2147483647, %v9203_v13 }
 0x401   :  { %v3222_v18 = vor.u32 8388608, %v3221_v61  ;;  %v3233_v6 = vor.u32 %v3232_v10, %v3231_v30  ;;  %v3236_v23 = vor.u32 %v3235_v51, %v3234_v50  ;;  %v3242_v54 = vor.u32 %v3241_v42, %v3240_v11 }
 0x402   :  { %12860 = vst [vmem:[#allocation25_spill] sm:$0xff] %v9566_v43  ;;  %vm9571_vm1 = vcmp.le.f32.partialorder %v12861_v1, 0.7853982  ;;  %vm2685_vm2 = vcmp.lt.s32.totalorder %v9419_v47, 2  ;;  %v3093_v24 = vsel %vm3008_vm15, %v3092_v44, %v9345_v57  ;;  %v3239_v19 = vor.u32 %v3238_v56, %v3237_v5 }
 0x403   :  { %v3243_v46 = vshll.u32 %v12688_v8, %v3228_v2  ;;  %v3244_v22 = vshrl.u32 %v12689_v48, %v3229_v4  ;;  %v3086_v29 = vand.u32 2147483647, %v3085_v38  ;;  %v3088_v1 = vcvt.s32.f32 %v3081_v16 }
 0x404   :  { %v2970_v25 = vclz %v6347_v39  ;;  %v3425_v14 = vand.u32 2139095040, %v9560_v35  ;;  %vm2696_vm4 = vcmp.lt.s32.totalorder %v9035_v32, 0  ;;  %v3173_v61 = vshll.u32 %v9566_v43, 30 }
 0x405   :  { %v3245_v30 = vor.u32 %v3244_v22, %v3243_v46  ;;  %vm3246_vm5 = vcmp.lt.s32.totalorder %v3227_v40, 1  ;;  %vm3249_vm6 = vcmp.lt.s32.totalorder %v3227_v40, 4  ;;  %vm3248_vm10 = vcmp.lt.s32.totalorder %v3227_v40, 3 }
 0x406   :  { %v3254_v57 = vsel %vm3246_vm5, %v3233_v6, %v3236_v23  ;;  %v3255_v44 = vsel %vm3249_vm6, %v3242_v54, 920167782  ;;  %v3262_v10 = vshll.u32 %v3222_v18, 8  ;;  %vm3247_vm7 = vcmp.lt.s32.totalorder %v3227_v40, 2 }
 0x407   :  { %v3251_v2 = vsel %vm3249_vm6, %v3239_v19, 2102212464  ;;  %v3256_v38 = vsel %vm3248_vm10, %v3239_v19, %v3255_v44  ;;  %v3258_v16 = vsel %vm3246_vm5, %v3236_v23, %v3239_v19  ;;  %v3230_v39 = vshrl.u32 %v12684_v28, %v3229_v4 }
 0x408   :  { %v3257_v50 = vsel %vm3247_vm7, %v3254_v57, %v3256_v38  ;;  %v3259_v51 = vsel %vm3249_vm6, %v3245_v30, 1326507024  ;;  %v3426_v56 = vshrl.u32 %v3425_v14, 23  ;;  %v9589_v22 = vsub.s32 %v3170_v12, %v3173_v61  ;;  %v9596_v18 = vpop.eup %6741 }
 0x409   :  { %v3260_v11 = vsel %vm3248_vm10, %v3242_v54, %v3259_v51  ;;  %v9592_v42 = vmul.u32.u64.low %v3262_v10, %v3257_v50  ;;  %v9593_v5 = vmul.u32.u64.high %v3262_v10, %v3257_v50, %v9592_v42  ;;  %v3250_v46 = vsel %vm3246_vm5, %v3230_v39, %v3233_v6 }
 0x40a   :  { %v3252_v19 = vsel %vm3248_vm10, %v3236_v23, %v3251_v2  ;;  %v3261_v4 = vsel %vm3247_vm7, %v3258_v16, %v3260_v11  ;;  %v6366_v44 = vadd.s32 4294967169, %v3426_v56  ;;  %v3089_v57 = vmul.f32 %v3088_v1, %v3086_v29 }
 0x40b   :  { %v3095_v14 = vsel %vm9571_vm1, 0, %v3093_v24  ;;  %v9603_v12 = vmul.u32.u64.low %v3262_v10, %v3261_v4  ;;  %v9604_v61 = vmul.u32.u64.high %v3262_v10, %v3261_v4, %v9603_v12  ;;  %v9610_v54 = vsel %vm2685_vm2, %v9540_v41, %v9508_v55 }
 0x40c   :  { %12864 = vst [vmem:[#allocation30_spill] sm:$0xff] %v9610_v54  ;;  %v9613_v6 = vand.u32 3, %v9546_v53  ;;  %v2309_v23 = vmax.f32 %v9343_v3, 0.0  ;;  %v3432_v30 = vadd.s32 1, %v6366_v44  ;;  %v6348_v2 = vadd.s32 4294967294, %v2970_v25  ;;  %v9619_v38 = vpop.eup %6743  ;;  %v2204_v53 = vpop.f32.mrf.mxu0 }
 0x40d   :  { %v3176_v29 = vsub.s32 0, %v9589_v22  ;;  %v3253_v24 = vsel %vm3247_vm7, %v3250_v46, %v3252_v19  ;;  %v3272_v1 = vadd.s32 1, %v9593_v5  ;;  %v12865_v47 = vxor.u32 2147483648, %v9523_v9 }
 0x40e   :  { %v3099_v41 = vadd.s32 3, %v3095_v14  ;;  %v12867_v3 = vmax.f32 %v9220_v27, 0.0  ;;  %vm3433_vm11 = vcmp.gt.s32.totalorder %v3432_v30, 0  ;;  %v3090_v40 = vxor.u32 2147483648, %v3089_v57 }
 0x40f   :  { %v9626_v55 = vsel %vm2696_vm4, %v12865_v47, %v9523_v9  ;;  %v9634_v16 = vmul.f32 %v9550_v21, %v2309_v23  ;;  %v2326_v50 = vsub.f32 1.0, %v9437_v63  ;;  %v3269_v51 = vmul.u32 %v3262_v10, %v3253_v24 }
 0x410   :  { %12866 = vst [vmem:[#allocation13_spill] sm:$0xff] %v9626_v55  ;;  %v9631_v25 = vmul.f32 %v9447_v26, %v12867_v3  ;;  %vm3271_vm12 = vc.u32 %v9604_v61, %v9592_v42  ;;  %v12582_v9 = vand.u32 2147483647, %v9560_v35  ;;  %v3434_v27 = vsel %vm3433_vm11, %v3432_v30, 0 }
 0x411   :  { %12869 = vst [vmem:[#allocation24_spill] sm:$0xff] %v9634_v16  ;;  %vm2897_vm8 = vcmp.eq.s32.totalorder %v9613_v6, 2  ;;  %vm6349_vm9 = vcmp.lt.s32.totalorder %v6348_v2, 0  ;;  %v6355_v26 = vmin.u32 %v3176_v29, %v9589_v22  ;;  %v3273_v56 = vsel %vm3271_vm12, %v3272_v1, %v9593_v5 }
 0x412   :  { %12868 = vst [vmem:[#allocation28_spill] sm:$0xff] %v9631_v25  ;;  %v9645_v21 = vadd.f32 %v2204_v53, %v8866_v60  ;;  %v9647_v11 = vand.u32 3, %v3099_v41  ;;  %v3274_v46 = vadd.s32 %v3273_v56, %v3269_v51  ;;  %v3436_v19 = vand.u32 31, %v3434_v27 }
 0x413   :  { %v2898_v4 = vxor.u32 2147483648, %v9596_v18  ;;  %v3091_v44 = vsel %vm3008_vm15, %v3090_v40, %v3089_v57  ;;  %v9655_v14 = vadd.s32 %v9376_v49, %v9384_v7  ;;  %v9657_v12 = vmax.f32 %v2326_v50, 0.0 }
 0x414   :  { %v9659_v5 = vsel %vm6349_vm9, 0, %v6348_v2  ;;  %v3275_v23 = vadd.s32 536870912, %v3274_v46  ;;  %v3429_v30 = vand.u32 8388607, %v12582_v9  ;;  %v3437_v29 = vsub.s32 32, %v3436_v19 }
 0x415   :  { %v3178_v24 = vclz %v6355_v26  ;;  %v9663_v1 = vshrl.u32 %v3434_v27, 5  ;;  %v3439_v47 = vshll.u32 %v12684_v28, %v3436_v19  ;;  %v9667_v57 = vmul.f32 6.2831855, %v9645_v21 }
 0x416   :  { %v9669_v41 = vshrl.u32 %v3275_v23, 30  ;;  %v3440_v49 = vshrl.u32 %v12685_v36, %v3437_v29  ;;  %v3442_v7 = vshll.u32 %v12685_v36, %v3436_v19  ;;  %v3443_v2 = vshrl.u32 %v12686_v31, %v3437_v29 }
 0x417   :  { %v3445_v3 = vshll.u32 %v12686_v31, %v3436_v19  ;;  %v3446_v53 = vshrl.u32 %v12687_v59, %v3437_v29  ;;  %v3448_v40 = vshll.u32 %v12687_v59, %v3436_v19  ;;  %v3449_v50 = vshrl.u32 %v12688_v8, %v3437_v29 }
 0x418   :  { %v3277_v51 = vshll.u32 %v9669_v41, 30  ;;  %v3430_v27 = vor.u32 8388608, %v3429_v30  ;;  %v3441_v26 = vor.u32 %v3440_v49, %v3439_v47  ;;  %v3444_v56 = vor.u32 %v3443_v2, %v3442_v7 }
 0x419   :  { %vm2894_vm3 = vcmp.eq.s32.totalorder %v9613_v6, 0  ;;  %v3447_v23 = vor.u32 %v3446_v53, %v3445_v3  ;;  %v3450_v9 = vor.u32 %v3449_v50, %v3448_v40  ;;  %v3451_v10 = vshll.u32 %v12688_v8, %v3436_v19 }
 0x41a   :  { %v3452_v39 = vshrl.u32 %v12689_v48, %v3437_v29  ;;  %v2895_v16 = vxor.u32 2147483648, %v9619_v38  ;;  %v2899_v54 = vsel %vm2897_vm8, %v2898_v4, %v9619_v38  ;;  %v3094_v30 = vsel %vm9571_vm1, %v9203_v13, %v3091_v44 }
 0x41b   :  { %v9689_v47 = vsub.s32 %v3274_v46, %v3277_v51  ;;  %v2978_v49 = vsub.s32 4294967266, %v9659_v5  ;;  %vm3454_vm13 = vcmp.lt.s32.totalorder %v9663_v1, 1  ;;  %v3321_v19 = vand.u32 2139095040, %v9667_v57 }
 0x41c   :  { %v3453_v7 = vor.u32 %v3452_v39, %v3451_v10  ;;  %v6356_v2 = vadd.s32 4294967294, %v3178_v24  ;;  %vm3457_vm15 = vcmp.lt.s32.totalorder %v9663_v1, 4  ;;  %v3462_v38 = vsel %vm3454_vm13, %v3441_v26, %v3444_v56 }
 0x41d   :  { %v3280_v3 = vsub.s32 0, %v9689_v47  ;;  %vm3456_vm2 = vcmp.lt.s32.totalorder %v9663_v1, 3  ;;  %v3459_v0 = vsel %vm3457_vm15, %v3447_v23, 2102212464  ;;  %v3463_v46 = vsel %vm3457_vm15, %v3450_v9, 920167782 }
 0x41e   :  { %v3470_v4 = vshll.u32 %v3430_v27, 8  ;;  %v3438_v39 = vshrl.u32 %v12684_v28, %v3437_v29  ;;  %vm3455_vm1 = vcmp.lt.s32.totalorder %v9663_v1, 2  ;;  %v3464_v10 = vsel %vm3456_vm2, %v3447_v23, %v3463_v46  ;;  %v2293_v1 = vpop.f32.mrf.mxu1 }
 0x41f   :  { %v6359_v44 = vmin.u32 %v3280_v3, %v9689_v47  ;;  %vm2893_vm5 = vcmp.lt.s32.totalorder %v9613_v6, 2  ;;  %v3465_v24 = vsel %vm3455_vm1, %v3462_v38, %v3464_v10  ;;  %v3466_v53 = vsel %vm3454_vm13, %v3444_v56, %v3447_v23 }
 0x420   :  { %v3467_v40 = vsel %vm3457_vm15, %v3453_v7, 1326507024  ;;  %v3322_v50 = vshrl.u32 %v3321_v19, 23  ;;  %v2974_v51 = vsub.s32 32, %v9659_v5  ;;  %v3458_v29 = vsel %vm3454_vm13, %v3438_v39, %v3441_v26 }
 0x421   :  { %v3282_v27 = vclz %v6359_v44  ;;  %v3460_v3 = vsel %vm3456_vm2, %v3444_v56, %v3459_v0  ;;  %v3468_v46 = vsel %vm3456_vm2, %v3450_v9, %v3467_v40  ;;  %v2896_v23 = vsel %vm2894_vm3, %v9596_v18, %v2895_v16 }
 0x422   :  { %v9716_v25 = vmul.u32.u64.low %v3470_v4, %v3465_v24  ;;  %v9717_v55 = vmul.u32.u64.high %v3470_v4, %v3465_v24, %v9716_v25  ;;  %v6362_v38 = vadd.s32 4294967169, %v3322_v50  ;;  %v2979_v7 = vadd.s32 127, %v2978_v49 }
 0x423   :  { %v6360_v19 = vadd.s32 4294967294, %v3282_v27  ;;  %v3469_v26 = vsel %vm3455_vm1, %v3466_v53, %v3468_v46  ;;  %vm6357_vm6 = vcmp.lt.s32.totalorder %v6356_v2, 0  ;;  %6745 = vcosq.f32 %v3094_v30 }
 0x424   :  { %v9725_v44 = vmul.u32.u64.low %v3470_v4, %v3469_v26  ;;  %v9726_v56 = vmul.u32.u64.high %v3470_v4, %v3469_v26, %v9725_v44  ;;  %v3328_v0 = vadd.s32 1, %v6362_v38  ;;  %v2975_v9 = vshll.u32 %v9515_v34, %v9659_v5 }
 0x425   :  { %vm6361_vm10 = vcmp.lt.s32.totalorder %v6360_v19, 0  ;;  %v3461_v39 = vsel %vm3455_vm1, %v3458_v29, %v3460_v3  ;;  %v2976_v18 = vshrl.u32 %v9655_v14, %v2974_v51  ;;  %v3480_v49 = vadd.s32 1, %v9717_v55 }
 0x426   :  { %v9733_v16 = vsel %vm6361_vm10, 0, %v6360_v19  ;;  %vm3329_vm7 = vcmp.gt.s32.totalorder %v3328_v0, 0  ;;  %v2980_v10 = vshll.u32 %v2979_v7, 23  ;;  %v9736_v24 = vsel %vm6357_vm6, 0, %v6356_v2 }
 0x427   :  { %v12583_v53 = vand.u32 2147483647, %v9667_v57  ;;  %v3330_v40 = vsel %vm3329_vm7, %v3328_v0, 0  ;;  %v3290_v50 = vsub.s32 4294967266, %v9733_v16  ;;  %v3477_v34 = vmul.u32 %v3470_v4, %v3461_v39 }
 0x428   :  { %vm3479_vm11 = vc.u32 %v9726_v56, %v9716_v25  ;;  %v3332_v5 = vand.u32 31, %v3330_v40  ;;  %v9744_v14 = vsel %vm2893_vm5, %v2896_v23, %v2899_v54  ;;  %6747 = vsinq.f32 %v3094_v30 }
 0x429   :  { %v3481_v2 = vsel %vm3479_vm11, %v3480_v49, %v9717_v55  ;;  %v9748_v27 = vor.u32 %v2976_v18, %v2975_v9  ;;  %v9752_v29 = vadd.s32 %v9501_v62, %v9499_v15  ;;  %v9754_v46 = vor.u32 4788187, %v2980_v10 }
 0x42a   :  { %v3482_v4 = vadd.s32 %v3481_v2, %v3477_v34  ;;  %v3333_v3 = vsub.s32 32, %v3332_v5  ;;  %v3186_v38 = vsub.s32 4294967266, %v9736_v24  ;;  %v3325_v54 = vand.u32 8388607, %v12583_v53 }
 0x42b   :  { %v9760_v6 = vadd.f32 %v2293_v1, %v8866_v60  ;;  %v3291_v30 = vadd.s32 127, %v3290_v50  ;;  %v3335_v15 = vshll.u32 %v12684_v28, %v3332_v5  ;;  %v3338_v62 = vshll.u32 %v12685_v36, %v3332_v5 }
 0x42c   :  { %v3483_v55 = vadd.s32 536870912, %v3482_v4  ;;  %v3336_v23 = vshrl.u32 %v12685_v36, %v3333_v3  ;;  %v3339_v7 = vshrl.u32 %v12686_v31, %v3333_v3  ;;  %v3342_v19 = vshrl.u32 %v12687_v59, %v3333_v3 }
 0x42d   :  { %v3345_v26 = vshrl.u32 %v12688_v8, %v3333_v3  ;;  %v9770_v0 = vshrl.u32 %v3330_v40, 5  ;;  %v3341_v60 = vshll.u32 %v12686_v31, %v3332_v5  ;;  %v3344_v9 = vshll.u32 %v12687_v59, %v3332_v5 }
 0x42e   :  { %v9768_v44 = vshrl.u32 %v3483_v55, 30  ;;  %v3337_v39 = vor.u32 %v3336_v23, %v3335_v15  ;;  %v3340_v18 = vor.u32 %v3339_v7, %v3338_v62  ;;  %v3347_v49 = vshll.u32 %v12688_v8, %v3332_v5 }
 0x42f   :  { %v3348_v10 = vshrl.u32 %v12689_v48, %v3333_v3  ;;  %v3286_v50 = vsub.s32 32, %v9733_v16  ;;  %v3326_v1 = vor.u32 8388608, %v3325_v54  ;;  %v3346_v2 = vor.u32 %v3345_v26, %v3344_v9 }
 0x430   :  { %v3485_v34 = vshll.u32 %v9768_v44, 30  ;;  %v3182_v55 = vsub.s32 32, %v9736_v24  ;;  %v3292_v40 = vshll.u32 %v3291_v30, 23  ;;  %v3343_v53 = vor.u32 %v3342_v19, %v3341_v60  ;;  %v9779_v32 = vpop.eup %6745 }
 0x431   :  { %v3349_v51 = vor.u32 %v3348_v10, %v3347_v49  ;;  %v3187_v43 = vadd.s32 127, %v3186_v38  ;;  %v3270_v23 = vadd.s32 %v9592_v42, %v9604_v61  ;;  %vm3350_vm12 = vcmp.lt.s32.totalorder %v9770_v0, 1 }
 0x432   :  { %v9783_v5 = vsub.s32 %v3482_v4, %v3485_v34  ;;  %v3287_v7 = vshll.u32 %v9689_v47, %v9733_v16  ;;  %vm3353_vm8 = vcmp.lt.s32.totalorder %v9770_v0, 4  ;;  %v3358_v54 = vsel %vm3350_vm12, %v3337_v39, %v3340_v18 }
 0x433   :  { %v9792_v30 = vmul.f32 6.2831855, %v9760_v6  ;;  %vm2890_vm9 = vweird.f32 %v9058_v33  ;;  %v3288_v38 = vshrl.u32 %v3270_v23, %v3286_v50  ;;  %vm3352_vm3 = vcmp.lt.s32.totalorder %v9770_v0, 3 }
 0x434   :  { %v3359_v42 = vsel %vm3353_vm8, %v3346_v2, 920167782  ;;  %v3366_v61 = vshll.u32 %v3326_v1, 8  ;;  %v3293_v4 = vor.u32 4788187, %v3292_v40  ;;  %vm3351_vm13 = vcmp.lt.s32.totalorder %v9770_v0, 2 }
 0x435   :  { %v3360_v47 = vsel %vm3352_vm3, %v3343_v53, %v3359_v42  ;;  %v3363_v16 = vsel %vm3353_vm8, %v3349_v51, 1326507024  ;;  %v6748_v15 = vpop.eup %6747  ;;  %v3488_v62 = vsub.s32 0, %v9783_v5  ;;  %v3355_v19 = vsel %vm3353_vm8, %v3343_v53, 2102212464 }
 0x436   :  { %v3361_v26 = vsel %vm3351_vm13, %v3358_v54, %v3360_v47  ;;  %v3362_v60 = vsel %vm3350_vm12, %v3340_v18, %v3343_v53  ;;  %vm3102_vm15 = vcmp.eq.s32.totalorder %v9647_v11, 0  ;;  %vm3105_vm2 = vcmp.eq.s32.totalorder %v9647_v11, 2 }
 0x437   :  { %v3334_v9 = vshrl.u32 %v12684_v28, %v3333_v3  ;;  %v3364_v49 = vsel %vm3352_vm3, %v3346_v2, %v3363_v16  ;;  %v9809_v51 = vmul.u32.u64.low %v3366_v61, %v3361_v26  ;;  %v9810_v10 = vmul.u32.u64.high %v3366_v61, %v3361_v26, %v9809_v51 }
 0x438   :  { %v2982_v50 = vand.u32 2147483647, %v9754_v46  ;;  %v2984_v34 = vcvt.s32.f32 %v9748_v27  ;;  %v3188_v1 = vshll.u32 %v3187_v43, 23  ;;  %v3289_v40 = vor.u32 %v3288_v38, %v3287_v7  ;;  %v2208_v27 = vpop.f32.mrf.mxu0 }
 0x439   :  { %v3184_v53 = vshrl.u32 %v9752_v29, %v3182_v55  ;;  %v3354_v23 = vsel %vm3350_vm12, %v3334_v9, %v3337_v39  ;;  %v3356_v3 = vsel %vm3352_vm3, %v3340_v18, %v3355_v19  ;;  %v3365_v2 = vsel %vm3351_vm13, %v3362_v60, %v3364_v49 }
 0x43a   :  { %v3294_v54 = vand.u32 2147483647, %v3293_v4  ;;  %v6367_v42 = vmin.u32 %v3488_v62, %v9783_v5  ;;  %v9823_v47 = vmul.u32.u64.low %v3366_v61, %v3365_v2  ;;  %v9824_v46 = vmul.u32.u64.high %v3366_v61, %v3365_v2, %v9823_v47 }
 0x43b   :  { %vm3101_vm1 = vcmp.lt.s32.totalorder %v9647_v11, 2  ;;  %v3103_v43 = vxor.u32 2147483648, %v6748_v15  ;;  %v3106_v29 = vxor.u32 2147483648, %v9779_v32  ;;  %v3183_v39 = vshll.u32 %v9589_v22, %v9736_v24 }
 0x43c   :  { %v3529_v18 = vand.u32 2139095040, %v9792_v30  ;;  %v3189_v55 = vor.u32 4788187, %v3188_v1  ;;  %vm3216_vm5 = vcmp.lt.s32.totalorder %v9455_v20, 0  ;;  %v3296_v7 = vcvt.s32.f32 %v3289_v40 }
 0x43d   :  { %v3357_v38 = vsel %vm3351_vm13, %v3354_v23, %v3356_v3  ;;  %v3376_v4 = vadd.s32 1, %v9810_v10  ;;  %v2901_v16 = vsel %vm2890_vm9, nan, %v9744_v14  ;;  %vm2904_vm6 = vcmp.lt.s32.totalorder %v9229_v17, 0 }
 0x43e   :  { %v12870_v62 = vmax.f32 %v9437_v63, 0.0  ;;  %v3530_v24 = vshrl.u32 %v3529_v18, 23  ;;  %v9845_v19 = vadd.f32 %v2208_v27, %v8990_v58  ;;  %vm3098_vm10 = vweird.f32 %v9203_v13 }
 0x43f   :  { %v2985_v0 = vmul.f32 %v2984_v34, %v2982_v50  ;;  %v3185_v26 = vor.u32 %v3184_v53, %v3183_v39  ;;  %v3297_v60 = vmul.f32 %v3296_v7, %v3294_v54  ;;  %v3490_v9 = vclz %v6367_v42 }
 0x440   :  { %v9842_v22 = vmul.f32 %v9657_v12, %v12870_v62  ;;  %v12871_v33 = vand.u32 2147483647, %v9455_v20  ;;  %v12874_v63 = vsub.f32 1.0, %v9543_v45  ;;  %v3373_v49 = vmul.u32 %v3366_v61, %v3357_v38 }
 0x441   :  { %vm3375_vm11 = vc.u32 %v9824_v46, %v9809_v51  ;;  %v6370_v1 = vadd.s32 4294967169, %v3530_v24  ;;  %v3104_v50 = vsel %vm3102_vm15, %v9779_v32, %v3103_v43  ;;  %v3107_v34 = vsel %vm3105_vm2, %v3106_v29, %v6748_v15 }
 0x442   :  { %vm9850_vm7 = vcmp.le.f32.partialorder %v12871_v33, 0.7853982  ;;  %v2344_v12 = vmax.f32 %v12874_v63, 0.0  ;;  %v3190_v40 = vand.u32 2147483647, %v3189_v55  ;;  %v3377_v53 = vsel %vm3375_vm11, %v3376_v4, %v9810_v10 }
 0x443   :  { %v3300_v23 = vsub.s32 4, %v9669_v41  ;;  %v3378_v3 = vadd.s32 %v3377_v53, %v3373_v49  ;;  %v3536_v2 = vadd.s32 1, %v6370_v1  ;;  %v9866_v61 = vmul.f32 6.2831855, %v9845_v19 }
 0x444   :  { %v2986_v54 = vxor.u32 2147483648, %v2985_v0  ;;  %v3192_v42 = vcvt.s32.f32 %v3185_v26  ;;  %v3298_v47 = vxor.u32 2147483648, %v3297_v60  ;;  %v6368_v27 = vadd.s32 4294967294, %v3490_v9 }
 0x445   :  { %v9869_v39 = vmul.f32 %v2901_v16, %v9247_v37  ;;  %v3379_v32 = vadd.s32 536870912, %v3378_v3  ;;  %v12588_v15 = vand.u32 2147483647, %v9792_v30  ;;  %vm3537_vm12 = vcmp.gt.s32.totalorder %v3536_v2, 0 }
 0x446   :  { %v3108_v10 = vsel %vm3101_vm1, %v3104_v50, %v3107_v34  ;;  %v9874_v43 = vmul.f32 %v3192_v42, %v3190_v40  ;;  %v2327_v29 = vsub.f32 1.0, %v9645_v21  ;;  %v3538_v18 = vsel %vm3537_vm12, %v3536_v2, 0 }
 0x447   :  { %12875 = vst [vmem:[#allocation26_spill] sm:$0xff] %v9869_v39  ;;  %v9880_v55 = vsel %vm3216_vm5, %v3300_v23, %v9669_v41  ;;  %v9882_v7 = vshrl.u32 %v3379_v32, 30  ;;  %v3540_v37 = vand.u32 31, %v3538_v18  ;;  %v3633_v38 = vand.u32 2139095040, %v9866_v61 }
 0x448   :  { %v9887_v4 = vsel %vm2904_vm6, %v2986_v54, %v2985_v0  ;;  %v3299_v11 = vsel %vm3216_vm5, %v3298_v47, %v3297_v60  ;;  %v12876_v16 = vmax.f32 %v9543_v45, 0.0  ;;  %vm6369_vm8 = vcmp.lt.s32.totalorder %v6368_v27, 0 }
 0x449   :  { %v9897_v41 = vsel %vm3098_vm10, nan, %v3108_v10  ;;  %v3381_v24 = vshll.u32 %v9882_v7, 30  ;;  %v3533_v26 = vand.u32 8388607, %v12588_v15  ;;  %v3541_v9 = vsub.s32 32, %v3540_v37 }
 0x44a   :  { %v9893_v62 = vmul.f32 %v2344_v12, %v12876_v16  ;;  %12878 = vst [vmem:[#allocation29_spill] sm:$0xff] %v9897_v41  ;;  %v3303_v60 = vsel %vm9850_vm7, 0, %v9880_v55  ;;  %v9907_v33 = vmax.f32 %v2327_v29, 0.0  ;;  %v9912_v13 = vsel %vm9850_vm7, %v9455_v20, %v3299_v11 }
 0x44b   :  { %v9914_v63 = vsel %vm6369_vm8, 0, %v6368_v27  ;;  %v3544_v12 = vshrl.u32 %v12685_v36, %v3541_v9  ;;  %v3634_v49 = vshrl.u32 %v3633_v38, 23  ;;  %v3543_v1 = vshll.u32 %v12684_v28, %v3540_v37 }
 0x44c   :  { %12877 = vst [vmem:[#allocation17_spill] sm:$0xff] %v9893_v62  ;;  %v3546_v50 = vshll.u32 %v12685_v36, %v3540_v37  ;;  %v3547_v34 = vshrl.u32 %v12686_v31, %v3541_v9  ;;  %v3550_v40 = vshrl.u32 %v12687_v59, %v3541_v9  ;;  %v9921_v53 = vsub.s32 %v3378_v3, %v3381_v24 }
 0x44d   :  { %v3534_v23 = vor.u32 8388608, %v3533_v26  ;;  %v3539_v2 = vshrl.u32 %v3538_v18, 5  ;;  %v3549_v14 = vshll.u32 %v12686_v31, %v3540_v37  ;;  %v3545_v54 = vor.u32 %v3544_v12, %v3543_v1 }
 0x44e   :  { %v3548_v42 = vor.u32 %v3547_v34, %v3546_v50  ;;  %v3552_v47 = vshll.u32 %v12687_v59, %v3540_v37  ;;  %v3553_v27 = vshrl.u32 %v12688_v8, %v3541_v9  ;;  %v3478_v32 = vadd.s32 %v9716_v25, %v9726_v56 }
 0x44f   :  { %v3551_v10 = vor.u32 %v3550_v40, %v3549_v14  ;;  %v3555_v29 = vshll.u32 %v12688_v8, %v3540_v37  ;;  %v3556_v55 = vshrl.u32 %v12689_v48, %v3541_v9  ;;  %6749 = vcosq.f32 %v9912_v13 }
 0x450   :  { %v3494_v3 = vsub.s32 32, %v9914_v63  ;;  %v3554_v18 = vor.u32 %v3553_v27, %v3552_v47  ;;  %v6374_v38 = vadd.s32 4294967169, %v3634_v49  ;;  %vm3112_vm9 = vcmp.lt.s32.totalorder %v9368_v52, 0 }
 0x451   :  { %v3498_v11 = vsub.s32 4294967266, %v9914_v63  ;;  %v3384_v16 = vsub.s32 0, %v9921_v53  ;;  %v3557_v24 = vor.u32 %v3556_v55, %v3555_v29  ;;  %vm3558_vm3 = vcmp.lt.s32.totalorder %v3539_v2, 1 }
 0x452   :  { %v3542_v25 = vshrl.u32 %v12684_v28, %v3541_v9  ;;  %vm3561_vm13 = vcmp.lt.s32.totalorder %v3539_v2, 4  ;;  %v3566_v56 = vsel %vm3558_vm3, %v3545_v54, %v3548_v42  ;;  %v3574_v37 = vshll.u32 %v3534_v23, 8 }
 0x453   :  { %vm3560_vm15 = vcmp.lt.s32.totalorder %v3539_v2, 3  ;;  %v3563_v26 = vsel %vm3561_vm13, %v3551_v10, 2102212464  ;;  %v3567_v12 = vsel %vm3561_vm13, %v3554_v18, 920167782  ;;  %v3570_v1 = vsel %vm3558_vm3, %v3548_v42, %v3551_v10 }
 0x454   :  { %vm3424_vm2 = vcmp.lt.s32.totalorder %v9560_v35, 0  ;;  %vm3559_vm1 = vcmp.lt.s32.totalorder %v3539_v2, 2  ;;  %v3568_v49 = vsel %vm3560_vm15, %v3551_v10, %v3567_v12  ;;  %v3571_v50 = vsel %vm3561_vm13, %v3557_v24, 1326507024  ;;  %v2297_v12 = vpop.f32.mrf.mxu1 }
 0x455   :  { %v3640_v34 = vadd.s32 1, %v6374_v38  ;;  %v6363_v40 = vmin.u32 %v3384_v16, %v9921_v53  ;;  %v3562_v14 = vsel %vm3558_vm3, %v3542_v25, %v3545_v54  ;;  %v3569_v47 = vsel %vm3559_vm1, %v3566_v56, %v3568_v49 }
 0x456   :  { %v3572_v27 = vsel %vm3560_vm15, %v3554_v18, %v3571_v50  ;;  %v3564_v9 = vsel %vm3560_vm15, %v3548_v42, %v3563_v26  ;;  %v9940_v23 = vmul.u32.u64.low %v3574_v37, %v3569_v47  ;;  %v9941_v55 = vmul.u32.u64.high %v3574_v37, %v3569_v47, %v9940_v23 }
 0x457   :  { %v3573_v29 = vsel %vm3559_vm1, %v3570_v1, %v3572_v27  ;;  %v3307_v15 = vadd.s32 3, %v3303_v60  ;;  %v3496_v45 = vshrl.u32 %v3478_v32, %v3494_v3  ;;  %v3499_v0 = vadd.s32 127, %v3498_v11  ;;  %v2210_v1 = vpop.f32.mrf.mxu0 }
 0x458   :  { %v3508_v10 = vsub.s32 4, %v9768_v44  ;;  %v9945_v24 = vmul.u32.u64.low %v3574_v37, %v3573_v29  ;;  %v9946_v38 = vmul.u32.u64.high %v3574_v37, %v3573_v29, %v9945_v24  ;;  %v12589_v54 = vand.u32 2147483647, %v9866_v61 }
 0x459   :  { %vm3641_vm5 = vcmp.gt.s32.totalorder %v3640_v34, 0  ;;  %v3495_v42 = vshll.u32 %v9783_v5, %v9914_v63  ;;  %v3386_v18 = vclz %v6363_v40  ;;  %v3565_v16 = vsel %vm3559_vm1, %v3562_v14, %v3564_v9 }
 0x45a   :  { %v3642_v25 = vsel %vm3641_vm5, %v3640_v34, 0  ;;  %v12879_v60 = vxor.u32 2147483648, %v9874_v43  ;;  %v12880_v3 = vmax.f32 %v9645_v21, 0.0  ;;  %v3584_v56 = vadd.s32 1, %v9941_v55 }
 0x45b   :  { %v3644_v26 = vand.u32 31, %v3642_v25  ;;  %6751 = vsinq.f32 %v9912_v13  ;;  %v9966_v5 = vand.u32 3, %v3307_v15  ;;  %v9968_v63 = vor.u32 %v3496_v45, %v3495_v42 }
 0x45c   :  { %v9957_v32 = vsel %vm3112_vm9, %v12879_v60, %v9874_v43  ;;  %v9962_v11 = vmul.f32 %v9907_v33, %v12880_v3  ;;  %v3500_v2 = vshll.u32 %v3499_v0, 23  ;;  %v3581_v49 = vmul.u32 %v3574_v37, %v3565_v16  ;;  %v9974_v33 = vpop.eup %6749 }
 0x45d   :  { %vm3583_vm10 = vc.u32 %v9946_v38, %v9940_v23  ;;  %v3637_v21 = vand.u32 8388607, %v12589_v54  ;;  %v3645_v43 = vsub.s32 32, %v3644_v26  ;;  %v9979_v15 = vsel %vm3424_vm2, %v3508_v10, %v9768_v44 }
 0x45e   :  { %v6364_v45 = vadd.s32 4294967294, %v3386_v18  ;;  %v3585_v13 = vsel %vm3583_vm10, %v3584_v56, %v9941_v55  ;;  %v9985_v34 = vadd.f32 %v2297_v12, %v8990_v58  ;;  %v9988_v40 = vadd.f32 %v2210_v1, %v8990_v58 }
 0x45f   :  { %v3586_v37 = vadd.s32 %v3585_v13, %v3581_v49  ;;  %v3648_v50 = vshrl.u32 %v12685_v36, %v3645_v43  ;;  %v3501_v14 = vor.u32 4788187, %v3500_v2  ;;  %v3504_v47 = vcvt.s32.f32 %v9968_v63 }
 0x460   :  { %v3647_v44 = vshll.u32 %v12684_v28, %v3644_v26  ;;  %v3651_v27 = vshrl.u32 %v12686_v31, %v3645_v43  ;;  %v3638_v29 = vor.u32 8388608, %v3637_v21  ;;  %v3650_v55 = vshll.u32 %v12685_v36, %v3644_v26 }
 0x461   :  { %v3587_v9 = vadd.s32 536870912, %v3586_v37  ;;  %v3654_v10 = vshrl.u32 %v12687_v59, %v3645_v43  ;;  %vm6365_vm7 = vcmp.lt.s32.totalorder %v6364_v45, 0  ;;  %v3643_v24 = vshrl.u32 %v3642_v25, 5 }
 0x462   :  { %v3649_v42 = vor.u32 %v3648_v50, %v3647_v44  ;;  %v3653_v18 = vshll.u32 %v12686_v31, %v3644_v26  ;;  %v3652_v60 = vor.u32 %v3651_v27, %v3650_v55  ;;  %v3656_v3 = vshll.u32 %v12687_v59, %v3644_v26 }
 0x463   :  { %v9996_v16 = vshrl.u32 %v3587_v9, 30  ;;  %v3657_v56 = vshrl.u32 %v12688_v8, %v3645_v43  ;;  %v3314_v63 = vxor.u32 2147483648, %v9974_v33  ;;  %v12881_v2 = vand.u32 2147483647, %v9560_v35 }
 0x464   :  { %v3655_v1 = vor.u32 %v3654_v10, %v3653_v18  ;;  %v3659_v25 = vshll.u32 %v12688_v8, %v3644_v26  ;;  %v3660_v49 = vshrl.u32 %v12689_v48, %v3645_v43  ;;  %v3502_v21 = vand.u32 2147483647, %v3501_v14 }
 0x465   :  { %vm10003_vm11 = vcmp.le.f32.partialorder %v12881_v2, 0.7853982  ;;  %v3589_v13 = vshll.u32 %v9996_v16, 30  ;;  %v3658_v50 = vor.u32 %v3657_v56, %v3656_v3  ;;  %v3678_v44 = vshll.u32 %v3638_v29, 8 }
 0x466   :  { %vm3313_vm12 = vcmp.eq.s32.totalorder %v9966_v5, 2  ;;  %v10012_v27 = vsel %vm6365_vm7, 0, %v6364_v45  ;;  %v3661_v9 = vor.u32 %v3660_v49, %v3659_v25  ;;  %vm3662_vm8 = vcmp.lt.s32.totalorder %v3643_v24, 1 }
 0x467   :  { %v10015_v55 = vmul.f32 6.2831855, %v9985_v34  ;;  %vm3310_vm3 = vcmp.eq.s32.totalorder %v9966_v5, 0  ;;  %v10018_v26 = vsub.s32 %v3586_v37, %v3589_v13  ;;  %vm3664_vm13 = vcmp.lt.s32.totalorder %v3643_v24, 3 }
 0x468   :  { %vm3665_vm15 = vcmp.lt.s32.totalorder %v3643_v24, 4  ;;  %v3670_v14 = vsel %vm3662_vm8, %v3649_v42, %v3652_v60  ;;  %v3674_v18 = vsel %vm3662_vm8, %v3652_v60, %v3655_v1  ;;  %v6752_v45 = vpop.eup %6751  ;;  %v3646_v56 = vshrl.u32 %v12684_v28, %v3645_v43 }
 0x469   :  { %v3667_v10 = vsel %vm3665_vm15, %v3655_v1, 2102212464  ;;  %v3671_v29 = vsel %vm3665_vm15, %v3658_v50, 920167782  ;;  %v3675_v3 = vsel %vm3665_vm15, %v3661_v9, 1326507024  ;;  %v3505_v37 = vmul.f32 %v3504_v47, %v3502_v21 }
 0x46a   :  { %vm3663_vm1 = vcmp.lt.s32.totalorder %v3643_v24, 2  ;;  %v3672_v2 = vsel %vm3664_vm13, %v3655_v1, %v3671_v29  ;;  %v3676_v25 = vsel %vm3664_vm13, %v3658_v50, %v3675_v3  ;;  %vm3309_vm5 = vcmp.lt.s32.totalorder %v9966_v5, 2 }
 0x46b   :  { %v3394_v49 = vsub.s32 4294967266, %v10012_v27  ;;  %v3673_v13 = vsel %vm3663_vm1, %v3670_v14, %v3672_v2  ;;  %v3677_v54 = vsel %vm3663_vm1, %v3674_v18, %v3676_v25  ;;  %v3666_v0 = vsel %vm3662_vm8, %v3646_v56, %v3649_v42 }
 0x46c   :  { %v3668_v9 = vsel %vm3664_vm13, %v3652_v60, %v3667_v10  ;;  %v10031_v41 = vmul.u32.u64.low %v3678_v44, %v3677_v54  ;;  %v10032_v43 = vmul.u32.u64.high %v3678_v44, %v3677_v54, %v10031_v41  ;;  %v3311_v62 = vxor.u32 2147483648, %v6752_v45 }
 0x46d   :  { %v3592_v1 = vsub.s32 0, %v10018_v26  ;;  %v10035_v50 = vmul.u32.u64.low %v3678_v44, %v3673_v13  ;;  %v10036_v29 = vmul.u32.u64.high %v3678_v44, %v3673_v13, %v10035_v50  ;;  %vm3306_vm10 = vweird.f32 %v9455_v20 }
 0x46e   :  { %v3511_v47 = vsel %vm10003_vm11, 0, %v9979_v15  ;;  %v2329_v42 = vsub.f32 1.0, %v9760_v6  ;;  %v2314_v60 = vmax.f32 %v9845_v19, 0.0  ;;  %v3841_v54 = vand.u32 2139095040, %v10015_v55 }
 0x46f   :  { %v3506_v41 = vxor.u32 2147483648, %v3505_v37  ;;  %v3374_v21 = vadd.s32 %v9809_v51, %v9824_v46  ;;  %v3390_v14 = vsub.s32 32, %v10012_v27  ;;  %v3669_v10 = vsel %vm3663_vm1, %v3666_v0, %v3668_v9 }
 0x470   :  { %v3315_v18 = vsel %vm3313_vm12, %v3314_v63, %v6752_v45  ;;  %v3395_v3 = vadd.s32 127, %v3394_v49  ;;  %vm3687_vm7 = vc.u32 %v10032_v43, %v10035_v50  ;;  %v3842_v15 = vshrl.u32 %v3841_v54, 23 }
 0x471   :  { %v3312_v56 = vsel %vm3310_vm3, %v9974_v33, %v3311_v62  ;;  %v6371_v2 = vmin.u32 %v3592_v1, %v10018_v26  ;;  %v3688_v51 = vadd.s32 1, %v10036_v29  ;;  %v10060_v46 = vmul.f32 6.2831855, %v9988_v40 }
 0x472   :  { %v3515_v0 = vadd.s32 3, %v3511_v47  ;;  %v2330_v24 = vsub.f32 1.0, %v9845_v19  ;;  %v3685_v63 = vmul.u32 %v3678_v44, %v3669_v10  ;;  %v6382_v45 = vadd.s32 4294967169, %v3842_v15 }
 0x473   :  { %v3507_v25 = vsel %vm3424_vm2, %v3506_v41, %v3505_v37  ;;  %v3392_v49 = vshrl.u32 %v3374_v21, %v3390_v14  ;;  %v2345_v13 = vmax.f32 %v2329_v42, 0.0  ;;  %v3689_v9 = vsel %vm3687_vm7, %v3688_v51, %v10036_v29 }
 0x474   :  { %v3316_v62 = vsel %vm3309_vm5, %v3312_v56, %v3315_v18  ;;  %v3396_v33 = vshll.u32 %v3395_v3, 23  ;;  %v3690_v1 = vadd.s32 %v3689_v9, %v3685_v63  ;;  %v12590_v54 = vand.u32 2147483647, %v10015_v55 }
 0x475   :  { %v3391_v47 = vshll.u32 %v9921_v53, %v10012_v27  ;;  %v3594_v19 = vclz %v6371_v2  ;;  %v3848_v44 = vadd.s32 1, %v6382_v45  ;;  %v3737_v10 = vand.u32 2139095040, %v10060_v46 }
 0x476   :  { %v3510_v37 = vsel %vm10003_vm11, %v9560_v35, %v3507_v25  ;;  %v10075_v42 = vand.u32 3, %v3515_v0  ;;  %v2346_v29 = vmax.f32 %v2330_v24, 0.0  ;;  %v3691_v5 = vadd.s32 536870912, %v3690_v1 }
 0x477   :  { %v3317_v41 = vsel %vm3306_vm10, nan, %v3316_v62  ;;  %v3393_v21 = vor.u32 %v3392_v49, %v3391_v47  ;;  %v12884_v14 = vmax.f32 %v9760_v6, 0.0  ;;  %vm3849_vm2 = vcmp.gt.s32.totalorder %v3848_v44, 0 }
 0x478   :  { %v3397_v53 = vor.u32 4788187, %v3396_v33  ;;  %v10083_v27 = vshrl.u32 %v3691_v5, 30  ;;  %v3845_v12 = vand.u32 8388607, %v12590_v54  ;;  %v3850_v3 = vsel %vm3849_vm2, %v3848_v44, 0 }
 0x479   :  { %v10081_v18 = vmul.f32 %v2345_v13, %v12884_v14  ;;  %6753 = vcosq.f32 %v3510_v37  ;;  %v6372_v15 = vadd.s32 4294967294, %v3594_v19  ;;  %v3852_v56 = vand.u32 31, %v3850_v3 }
 0x47a   :  { %v3738_v2 = vshrl.u32 %v3737_v10, 23  ;;  %v10088_v20 = vmul.f32 %v3317_v41, %v9842_v22  ;;  %6755 = vsinq.f32 %v3510_v37  ;;  %v10090_v51 = vmul.f32 %v2346_v29, %v2314_v60 }
 0x47b   :  { %12885 = vst [vmem:[#allocation32_spill] sm:$0xff] %v10081_v18  ;;  %v3693_v6 = vshll.u32 %v10083_v27, 30  ;;  %v10095_v0 = vadd.s32 %v9940_v23, %v9946_v38  ;;  %v3853_v45 = vsub.s32 32, %v3852_v56  ;;  %v3398_v25 = vand.u32 2147483647, %v3397_v53 }
 0x47c   :  { %12886 = vst [vmem:[#allocation34_spill] sm:$0xff] %v10088_v20  ;;  %v3400_v49 = vcvt.s32.f32 %v3393_v21  ;;  %v3846_v22 = vor.u32 8388608, %v3845_v12  ;;  %vm6373_vm11 = vcmp.lt.s32.totalorder %v6372_v15, 0  ;;  %v6378_v62 = vadd.s32 4294967169, %v3738_v2 }
 0x47d   :  { %v10099_v13 = vsub.s32 %v3690_v1, %v3693_v6  ;;  %v3856_v60 = vshrl.u32 %v12685_v36, %v3853_v45  ;;  %v3859_v9 = vshrl.u32 %v12686_v31, %v3853_v45  ;;  %v3855_v23 = vshll.u32 %v12684_v28, %v3852_v56 }
 0x47e   :  { %v3858_v38 = vshll.u32 %v12685_v36, %v3852_v56  ;;  %v3862_v47 = vshrl.u32 %v12687_v59, %v3853_v45  ;;  %v3851_v19 = vshrl.u32 %v3850_v3, 5  ;;  %v3861_v44 = vshll.u32 %v12686_v31, %v3852_v56 }
 0x47f   :  { %v3696_v33 = vsub.s32 0, %v10099_v13  ;;  %v3864_v1 = vshll.u32 %v12687_v59, %v3852_v56  ;;  %v3865_v10 = vshrl.u32 %v12688_v8, %v3853_v45  ;;  %v10110_v37 = vmul.f32 %v3400_v49, %v3398_v25 }
 0x480   :  { %v3857_v5 = vor.u32 %v3856_v60, %v3855_v23  ;;  %v3860_v41 = vor.u32 %v3859_v9, %v3858_v38  ;;  %v3863_v21 = vor.u32 %v3862_v47, %v3861_v44  ;;  %v3867_v53 = vshll.u32 %v12688_v8, %v3852_v56 }
 0x481   :  { %v6375_v29 = vmin.u32 %v3696_v33, %v10099_v13  ;;  %v3866_v14 = vor.u32 %v3865_v10, %v3864_v1  ;;  %v3868_v12 = vshrl.u32 %v12689_v48, %v3853_v45  ;;  %v10116_v3 = vsel %vm6373_vm11, 0, %v6372_v15 }
 0x482   :  { %v3886_v6 = vshll.u32 %v3846_v22, 8  ;;  %v12591_v24 = vand.u32 2147483647, %v10060_v46  ;;  %v3854_v25 = vshrl.u32 %v12684_v28, %v3853_v45  ;;  %vm3870_vm12 = vcmp.lt.s32.totalorder %v3851_v19, 1 }
 0x483   :  { %v3698_v2 = vclz %v6375_v29  ;;  %v3869_v49 = vor.u32 %v3868_v12, %v3867_v53  ;;  %v3744_v33 = vadd.s32 1, %v6378_v62  ;;  %vm3872_vm8 = vcmp.lt.s32.totalorder %v3851_v19, 3  ;;  %v2299_v53 = vpop.f32.mrf.mxu1 }
 0x484   :  { %vm3873_vm3 = vcmp.lt.s32.totalorder %v3851_v19, 4  ;;  %v3878_v9 = vsel %vm3870_vm12, %v3857_v5, %v3860_v41  ;;  %v3882_v38 = vsel %vm3870_vm12, %v3860_v41, %v3863_v21  ;;  %vm3871_vm15 = vcmp.lt.s32.totalorder %v3851_v19, 2 }
 0x485   :  { %v6376_v60 = vadd.s32 4294967294, %v3698_v2  ;;  %v3875_v56 = vsel %vm3873_vm3, %v3863_v21, 2102212464  ;;  %v3879_v23 = vsel %vm3873_vm3, %v3866_v14, 920167782  ;;  %v3874_v1 = vsel %vm3870_vm12, %v3854_v25, %v3857_v5 }
 0x486   :  { %v3883_v15 = vsel %vm3873_vm3, %v3869_v49, 1326507024  ;;  %v10122_v47 = vpop.eup %6753  ;;  %v3880_v22 = vsel %vm3872_vm8, %v3863_v21, %v3879_v23  ;;  %v3876_v49 = vsel %vm3872_vm8, %v3860_v41, %v3875_v56  ;;  %vm3745_vm1 = vcmp.gt.s32.totalorder %v3744_v33, 0 }
 0x487   :  { %vm6377_vm13 = vcmp.lt.s32.totalorder %v6376_v60, 0  ;;  %v3884_v45 = vsel %vm3872_vm8, %v3866_v14, %v3883_v15  ;;  %v10126_v44 = vpop.eup %6755  ;;  %v3881_v10 = vsel %vm3871_vm15, %v3878_v9, %v3880_v22  ;;  %v3746_v25 = vsel %vm3745_vm1, %v3744_v33, 0 }
 0x488   :  { %v3701_v62 = vsel %vm6377_vm13, 0, %v6376_v60  ;;  %v3885_v29 = vsel %vm3871_vm15, %v3882_v38, %v3884_v45  ;;  %v10135_v21 = vmul.u32.u64.low %v3886_v6, %v3881_v10  ;;  %v10136_v14 = vmul.u32.u64.high %v3886_v6, %v3881_v10, %v10135_v21 }
 0x489   :  { %v3702_v12 = vsub.s32 32, %v3701_v62  ;;  %v3706_v2 = vsub.s32 4294967266, %v3701_v62  ;;  %v10132_v63 = vmul.u32.u64.low %v3886_v6, %v3885_v29  ;;  %v10133_v54 = vmul.u32.u64.high %v3886_v6, %v3885_v29, %v10132_v63 }
 0x48a   :  { %v10141_v9 = vadd.f32 %v2299_v53, %v8990_v58  ;;  %v3686_v41 = vadd.s32 %v10035_v50, %v10032_v43  ;;  %v3877_v56 = vsel %vm3871_vm15, %v3874_v1, %v3876_v49  ;;  %v3748_v38 = vand.u32 31, %v3746_v25 }
 0x48b   :  { %v3707_v5 = vadd.s32 127, %v3706_v2  ;;  %v3741_v45 = vand.u32 8388607, %v12591_v24  ;;  %vm3895_vm5 = vc.u32 %v10133_v54, %v10135_v21  ;;  %v3896_v58 = vadd.s32 1, %v10136_v14 }
 0x48c   :  { %v3704_v33 = vshrl.u32 %v3686_v41, %v3702_v12  ;;  %v3749_v10 = vsub.s32 32, %v3748_v38  ;;  %v3703_v43 = vshll.u32 %v10099_v13, %v3701_v62  ;;  %v3893_v19 = vmul.u32 %v3886_v6, %v3877_v56 }
 0x48d   :  { %v3708_v22 = vshll.u32 %v3707_v5, 23  ;;  %v10156_v1 = vmul.f32 6.2831855, %v10141_v9  ;;  %v3897_v29 = vsel %vm3895_vm5, %v3896_v58, %v10136_v14  ;;  %v3747_v53 = vshrl.u32 %v3746_v25, 5 }
 0x48e   :  { %v3752_v2 = vshrl.u32 %v12685_v36, %v3749_v10  ;;  %v3755_v12 = vshrl.u32 %v12686_v31, %v3749_v10  ;;  %vm3632_vm10 = vcmp.lt.s32.totalorder %v9866_v61, 0  ;;  %v3898_v49 = vadd.s32 %v3897_v29, %v3893_v19 }
 0x48f   :  { %v3709_v50 = vor.u32 4788187, %v3708_v22  ;;  %v3751_v5 = vshll.u32 %v12684_v28, %v3748_v38  ;;  %v3754_v41 = vshll.u32 %v12685_v36, %v3748_v38  ;;  %v3758_v13 = vshrl.u32 %v12687_v59, %v3749_v10 }
 0x490   :  { %v3705_v6 = vor.u32 %v3704_v33, %v3703_v43  ;;  %v3757_v62 = vshll.u32 %v12686_v31, %v3748_v38  ;;  %v3760_v56 = vshll.u32 %v12687_v59, %v3748_v38  ;;  %v3761_v14 = vshrl.u32 %v12688_v8, %v3749_v10 }
 0x491   :  { %v3710_v25 = vand.u32 2147483647, %v3709_v50  ;;  %v3899_v22 = vadd.s32 536870912, %v3898_v49  ;;  %v3753_v58 = vor.u32 %v3752_v2, %v3751_v5  ;;  %v3756_v24 = vor.u32 %v3755_v12, %v3754_v41 }
 0x492   :  { %v3759_v23 = vor.u32 %v3758_v13, %v3757_v62  ;;  %v3762_v15 = vor.u32 %v3761_v14, %v3760_v56  ;;  %v3763_v19 = vshll.u32 %v12688_v8, %v3748_v38  ;;  %v3764_v29 = vshrl.u32 %v12689_v48, %v3749_v10 }
 0x493   :  { %vm3521_vm7 = vcmp.eq.s32.totalorder %v10075_v42, 2  ;;  %v3602_v33 = vsub.s32 4294967266, %v10116_v3  ;;  %v3716_v43 = vsub.s32 4, %v10083_v27  ;;  %v10173_v63 = vshrl.u32 %v3899_v22, 30 }
 0x494   :  { %v3742_v60 = vor.u32 8388608, %v3741_v45  ;;  %vm3320_vm2 = vcmp.lt.s32.totalorder %v9667_v57, 0  ;;  %v12887_v50 = vand.u32 2147483647, %v9866_v61  ;;  %v3712_v38 = vcvt.s32.f32 %v3705_v6 }
 0x495   :  { %v3765_v12 = vor.u32 %v3764_v29, %v3763_v19  ;;  %vm3766_vm12 = vcmp.lt.s32.totalorder %v3747_v53, 1  ;;  %v3945_v5 = vand.u32 2139095040, %v10156_v1  ;;  %v3901_v41 = vshll.u32 %v10173_v63, 30 }
 0x496   :  { %vm10178_vm11 = vcmp.le.f32.partialorder %v12887_v50, 0.7853982  ;;  %v3750_v13 = vshrl.u32 %v12684_v28, %v3749_v10  ;;  %vm3769_vm8 = vcmp.lt.s32.totalorder %v3747_v53, 4  ;;  %v3774_v45 = vsel %vm3766_vm12, %v3753_v58, %v3756_v24 }
 0x497   :  { %v3713_v62 = vmul.f32 %v3712_v38, %v3710_v25  ;;  %vm3768_vm3 = vcmp.lt.s32.totalorder %v3747_v53, 3  ;;  %v3771_v56 = vsel %vm3769_vm8, %v3759_v23, 2102212464  ;;  %v3775_v14 = vsel %vm3769_vm8, %v3762_v15, 920167782 }
 0x498   :  { %v10186_v22 = vsub.s32 %v3898_v49, %v3901_v41  ;;  %vm3767_vm13 = vcmp.lt.s32.totalorder %v3747_v53, 2  ;;  %v3776_v50 = vsel %vm3768_vm3, %v3759_v23, %v3775_v14  ;;  %v3778_v6 = vsel %vm3766_vm12, %v3756_v24, %v3759_v23 }
 0x499   :  { %v3717_v19 = vsel %vm3632_vm10, %v3716_v43, %v10083_v27  ;;  %v3777_v29 = vsel %vm3767_vm13, %v3774_v45, %v3776_v50  ;;  %v3779_v10 = vsel %vm3769_vm8, %v3765_v12, 1326507024  ;;  %v3782_v18 = vshll.u32 %v3742_v60, 8 }
 0x49a   :  { %v3904_v39 = vsub.s32 0, %v10186_v22  ;;  %v3770_v25 = vsel %vm3766_vm12, %v3750_v13, %v3753_v58  ;;  %v3772_v38 = vsel %vm3768_vm3, %v3756_v24, %v3771_v56  ;;  %v3780_v20 = vsel %vm3768_vm3, %v3762_v15, %v3779_v10 }
 0x49b   :  { %v3781_v49 = vsel %vm3767_vm13, %v3778_v6, %v3780_v20  ;;  %v10196_v41 = vmul.u32.u64.low %v3782_v18, %v3777_v29  ;;  %v10197_v14 = vmul.u32.u64.high %v3782_v18, %v3777_v29, %v10196_v41  ;;  %v3946_v23 = vshrl.u32 %v3945_v5, 23 }
 0x49c   :  { %v3714_v35 = vxor.u32 2147483648, %v3713_v62  ;;  %v6383_v27 = vmin.u32 %v3904_v39, %v10186_v22  ;;  %v10201_v43 = vmul.u32.u64.low %v3782_v18, %v3781_v49  ;;  %v10202_v45 = vmul.u32.u64.high %v3782_v18, %v3781_v49, %v10201_v43 }
 0x49d   :  { %v12890_v60 = vxor.u32 2147483648, %v10122_v47  ;;  %v3603_v15 = vadd.s32 127, %v3602_v33  ;;  %v3773_v20 = vsel %vm3767_vm13, %v3770_v25, %v3772_v38  ;;  %v6386_v58 = vadd.s32 4294967169, %v3946_v23 }
 0x49e   :  { %v12891_v12 = vxor.u32 2147483648, %v10110_v37  ;;  %v3719_v5 = vsel %vm10178_vm11, 0, %v3717_v19  ;;  %v3906_v13 = vclz %v6383_v27  ;;  %v2331_v56 = vsub.f32 1.0, %v9988_v40 }
 0x49f   :  { %v10209_v24 = vsel %vm3521_vm7, %v12890_v60, %v10126_v44  ;;  %v12892_v50 = vsub.s32 32, %v10116_v3  ;;  %v3792_v53 = vadd.s32 1, %v10197_v14  ;;  %v12594_v6 = vand.u32 2147483647, %v10156_v1 }
 0x4a0   :  { %v10217_v39 = vsel %vm3320_vm2, %v12891_v12, %v10110_v37  ;;  %v3952_v29 = vadd.s32 1, %v6386_v58  ;;  %v3715_v10 = vsel %vm3632_vm10, %v3714_v35, %v3713_v62  ;;  %v6384_v37 = vadd.s32 4294967294, %v3906_v13 }
 0x4a1   :  { %v3600_v33 = vshrl.u32 %v10095_v0, %v12892_v50  ;;  %v3789_v25 = vmul.u32 %v3782_v18, %v3773_v20  ;;  %vm3791_vm15 = vc.u32 %v10202_v45, %v10196_v41  ;;  %v3604_v19 = vshll.u32 %v3603_v15, 23 }
 0x4a2   :  { %v3723_v38 = vadd.s32 3, %v3719_v5  ;;  %v3793_v49 = vsel %vm3791_vm15, %v3792_v53, %v10197_v14  ;;  %vm3953_vm1 = vcmp.gt.s32.totalorder %v3952_v29, 0  ;;  %v3599_v0 = vshll.u32 %v10018_v26, %v10116_v3 }
 0x4a3   :  { %vm6385_vm5 = vcmp.lt.s32.totalorder %v6384_v37, 0  ;;  %v3794_v23 = vadd.s32 %v3793_v49, %v3789_v25  ;;  %v3954_v27 = vsel %vm3953_vm1, %v3952_v29, 0  ;;  %v3718_v35 = vsel %vm10178_vm11, %v9866_v61, %v3715_v10 }
 0x4a4   :  { %v3894_v18 = vadd.s32 %v10135_v21, %v10133_v54  ;;  %v3909_v62 = vsel %vm6385_vm5, 0, %v6384_v37  ;;  %v3956_v43 = vand.u32 31, %v3954_v27  ;;  %v3949_v14 = vand.u32 8388607, %v12594_v6 }
 0x4a5   :  { %v3910_v60 = vsub.s32 32, %v3909_v62  ;;  %v3914_v15 = vsub.s32 4294967266, %v3909_v62  ;;  %v3795_v20 = vadd.s32 536870912, %v3794_v23  ;;  %v10241_v58 = vor.u32 %v3600_v33, %v3599_v0 }
 0x4a6   :  { %v10243_v26 = vor.u32 4788187, %v3604_v19  ;;  %v10245_v3 = vand.u32 3, %v3723_v38  ;;  %v3957_v12 = vsub.s32 32, %v3956_v43  ;;  %6757 = vcosq.f32 %v3718_v35 }
 0x4a7   :  { %v3912_v2 = vshrl.u32 %v3894_v18, %v3910_v60  ;;  %v3915_v5 = vadd.s32 127, %v3914_v15  ;;  %v10247_v13 = vshrl.u32 %v3795_v20, 30  ;;  %6759 = vsinq.f32 %v3718_v35 }
 0x4a8   :  { %v3911_v54 = vshll.u32 %v10186_v22, %v3909_v62  ;;  %v3960_v21 = vshrl.u32 %v12685_v36, %v3957_v12  ;;  %v3963_v50 = vshrl.u32 %v12686_v31, %v3957_v12  ;;  %v3950_v29 = vor.u32 8388608, %v3949_v14 }
 0x4a9   :  { %v3916_v53 = vshll.u32 %v3915_v5, 23  ;;  %v3797_v33 = vshll.u32 %v10247_v13, 30  ;;  %v3959_v10 = vshll.u32 %v12684_v28, %v3956_v43  ;;  %v3962_v25 = vshll.u32 %v12685_v36, %v3956_v43 }
 0x4aa   :  { %v3913_v37 = vor.u32 %v3912_v2, %v3911_v54  ;;  %v3965_v19 = vshll.u32 %v12686_v31, %v3956_v43  ;;  %v3966_v38 = vshrl.u32 %v12687_v59, %v3957_v12  ;;  %v3955_v22 = vshrl.u32 %v3954_v27, 5 }
 0x4ab   :  { %v3917_v49 = vor.u32 4788187, %v3916_v53  ;;  %v10257_v0 = vsub.s32 %v3794_v23, %v3797_v33  ;;  %v3961_v35 = vor.u32 %v3960_v21, %v3959_v10  ;;  %v3964_v18 = vor.u32 %v3963_v50, %v3962_v25 }
 0x4ac   :  { %v3967_v62 = vor.u32 %v3966_v38, %v3965_v19  ;;  %v3968_v60 = vshll.u32 %v12687_v59, %v3956_v43  ;;  %v3969_v15 = vshrl.u32 %v12688_v8, %v3957_v12  ;;  %v3958_v2 = vshrl.u32 %v12684_v28, %v3957_v12 }
 0x4ad   :  { %v3918_v20 = vand.u32 2147483647, %v3917_v49  ;;  %v3800_v14 = vsub.s32 0, %v10257_v0  ;;  %v10263_v5 = vshll.u32 %v3950_v29, 8  ;;  %v3920_v54 = vcvt.s32.f32 %v3913_v37 }
 0x4ae   :  { %v3970_v6 = vor.u32 %v3969_v15, %v3968_v60  ;;  %v3971_v23 = vshll.u32 %v12688_v8, %v3956_v43  ;;  %v3972_v27 = vshrl.u32 %v12689_v48, %v3957_v12  ;;  %vm3974_vm10 = vcmp.lt.s32.totalorder %v3955_v22, 1 }
 0x4af   :  { %v6379_v21 = vmin.u32 %v3800_v14, %v10257_v0  ;;  %vm3975_vm7 = vcmp.lt.s32.totalorder %v3955_v22, 2  ;;  %vm3977_vm11 = vcmp.lt.s32.totalorder %v3955_v22, 4  ;;  %v3921_v50 = vmul.f32 %v3920_v54, %v3918_v20 }
 0x4b0   :  { %v3973_v53 = vor.u32 %v3972_v27, %v3971_v23  ;;  %v3979_v33 = vsel %vm3977_vm11, %v3967_v62, 2102212464  ;;  %v3982_v10 = vsel %vm3974_vm10, %v3961_v35, %v3964_v18  ;;  %vm3840_vm12 = vcmp.lt.s32.totalorder %v10015_v55, 0 }
 0x4b1   :  { %v3802_v25 = vclz %v6379_v21  ;;  %vm3976_vm8 = vcmp.lt.s32.totalorder %v3955_v22, 3  ;;  %v3978_v29 = vsel %vm3974_vm10, %v3958_v2, %v3961_v35  ;;  %v3983_v37 = vsel %vm3977_vm11, %v3970_v6, 920167782 }
 0x4b2   :  { %v3980_v19 = vsel %vm3976_vm8, %v3964_v18, %v3979_v33  ;;  %v3984_v38 = vsel %vm3976_vm8, %v3967_v62, %v3983_v37  ;;  %v3986_v43 = vsel %vm3974_vm10, %v3964_v18, %v3967_v62  ;;  %v3987_v49 = vsel %vm3977_vm11, %v3973_v53, 1326507024 }
 0x4b3   :  { %v6380_v12 = vadd.s32 4294967294, %v3802_v25  ;;  %v3985_v60 = vsel %vm3975_vm7, %v3982_v10, %v3984_v38  ;;  %v3988_v15 = vsel %vm3976_vm8, %v3970_v6, %v3987_v49  ;;  %v12893_v14 = vand.u32 2147483647, %v9667_v57  ;;  %v6758_v54 = vpop.eup %6757 }
 0x4b4   :  { %v12896_v23 = vand.u32 2147483647, %v10015_v55  ;;  %v3989_v18 = vsel %vm3975_vm7, %v3986_v43, %v3988_v15  ;;  %v10284_v62 = vmul.u32.u64.low %v10263_v5, %v3985_v60  ;;  %v10285_v2 = vmul.u32.u64.high %v10263_v5, %v3985_v60, %v10284_v62  ;;  %v6760_v27 = vpop.eup %6759 }
 0x4b5   :  { %vm10272_vm3 = vcmp.le.f32.partialorder %v12893_v14, 0.7853982  ;;  %vm6381_vm15 = vcmp.lt.s32.totalorder %v6380_v12, 0  ;;  %v3981_v21 = vsel %vm3975_vm7, %v3978_v29, %v3980_v19  ;;  %vm3726_vm1 = vcmp.eq.s32.totalorder %v10245_v3, 0 }
 0x4b6   :  { %vm10278_vm13 = vcmp.le.f32.partialorder %v12896_v23, 0.7853982  ;;  %v3406_v6 = vsel %vm10272_vm3, %v9667_v57, %v10217_v39  ;;  %v10294_v53 = vmul.u32.u64.low %v10263_v5, %v3989_v18  ;;  %v10295_v33 = vmul.u32.u64.high %v10263_v5, %v3989_v18, %v10294_v53 }
 0x4b7   :  { %v3922_v10 = vxor.u32 2147483648, %v3921_v50  ;;  %v3790_v25 = vadd.s32 %v10196_v41, %v10202_v45  ;;  %v3805_v37 = vsel %vm6381_vm15, 0, %v6380_v12  ;;  %vm3518_vm5 = vcmp.eq.s32.totalorder %v10075_v42, 0 }
 0x4b8   :  { %v3730_v38 = vxor.u32 2147483648, %v6758_v54  ;;  %v3806_v43 = vsub.s32 32, %v3805_v37  ;;  %v3810_v39 = vsub.s32 4294967266, %v3805_v37  ;;  %v3404_v49 = vsub.s32 4, %v9882_v7 }
 0x4b9   :  { %v3727_v22 = vxor.u32 2147483648, %v6760_v27  ;;  %v3997_v29 = vmul.u32 %v10263_v5, %v3981_v21  ;;  %v4000_v19 = vadd.s32 1, %v10285_v2  ;;  %6761 = vcosq.f32 %v3406_v6 }
 0x4ba   :  { %vm3722_vm10 = vweird.f32 %v9866_v61  ;;  %v3807_v60 = vshll.u32 %v10257_v0, %v3805_v37  ;;  %v3808_v15 = vshrl.u32 %v3790_v25, %v3806_v43  ;;  %v3811_v41 = vadd.s32 127, %v3810_v39 }
 0x4bb   :  { %vm3999_vm7 = vc.u32 %v10295_v33, %v10284_v62  ;;  %v3923_v45 = vsel %vm3840_vm12, %v3922_v10, %v3921_v50  ;;  %v3924_v12 = vsub.s32 4, %v10173_v63  ;;  %6763 = vsinq.f32 %v3406_v6 }
 0x4bc   :  { %v4001_v14 = vsel %vm3999_vm7, %v4000_v19, %v10285_v2  ;;  %vm3517_vm11 = vcmp.lt.s32.totalorder %v10075_v42, 2  ;;  %vm3729_vm8 = vcmp.eq.s32.totalorder %v10245_v3, 2  ;;  %v3809_v5 = vor.u32 %v3808_v15, %v3807_v60 }
 0x4bd   :  { %v3812_v23 = vshll.u32 %v3811_v41, 23  ;;  %v4002_v0 = vadd.s32 %v4001_v14, %v3997_v29  ;;  %v3606_v18 = vand.u32 2147483647, %v10243_v26  ;;  %v3728_v21 = vsel %vm3726_vm1, %v6758_v54, %v3727_v22 }
 0x4be   :  { %v3731_v53 = vsel %vm3729_vm8, %v3730_v38, %v6760_v27  ;;  %v3820_v50 = vsub.s32 4, %v10247_v13  ;;  %v3926_v2 = vsel %vm10278_vm13, %v10015_v55, %v3923_v45  ;;  %v3405_v25 = vsel %vm3320_vm2, %v3404_v49, %v9882_v7 }
 0x4bf   :  { %v3813_v6 = vor.u32 4788187, %v3812_v23  ;;  %v4003_v10 = vadd.s32 536870912, %v4002_v0  ;;  %v3608_v37 = vcvt.s32.f32 %v10241_v58  ;;  %vm3725_vm15 = vcmp.lt.s32.totalorder %v10245_v3, 2 }
 0x4c0   :  { %v3925_v26 = vsel %vm3840_vm12, %v3924_v12, %v10173_v63  ;;  %vm3736_vm1 = vcmp.lt.s32.totalorder %v10060_v46, 0  ;;  %v3732_v54 = vsel %vm3725_vm15, %v3728_v21, %v3731_v53  ;;  %v3816_v38 = vcvt.s32.f32 %v3809_v5 }
 0x4c1   :  { %v3814_v27 = vand.u32 2147483647, %v3813_v6  ;;  %v10330_v43 = vshrl.u32 %v4003_v10, 30  ;;  %v12899_v39 = vxor.u32 2147483648, %v10126_v44  ;;  %vm3528_vm2 = vcmp.lt.s32.totalorder %v9792_v30, 0 }
 0x4c2   :  { %6765 = vcosq.f32 %v3926_v2  ;;  %v3821_v63 = vsel %vm3736_vm1, %v3820_v50, %v10247_v13  ;;  %v3407_v58 = vsel %vm10272_vm3, 0, %v3405_v25  ;;  %v3609_v3 = vmul.f32 %v3608_v37, %v3606_v18 }
 0x4c3   :  { %v3520_v7 = vsel %vm3518_vm5, %v10122_v47, %v12899_v39  ;;  %v3927_v49 = vsel %vm10278_vm13, 0, %v3925_v26  ;;  %v3817_v22 = vmul.f32 %v3816_v38, %v3814_v27  ;;  %v4005_v44 = vshll.u32 %v10330_v43, 30 }
 0x4c4   :  { %v3733_v47 = vsel %vm3722_vm10, nan, %v3732_v54  ;;  %v12900_v29 = vsub.f32 1.0, %v9985_v34  ;;  %v2347_v13 = vmax.f32 %v2331_v56, 0.0  ;;  %v12901_v20 = vand.u32 2147483647, %v10060_v46  ;;  %v12904_v54 = vld [vmem:[#allocation56_spill] sm:$0xff] }
 0x4c5   :  { %v3818_v35 = vxor.u32 2147483648, %v3817_v22  ;;  %v10360_v15 = vsub.s32 %v4002_v0, %v4005_v44  ;;  %v3411_v41 = vadd.s32 3, %v3407_v58  ;;  %v10367_v45 = vsel %vm3517_vm11, %v3520_v7, %v10209_v24 }
 0x4c6   :  { %v10350_v19 = vmax.f32 %v12900_v29, 0.0  ;;  %vm10356_vm12 = vcmp.le.f32.partialorder %v12901_v20, 0.7853982  ;;  %6767 = vsinq.f32 %v3926_v2  ;;  %v3931_v56 = vadd.s32 3, %v3927_v49  ;;  %v6762_v14 = vpop.eup %6761 }
 0x4c7   :  { %v3823_v61 = vsel %vm10356_vm12, 0, %v3821_v63  ;;  %v2315_v12 = vmax.f32 %v9988_v40, 0.0  ;;  %v3610_v5 = vxor.u32 2147483648, %v3609_v3  ;;  %v4058_v23 = vmul.f32 %v3733_v47, %v10090_v51 }
 0x4c8   :  { %v3819_v0 = vsel %vm3736_vm1, %v3818_v35, %v3817_v22  ;;  %v4008_v18 = vsub.s32 0, %v10360_v15  ;;  %v3827_v24 = vadd.s32 3, %v3823_v61  ;;  %v3612_v53 = vsub.s32 4, %v9996_v16  ;;  %v6764_v50 = vpop.eup %6763 }
 0x4c9   :  { %v10374_v21 = vmul.f32 %v2347_v13, %v2315_v12  ;;  %v3822_v42 = vsel %vm10356_vm12, %v10060_v46, %v3819_v0  ;;  %v2333_v40 = vsub.f32 1.0, %v10141_v9  ;;  %v3412_v51 = vand.u32 3, %v3411_v41 }
 0x4ca   :  { %v6387_v2 = vmin.u32 %v4008_v18, %v10360_v15  ;;  %6769 = vcosq.f32 %v3822_v42  ;;  %v10382_v6 = vand.u32 3, %v3931_v56  ;;  %v3415_v10 = vxor.u32 2147483648, %v6764_v50 }
 0x4cb   :  { %6771 = vsinq.f32 %v3822_v42  ;;  %v3418_v25 = vxor.u32 2147483648, %v6762_v14  ;;  %v3611_v37 = vsel %vm3528_vm2, %v3610_v5, %v3609_v3  ;;  %vm3944_vm3 = vcmp.lt.s32.totalorder %v10156_v1, 0 }
 0x4cc   :  { %v4010_v26 = vclz %v6387_v2  ;;  %v10388_v27 = vadd.f32 %v4058_v23, %v12904_v54  ;;  %v3998_v38 = vadd.s32 %v10284_v62, %v10295_v33  ;;  %v10392_v39 = vand.u32 3, %v3827_v24 }
 0x4cd   :  { %v12906_v7 = vand.u32 2147483647, %v9792_v30  ;;  %v3613_v58 = vsel %vm3528_vm2, %v3612_v53, %v9996_v16  ;;  %vm3414_vm5 = vcmp.eq.s32.totalorder %v3412_v51, 0  ;;  %vm3417_vm10 = vcmp.eq.s32.totalorder %v3412_v51, 2  ;;  %v12915_v16 = vld [vmem:[#allocation38_spill] sm:$0xff] }
 0x4ce   :  { %12905 = vst [vmem:[#allocation33_spill] sm:$0xff] %v10388_v27  ;;  %v6388_v3 = vadd.s32 4294967294, %v4010_v26  ;;  %v12909_v49 = vand.u32 2147483647, %v9229_v17  ;;  %vm3937_vm11 = vcmp.eq.s32.totalorder %v10382_v6, 2  ;;  %v3416_v44 = vsel %vm3414_vm5, %v6762_v14, %v3415_v10 }
 0x4cf   :  { %vm10396_vm13 = vcmp.le.f32.partialorder %v12906_v7, 0.7853982  ;;  %v12912_v62 = vand.u32 2147483647, %v10156_v1  ;;  %v3419_v47 = vsel %vm3417_vm10, %v3418_v25, %v6764_v50  ;;  %v2988_v29 = vsub.s32 4, %v12915_v16  ;;  %v6766_v20 = vpop.eup %6765 }
 0x4d0   :  { %vm10405_vm7 = vcmp.le.f32.partialorder %v12909_v49, 0.7853982  ;;  %vm6389_vm15 = vcmp.lt.s32.totalorder %v6388_v3, 0  ;;  %v4028_v60 = vsub.s32 4, %v10330_v43  ;;  %v3614_v35 = vsel %vm10396_vm13, %v9792_v30, %v3611_v37 }
 0x4d1   :  { %vm10412_vm8 = vcmp.le.f32.partialorder %v12912_v62, 0.7853982  ;;  %v2990_v13 = vsel %vm10405_vm7, %v9229_v17, %v9887_v4  ;;  %v4013_v61 = vsel %vm6389_vm15, 0, %v6388_v3  ;;  %vm3413_vm1 = vcmp.lt.s32.totalorder %v3412_v51, 2  ;;  %v12919_v51 = vld [vmem:[#allocation25_spill] sm:$0xff] }
 0x4d2   :  { %6773 = vcosq.f32 %v2990_v13  ;;  %v2989_v41 = vsel %vm2904_vm6, %v2988_v29, %v12915_v16  ;;  %v4014_v56 = vsub.s32 32, %v4013_v61  ;;  %v4018_v12 = vsub.s32 4294967266, %v4013_v61 }
 0x4d3   :  { %6775 = vsinq.f32 %v2990_v13  ;;  %vm3410_vm2 = vweird.f32 %v9667_v57  ;;  %v3420_v4 = vsel %vm3413_vm1, %v3416_v44, %v3419_v47  ;;  %vm3934_vm12 = vcmp.eq.s32.totalorder %v10382_v6, 0  ;;  %v6768_v0 = vpop.eup %6767 }
 0x4d4   :  { %v3938_v14 = vxor.u32 2147483648, %v6766_v20  ;;  %vm3829_vm5 = vcmp.lt.s32.totalorder %v10392_v39, 2  ;;  %v3615_v5 = vsel %vm10396_vm13, 0, %v3613_v58  ;;  %6777 = vcosq.f32 %v3614_v35 }
 0x4d5   :  { %v2991_v23 = vsel %vm10405_vm7, 0, %v2989_v41  ;;  %v4015_v18 = vshll.u32 %v10360_v15, %v4013_v61  ;;  %v4016_v42 = vshrl.u32 %v3998_v38, %v4014_v56  ;;  %v4019_v24 = vadd.s32 127, %v4018_v12 }
 0x4d6   :  { %vm3826_vm6 = vweird.f32 %v10060_v46  ;;  %v10440_v57 = vsel %vm3944_vm3, %v4028_v60, %v10330_v43  ;;  %v3421_v53 = vsel %vm3410_vm2, nan, %v3420_v4  ;;  %6779 = vsinq.f32 %v3614_v35  ;;  %v12920_v60 = vld [vmem:[#allocation46_spill] sm:$0xff] }
 0x4d7   :  { %v12916_v50 = vand.u32 2147483647, %v9368_v52  ;;  %v3196_v10 = vsub.s32 4, %v12919_v51  ;;  %v4017_v15 = vor.u32 %v4016_v42, %v4015_v18  ;;  %v4020_v25 = vshll.u32 %v4019_v24, 23  ;;  %v6770_v43 = vpop.eup %6769  ;;  %v12926_v18 = vld [vmem:[#allocation49_spill] sm:$0xff] }
 0x4d8   :  { %v2995_v37 = vadd.s32 3, %v2991_v23  ;;  %v3935_v54 = vxor.u32 2147483648, %v6768_v0  ;;  %vm3830_vm10 = vcmp.eq.s32.totalorder %v10392_v39, 0  ;;  %vm3833_vm7 = vcmp.eq.s32.totalorder %v10392_v39, 2  ;;  %v6772_v7 = vpop.eup %6771  ;;  %v12928_v39 = vld [vmem:[#allocation19_spill] sm:$0xff] }
 0x4d9   :  { %vm10444_vm13 = vcmp.le.f32.partialorder %v12916_v50, 0.7853982  ;;  %v3619_v38 = vadd.s32 3, %v3615_v5  ;;  %v3939_v63 = vsel %vm3937_vm11, %v3938_v14, %v6768_v0  ;;  %v4021_v58 = vor.u32 4788187, %v4020_v25  ;;  %v12925_v14 = vld [vmem:[#allocation12_spill] sm:$0xff] }
 0x4da   :  { %v3198_v26 = vsel %vm10444_vm13, %v9368_v52, %v9957_v32  ;;  %v3834_v3 = vxor.u32 2147483648, %v6770_v43  ;;  %v4031_v49 = vsel %vm10412_vm8, 0, %v10440_v57  ;;  %v3831_v22 = vxor.u32 2147483648, %v6772_v7 }
 0x4db   :  { %v4055_v32 = vmul.f32 %v3421_v53, %v9962_v11  ;;  %v3197_v62 = vsel %vm3112_vm9, %v3196_v10, %v12919_v51  ;;  %6781 = vcosq.f32 %v3198_v26  ;;  %v4022_v44 = vand.u32 2147483647, %v4021_v58  ;;  %v12924_v11 = vld [vmem:[#allocation39_spill] sm:$0xff] }
 0x4dc   :  { %v4024_v47 = vcvt.s32.f32 %v4017_v15  ;;  %v3835_v16 = vsel %vm3833_vm7, %v3834_v3, %v6772_v7  ;;  %v2996_v29 = vand.u32 3, %v2995_v37  ;;  %v3832_v13 = vsel %vm3830_vm10, %v6770_v43, %v3831_v22  ;;  %v12929_v15 = vld [vmem:[#allocation55_spill] sm:$0xff]  ;;  %v12931_v43 = vld [vmem:[#allocation52_spill] sm:$0xff]  ;;  %v12935_v22 = vld [vmem:[#allocation53_spill] sm:$0xff] }
 0x4dd   :  { %6783 = vsinq.f32 %v3198_v26  ;;  %v12921_v35 = vand.u32 2147483647, %v12920_v60  ;;  %v2572_v41 = vsub.s32 4, %v12924_v11  ;;  %vm3933_vm15 = vcmp.lt.s32.totalorder %v10382_v6, 2 }
 0x4de   :  { %v3936_v56 = vsel %vm3934_vm12, %v6766_v20, %v3935_v54  ;;  %v4025_v12 = vmul.f32 %v4024_v47, %v4022_v44  ;;  %v3836_v4 = vsel %vm3829_vm5, %v3832_v13, %v3835_v16  ;;  %v10485_v42 = vadd.f32 %v4055_v32, %v12926_v18  ;;  %v12937_v44 = vld [vmem:[#allocation35_spill] sm:$0xff]  ;;  %v12938_v47 = vld [vmem:[#allocation34_spill] sm:$0xff] }
 0x4df   :  { %vm10468_vm11 = vcmp.le.f32.partialorder %v12921_v35, 0.7853982  ;;  %v6774_v23 = vpop.eup %6773  ;;  %v3837_v0 = vsel %vm3826_vm6, nan, %v3836_v4  ;;  %vm2994_vm9 = vweird.f32 %v9229_v17  ;;  %v3199_v20 = vsel %vm10444_vm13, 0, %v3197_v62  ;;  %v12936_v62 = vld [vmem:[#allocation13_spill] sm:$0xff] }
 0x4e0   :  { %v2574_v5 = vsel %vm10468_vm11, %v12920_v60, %v12925_v14  ;;  %12927 = vst [vmem:[#allocation7_spill] sm:$0xff] %v10485_v42  ;;  %v6776_v24 = vpop.eup %6775  ;;  %vm3514_vm1 = vweird.f32 %v12928_v39  ;;  %v4026_v57 = vxor.u32 2147483648, %v4025_v12  ;;  %v4059_v53 = vmul.f32 %v3837_v0, %v10374_v21 }
 0x4e1   :  { %vm2998_vm2 = vcmp.eq.s32.totalorder %v2996_v29, 0  ;;  %v3002_v50 = vxor.u32 2147483648, %v6774_v23  ;;  %v2999_v51 = vxor.u32 2147483648, %v6776_v24  ;;  %vm3001_vm12 = vcmp.eq.s32.totalorder %v2996_v29, 2  ;;  %v6778_v10 = vpop.eup %6777 }
 0x4e2   :  { %v2573_v46 = vsel %vm2488_vm0, %v2572_v41, %v12924_v11  ;;  %6785 = vcosq.f32 %v2574_v5  ;;  %v4027_v2 = vsel %vm3944_vm3, %v4026_v57, %v4025_v12  ;;  %v10498_v25 = vadd.f32 %v4059_v53, %v12929_v15  ;;  %v12940_v41 = vld [vmem:[#allocation28_spill] sm:$0xff] }
 0x4e3   :  { %v3003_v37 = vsel %vm3001_vm12, %v3002_v50, %v6776_v24  ;;  %6787 = vsinq.f32 %v2574_v5  ;;  %v4030_v21 = vsel %vm10412_vm8, %v10156_v1, %v4027_v2  ;;  %vm2997_vm5 = vcmp.lt.s32.totalorder %v2996_v29, 2  ;;  %v6780_v58 = vpop.eup %6779  ;;  %v12945_v24 = vld [vmem:[#allocation26_spill] sm:$0xff] }
 0x4e4   :  { %12930 = vst [vmem:[#allocation27_spill] sm:$0xff] %v10498_v25  ;;  %v3000_v26 = vsel %vm2998_vm2, %v6774_v23, %v2999_v51  ;;  %v12932_v54 = vand.u32 2147483647, %v12931_v43  ;;  %4142 = vmatprep.subr.mxu0 %v10498_v25  ;;  %6789 = vcosq.f32 %v4030_v21  ;;  %v2780_v32 = vsub.s32 4, %v12935_v22 }
 0x4e5   :  { %v3004_v3 = vsel %vm2997_vm5, %v3000_v26, %v3003_v37  ;;  %6791 = vsinq.f32 %v4030_v21  ;;  %4143 = vmatpush1.msra.mxu0 %v10388_v27  ;;  %v10518_v16 = vadd.f32 %v12938_v47, %v12937_v44  ;;  %v2575_v13 = vsel %vm10468_vm11, 0, %v2573_v46 }
 0x4e6   :  { %vm10505_vm6 = vcmp.le.f32.partialorder %v12932_v54, 0.7853982  ;;  %v3005_v29 = vsel %vm2994_vm9, nan, %v3004_v3  ;;  %v4035_v35 = vadd.s32 3, %v4031_v49  ;;  %4144 = vmatprep.subr.mxu0 %v10485_v42  ;;  %v3620_v11 = vand.u32 3, %v3619_v38  ;;  %v12941_v49 = vld [vmem:[#allocation51_spill] sm:$0xff] }
 0x4e7   :  { %v2782_v33 = vsel %vm10505_vm6, %v12931_v43, %v12936_v62  ;;  %12939 = vst [vmem:[#allocation22_spill] sm:$0xff] %v10518_v16  ;;  %v4051_v12 = vmul.f32 %v3005_v29, %v12940_v41  ;;  %v3940_v4 = vsel %vm3933_vm15, %v3936_v56, %v3939_v63  ;;  %v3626_v14 = vxor.u32 2147483648, %v6778_v10  ;;  %4145 = vmatpush1.msra.mxu0 %v10518_v16 }
 0x4e8   :  { %6793 = vcosq.f32 %v2782_v33  ;;  %v3203_v5 = vadd.s32 3, %v3199_v20  ;;  %v2781_v17 = vsel %vm2696_vm4, %v2780_v32, %v12935_v22  ;;  %v6782_v61 = vpop.eup %6781  ;;  %v3623_v23 = vxor.u32 2147483648, %v6780_v58  ;;  %v12944_v20 = vld [vmem:[#allocation44_spill] sm:$0xff]  ;;  %v12947_v22 = vld [vmem:[#allocation54_spill] sm:$0xff] }
 0x4e9   :  { %v10533_v0 = vadd.f32 %v4051_v12, %v12941_v49  ;;  %v2579_v38 = vadd.s32 3, %v2575_v13  ;;  %6795 = vsinq.f32 %v2782_v33  ;;  %v10538_v6 = vsel %vm3514_vm1, nan, %v10367_v45 }
 0x4ea   :  { %v12943_v63 = vmax.f32 %v9985_v34, 0.0  ;;  %v2349_v18 = vmax.f32 %v2333_v40, 0.0  ;;  %v10547_v57 = vadd.f32 %v12945_v24, %v12944_v20  ;;  %v6784_v53 = vpop.eup %6783  ;;  %vm3930_vm0 = vweird.f32 %v10015_v55  ;;  %v12950_v24 = vld [vmem:[#allocation45_spill] sm:$0xff] }
 0x4eb   :  { %12942 = vst [vmem:[#allocation11_spill] sm:$0xff] %v10533_v0  ;;  %v2317_v50 = vmax.f32 %v10141_v9, 0.0  ;;  %v4036_v51 = vand.u32 3, %v4035_v35  ;;  %4146 = vmatprep.subr.mxu0 %v10533_v0  ;;  %v2783_v34 = vsel %vm10505_vm6, 0, %v2781_v17  ;;  %v3941_v45 = vsel %vm3930_vm0, nan, %v3940_v4 }
 0x4ec   :  { %v2364_v56 = vmul.f32 %v10350_v19, %v12943_v63  ;;  %12946 = vst [vmem:[#allocation8_spill] sm:$0xff] %v10547_v57  ;;  %vm3622_vm4 = vcmp.eq.s32.totalorder %v3620_v11, 0  ;;  %vm3625_vm3 = vcmp.eq.s32.totalorder %v3620_v11, 2  ;;  %v3204_v19 = vand.u32 3, %v3203_v5  ;;  %4147 = vmatpush1.msra.mxu0 %v10547_v57 }
 0x4ed   :  { %v3624_v40 = vsel %vm3622_vm4, %v6778_v10, %v3623_v23  ;;  %v3627_v39 = vsel %vm3625_vm3, %v3626_v14, %v6780_v58  ;;  %v3210_v46 = vxor.u32 2147483648, %v6782_v61  ;;  %v2580_v2 = vand.u32 3, %v2579_v38  ;;  %v12949_v38 = vld [vmem:[#allocation32_spill] sm:$0xff] }
 0x4ee   :  { %v2365_v15 = vmul.f32 %v2349_v18, %v2317_v50  ;;  %vm3618_vm8 = vweird.f32 %v9792_v30  ;;  %v3207_v55 = vxor.u32 2147483648, %v6784_v53  ;;  %v2787_v9 = vadd.s32 3, %v2783_v34  ;;  %v12948_v30 = vld [vmem:[#allocation16_spill] sm:$0xff]  ;;  %v12952_v34 = vld [vmem:[#allocation43_spill] sm:$0xff] }
 0x4ef   :  { %v6786_v37 = vpop.eup %6785  ;;  %v10556_v21 = vmul.f32 %v3941_v45, %v2364_v56  ;;  %vm4034_vm13 = vweird.f32 %v10156_v1  ;;  %vm4037_vm10 = vcmp.lt.s32.totalorder %v4036_v51, 2  ;;  %vm4038_vm7 = vcmp.eq.s32.totalorder %v4036_v51, 0  ;;  %v12953_v45 = vld [vmem:[#allocation20_spill] sm:$0xff] }
 0x4f0   :  { %vm3621_vm11 = vcmp.lt.s32.totalorder %v3620_v11, 2  ;;  %v6788_v26 = vpop.eup %6787  ;;  %vm4041_vm15 = vcmp.eq.s32.totalorder %v4036_v51, 2  ;;  %vm3209_vm9 = vcmp.eq.s32.totalorder %v3204_v19, 2  ;;  %v2586_v10 = vxor.u32 2147483648, %v6786_v37  ;;  %v4078_v51 = vld [vmem:[%s12448_s6] sm:$0xff]  ;;  %v12957_v1 = vld [vmem:[#allocation36_spill] sm:$0xff] }
 0x4f1   :  { %v3628_v54 = vsel %vm3621_vm11, %v3624_v40, %v3627_v39  ;;  %vm3206_vm1 = vcmp.eq.s32.totalorder %v3204_v19, 0  ;;  %v3211_v7 = vsel %vm3209_vm9, %v3210_v46, %v6784_v53  ;;  %v2583_v58 = vxor.u32 2147483648, %v6788_v26  ;;  %v6790_v3 = vpop.eup %6789  ;;  %v12955_v40 = vld [vmem:[#allocation15_spill] sm:$0xff] }
 0x4f2   :  { %vm2585_vm2 = vcmp.eq.s32.totalorder %v2580_v2, 2  ;;  %vm2682_vm12 = vweird.f32 %v12947_v22  ;;  %v3208_v32 = vsel %vm3206_vm1, %v6782_v61, %v3207_v55  ;;  %vm2582_vm5 = vcmp.eq.s32.totalorder %v2580_v2, 0  ;;  %v6792_v44 = vpop.eup %6791  ;;  %v12969_v22 = vld [vmem:[#allocation40_spill] sm:$0xff] }
 0x4f3   :  { %v2587_v62 = vsel %vm2585_vm2, %v2586_v10, %v6788_v26  ;;  %v2788_v33 = vand.u32 3, %v2787_v9  ;;  %v4042_v47 = vxor.u32 2147483648, %v6790_v3  ;;  %v3629_v29 = vsel %vm3618_vm8, nan, %v3628_v54  ;;  %v12959_v9 = vld [vmem:[#allocation30_spill] sm:$0xff]  ;;  %v12962_v10 = vld [vmem:[#allocation24_spill] sm:$0xff] }
 0x4f4   :  { %vm2581_vm6 = vcmp.lt.s32.totalorder %v2580_v2, 2  ;;  %v2584_v13 = vsel %vm2582_vm5, %v6786_v37, %v2583_v58  ;;  %v4039_v11 = vxor.u32 2147483648, %v6792_v44  ;;  %vm3205_vm0 = vcmp.lt.s32.totalorder %v3204_v19, 2  ;;  %v12958_v2 = vld [vmem:[#allocation17_spill] sm:$0xff]  ;;  %v12960_v26 = vld [vmem:[#allocation42_spill] sm:$0xff] }
 0x4f5   :  { %v6794_v35 = vpop.eup %6793  ;;  %vm2578_vm4 = vweird.f32 %v12920_v60  ;;  %v2588_v41 = vsel %vm2581_vm6, %v2584_v13, %v2587_v62  ;;  %v4043_v12 = vsel %vm4041_vm15, %v4042_v47, %v6792_v44  ;;  %v3212_v4 = vsel %vm3205_vm0, %v3208_v32, %v3211_v7  ;;  %v12971_v13 = vld [vmem:[#allocation37_spill] sm:$0xff] }
 0x4f6   :  { %v2589_v14 = vsel %vm2578_vm4, nan, %v2588_v41  ;;  %v2794_v5 = vxor.u32 2147483648, %v6794_v35  ;;  %v6796_v17 = vpop.eup %6795  ;;  %v4040_v61 = vsel %vm4038_vm7, %v6790_v3, %v4039_v11  ;;  %vm3202_vm3 = vweird.f32 %v9368_v52  ;;  %v12963_v3 = vld [vmem:[#allocation47_spill] sm:$0xff]  ;;  %v4079_v41 = vld [vmem:[%s12448_s6 + $0x8] sm:$0xff] }
 0x4f7   :  { %v4047_v23 = vmul.f32 %v2589_v14, %v12948_v30  ;;  %vm2793_vm8 = vcmp.eq.s32.totalorder %v2788_v33, 2  ;;  %v4044_v49 = vsel %vm4037_vm10, %v4040_v61, %v4043_v12  ;;  %v4057_v63 = vmul.f32 %v3629_v29, %v12949_v38  ;;  %v12975_v14 = vld [vmem:[#allocation50_spill] sm:$0xff]  ;;  %v12979_v30 = vld [vmem:[#allocation41_spill] sm:$0xff]  ;;  %v12981_v38 = vld [vmem:[#allocation31_spill] sm:$0xff] }
 0x4f8   :  { %v2791_v56 = vxor.u32 2147483648, %v6796_v17  ;;  %v2795_v60 = vsel %vm2793_vm8, %v2794_v5, %v6796_v17  ;;  %v4045_v18 = vsel %vm4034_vm13, nan, %v4044_v49  ;;  %v3213_v20 = vsel %vm3202_vm3, nan, %v3212_v4  ;;  %v12977_v17 = vld [vmem:[#allocation21_spill] sm:$0xff]  ;;  %v4080_v49 = vld [vmem:[%s12448_s6 + $0x10] sm:$0xff] }
 0x4f9   :  { %v10572_v53 = vadd.f32 %v4047_v23, %v12950_v24  ;;  %vm2790_vm11 = vcmp.eq.s32.totalorder %v2788_v33, 0  ;;  %v4061_v50 = vmul.f32 %v4045_v18, %v2365_v15  ;;  %vm2789_vm7 = vcmp.lt.s32.totalorder %v2788_v33, 2  ;;  %v12966_v33 = vld [vmem:[#allocation29_spill] sm:$0xff] }
 0x4fa   :  { %v2792_v52 = vsel %vm2790_vm11, %v6794_v35, %v2791_v56  ;;  %v10576_v19 = vadd.f32 %v12953_v45, %v12952_v34  ;;  %v12956_v39 = vmax.f32 %v12955_v40, 0.0  ;;  %v4056_v55 = vmul.f32 %v10538_v6, %v12958_v2  ;;  %v12965_v6 = vld [vmem:[#allocation23_spill] sm:$0xff]  ;;  %v4081_v56 = vld [vmem:[%s12448_s6 + $0x18] sm:$0xff] }
 0x4fb   :  { %12951 = vst [vmem:[#allocation10_spill] sm:$0xff] %v10572_v53  ;;  %4148 = vmatprep.subr.mxu0 %v10572_v53  ;;  %vm2786_vm13 = vweird.f32 %v12931_v43  ;;  %v2796_v15 = vsel %vm2789_vm7, %v2792_v52, %v2795_v60  ;;  %v2693_v37 = vsel %vm2682_vm12, nan, %v12959_v9  ;;  %v10592_v54 = vadd.f32 %v4061_v50, %v12960_v26  ;;  %v12967_v43 = vld [vmem:[#allocation9_spill] sm:$0xff]  ;;  %v10656_v60 = vpop.permute.xlu1 %4098 }
 0x4fc   :  { %12954 = vst [vmem:[#allocation5_spill] sm:$0xff] %v10576_v19  ;;  %v2356_v46 = vmul.f32 %v12957_v1, %v12956_v39  ;;  %v4053_v7 = vmul.f32 %v3213_v20, %v12962_v10  ;;  %v2797_v58 = vsel %vm2786_vm13, nan, %v2796_v15  ;;  %4149 = vmatpush1.msra.mxu0 %v10576_v19  ;;  %v12964_v32 = vmax.f32 %v12963_v3, 0.0 }
 0x4fd   :  { %12961 = vst [vmem:[#allocation18_spill] sm:$0xff] %v10592_v54  ;;  %v10602_v47 = vadd.f32 %v10556_v21, %v12967_v43  ;;  %6390 = vmatmul.mubr.msk.f32.vlgmr.msra.gmra.mxu0 %vm12647_vm14, %v4078_v51  ;;  %4231 = vmatprep.subr.mxu1 %v10592_v54  ;;  %v10607_v29 = vadd.f32 %v4057_v63, %v12969_v22  ;;  %v12972_v11 = vmov 0.0   ;;  %v12973_v21 = vld [vmem:[#allocation48_spill] sm:$0xff] }
 0x4fe   :  { %v2352_v62 = vmul.f32 %v12965_v6, %v12964_v32  ;;  %v4052_v44 = vmul.f32 %v12966_v33, %v2356_v46  ;;  %v4049_v35 = vmul.f32 %v2797_v58, %v12971_v13  ;;  %4188 = vmatprep.mubr.f32.mxu0 %v12972_v11  ;;  %v10616_v4 = vadd.f32 %v4056_v55, %v12973_v21 }
 0x4ff   :  { %12968 = vst [vmem:[#allocation14_spill] sm:$0xff] %v10602_v47  ;;  %12970 = vst [vmem:[#allocation6_spill] sm:$0xff] %v10607_v29  ;;  %4232 = vmatpush1.msra.mxu1 %v10602_v47  ;;  %v10620_v5 = vadd.f32 %v4053_v7, %v12975_v14  ;;  %v10658_v18 = vpop.permute.xlu1 %4088 }
 0x500   :  { %v4048_v12 = vmul.f32 %v2693_v37, %v2352_v62  ;;  %12974 = vst [vmem:[#allocation56_spill] sm:$0xff] %v10616_v4  ;;  %4233 = vmatprep.subr.mxu1 %v10607_v29  ;;  %v10624_v61 = vadd.f32 %v4052_v44, %v12977_v17  ;;  %v10629_v23 = vadd.f32 %v4049_v35, %v12979_v30 }
 0x501   :  { %12976 = vst [vmem:[#allocation38_spill] sm:$0xff] %v10620_v5  ;;  %4234 = vmatpush1.msra.mxu1 %v10616_v4  ;;  %6391 = vmatmul.mubr.msk.f32.gmra.mxu0 %vm12647_vm14, %v4079_v41 }
 0x502   :  { %12978 = vst [vmem:[#allocation25_spill] sm:$0xff] %v10624_v61  ;;  %4235 = vmatprep.subr.mxu1 %v10620_v5  ;;  %12980 = vst [vmem:[#allocation46_spill] sm:$0xff] %v10629_v23  ;;  %4194 = vmatprep.mubr.f32.mxu0 %v12972_v11  ;;  %v10637_v63 = vadd.f32 %v4048_v12, %v12981_v38 }
 0x503   :  { %4236 = vmatpush1.msra.mxu1 %v10624_v61 }
 0x504   :  { %12982 = vst [vmem:[#allocation39_spill] sm:$0xff] %v10637_v63  ;;  %4237 = vmatprep.subr.mxu1 %v10629_v23 }
 0x505   :  { %4238 = vmatpush1.msra.mxu1 %v10637_v63  ;;  %6392 = vmatmul.mubr.msk.f32.gmra.mxu0 %vm12647_vm14, %v4080_v49 }
 0x506   :  { %6394 = vmatmul.mubr.msk.f32.vlgmr.msra.gmra.mxu1 %vm12647_vm14, %v4078_v51  ;;  %4200 = vmatprep.mubr.f32.mxu0 %v12972_v11 }
 0x507   :  { %4277 = vmatprep.mubr.f32.mxu1 %v12972_v11 }
 0x509   :  { %6393 = vmatmul.mubr.msk.f32.gmra.mxu0 %vm12647_vm14, %v4081_v56 }
 0x50a   :  { %6395 = vmatmul.mubr.msk.f32.gmra.mxu1 %vm12647_vm14, %v4079_v41  ;;  %6146 = vmatprep.mubr.f32.mxu0 %v12972_v11 }
 0x50b   :  { %4283 = vmatprep.mubr.f32.mxu1 %v12972_v11 }
 0x50e   :  { %6396 = vmatmul.mubr.msk.f32.gmra.mxu1 %vm12647_vm14, %v4080_v49 }
 0x50f   :  { %4289 = vmatprep.mubr.f32.mxu1 %v12972_v11 }
 0x512   :  { %6397 = vmatmul.mubr.msk.f32.gmra.mxu1 %vm12647_vm14, %v4081_v56 }
 0x513   :  { %6217 = vmatprep.mubr.f32.mxu1 %v12972_v11 }
 0x5bd   :  { %v4184_v20 = vpop.f32.mrf.mxu0 }
 0x5be   :  { %v10661_v24 = vadd.f32 %v4184_v20, %v10658_v18 }
 0x5bf   :  { %v4186_v50 = vpop.f32.mrf.mxu0 }
 0x5c0   :  { %v10664_v52 = vmul.f32 6.2831855, %v10661_v24  ;;  %v10667_v34 = vadd.f32 %v4186_v50, %v10658_v18 }
 0x5c2   :  { %v12597_v45 = vand.u32 2147483647, %v10664_v52  ;;  %v4379_v51 = vand.u32 2139095040, %v10664_v52  ;;  %v10672_v40 = vmul.f32 6.2831855, %v10667_v34 }
 0x5c4   :  { %12983 = vst [vmem:[#allocation12_spill] sm:$0xff] %v10672_v40  ;;  %v4380_v39 = vshrl.u32 %v4379_v51, 23  ;;  %v4483_v1 = vand.u32 2139095040, %v10672_v40  ;;  %v4383_v2 = vand.u32 8388607, %v12597_v45 }
 0x5c6   :  { %v6398_v46 = vadd.s32 4294967169, %v4380_v39  ;;  %v4273_v55 = vpop.f32.mrf.mxu1  ;;  %v4484_v9 = vshrl.u32 %v4483_v1, 23  ;;  %v4384_v26 = vor.u32 8388608, %v4383_v2 }
 0x5c7   :  { %v10678_v15 = vadd.f32 %v4273_v55, %v10658_v18 }
 0x5c8   :  { %v4386_v37 = vadd.s32 1, %v6398_v46  ;;  %v6402_v58 = vadd.s32 4294967169, %v4484_v9  ;;  %v4424_v6 = vshll.u32 %v4384_v26, 8 }
 0x5c9   :  { %12984 = vst [vmem:[#allocation49_spill] sm:$0xff] %v10678_v15  ;;  %v10681_v10 = vmul.f32 6.2831855, %v10678_v15  ;;  %v4314_v42 = vsub.f32 1.0, %v10678_v15 }
 0x5ca   :  { %vm4387_vm10 = vcmp.gt.s32.totalorder %v4386_v37, 0  ;;  %v4490_v13 = vadd.s32 1, %v6402_v58 }
 0x5cb   :  { %12985 = vst [vmem:[#allocation19_spill] sm:$0xff] %v10681_v10  ;;  %v4388_v7 = vsel %vm4387_vm10, %v4386_v37, 0  ;;  %v12596_v62 = vand.u32 2147483647, %v10681_v10  ;;  %v4587_v33 = vand.u32 2139095040, %v10681_v10 }
 0x5cc   :  { %v4390_v3 = vand.u32 31, %v4388_v7  ;;  %v4389_v44 = vshrl.u32 %v4388_v7, 5  ;;  %vm4491_vm5 = vcmp.gt.s32.totalorder %v4490_v13, 0 }
 0x5cd   :  { %v4588_v20 = vshrl.u32 %v4587_v33, 23 }
 0x5ce   :  { %v4391_v32 = vsub.s32 32, %v4390_v3  ;;  %v4393_v43 = vshll.u32 %v12684_v28, %v4390_v3  ;;  %v4396_v22 = vshll.u32 %v12685_v36, %v4390_v3  ;;  %v4399_v41 = vshll.u32 %v12686_v31, %v4390_v3 }
 0x5cf   :  { %v4402_v21 = vshll.u32 %v12687_v59, %v4390_v3  ;;  %v4405_v17 = vshll.u32 %v12688_v8, %v4390_v3  ;;  %vm4408_vm15 = vcmp.lt.s32.totalorder %v4389_v44, 1  ;;  %vm4411_vm9 = vcmp.lt.s32.totalorder %v4389_v44, 4 }
 0x5d0   :  { %v4394_v35 = vshrl.u32 %v12685_v36, %v4391_v32  ;;  %v4397_v11 = vshrl.u32 %v12686_v31, %v4391_v32  ;;  %v4400_v12 = vshrl.u32 %v12687_v59, %v4391_v32  ;;  %v4403_v14 = vshrl.u32 %v12688_v8, %v4391_v32 }
 0x5d1   :  { %v4406_v30 = vshrl.u32 %v12689_v48, %v4391_v32  ;;  %v4392_v39 = vshrl.u32 %v12684_v28, %v4391_v32  ;;  %vm4410_vm1 = vcmp.lt.s32.totalorder %v4389_v44, 3  ;;  %v6406_v37 = vadd.s32 4294967169, %v4588_v20 }
 0x5d2   :  { %v4395_v49 = vor.u32 %v4394_v35, %v4393_v43  ;;  %v4398_v38 = vor.u32 %v4397_v11, %v4396_v22  ;;  %v4401_v56 = vor.u32 %v4400_v12, %v4399_v41  ;;  %v4404_v50 = vor.u32 %v4403_v14, %v4402_v21 }
 0x5d3   :  { %v4407_v51 = vor.u32 %v4406_v30, %v4405_v17  ;;  %vm4409_vm2 = vcmp.lt.s32.totalorder %v4389_v44, 2  ;;  %v4594_v22 = vadd.s32 1, %v6406_v37  ;;  %v4591_v17 = vand.u32 8388607, %v12596_v62 }
 0x5d4   :  { %v4413_v1 = vsel %vm4411_vm9, %v4401_v56, 2102212464  ;;  %v4416_v46 = vsel %vm4408_vm15, %v4395_v49, %v4398_v38  ;;  %v4420_v2 = vsel %vm4408_vm15, %v4398_v38, %v4401_v56  ;;  %v4417_v55 = vsel %vm4411_vm9, %v4404_v50, 920167782 }
 0x5d5   :  { %v4421_v9 = vsel %vm4411_vm9, %v4407_v51, 1326507024  ;;  %v4412_v26 = vsel %vm4408_vm15, %v4392_v39, %v4395_v49  ;;  %v4418_v7 = vsel %vm4410_vm1, %v4401_v56, %v4417_v55  ;;  %v4414_v3 = vsel %vm4410_vm1, %v4398_v38, %v4413_v1 }
 0x5d6   :  { %v4422_v58 = vsel %vm4410_vm1, %v4404_v50, %v4421_v9  ;;  %v4419_v43 = vsel %vm4409_vm2, %v4416_v46, %v4418_v7  ;;  %vm4595_vm12 = vcmp.gt.s32.totalorder %v4594_v22, 0  ;;  %v4415_v12 = vsel %vm4409_vm2, %v4412_v26, %v4414_v3 }
 0x5d7   :  { %v4423_v33 = vsel %vm4409_vm2, %v4420_v2, %v4422_v58  ;;  %v10699_v41 = vmul.u32.u64.low %v4424_v6, %v4419_v43  ;;  %v10700_v32 = vmul.u32.u64.high %v4424_v6, %v4419_v43, %v10699_v41  ;;  %v4596_v21 = vsel %vm4595_vm12, %v4594_v22, 0 }
 0x5d8   :  { %v10696_v35 = vmul.u32.u64.low %v4424_v6, %v4423_v33  ;;  %v10697_v11 = vmul.u32.u64.high %v4424_v6, %v4423_v33, %v10696_v35  ;;  %v4598_v14 = vand.u32 31, %v4596_v21  ;;  %v4431_v30 = vmul.u32 %v4424_v6, %v4415_v12 }
 0x5d9   :  { %v4434_v44 = vadd.s32 1, %v10700_v32  ;;  %v4597_v49 = vshrl.u32 %v4596_v21, 5  ;;  %v4492_v56 = vsel %vm4491_vm5, %v4490_v13, 0  ;;  %v4592_v7 = vor.u32 8388608, %v4591_v17 }
 0x5da   :  { %vm4433_vm6 = vc.u32 %v10697_v11, %v10699_v41  ;;  %v4599_v38 = vsub.s32 32, %v4598_v14  ;;  %v4601_v50 = vshll.u32 %v12684_v28, %v4598_v14  ;;  %v4604_v51 = vshll.u32 %v12685_v36, %v4598_v14 }
 0x5db   :  { %v4435_v20 = vsel %vm4433_vm6, %v4434_v44, %v10700_v32  ;;  %v4607_v39 = vshll.u32 %v12686_v31, %v4598_v14  ;;  %v4610_v55 = vshll.u32 %v12687_v59, %v4598_v14  ;;  %v4613_v13 = vshll.u32 %v12688_v8, %v4598_v14 }
 0x5dc   :  { %v4436_v1 = vadd.s32 %v4435_v20, %v4431_v30  ;;  %v4602_v46 = vshrl.u32 %v12685_v36, %v4599_v38  ;;  %v4605_v2 = vshrl.u32 %v12686_v31, %v4599_v38  ;;  %v4608_v6 = vshrl.u32 %v12687_v59, %v4599_v38 }
 0x5dd   :  { %v4611_v9 = vshrl.u32 %v12688_v8, %v4599_v38  ;;  %v4614_v37 = vshrl.u32 %v12689_v48, %v4599_v38  ;;  %vm4616_vm0 = vcmp.lt.s32.totalorder %v4597_v49, 1  ;;  %vm4619_vm4 = vcmp.lt.s32.totalorder %v4597_v49, 4 }
 0x5de   :  { %v4437_v26 = vadd.s32 536870912, %v4436_v1  ;;  %v4603_v58 = vor.u32 %v4602_v46, %v4601_v50  ;;  %v4606_v3 = vor.u32 %v4605_v2, %v4604_v51  ;;  %v4609_v43 = vor.u32 %v4608_v6, %v4607_v39 }
 0x5df   :  { %v4612_v33 = vor.u32 %v4611_v9, %v4610_v55  ;;  %v4615_v22 = vor.u32 %v4614_v37, %v4613_v13  ;;  %v4494_v12 = vand.u32 31, %v4492_v56  ;;  %vm4618_vm3 = vcmp.lt.s32.totalorder %v4597_v49, 3 }
 0x5e0   :  { %v10719_v35 = vshrl.u32 %v4437_v26, 30  ;;  %v4624_v32 = vsel %vm4616_vm0, %v4603_v58, %v4606_v3  ;;  %v4628_v14 = vsel %vm4616_vm0, %v4606_v3, %v4609_v43  ;;  %vm4617_vm8 = vcmp.lt.s32.totalorder %v4597_v49, 2 }
 0x5e1   :  { %v4625_v21 = vsel %vm4619_vm4, %v4612_v33, 920167782  ;;  %v4629_v44 = vsel %vm4619_vm4, %v4615_v22, 1326507024  ;;  %v4621_v17 = vsel %vm4619_vm4, %v4609_v43, 2102212464  ;;  %v4600_v50 = vshrl.u32 %v12684_v28, %v4599_v38 }
 0x5e2   :  { %v4439_v30 = vshll.u32 %v10719_v35, 30  ;;  %v4626_v20 = vsel %vm4618_vm3, %v4609_v43, %v4625_v21  ;;  %v4630_v39 = vsel %vm4618_vm3, %v4612_v33, %v4629_v44  ;;  %v4632_v46 = vshll.u32 %v4592_v7, 8  ;;  %v4275_v33 = vpop.f32.mrf.mxu1 }
 0x5e3   :  { %v4627_v51 = vsel %vm4617_vm8, %v4624_v32, %v4626_v20  ;;  %v4631_v55 = vsel %vm4617_vm8, %v4628_v14, %v4630_v39  ;;  %v12595_v6 = vand.u32 2147483647, %v10672_v40  ;;  %v4620_v9 = vsel %vm4616_vm0, %v4600_v50, %v4603_v58 }
 0x5e4   :  { %v4440_v2 = vsub.s32 %v4436_v1, %v4439_v30  ;;  %v4622_v13 = vsel %vm4618_vm3, %v4606_v3, %v4621_v17  ;;  %v10732_v37 = vmul.u32.u64.low %v4632_v46, %v4631_v55  ;;  %v10733_v26 = vmul.u32.u64.high %v4632_v46, %v4631_v55, %v10732_v37 }
 0x5e5   :  { %v10735_v22 = vmul.u32.u64.low %v4632_v46, %v4627_v51  ;;  %v10736_v38 = vmul.u32.u64.high %v4632_v46, %v4627_v51, %v10735_v22  ;;  %v10739_v32 = vsub.s32 32, %v4494_v12  ;;  %v4623_v1 = vsel %vm4617_vm8, %v4620_v9, %v4622_v13 }
 0x5e6   :  { %v4442_v43 = vsub.s32 0, %v4440_v2  ;;  %v4487_v58 = vand.u32 8388607, %v12595_v6  ;;  %v4639_v14 = vmul.u32 %v4632_v46, %v4623_v1  ;;  %v10749_v30 = vshrl.u32 %v4492_v56, 5 }
 0x5e7   :  { %vm4641_vm11 = vc.u32 %v10733_v26, %v10735_v22  ;;  %v4507_v3 = vshrl.u32 %v12688_v8, %v10739_v32  ;;  %v4642_v44 = vadd.s32 1, %v10736_v38  ;;  %v10752_v17 = vadd.f32 %v4275_v33, %v10658_v18 }
 0x5e8   :  { %v6399_v7 = vmin.u32 %v4442_v43, %v4440_v2  ;;  %v4498_v20 = vshrl.u32 %v12685_v36, %v10739_v32  ;;  %v4506_v50 = vshll.u32 %v12687_v59, %v4494_v12  ;;  %v4510_v51 = vshrl.u32 %v12689_v48, %v10739_v32 }
 0x5e9   :  { %12986 = vst [vmem:[#allocation55_spill] sm:$0xff] %v10752_v17  ;;  %v4643_v39 = vsel %vm4641_vm11, %v4642_v44, %v10736_v38  ;;  %v4501_v46 = vshrl.u32 %v12686_v31, %v10739_v32  ;;  %v4504_v56 = vshrl.u32 %v12687_v59, %v10739_v32  ;;  %v4509_v18 = vshll.u32 %v12688_v8, %v4494_v12 }
 0x5ea   :  { %v4444_v21 = vclz %v6399_v7  ;;  %v4644_v55 = vadd.s32 %v4643_v39, %v4639_v14  ;;  %v4497_v9 = vshll.u32 %v12684_v28, %v4494_v12  ;;  %v4508_v13 = vor.u32 %v4507_v3, %v4506_v50 }
 0x5eb   :  { %v4500_v43 = vshll.u32 %v12685_v36, %v4494_v12  ;;  %v4503_v7 = vshll.u32 %v12686_v31, %v4494_v12  ;;  %v4511_v1 = vor.u32 %v4510_v51, %v4509_v18  ;;  %v4432_v38 = vadd.s32 %v10699_v41, %v10697_v11 }
 0x5ec   :  { %v6400_v49 = vadd.s32 4294967294, %v4444_v21  ;;  %v4499_v44 = vor.u32 %v4498_v20, %v4497_v9  ;;  %v4645_v6 = vadd.s32 536870912, %v4644_v55  ;;  %vm4515_vm13 = vcmp.lt.s32.totalorder %v10749_v30, 4  ;;  %v10790_v9 = vpop.permute.xlu0 %4103 }
 0x5ed   :  { %v4502_v62 = vor.u32 %v4501_v46, %v4500_v43  ;;  %v4505_v45 = vor.u32 %v4504_v56, %v4503_v7  ;;  %v4488_v50 = vor.u32 8388608, %v4487_v58  ;;  %v4525_v12 = vsel %vm4515_vm13, %v4511_v1, 1326507024 }
 0x5ee   :  { %vm6401_vm7 = vcmp.lt.s32.totalorder %v6400_v49, 0  ;;  %vm4512_vm10 = vcmp.lt.s32.totalorder %v10749_v30, 1  ;;  %vm4514_vm15 = vcmp.lt.s32.totalorder %v10749_v30, 3  ;;  %v10777_v41 = vshrl.u32 %v4645_v6, 30 }
 0x5ef   :  { %v4447_v37 = vsel %vm6401_vm7, 0, %v6400_v49  ;;  %v4521_v49 = vsel %vm4515_vm13, %v4508_v13, 920167782  ;;  %v10784_v46 = vmul.f32 6.2831855, %v10752_v17  ;;  %v4524_v56 = vsel %vm4512_vm10, %v4502_v62, %v4505_v45 }
 0x5f0   :  { %v4448_v33 = vsub.s32 32, %v4447_v37  ;;  %v4452_v21 = vsub.s32 4294967266, %v4447_v37  ;;  %v4449_v14 = vshll.u32 %v4440_v2, %v4447_v37  ;;  %v4520_v2 = vsel %vm4512_vm10, %v4499_v44, %v4502_v62 }
 0x5f1   :  { %v4522_v20 = vsel %vm4514_vm15, %v4505_v45, %v4521_v49  ;;  %12987 = vst [vmem:[#allocation52_spill] sm:$0xff] %v10784_v46  ;;  %v4526_v18 = vsel %vm4514_vm15, %v4508_v13, %v4525_v12  ;;  %vm4513_vm9 = vcmp.lt.s32.totalorder %v10749_v30, 2  ;;  %v4647_v7 = vshll.u32 %v10777_v41, 30  ;;  %v4190_v49 = vpop.f32.mrf.mxu0 }
 0x5f2   :  { %v4450_v39 = vshrl.u32 %v4432_v38, %v4448_v33  ;;  %v4453_v3 = vadd.s32 127, %v4452_v21  ;;  %v4523_v43 = vsel %vm4513_vm9, %v4520_v2, %v4522_v20  ;;  %v4527_v1 = vsel %vm4513_vm9, %v4524_v56, %v4526_v18  ;;  %v10807_v2 = vpop.permute.xlu0 %4093 }
 0x5f3   :  { %v4528_v38 = vshll.u32 %v4488_v50, 8  ;;  %v4691_v33 = vand.u32 2139095040, %v10784_v46  ;;  %v4462_v13 = vsub.s32 4, %v10719_v35  ;;  %vm4378_vm1 = vcmp.lt.s32.totalorder %v10664_v52, 0 }
 0x5f4   :  { %v4451_v51 = vor.u32 %v4450_v39, %v4449_v14  ;;  %v4454_v11 = vshll.u32 %v4453_v3, 23  ;;  %v10810_v50 = vsub.s32 %v4644_v55, %v4647_v7  ;;  %v4517_v55 = vsel %vm4515_vm13, %v4505_v45, 2102212464 }
 0x5f5   :  { %v10800_v14 = vmul.u32.u64.low %v4528_v38, %v4523_v43  ;;  %v10801_v39 = vmul.u32.u64.high %v4528_v38, %v4523_v43, %v10800_v14  ;;  %v4692_v3 = vshrl.u32 %v4691_v33, 23  ;;  %vm4468_vm6 = vweird.f32 %v10664_v52 }
 0x5f6   :  { %v4455_v58 = vor.u32 4788187, %v4454_v11  ;;  %v4458_v37 = vcvt.s32.f32 %v4451_v51  ;;  %v10804_v51 = vmul.u32.u64.low %v4528_v38, %v4527_v1  ;;  %v10805_v11 = vmul.u32.u64.high %v4528_v38, %v4527_v1, %v10804_v51 }
 0x5f7   :  { %v6410_v20 = vadd.s32 4294967169, %v4692_v3  ;;  %v4496_v1 = vshrl.u32 %v12684_v28, %v10739_v32  ;;  %v4538_v3 = vadd.s32 1, %v10801_v39  ;;  %v4312_v32 = vsub.f32 1.0, %v10661_v24 }
 0x5f8   :  { %v4456_v6 = vand.u32 2147483647, %v4455_v58  ;;  %v12988_v58 = vand.u32 2147483647, %v10664_v52  ;;  %vm4537_vm5 = vc.u32 %v10805_v11, %v10800_v14 }
 0x5f9   :  { %v4698_v7 = vadd.s32 1, %v6410_v20  ;;  %v4328_v56 = vmax.f32 %v4312_v32, 0.0 }
 0x5fa   :  { %v4459_v21 = vmul.f32 %v4458_v37, %v4456_v6  ;;  %vm10814_vm2 = vcmp.le.f32.partialorder %v12988_v58, 0.7853982  ;;  %v4463_v6 = vsel %vm4378_vm1, %v4462_v13, %v10719_v35  ;;  %v10820_v37 = vadd.f32 %v4190_v49, %v10807_v2 }
 0x5fb   :  { %v4465_v33 = vsel %vm10814_vm2, 0, %v4463_v6  ;;  %v4650_v35 = vsub.s32 0, %v10810_v50  ;;  %vm4699_vm12 = vcmp.gt.s32.totalorder %v4698_v7, 0  ;;  %v4518_v13 = vsel %vm4514_vm15, %v4502_v62, %v4517_v55 }
 0x5fc   :  { %v4460_v12 = vxor.u32 2147483648, %v4459_v21  ;;  %v10837_v45 = vmul.f32 6.2831855, %v10820_v37  ;;  %v4700_v49 = vsel %vm4699_vm12, %v4698_v7, 0  ;;  %v4539_v58 = vsel %vm4537_vm5, %v4538_v3, %v10801_v39 }
 0x5fd   :  { %v6407_v51 = vmin.u32 %v4650_v35, %v10810_v50  ;;  %v4702_v20 = vand.u32 31, %v4700_v49  ;;  %v12598_v55 = vand.u32 2147483647, %v10784_v46 }
 0x5fe   :  { %v4461_v18 = vsel %vm4378_vm1, %v4460_v12, %v4459_v21  ;;  %v4516_v21 = vsel %vm4512_vm10, %v4496_v1, %v4499_v44  ;;  %v4469_v12 = vadd.s32 3, %v4465_v33  ;;  %v4795_v62 = vand.u32 2139095040, %v10837_v45 }
 0x5ff   :  { %v4464_v43 = vsel %vm10814_vm2, %v10664_v52, %v4461_v18  ;;  %v4519_v44 = vsel %vm4513_vm9, %v4516_v21, %v4518_v13  ;;  %v10849_v7 = vsub.s32 32, %v4702_v20  ;;  %v4296_v1 = vmax.f32 %v10661_v24, 0.0 }
 0x600   :  { %6797 = vcosq.f32 %v4464_v43  ;;  %v4470_v18 = vand.u32 3, %v4469_v12  ;;  %v4535_v6 = vmul.u32 %v4528_v38, %v4519_v44  ;;  %v4796_v35 = vshrl.u32 %v4795_v62, 23 }
 0x601   :  { %6799 = vsinq.f32 %v4464_v43  ;;  %v4652_v43 = vclz %v6407_v51  ;;  %v4344_v30 = vmul.f32 %v4328_v56, %v4296_v1  ;;  %v4695_v38 = vand.u32 8388607, %v12598_v55 }
 0x602   :  { %v4540_v33 = vadd.s32 %v4539_v58, %v4535_v6  ;;  %vm4471_vm0 = vcmp.lt.s32.totalorder %v4470_v18, 2  ;;  %vm4472_vm4 = vcmp.eq.s32.totalorder %v4470_v18, 0  ;;  %vm4475_vm3 = vcmp.eq.s32.totalorder %v4470_v18, 2 }
 0x603   :  { %v6408_v39 = vadd.s32 4294967294, %v4652_v43  ;;  %v4715_v13 = vshrl.u32 %v12688_v8, %v10849_v7  ;;  %v4718_v3 = vshrl.u32 %v12689_v48, %v10849_v7  ;;  %v4714_v51 = vshll.u32 %v12687_v59, %v4702_v20 }
 0x604   :  { %v4541_v12 = vadd.s32 536870912, %v4540_v33  ;;  %v6414_v44 = vadd.s32 4294967169, %v4796_v35  ;;  %v4706_v58 = vshrl.u32 %v12685_v36, %v10849_v7  ;;  %v4709_v56 = vshrl.u32 %v12686_v31, %v10849_v7 }
 0x605   :  { %v4717_v6 = vshll.u32 %v12688_v8, %v4702_v20  ;;  %v10865_v1 = vshrl.u32 %v4700_v49, 5  ;;  %v4705_v55 = vshll.u32 %v12684_v28, %v4702_v20  ;;  %v4712_v63 = vshrl.u32 %v12687_v59, %v10849_v7 }
 0x606   :  { %v4708_v35 = vshll.u32 %v12685_v36, %v4702_v20  ;;  %v4716_v61 = vor.u32 %v4715_v13, %v4714_v51  ;;  %vm6409_vm8 = vcmp.lt.s32.totalorder %v6408_v39, 0  ;;  %v4711_v29 = vshll.u32 %v12686_v31, %v4702_v20 }
 0x607   :  { %v4719_v5 = vor.u32 %v4718_v3, %v4717_v6  ;;  %v4802_v47 = vadd.s32 1, %v6414_v44  ;;  %vm4723_vm11 = vcmp.lt.s32.totalorder %v10865_v1, 4  ;;  %v4696_v18 = vor.u32 8388608, %v4695_v38 }
 0x608   :  { %v10880_v54 = vor.u32 %v4709_v56, %v4708_v35  ;;  %v10889_v52 = vsel %vm6409_vm8, 0, %v6408_v39  ;;  %vm4720_vm7 = vcmp.lt.s32.totalorder %v10865_v1, 1  ;;  %vm4722_vm10 = vcmp.lt.s32.totalorder %v10865_v1, 3  ;;  %v4279_v35 = vpop.f32.mrf.mxu1 }
 0x609   :  { %v4733_v20 = vsel %vm4723_vm11, %v4719_v5, 1326507024  ;;  %vm4803_vm13 = vcmp.gt.s32.totalorder %v4802_v47, 0  ;;  %v4640_v13 = vadd.s32 %v10735_v22, %v10733_v26  ;;  %v10908_v3 = vshll.u32 %v4696_v18, 8 }
 0x60a   :  { %v4734_v39 = vsel %vm4722_vm10, %v4716_v61, %v4733_v20  ;;  %vm4721_vm15 = vcmp.lt.s32.totalorder %v10865_v1, 2 }
 0x60d   :  { %v6798_v21 = vpop.eup %6797 }
 0x60e   :  { %v6800_v24 = vpop.eup %6799  ;;  %v4476_v32 = vxor.u32 2147483648, %v6798_v21 }
 0x60f   :  { %v4473_v62 = vxor.u32 2147483648, %v6800_v24 }
 0x610   :  { %v4477_v43 = vsel %vm4475_vm3, %v4476_v32, %v6800_v24  ;;  %v10876_v24 = vshrl.u32 %v4541_v12, 30  ;;  %v10878_v32 = vor.u32 %v4706_v58, %v4705_v55  ;;  %v4656_v12 = vsub.s32 32, %v10889_v52 }
 0x611   :  { %v4474_v23 = vsel %vm4472_vm4, %v6798_v21, %v4473_v62  ;;  %v4713_v62 = vor.u32 %v4712_v63, %v4711_v29  ;;  %v4804_v63 = vsel %vm4803_vm13, %v4802_v47, 0  ;;  %v4660_v47 = vsub.s32 4294967266, %v10889_v52 }
 0x612   :  { %v4478_v4 = vsel %vm4471_vm0, %v4474_v23, %v4477_v43  ;;  %12991 = vst [vmem:[#allocation53_spill] sm:$0xff] %v10876_v24  ;;  %v4729_v23 = vsel %vm4723_vm11, %v4716_v61, 920167782  ;;  %v4543_v55 = vshll.u32 %v10876_v24, 30  ;;  %v4728_v29 = vsel %vm4720_vm7, %v10878_v32, %v10880_v54 }
 0x613   :  { %v4479_v49 = vsel %vm4468_vm6, nan, %v4478_v4  ;;  %v12607_v4 = vand.u32 2147483647, %v10837_v45  ;;  %v4730_v5 = vsel %vm4722_vm10, %v4713_v62, %v4729_v23  ;;  %v4806_v38 = vand.u32 31, %v4804_v63 }
 0x614   :  { %v10882_v21 = vmul.f32 %v4479_v49, %v4344_v30  ;;  %v4732_v30 = vsel %vm4720_vm7, %v10880_v54, %v4713_v62  ;;  %v10913_v44 = vsub.s32 %v4540_v33, %v4543_v55  ;;  %v4731_v58 = vsel %vm4721_vm15, %v4728_v29, %v4730_v5 }
 0x615   :  { %v4807_v51 = vsub.s32 32, %v4806_v38  ;;  %v4735_v61 = vsel %vm4721_vm15, %v4732_v30, %v4734_v39  ;;  %v4799_v26 = vand.u32 8388607, %v12607_v4  ;;  %v4809_v22 = vshll.u32 %v12684_v28, %v4806_v38 }
 0x616   :  { %12992 = vst [vmem:[#allocation13_spill] sm:$0xff] %v10882_v21  ;;  %v4812_v6 = vshll.u32 %v12685_v36, %v4806_v38  ;;  %v4805_v33 = vshrl.u32 %v4804_v63, 5  ;;  %v4818_v18 = vshll.u32 %v12687_v59, %v4806_v38  ;;  %v4815_v29 = vshll.u32 %v12686_v31, %v4806_v38 }
 0x617   :  { %v4810_v56 = vshrl.u32 %v12685_v36, %v4807_v51  ;;  %v4813_v43 = vshrl.u32 %v12686_v31, %v4807_v51  ;;  %v4816_v49 = vshrl.u32 %v12687_v59, %v4807_v51  ;;  %v4819_v23 = vshrl.u32 %v12688_v8, %v4807_v51 }
 0x618   :  { %v4822_v5 = vshrl.u32 %v12689_v48, %v4807_v51  ;;  %v4546_v30 = vsub.s32 0, %v10913_v44  ;;  %v4800_v39 = vor.u32 8388608, %v4799_v26  ;;  %v10932_v21 = vadd.f32 %v4279_v35, %v10807_v2 }
 0x619   :  { %v4811_v20 = vor.u32 %v4810_v56, %v4809_v22  ;;  %v4814_v55 = vor.u32 %v4813_v43, %v4812_v6  ;;  %v4820_v4 = vor.u32 %v4819_v23, %v4818_v18  ;;  %v4817_v53 = vor.u32 %v4816_v49, %v4815_v29 }
 0x61a   :  { %12993 = vst [vmem:[#allocation35_spill] sm:$0xff] %v10932_v21  ;;  %v10935_v63 = vmul.u32.u64.low %v10908_v3, %v4731_v58  ;;  %v10936_v19 = vmul.u32.u64.high %v10908_v3, %v4731_v58, %v10935_v63  ;;  %v4821_v22 = vshll.u32 %v12688_v8, %v4806_v38  ;;  %v4658_v56 = vshrl.u32 %v4640_v13, %v4656_v12 }
 0x61b   :  { %v10941_v6 = vmul.u32.u64.low %v10908_v3, %v4735_v61  ;;  %v10942_v43 = vmul.u32.u64.high %v10908_v3, %v4735_v61, %v10941_v6  ;;  %vm4824_vm9 = vcmp.lt.s32.totalorder %v4805_v33, 1  ;;  %v4661_v57 = vadd.s32 127, %v4660_v47 }
 0x61c   :  { %v4823_v26 = vor.u32 %v4822_v5, %v4821_v22  ;;  %vm4827_vm1 = vcmp.lt.s32.totalorder %v4805_v33, 4  ;;  %v4832_v35 = vsel %vm4824_vm9, %v4811_v20, %v4814_v55  ;;  %v6403_v18 = vmin.u32 %v4546_v30, %v10913_v44 }
 0x61d   :  { %vm4826_vm2 = vcmp.lt.s32.totalorder %v4805_v33, 3  ;;  %v4833_v58 = vsel %vm4827_vm1, %v4820_v4, 920167782  ;;  %v4840_v23 = vshll.u32 %v4800_v39, 8  ;;  %vm4825_vm12 = vcmp.lt.s32.totalorder %v4805_v33, 2 }
 0x61e   :  { %v4829_v38 = vsel %vm4827_vm1, %v4817_v53, 2102212464  ;;  %v4834_v13 = vsel %vm4826_vm2, %v4817_v53, %v4833_v58  ;;  %v10950_v12 = vmul.f32 6.2831855, %v10932_v21  ;;  %v4725_v47 = vsel %vm4723_vm11, %v4713_v62, 2102212464 }
 0x61f   :  { %v4808_v61 = vshrl.u32 %v12684_v28, %v4807_v51  ;;  %v4835_v49 = vsel %vm4825_vm12, %v4832_v35, %v4834_v13  ;;  %v4836_v29 = vsel %vm4824_vm9, %v4814_v55, %v4817_v53  ;;  %v4704_v5 = vshrl.u32 %v12684_v28, %v10849_v7 }
 0x620   :  { %12994 = vst [vmem:[#allocation34_spill] sm:$0xff] %v10950_v12  ;;  %v4837_v30 = vsel %vm4827_vm1, %v4823_v26, 1326507024  ;;  %v10960_v39 = vmul.u32.u64.low %v4840_v23, %v4835_v49  ;;  %v10961_v22 = vmul.u32.u64.high %v4840_v23, %v4835_v49, %v10960_v39  ;;  %v4662_v6 = vshll.u32 %v4661_v57, 23 }
 0x621   :  { %v4828_v58 = vsel %vm4824_vm9, %v4808_v61, %v4811_v20  ;;  %v4830_v62 = vsel %vm4826_vm2, %v4814_v55, %v4829_v38  ;;  %v4838_v51 = vsel %vm4826_vm2, %v4820_v4, %v4837_v30  ;;  %v4724_v53 = vsel %vm4720_vm7, %v4704_v5, %v10878_v32  ;;  %v4192_v55 = vpop.f32.mrf.mxu0 }
 0x622   :  { %v4726_v7 = vsel %vm4722_vm10, %v10880_v54, %v4725_v47  ;;  %v4839_v26 = vsel %vm4825_vm12, %v4836_v29, %v4838_v51  ;;  %v5003_v35 = vand.u32 2139095040, %v10950_v12  ;;  %v4548_v13 = vclz %v6403_v18 }
 0x623   :  { %v4746_v57 = vadd.s32 1, %v10936_v19  ;;  %v10976_v20 = vmul.u32.u64.low %v4840_v23, %v4839_v26  ;;  %v10977_v61 = vmul.u32.u64.high %v4840_v23, %v4839_v26, %v10976_v20  ;;  %vm4745_vm5 = vc.u32 %v10942_v43, %v10935_v63 }
 0x624   :  { %v4831_v32 = vsel %vm4825_vm12, %v4828_v58, %v4830_v62  ;;  %v4850_v4 = vadd.s32 1, %v10961_v22  ;;  %v5004_v38 = vshrl.u32 %v5003_v35, 23  ;;  %v4657_v54 = vshll.u32 %v10810_v50, %v10889_v52 }
 0x625   :  { %v4663_v47 = vor.u32 4788187, %v4662_v6  ;;  %v4727_v18 = vsel %vm4721_vm15, %v4724_v53, %v4726_v7  ;;  %v4313_v49 = vsub.f32 1.0, %v10667_v34  ;;  %v10989_v5 = vadd.f32 %v4192_v55, %v10807_v2 }
 0x626   :  { %v6422_v29 = vadd.s32 4294967169, %v5004_v38  ;;  %v4659_v30 = vor.u32 %v4658_v56, %v4657_v54  ;;  %v4747_v33 = vsel %vm4745_vm5, %v4746_v57, %v10936_v19  ;;  %v4847_v58 = vmul.u32 %v4840_v23, %v4831_v32 }
 0x627   :  { %vm4849_vm6 = vc.u32 %v10977_v61, %v10960_v39  ;;  %v6404_v62 = vadd.s32 4294967294, %v4548_v13  ;;  %v4743_v50 = vmul.u32 %v10908_v3, %v4727_v18  ;;  %v4664_v6 = vand.u32 2147483647, %v4663_v47 }
 0x628   :  { %v4851_v52 = vsel %vm4849_vm6, %v4850_v4, %v10961_v22  ;;  %v5010_v1 = vadd.s32 1, %v6422_v29  ;;  %v4329_v53 = vmax.f32 %v4313_v49, 0.0  ;;  %v4666_v26 = vcvt.s32.f32 %v4659_v30 }
 0x629   :  { %v4852_v51 = vadd.s32 %v4851_v52, %v4847_v58  ;;  %v10996_v7 = vadd.s32 %v4747_v33, %v4743_v50  ;;  %v4297_v19 = vmax.f32 %v10667_v34, 0.0  ;;  %vm6405_vm4 = vcmp.lt.s32.totalorder %v6404_v62, 0 }
 0x62a   :  { %vm5011_vm0 = vcmp.gt.s32.totalorder %v5010_v1, 0  ;;  %v11000_v35 = vmul.f32 6.2831855, %v10989_v5  ;;  %v4667_v13 = vmul.f32 %v4666_v26, %v4664_v6  ;;  %v11007_v55 = vsel %vm6405_vm4, 0, %v6404_v62 }
 0x62b   :  { %v4853_v56 = vadd.s32 536870912, %v4852_v51  ;;  %v5012_v23 = vsel %vm5011_vm0, %v5010_v1, 0  ;;  %v11004_v22 = vmul.f32 %v4329_v53, %v4297_v19  ;;  %v4749_v57 = vadd.s32 536870912, %v10996_v7 }
 0x62c   :  { %v5014_v20 = vand.u32 31, %v5012_v23  ;;  %v12611_v34 = vand.u32 2147483647, %v10950_v12  ;;  %v4316_v54 = vsub.f32 1.0, %v10820_v37  ;;  %v4899_v18 = vand.u32 2139095040, %v11000_v35 }
 0x62d   :  { %v11002_v3 = vshrl.u32 %v4853_v56, 30  ;;  %12995 = vst [vmem:[#allocation28_spill] sm:$0xff] %v11004_v22  ;;  %vm4586_vm3 = vcmp.lt.s32.totalorder %v10681_v10, 0  ;;  %v4668_v49 = vxor.u32 2147483648, %v4667_v13  ;;  %v4670_v29 = vsub.s32 4, %v10777_v41 }
 0x62e   :  { %v5015_v47 = vsub.s32 32, %v5014_v20  ;;  %v4556_v33 = vsub.s32 4294967266, %v11007_v55  ;;  %v11020_v58 = vshrl.u32 %v4749_v57, 30  ;;  %v5007_v52 = vand.u32 8388607, %v12611_v34 }
 0x62f   :  { %v4855_v4 = vshll.u32 %v11002_v3, 30  ;;  %v5017_v1 = vshll.u32 %v12684_v28, %v5014_v20  ;;  %v5020_v6 = vshll.u32 %v12685_v36, %v5014_v20  ;;  %v5026_v26 = vshll.u32 %v12687_v59, %v5014_v20 }
 0x630   :  { %12996 = vst [vmem:[#allocation51_spill] sm:$0xff] %v11020_v58  ;;  %v5018_v62 = vshrl.u32 %v12685_v36, %v5015_v47  ;;  %v5021_v50 = vshrl.u32 %v12686_v31, %v5015_v47  ;;  %v5024_v53 = vshrl.u32 %v12687_v59, %v5015_v47  ;;  %v5027_v56 = vshrl.u32 %v12688_v8, %v5015_v47 }
 0x631   :  { %v11017_v30 = vsub.s32 %v4852_v51, %v4855_v4  ;;  %v5023_v51 = vshll.u32 %v12686_v31, %v5014_v20  ;;  %v4900_v19 = vshrl.u32 %v4899_v18, 23  ;;  %v5013_v4 = vshrl.u32 %v5012_v23, 5 }
 0x632   :  { %v5019_v38 = vor.u32 %v5018_v62, %v5017_v1  ;;  %v5022_v32 = vor.u32 %v5021_v50, %v5020_v6  ;;  %v5028_v34 = vor.u32 %v5027_v56, %v5026_v26  ;;  %v5029_v0 = vshll.u32 %v12688_v8, %v5014_v20 }
 0x633   :  { %v4858_v57 = vsub.s32 0, %v11017_v30  ;;  %v5025_v22 = vor.u32 %v5024_v53, %v5023_v51  ;;  %v5030_v16 = vshrl.u32 %v12689_v48, %v5015_v47  ;;  %v4669_v25 = vsel %vm4586_vm3, %v4668_v49, %v4667_v13 }
 0x634   :  { %v4671_v18 = vsel %vm4586_vm3, %v4670_v29, %v10777_v41  ;;  %v4557_v27 = vadd.s32 127, %v4556_v33  ;;  %v4751_v23 = vshll.u32 %v11020_v58, 30  ;;  %v5008_v62 = vor.u32 8388608, %v5007_v52 }
 0x635   :  { %v5031_v50 = vor.u32 %v5030_v16, %v5029_v0  ;;  %v6418_v1 = vadd.s32 4294967169, %v4900_v19  ;;  %v6415_v6 = vmin.u32 %v4858_v57, %v11017_v30  ;;  %vm5032_vm8 = vcmp.lt.s32.totalorder %v5013_v4, 1 }
 0x636   :  { %vm5034_vm11 = vcmp.lt.s32.totalorder %v5013_v4, 3  ;;  %vm5035_vm7 = vcmp.lt.s32.totalorder %v5013_v4, 4  ;;  %v5040_v53 = vsel %vm5032_vm8, %v5019_v38, %v5022_v32  ;;  %v5044_v13 = vsel %vm5032_vm8, %v5022_v32, %v5025_v22 }
 0x637   :  { %v5037_v20 = vsel %vm5035_vm7, %v5025_v22, 2102212464  ;;  %v5041_v51 = vsel %vm5035_vm7, %v5028_v34, 920167782  ;;  %v5016_v49 = vshrl.u32 %v12684_v28, %v5015_v47  ;;  %vm5033_vm13 = vcmp.lt.s32.totalorder %v5013_v4, 2 }
 0x638   :  { %v5042_v41 = vsel %vm5034_vm11, %v5025_v22, %v5041_v51  ;;  %v5045_v29 = vsel %vm5035_vm7, %v5031_v50, 1326507024  ;;  %v11048_v16 = vsub.s32 %v10996_v7, %v4751_v23  ;;  %v5048_v52 = vshll.u32 %v5008_v62, 8 }
 0x639   :  { %v5043_v0 = vsel %vm5033_vm13, %v5040_v53, %v5042_v41  ;;  %v5046_v33 = vsel %vm5034_vm11, %v5028_v34, %v5045_v29  ;;  %v4860_v26 = vclz %v6415_v6  ;;  %v5036_v56 = vsel %vm5032_vm8, %v5016_v49, %v5019_v38 }
 0x63a   :  { %v5038_v19 = vsel %vm5034_vm11, %v5022_v32, %v5037_v20  ;;  %v5047_v57 = vsel %vm5033_vm13, %v5044_v13, %v5046_v33  ;;  %v11058_v22 = vmul.u32.u64.low %v5048_v52, %v5043_v0  ;;  %v11059_v50 = vmul.u32.u64.high %v5048_v52, %v5043_v0, %v11058_v22  ;;  %v4281_v33 = vpop.f32.mrf.mxu1 }
 0x63b   :  { %v11055_v47 = vmul.u32.u64.low %v5048_v52, %v5047_v57  ;;  %v11056_v15 = vmul.u32.u64.high %v5048_v52, %v5047_v57, %v11055_v47  ;;  %v11062_v7 = vmax.f32 %v4314_v42, 0.0  ;;  %v12998_v23 = vand.u32 2147483647, %v10681_v10 }
 0x63c   :  { %v4332_v38 = vmax.f32 %v4316_v54, 0.0  ;;  %v4906_v62 = vadd.s32 1, %v6418_v1  ;;  %v5039_v42 = vsel %vm5033_vm13, %v5036_v56, %v5038_v19  ;;  %v4552_v53 = vsub.s32 32, %v11007_v55 }
 0x63d   :  { %12997 = vst [vmem:[#allocation44_spill] sm:$0xff] %v11062_v7  ;;  %vm11066_vm10 = vcmp.le.f32.partialorder %v12998_v23, 0.7853982  ;;  %v4558_v51 = vshll.u32 %v4557_v27, 23  ;;  %v4754_v13 = vsub.s32 0, %v11048_v16  ;;  %v6416_v49 = vadd.s32 4294967294, %v4860_v26 }
 0x63e   :  { %v4672_v32 = vsel %vm11066_vm10, %v10681_v10, %v4669_v25  ;;  %v4673_v6 = vsel %vm11066_vm10, 0, %v4671_v18  ;;  %vm4907_vm15 = vcmp.gt.s32.totalorder %v4906_v62, 0  ;;  %vm5057_vm9 = vc.u32 %v11056_v15, %v11058_v22 }
 0x63f   :  { %v5058_v54 = vadd.s32 1, %v11059_v50  ;;  %v4908_v25 = vsel %vm4907_vm15, %v4906_v62, 0  ;;  %6801 = vcosq.f32 %v4672_v32  ;;  %v4315_v18 = vsub.f32 1.0, %v10752_v17 }
 0x640   :  { %v5055_v1 = vmul.u32 %v5048_v52, %v5039_v42  ;;  %v4910_v41 = vand.u32 31, %v4908_v25  ;;  %6803 = vsinq.f32 %v4672_v32  ;;  %v4536_v4 = vadd.s32 %v10800_v14, %v10805_v11 }
 0x641   :  { %v13001_v27 = vmax.f32 %v10820_v37, 0.0  ;;  %v5059_v0 = vsel %vm5057_vm9, %v5058_v54, %v11059_v50  ;;  %v4677_v26 = vadd.s32 3, %v4673_v6  ;;  %v4553_v56 = vshll.u32 %v10913_v44, %v11007_v55 }
 0x642   :  { %v5060_v19 = vadd.s32 %v5059_v0, %v5055_v1  ;;  %v11092_v57 = vsub.s32 32, %v4910_v41  ;;  %v4554_v52 = vshrl.u32 %v4536_v4, %v4552_v53  ;;  %v4559_v47 = vor.u32 4788187, %v4558_v51 }
 0x643   :  { %v11087_v29 = vmul.f32 %v4332_v38, %v13001_v27  ;;  %v6411_v23 = vmin.u32 %v4754_v13, %v11048_v16  ;;  %vm6417_vm1 = vcmp.lt.s32.totalorder %v6416_v49, 0  ;;  %v12619_v11 = vand.u32 2147483647, %v11000_v35 }
 0x644   :  { %v5061_v14 = vadd.s32 536870912, %v5060_v19  ;;  %v4914_v37 = vshrl.u32 %v12685_v36, %v11092_v57  ;;  %v11099_v50 = vadd.f32 %v4281_v33, %v10807_v2  ;;  %v4917_v44 = vshrl.u32 %v12686_v31, %v11092_v57 }
 0x645   :  { %v4920_v55 = vshrl.u32 %v12687_v59, %v11092_v57  ;;  %v4923_v34 = vshrl.u32 %v12688_v8, %v11092_v57  ;;  %v4926_v38 = vshrl.u32 %v12689_v48, %v11092_v57  ;;  %v11109_v62 = vsel %vm6417_vm1, 0, %v6416_v49 }
 0x646   :  { %v4913_v32 = vshll.u32 %v12684_v28, %v4910_v41  ;;  %v4916_v6 = vshll.u32 %v12685_v36, %v4910_v41  ;;  %v4922_v2 = vshll.u32 %v12687_v59, %v4910_v41  ;;  %v11114_v42 = vshrl.u32 %v5061_v14, 30 }
 0x647   :  { %v11116_v53 = vshrl.u32 %v4908_v25, 5  ;;  %v4919_v51 = vshll.u32 %v12686_v31, %v4910_v41  ;;  %v4925_v13 = vshll.u32 %v12688_v8, %v4910_v41  ;;  %v4903_v54 = vand.u32 8388607, %v12619_v11 }
 0x648   :  { %v11122_v1 = vor.u32 %v4914_v37, %v4913_v32  ;;  %v11124_v49 = vor.u32 %v4917_v44, %v4916_v6  ;;  %v4924_v4 = vor.u32 %v4923_v34, %v4922_v2  ;;  %v4555_v27 = vor.u32 %v4554_v52, %v4553_v56 }
 0x649   :  { %v11126_v0 = vmax.f32 %v4315_v18, 0.0  ;;  %v4921_v33 = vor.u32 %v4920_v55, %v4919_v51  ;;  %v4927_v14 = vor.u32 %v4926_v38, %v4925_v13  ;;  %v11128_v20 = vand.u32 3, %v4677_v26 }
 0x64a   :  { %v4560_v25 = vand.u32 2147483647, %v4559_v47  ;;  %v4756_v7 = vclz %v6411_v23  ;;  %v4868_v17 = vsub.s32 4294967266, %v11109_v62  ;;  %v5063_v41 = vshll.u32 %v11114_v42, 30 }
 0x64b   :  { %13002 = vst [vmem:[#allocation26_spill] sm:$0xff] %v11126_v0  ;;  %vm4928_vm2 = vcmp.lt.s32.totalorder %v11116_v53, 1  ;;  %vm4931_vm12 = vcmp.lt.s32.totalorder %v11116_v53, 4  ;;  %v11135_v37 = vmul.f32 6.2831855, %v11099_v50  ;;  %v4904_v56 = vor.u32 8388608, %v4903_v54 }
 0x64c   :  { %vm4930_vm5 = vcmp.lt.s32.totalorder %v11116_v53, 3  ;;  %v4936_v18 = vsel %vm4928_vm2, %v11122_v1, %v11124_v49  ;;  %v4937_v26 = vsel %vm4931_vm12, %v4924_v4, 920167782  ;;  %v6802_v52 = vpop.eup %6801  ;;  %v4562_v47 = vcvt.s32.f32 %v4555_v27 }
 0x64d   :  { %13003 = vst [vmem:[#allocation54_spill] sm:$0xff] %v11135_v37  ;;  %v4938_v23 = vsel %vm4930_vm5, %v4921_v33, %v4937_v26  ;;  %v4940_v44 = vsel %vm4928_vm2, %v11124_v49, %v4921_v33  ;;  %v4941_v55 = vsel %vm4931_vm12, %v4927_v14, 1326507024  ;;  %v6804_v34 = vpop.eup %6803  ;;  %v6412_v38 = vadd.s32 4294967294, %v4756_v7 }
 0x64e   :  { %v4869_v32 = vadd.s32 127, %v4868_v17  ;;  %vm4929_vm6 = vcmp.lt.s32.totalorder %v11116_v53, 2  ;;  %v4942_v6 = vsel %vm4930_vm5, %v4924_v4, %v4941_v55  ;;  %v11154_v2 = vsub.s32 %v5060_v19, %v5063_v41 }
 0x64f   :  { %v4939_v13 = vsel %vm4929_vm6, %v4936_v18, %v4938_v23  ;;  %v5107_v54 = vand.u32 2139095040, %v11135_v37  ;;  %v4563_v27 = vmul.f32 %v4562_v47, %v4560_v25  ;;  %v4864_v14 = vsub.s32 32, %v11109_v62  ;;  %v4196_v25 = vpop.f32.mrf.mxu0 }
 0x650   :  { %v4943_v17 = vsel %vm4929_vm6, %v4940_v44, %v4942_v6  ;;  %v11163_v7 = vshll.u32 %v4904_v56, 8  ;;  %v4681_v26 = vxor.u32 2147483648, %v6804_v34  ;;  %v4684_v11 = vxor.u32 2147483648, %v6802_v52 }
 0x651   :  { %v4848_v19 = vadd.s32 %v10960_v39, %v10977_v61  ;;  %v5108_v4 = vshrl.u32 %v5107_v54, 23  ;;  %vm6413_vm0 = vcmp.lt.s32.totalorder %v6412_v38, 0  ;;  %v4870_v41 = vshll.u32 %v4869_v32, 23 }
 0x652   :  { %v11168_v18 = vmul.u32.u64.low %v11163_v7, %v4939_v13  ;;  %v11169_v23 = vmul.u32.u64.high %v11163_v7, %v4939_v13, %v11168_v18  ;;  %vm4482_vm4 = vcmp.lt.s32.totalorder %v10672_v40, 0  ;;  %v5066_v47 = vsub.s32 0, %v11154_v2 }
 0x653   :  { %v11175_v56 = vmul.u32.u64.low %v11163_v7, %v4943_v17  ;;  %v11176_v44 = vmul.u32.u64.high %v11163_v7, %v4943_v17, %v11175_v56  ;;  %v6426_v55 = vadd.s32 4294967169, %v5108_v4  ;;  %vm4679_vm3 = vcmp.lt.s32.totalorder %v11128_v20, 2 }
 0x654   :  { %vm4680_vm8 = vcmp.eq.s32.totalorder %v11128_v20, 0  ;;  %vm4683_vm11 = vcmp.eq.s32.totalorder %v11128_v20, 2  ;;  %v4866_v39 = vshrl.u32 %v4848_v19, %v4864_v14  ;;  %v4564_v61 = vxor.u32 2147483648, %v4563_v27 }
 0x655   :  { %v11181_v32 = vsel %vm6413_vm0, 0, %v6412_v38  ;;  %v5114_v6 = vadd.s32 1, %v6426_v55  ;;  %v11184_v13 = vadd.f32 %v4196_v25, %v10656_v60  ;;  %v4685_v54 = vsel %vm4683_vm11, %v4684_v11, %v6804_v34 }
 0x656   :  { %v4865_v17 = vshll.u32 %v11017_v30, %v11109_v62  ;;  %v4871_v56 = vor.u32 4788187, %v4870_v41  ;;  %v4933_v4 = vsel %vm4931_vm12, %v4921_v33, 2102212464  ;;  %v4682_v51 = vsel %vm4680_vm8, %v6802_v52, %v4681_v26 }
 0x657   :  { %v6423_v0 = vmin.u32 %v5066_v47, %v11154_v2  ;;  %v4912_v14 = vshrl.u32 %v12684_v28, %v11092_v57  ;;  %vm5115_vm7 = vcmp.gt.s32.totalorder %v5114_v6, 0  ;;  %v4760_v38 = vsub.s32 32, %v11181_v32 }
 0x658   :  { %v4764_v19 = vsub.s32 4294967266, %v11181_v32  ;;  %v4867_v25 = vor.u32 %v4866_v39, %v4865_v17  ;;  %v5116_v11 = vsel %vm5115_vm7, %v5114_v6, 0  ;;  %v4934_v62 = vsel %vm4930_vm5, %v11124_v49, %v4933_v4 }
 0x659   :  { %v4932_v30 = vsel %vm4928_vm2, %v4912_v14, %v11122_v1  ;;  %v5118_v33 = vand.u32 31, %v5116_v11  ;;  %v11202_v52 = vmul.f32 6.2831855, %v11184_v13  ;;  %v4872_v57 = vand.u32 2147483647, %v4871_v56 }
 0x65a   :  { %v4318_v26 = vsub.f32 1.0, %v10932_v21  ;;  %v4954_v41 = vadd.s32 1, %v11169_v23  ;;  %v4744_v47 = vadd.s32 %v10935_v63, %v10942_v43  ;;  %v5068_v55 = vclz %v6423_v0 }
 0x65b   :  { %vm4953_vm13 = vc.u32 %v11176_v44, %v11168_v18  ;;  %v11211_v1 = vsub.s32 32, %v5118_v33  ;;  %v11215_v49 = vsel %vm4679_vm3, %v4682_v51, %v4685_v54  ;;  %v11219_v39 = vsel %vm4482_vm4, %v4564_v61, %v4563_v27 }
 0x65c   :  { %13004 = vst [vmem:[#allocation16_spill] sm:$0xff] %v11215_v49  ;;  %13005 = vst [vmem:[#allocation32_spill] sm:$0xff] %v11219_v39  ;;  %v4874_v6 = vcvt.s32.f32 %v4867_v25  ;;  %v4935_v17 = vsel %vm4929_vm6, %v4932_v30, %v4934_v62  ;;  %v4761_v63 = vshll.u32 %v11048_v16, %v11181_v32  ;;  %v4762_v43 = vshrl.u32 %v4744_v47, %v4760_v38 }
 0x65d   :  { %v4765_v0 = vadd.s32 127, %v4764_v19  ;;  %v5211_v56 = vand.u32 2139095040, %v11202_v52  ;;  %vm4794_vm10 = vcmp.lt.s32.totalorder %v10837_v45, 0  ;;  %v4878_v51 = vsub.s32 4, %v11002_v3 }
 0x65e   :  { %v4875_v20 = vmul.f32 %v4874_v6, %v4872_v57  ;;  %v4955_v54 = vsel %vm4953_vm13, %v4954_v41, %v11169_v23  ;;  %v12622_v27 = vand.u32 2147483647, %v11135_v37  ;;  %v6424_v61 = vadd.s32 4294967294, %v5068_v55 }
 0x65f   :  { %v4951_v53 = vmul.u32 %v11163_v7, %v4935_v17  ;;  %v11231_v4 = vshrl.u32 %v5116_v11, 5  ;;  %v5122_v16 = vshrl.u32 %v12685_v36, %v11211_v1  ;;  %v5125_v32 = vshrl.u32 %v12686_v31, %v11211_v1 }
 0x660   :  { %v5128_v14 = vshrl.u32 %v12687_v59, %v11211_v1  ;;  %v5130_v38 = vshll.u32 %v12687_v59, %v5118_v33  ;;  %v5131_v23 = vshrl.u32 %v12688_v8, %v11211_v1  ;;  %v5133_v7 = vshll.u32 %v12688_v8, %v5118_v33 }
 0x661   :  { %v11242_v19 = vadd.s32 %v4955_v54, %v4951_v53  ;;  %v5134_v25 = vshrl.u32 %v12689_v48, %v11211_v1  ;;  %v5212_v11 = vshrl.u32 %v5211_v56, 23  ;;  %v13006_v30 = vand.u32 2147483647, %v10837_v45 }
 0x662   :  { %v5121_v57 = vshll.u32 %v12684_v28, %v5118_v33  ;;  %v5124_v41 = vshll.u32 %v12685_v36, %v5118_v33  ;;  %v5127_v47 = vshll.u32 %v12686_v31, %v5118_v33  ;;  %v5132_v55 = vor.u32 %v5131_v23, %v5130_v38 }
 0x663   :  { %vm11249_vm15 = vcmp.le.f32.partialorder %v13006_v30, 0.7853982  ;;  %v4876_v6 = vxor.u32 2147483648, %v4875_v20  ;;  %vm6425_vm9 = vcmp.lt.s32.totalorder %v6424_v61, 0  ;;  %v5111_v17 = vand.u32 8388607, %v12622_v27 }
 0x664   :  { %v5135_v54 = vor.u32 %v5134_v25, %v5133_v7  ;;  %v5123_v56 = vor.u32 %v5122_v16, %v5121_v57  ;;  %v5126_v53 = vor.u32 %v5125_v32, %v5124_v41  ;;  %v5129_v34 = vor.u32 %v5128_v14, %v5127_v47  ;;  %v4285_v57 = vpop.f32.mrf.mxu1 }
 0x665   :  { %vm5139_vm1 = vcmp.lt.s32.totalorder %v11231_v4, 4  ;;  %v11259_v30 = vmax.f32 %v4318_v26, 0.0  ;;  %v6430_v33 = vadd.s32 4294967169, %v5212_v11  ;;  %v11264_v38 = vor.u32 %v4762_v43, %v4761_v63 }
 0x666   :  { %v5145_v21 = vsel %vm5139_vm1, %v5132_v55, 920167782  ;;  %v4766_v23 = vshll.u32 %v4765_v0, 23  ;;  %v11266_v10 = vsel %vm6425_vm9, 0, %v6424_v61  ;;  %v4957_v7 = vadd.s32 536870912, %v11242_v19 }
 0x667   :  { %13009 = vst [vmem:[#allocation45_spill] sm:$0xff] %v11259_v30  ;;  %v11272_v16 = vsel %vm4794_vm10, %v4878_v51, %v11002_v3  ;;  %vm5136_vm2 = vcmp.lt.s32.totalorder %v11231_v4, 1  ;;  %vm5138_vm12 = vcmp.lt.s32.totalorder %v11231_v4, 3  ;;  %v5149_v26 = vsel %vm5139_vm1, %v5135_v54, 1326507024 }
 0x668   :  { %v4877_v63 = vsel %vm4794_vm10, %v4876_v6, %v4875_v20  ;;  %v5112_v43 = vor.u32 8388608, %v5111_v17  ;;  %v5144_v0 = vsel %vm5136_vm2, %v5123_v56, %v5126_v53  ;;  %v5146_v61 = vsel %vm5138_vm12, %v5129_v34, %v5145_v21 }
 0x669   :  { %v5076_v3 = vsub.s32 4294967266, %v11266_v10  ;;  %v5148_v51 = vsel %vm5136_vm2, %v5126_v53, %v5129_v34  ;;  %v5150_v32 = vsel %vm5138_vm12, %v5132_v55, %v5149_v26  ;;  %v5218_v14 = vadd.s32 1, %v6430_v33 }
 0x66a   :  { %v11289_v25 = vor.u32 4788187, %v4766_v23  ;;  %v11292_v11 = vshrl.u32 %v4957_v7, 30  ;;  %vm5137_vm5 = vcmp.lt.s32.totalorder %v11231_v4, 2  ;;  %v4880_v21 = vsel %vm11249_vm15, %v10837_v45, %v4877_v63 }
 0x66b   :  { %v5147_v41 = vsel %vm5137_vm5, %v5144_v0, %v5146_v61  ;;  %vm5219_vm6 = vcmp.gt.s32.totalorder %v5218_v14, 0  ;;  %v5151_v47 = vsel %vm5137_vm5, %v5148_v51, %v5150_v32  ;;  %v11305_v55 = vshll.u32 %v5112_v43, 8 }
 0x66c   :  { %13010 = vst [vmem:[#allocation43_spill] sm:$0xff] %v11292_v11  ;;  %v12623_v6 = vand.u32 2147483647, %v11202_v52  ;;  %v5220_v17 = vsel %vm5219_vm6, %v5218_v14, 0  ;;  %v5072_v54 = vsub.s32 32, %v11266_v10  ;;  %v5077_v33 = vadd.s32 127, %v5076_v3 }
 0x66d   :  { %v5141_v23 = vsel %vm5139_vm1, %v5129_v34, 2102212464  ;;  %v5222_v7 = vand.u32 31, %v5220_v17  ;;  %v4959_v26 = vshll.u32 %v11292_v11, 30  ;;  %v5120_v63 = vshrl.u32 %v12684_v28, %v11211_v1 }
 0x66e   :  { %v11315_v0 = vmul.u32.u64.low %v11305_v55, %v5147_v41  ;;  %v11316_v61 = vmul.u32.u64.high %v11305_v55, %v5147_v41, %v11315_v0  ;;  %v5056_v43 = vadd.s32 %v11058_v22, %v11056_v15  ;;  %6805 = vcosq.f32 %v4880_v21 }
 0x66f   :  { %v11322_v51 = vmul.u32.u64.low %v11305_v55, %v5151_v47  ;;  %v11323_v3 = vmul.u32.u64.high %v11305_v55, %v5151_v47, %v11322_v51  ;;  %v5223_v32 = vsub.s32 32, %v5222_v7  ;;  %v5140_v34 = vsel %vm5136_vm2, %v5120_v63, %v5123_v56 }
 0x670   :  { %v5142_v1 = vsel %vm5138_vm12, %v5126_v53, %v5141_v23  ;;  %v5215_v14 = vand.u32 8388607, %v12623_v6  ;;  %v5073_v41 = vshll.u32 %v11154_v2, %v11266_v10  ;;  %v5074_v27 = vshrl.u32 %v5056_v43, %v5072_v54 }
 0x671   :  { %v5078_v15 = vshll.u32 %v5077_v33, 23  ;;  %v5226_v22 = vshrl.u32 %v12685_v36, %v5223_v32  ;;  %v11335_v47 = vsub.s32 %v11242_v19, %v4959_v26  ;;  %v5225_v51 = vshll.u32 %v12684_v28, %v5222_v7 }
 0x672   :  { %v5229_v56 = vshrl.u32 %v12686_v31, %v5223_v32  ;;  %v5232_v63 = vshrl.u32 %v12687_v59, %v5223_v32  ;;  %v5143_v53 = vsel %vm5137_vm5, %v5140_v34, %v5142_v1  ;;  %v5228_v23 = vshll.u32 %v12685_v36, %v5222_v7 }
 0x673   :  { %v5231_v10 = vshll.u32 %v12686_v31, %v5222_v7  ;;  %v5235_v2 = vshrl.u32 %v12688_v8, %v5223_v32  ;;  %v5216_v54 = vor.u32 8388608, %v5215_v14  ;;  %v5221_v33 = vshrl.u32 %v5220_v17, 5 }
 0x674   :  { %v5227_v43 = vor.u32 %v5226_v22, %v5225_v51  ;;  %v5234_v19 = vshll.u32 %v12687_v59, %v5222_v7  ;;  %v5230_v26 = vor.u32 %v5229_v56, %v5228_v23  ;;  %v5237_v49 = vshll.u32 %v12688_v8, %v5222_v7 }
 0x675   :  { %v5233_v6 = vor.u32 %v5232_v63, %v5231_v10  ;;  %v5238_v20 = vshrl.u32 %v12689_v48, %v5223_v32  ;;  %v4768_v4 = vand.u32 2147483647, %v11289_v25  ;;  %6807 = vsinq.f32 %v4880_v21 }
 0x676   :  { %v5162_v34 = vadd.s32 1, %v11316_v61  ;;  %v5236_v1 = vor.u32 %v5235_v2, %v5234_v19  ;;  %v5075_v30 = vor.u32 %v5074_v27, %v5073_v41  ;;  %v5079_v58 = vor.u32 4788187, %v5078_v15 }
 0x677   :  { %vm5161_vm0 = vc.u32 %v11323_v3, %v11315_v0  ;;  %v5239_v17 = vor.u32 %v5238_v20, %v5237_v49  ;;  %v4962_v14 = vsub.s32 0, %v11335_v47  ;;  %v5159_v22 = vmul.u32 %v11305_v55, %v5143_v53 }
 0x678   :  { %vm5240_vm3 = vcmp.lt.s32.totalorder %v5221_v33, 1  ;;  %vm5243_vm8 = vcmp.lt.s32.totalorder %v5221_v33, 4  ;;  %v5256_v25 = vshll.u32 %v5216_v54, 8  ;;  %v11355_v21 = vadd.f32 %v4285_v57, %v10656_v60 }
 0x679   :  { %v5245_v7 = vsel %vm5243_vm8, %v5233_v6, 2102212464  ;;  %v5248_v51 = vsel %vm5240_vm3, %v5227_v43, %v5230_v26  ;;  %v5163_v56 = vsel %vm5161_vm0, %v5162_v34, %v11316_v61  ;;  %v5224_v27 = vshrl.u32 %v12684_v28, %v5223_v32  ;;  %v4198_v32 = vpop.f32.mrf.mxu0 }
 0x67a   :  { %vm5242_vm11 = vcmp.lt.s32.totalorder %v5221_v33, 3  ;;  %v5249_v41 = vsel %vm5243_vm8, %v5236_v1, 920167782  ;;  %vm5241_vm7 = vcmp.lt.s32.totalorder %v5221_v33, 2  ;;  %v5252_v20 = vsel %vm5240_vm3, %v5230_v26, %v5233_v6 }
 0x67b   :  { %v5250_v49 = vsel %vm5242_vm11, %v5233_v6, %v5249_v41  ;;  %v5253_v15 = vsel %vm5243_vm8, %v5239_v17, 1326507024  ;;  %v5244_v63 = vsel %vm5240_vm3, %v5224_v27, %v5227_v43  ;;  %v5246_v55 = vsel %vm5242_vm11, %v5230_v26, %v5245_v7  ;;  %v11360_v10 = vpop.eup %6805 }
 0x67c   :  { %v5251_v53 = vsel %vm5241_vm7, %v5248_v51, %v5250_v49  ;;  %v5254_v23 = vsel %vm5242_vm11, %v5236_v1, %v5253_v15  ;;  %v6419_v57 = vmin.u32 %v4962_v14, %v11335_v47  ;;  %v11368_v19 = vadd.s32 %v5163_v56, %v5159_v22 }
 0x67d   :  { %v5255_v2 = vsel %vm5241_vm7, %v5252_v20, %v5254_v23  ;;  %v11364_v61 = vmul.u32.u64.low %v5256_v25, %v5251_v53  ;;  %v11365_v54 = vmul.u32.u64.high %v5256_v25, %v5251_v53, %v11364_v61  ;;  %v11374_v43 = vmul.f32 6.2831855, %v11355_v21 }
 0x67e   :  { %v11370_v6 = vmul.u32.u64.low %v5256_v25, %v5255_v2  ;;  %v11371_v34 = vmul.u32.u64.high %v5256_v25, %v5255_v2, %v11370_v6  ;;  %vm12648_vm13 = vcmp.lt.s32.totalorder %v10784_v46, 0  ;;  %v13011_v26 = vsel %vm11249_vm15, 0, %v11272_v16 }
 0x67f   :  { %v4885_v1 = vadd.s32 3, %v13011_v26  ;;  %vm5002_vm10 = vcmp.lt.s32.totalorder %v10950_v12, 0  ;;  %v5086_v17 = vsub.s32 4, %v11114_v42  ;;  %v5247_v14 = vsel %vm5241_vm7, %v5244_v63, %v5246_v55 }
 0x680   :  { %v13012_v22 = vcvt.s32.f32 %v11264_v38  ;;  %v5080_v51 = vand.u32 2147483647, %v5079_v58  ;;  %v5419_v56 = vand.u32 2139095040, %v11374_v43  ;;  %v11388_v27 = vadd.f32 %v4198_v32, %v10656_v60 }
 0x681   :  { %v13013_v62 = vsub.f32 1.0, %v10989_v5  ;;  %v4964_v16 = vclz %v6419_v57  ;;  %v4319_v49 = vsub.f32 1.0, %v11099_v50  ;;  %v5266_v20 = vadd.s32 1, %v11365_v54 }
 0x682   :  { %v4771_v7 = vmul.f32 %v13012_v22, %v4768_v4  ;;  %v5082_v15 = vcvt.s32.f32 %v5075_v30  ;;  %v5165_v33 = vadd.s32 536870912, %v11368_v19  ;;  %v5263_v63 = vmul.u32 %v5256_v25, %v5247_v14  ;;  %v6808_v58 = vpop.eup %6807 }
 0x683   :  { %v4333_v41 = vmax.f32 %v13013_v62, 0.0  ;;  %vm5265_vm15 = vc.u32 %v11371_v34, %v11364_v61  ;;  %v11397_v38 = vand.u32 3, %v4885_v1  ;;  %v5087_v4 = vsel %vm5002_vm10, %v5086_v17, %v11114_v42 }
 0x684   :  { %v5267_v55 = vsel %vm5265_vm15, %v5266_v20, %v11365_v54  ;;  %v5420_v53 = vshrl.u32 %v5419_v56, 23  ;;  %v4772_v23 = vxor.u32 2147483648, %v4771_v7  ;;  %v5083_v57 = vmul.f32 %v5082_v15, %v5080_v51 }
 0x685   :  { %v5268_v2 = vadd.s32 %v5267_v55, %v5263_v63  ;;  %v11404_v30 = vmul.f32 6.2831855, %v11388_v27  ;;  %v13015_v25 = vand.u32 2147483647, %v10950_v12  ;;  %v13018_v6 = vmax.f32 %v10989_v5, 0.0 }
 0x686   :  { %v6420_v42 = vadd.s32 4294967294, %v4964_v16  ;;  %v6438_v1 = vadd.s32 4294967169, %v5420_v53  ;;  %v4303_v17 = vmax.f32 %v11099_v50, 0.0  ;;  %v11419_v14 = vshrl.u32 %v5165_v33, 30 }
 0x687   :  { %13014 = vst [vmem:[#allocation20_spill] sm:$0xff] %v11404_v30  ;;  %vm11408_vm9 = vcmp.le.f32.partialorder %v13015_v25, 0.7853982  ;;  %v11414_v26 = vmul.f32 %v4333_v41, %v13018_v6  ;;  %v5269_v22 = vadd.s32 536870912, %v5268_v2  ;;  %vm4888_vm1 = vcmp.eq.s32.totalorder %v11397_v38, 0 }
 0x688   :  { %v5089_v54 = vsel %vm11408_vm9, 0, %v5087_v4  ;;  %13020 = vst [vmem:[#allocation36_spill] sm:$0xff] %v11419_v14  ;;  %vm4891_vm2 = vcmp.eq.s32.totalorder %v11397_v38, 2  ;;  %v4335_v51 = vmax.f32 %v4319_v49, 0.0  ;;  %v5426_v56 = vadd.s32 1, %v6438_v1 }
 0x689   :  { %13019 = vst [vmem:[#allocation15_spill] sm:$0xff] %v11414_v26  ;;  %v11425_v5 = vsel %vm12648_vm13, %v4772_v23, %v4771_v7  ;;  %v5084_v62 = vxor.u32 2147483648, %v5083_v57  ;;  %v11427_v41 = vshrl.u32 %v5269_v22, 30  ;;  %v5315_v16 = vand.u32 2139095040, %v11404_v30 }
 0x68a   :  { %13021 = vst [vmem:[#allocation17_spill] sm:$0xff] %v11425_v5  ;;  %v5093_v20 = vadd.s32 3, %v5089_v54  ;;  %vm6421_vm12 = vcmp.lt.s32.totalorder %v6420_v42, 0  ;;  %v4320_v50 = vsub.f32 1.0, %v11184_v13  ;;  %vm5427_vm5 = vcmp.gt.s32.totalorder %v5426_v56, 0 }
 0x68b   :  { %v4892_v15 = vxor.u32 2147483648, %v11360_v10  ;;  %v5167_v33 = vshll.u32 %v11419_v14, 30  ;;  %v5271_v49 = vshll.u32 %v11427_v41, 30  ;;  %v4889_v7 = vxor.u32 2147483648, %v6808_v58 }
 0x68c   :  { %v11435_v4 = vmul.f32 %v4335_v51, %v4303_v17  ;;  %v5428_v53 = vsel %vm5427_vm5, %v5426_v56, 0  ;;  %v5085_v23 = vsel %vm5002_vm10, %v5084_v62, %v5083_v57  ;;  %v11440_v25 = vsel %vm6421_vm12, 0, %v6420_v42 }
 0x68d   :  { %v11442_v6 = vsub.s32 %v5268_v2, %v5271_v49  ;;  %v5316_v1 = vshrl.u32 %v5315_v16, 23  ;;  %v11444_v54 = vand.u32 3, %v5093_v20  ;;  %v4952_v22 = vadd.s32 %v11168_v18, %v11176_v44 }
 0x68e   :  { %13022 = vst [vmem:[#allocation30_spill] sm:$0xff] %v11435_v4  ;;  %v11448_v63 = vmax.f32 %v4320_v50, 0.0  ;;  %v5430_v17 = vand.u32 31, %v5428_v53  ;;  %v11452_v51 = vsel %vm4891_vm2, %v4892_v15, %v6808_v58  ;;  %v11455_v56 = vsub.s32 %v11368_v19, %v5167_v33 }
 0x68f   :  { %v5274_v57 = vsub.s32 0, %v11442_v6  ;;  %v13023_v2 = vand.u32 2147483647, %v11374_v43  ;;  %v11463_v62 = vsel %vm4888_vm1, %v11360_v10, %v4889_v7  ;;  %v5088_v18 = vsel %vm11408_vm9, %v10950_v12, %v5085_v23 }
 0x690   :  { %v4968_v44 = vsub.s32 32, %v11440_v25  ;;  %v5431_v58 = vsub.s32 32, %v5430_v17  ;;  %v4972_v19 = vsub.s32 4294967266, %v11440_v25  ;;  %v5433_v20 = vshll.u32 %v12684_v28, %v5430_v17 }
 0x691   :  { %v5423_v42 = vand.u32 8388607, %v13023_v2  ;;  %v6431_v16 = vmin.u32 %v5274_v57, %v11442_v6  ;;  %v6434_v50 = vadd.s32 4294967169, %v5316_v1  ;;  %v5439_v10 = vshll.u32 %v12686_v31, %v5430_v17 }
 0x692   :  { %v5434_v15 = vshrl.u32 %v12685_v36, %v5431_v58  ;;  %v5437_v33 = vshrl.u32 %v12686_v31, %v5431_v58  ;;  %v5440_v49 = vshrl.u32 %v12687_v59, %v5431_v58  ;;  %v5170_v32 = vsub.s32 0, %v11455_v56 }
 0x693   :  { %v5424_v7 = vor.u32 8388608, %v5423_v42  ;;  %v5429_v23 = vshrl.u32 %v5428_v53, 5  ;;  %v5436_v2 = vshll.u32 %v12685_v36, %v5430_v17  ;;  %v5276_v55 = vclz %v6431_v16 }
 0x694   :  { %v5435_v4 = vor.u32 %v5434_v15, %v5433_v20  ;;  %v5441_v57 = vor.u32 %v5440_v49, %v5439_v10  ;;  %v5442_v12 = vshll.u32 %v12687_v59, %v5430_v17  ;;  %v5443_v26 = vshrl.u32 %v12688_v8, %v5431_v58 }
 0x695   :  { %v5438_v1 = vor.u32 %v5437_v33, %v5436_v2  ;;  %v5445_v5 = vshll.u32 %v12688_v8, %v5430_v17  ;;  %v5446_v46 = vshrl.u32 %v12689_v48, %v5431_v58  ;;  %6809 = vcosq.f32 %v5088_v18 }
 0x696   :  { %v4970_v14 = vshrl.u32 %v4952_v22, %v4968_v44  ;;  %v11482_v39 = vadd.s32 127, %v4972_v19  ;;  %v5322_v42 = vadd.s32 1, %v6434_v50  ;;  %v11485_v53 = vmin.u32 %v5170_v32, %v11455_v56 }
 0x697   :  { %v5444_v16 = vor.u32 %v5443_v26, %v5442_v12  ;;  %v5447_v20 = vor.u32 %v5446_v46, %v5445_v5  ;;  %vm5451_vm6 = vcmp.lt.s32.totalorder %v5429_v23, 4  ;;  %v5432_v15 = vshrl.u32 %v12684_v28, %v5431_v58 }
 0x698   :  { %vm5448_vm0 = vcmp.lt.s32.totalorder %v5429_v23, 1  ;;  %v5453_v33 = vsel %vm5451_vm6, %v5441_v57, 2102212464  ;;  %v5464_v10 = vshll.u32 %v5424_v7, 8  ;;  %v6432_v49 = vadd.s32 4294967294, %v5276_v55 }
 0x699   :  { %vm5449_vm3 = vcmp.lt.s32.totalorder %v5429_v23, 2  ;;  %v5456_v17 = vsel %vm5448_vm0, %v5435_v4, %v5438_v1  ;;  %v5460_v2 = vsel %vm5448_vm0, %v5438_v1, %v5441_v57  ;;  %vm5450_vm8 = vcmp.lt.s32.totalorder %v5429_v23, 3 }
 0x69a   :  { %v5457_v22 = vsel %vm5451_vm6, %v5444_v16, 920167782  ;;  %v5461_v44 = vsel %vm5451_vm6, %v5447_v20, 1326507024  ;;  %vm5323_vm11 = vcmp.gt.s32.totalorder %v5322_v42, 0  ;;  %v5452_v19 = vsel %vm5448_vm0, %v5432_v15, %v5435_v4  ;;  %v4287_v20 = vpop.f32.mrf.mxu1 }
 0x69b   :  { %v5454_v50 = vsel %vm5450_vm8, %v5438_v1, %v5453_v33  ;;  %v5458_v32 = vsel %vm5450_vm8, %v5441_v57, %v5457_v22  ;;  %v5462_v24 = vsel %vm5450_vm8, %v5444_v16, %v5461_v44  ;;  %v12634_v26 = vand.u32 2147483647, %v11404_v30 }
 0x69c   :  { %v5459_v46 = vsel %vm5449_vm3, %v5456_v17, %v5458_v32  ;;  %v5463_v12 = vsel %vm5449_vm3, %v5460_v2, %v5462_v24  ;;  %v5324_v5 = vsel %vm5323_vm11, %v5322_v42, 0  ;;  %v4969_v55 = vshll.u32 %v11335_v47, %v11440_v25 }
 0x69d   :  { %vm6433_vm7 = vcmp.lt.s32.totalorder %v6432_v49, 0  ;;  %v11493_v58 = vmul.u32.u64.low %v5464_v10, %v5463_v12  ;;  %v11494_v7 = vmul.u32.u64.high %v5464_v10, %v5463_v12, %v11493_v58  ;;  %v5455_v4 = vsel %vm5449_vm3, %v5452_v19, %v5454_v50 }
 0x69e   :  { %v11497_v1 = vmul.u32.u64.low %v5464_v10, %v5459_v46  ;;  %v11498_v57 = vmul.u32.u64.high %v5464_v10, %v5459_v46, %v11497_v1  ;;  %v5326_v16 = vand.u32 31, %v5324_v5  ;;  %6811 = vsinq.f32 %v5088_v18 }
 0x69f   :  { %v11501_v24 = vor.u32 %v4970_v14, %v4969_v55  ;;  %v4974_v42 = vshll.u32 %v11482_v39, 23  ;;  %v5172_v15 = vclz %v11485_v53  ;;  %vm4887_vm10 = vcmp.lt.s32.totalorder %v11397_v38, 2 }
 0x6a0   :  { %v11506_v47 = vsel %vm6433_vm7, 0, %v6432_v49  ;;  %v5319_v25 = vand.u32 8388607, %v12634_v26  ;;  %v11510_v23 = vsub.s32 32, %v5326_v16  ;;  %v11513_v33 = vadd.f32 %v4287_v20, %v10656_v60 }
 0x6a1   :  { %v5471_v17 = vmul.u32 %v5464_v10, %v5455_v4  ;;  %vm5473_vm15 = vc.u32 %v11494_v7, %v11497_v1  ;;  %v11517_v14 = vshrl.u32 %v5324_v5, 5  ;;  %v5329_v39 = vshll.u32 %v12684_v28, %v5326_v16 }
 0x6a2   :  { %v5474_v18 = vadd.s32 1, %v11498_v57  ;;  %v5330_v53 = vshrl.u32 %v12685_v36, %v11510_v23  ;;  %v5332_v49 = vshll.u32 %v12685_v36, %v5326_v16  ;;  %v5333_v2 = vshrl.u32 %v12686_v31, %v11510_v23  ;;  %v11526_v60 = vpop.eup %6809 }
 0x6a3   :  { %v5335_v10 = vshll.u32 %v12686_v31, %v5326_v16  ;;  %v5336_v22 = vshrl.u32 %v12687_v59, %v11510_v23  ;;  %v5338_v44 = vshll.u32 %v12687_v59, %v5326_v16  ;;  %v5339_v19 = vshrl.u32 %v12688_v8, %v11510_v23 }
 0x6a4   :  { %v5475_v50 = vsel %vm5473_vm15, %v5474_v18, %v11498_v57  ;;  %v11535_v32 = vor.u32 %v5330_v53, %v5329_v39  ;;  %v11537_v46 = vor.u32 %v5333_v2, %v5332_v49  ;;  %v5342_v12 = vshrl.u32 %v12689_v48, %v11510_v23 }
 0x6a5   :  { %v5476_v5 = vadd.s32 %v5475_v50, %v5471_v17  ;;  %v5337_v55 = vor.u32 %v5336_v22, %v5335_v10  ;;  %v5340_v58 = vor.u32 %v5339_v19, %v5338_v44  ;;  %v5341_v20 = vshll.u32 %v12688_v8, %v5326_v16 }
 0x6a6   :  { %v4975_v4 = vor.u32 4788187, %v4974_v42  ;;  %v6428_v26 = vadd.s32 4294967294, %v5172_v15  ;;  %v5284_v40 = vsub.s32 4294967266, %v11506_v47  ;;  %v5320_v11 = vor.u32 8388608, %v5319_v25 }
 0x6a7   :  { %v5477_v30 = vadd.s32 536870912, %v5476_v5  ;;  %v5343_v37 = vor.u32 %v5342_v12, %v5341_v20  ;;  %vm5344_vm9 = vcmp.lt.s32.totalorder %v11517_v14, 1  ;;  %vm5347_vm1 = vcmp.lt.s32.totalorder %v11517_v14, 4 }
 0x6a8   :  { %vm4884_vm2 = vweird.f32 %v10837_v45  ;;  %vm5346_vm12 = vcmp.lt.s32.totalorder %v11517_v14, 3  ;;  %v5352_v57 = vsel %vm5344_vm9, %v11535_v32, %v11537_v46  ;;  %v5353_v16 = vsel %vm5347_vm1, %v5340_v58, 920167782 }
 0x6a9   :  { %v11554_v42 = vmul.f32 6.2831855, %v11513_v33  ;;  %v4894_v15 = vsel %vm4887_vm10, %v11463_v62, %v11452_v51  ;;  %v13024_v25 = vmax.f32 %v11184_v13, 0.0  ;;  %v11565_v39 = vshrl.u32 %v5477_v30, 30 }
 0x6aa   :  { %v5354_v18 = vsel %vm5346_vm12, %v5337_v55, %v5353_v16  ;;  %vm5096_vm5 = vcmp.eq.s32.totalorder %v11444_v54, 0  ;;  %vm5099_vm6 = vcmp.eq.s32.totalorder %v11444_v54, 2  ;;  %v4978_v53 = vcvt.s32.f32 %v11501_v24 }
 0x6ab   :  { %v11563_v17 = vmul.f32 %v11448_v63, %v13024_v25  ;;  %vm6429_vm0 = vcmp.lt.s32.totalorder %v6428_v26, 0  ;;  %vm5345_vm3 = vcmp.lt.s32.totalorder %v11517_v14, 2  ;;  %v5356_v13 = vsel %vm5344_vm9, %v11537_v46, %v5337_v55  ;;  %v6812_v62 = vpop.eup %6811 }
 0x6ac   :  { %v4976_v38 = vand.u32 2147483647, %v4975_v4  ;;  %v5479_v30 = vshll.u32 %v11565_v39, 30  ;;  %v5355_v63 = vsel %vm5345_vm3, %v5352_v57, %v5354_v18  ;;  %v5357_v51 = vsel %vm5347_vm1, %v5343_v37, 1326507024 }
 0x6ad   :  { %v5285_v49 = vadd.s32 127, %v5284_v40  ;;  %v5358_v24 = vsel %vm5346_vm12, %v5340_v58, %v5357_v51  ;;  %v11583_v2 = vshll.u32 %v5320_v11, 8  ;;  %v5523_v10 = vand.u32 2139095040, %v11554_v42 }
 0x6ae   :  { %v5100_v22 = vxor.u32 2147483648, %v11526_v60  ;;  %v11587_v44 = vsel %vm6429_vm0, 0, %v6428_v26  ;;  %v11589_v19 = vsub.s32 %v5476_v5, %v5479_v30  ;;  %v5359_v50 = vsel %vm5345_vm3, %v5356_v13, %v5358_v24 }
 0x6af   :  { %v5280_v37 = vsub.s32 32, %v11506_v47  ;;  %v11595_v40 = vmul.u32.u64.low %v11583_v2, %v5355_v63  ;;  %v11596_v12 = vmul.u32.u64.high %v11583_v2, %v5355_v63, %v11595_v40  ;;  %v5524_v11 = vshrl.u32 %v5523_v10, 23 }
 0x6b0   :  { %v5097_v58 = vxor.u32 2147483648, %v6812_v62  ;;  %v5482_v20 = vsub.s32 0, %v11589_v19  ;;  %v11601_v4 = vmul.u32.u64.low %v11583_v2, %v5359_v50  ;;  %v11602_v26 = vmul.u32.u64.high %v11583_v2, %v5359_v50, %v11601_v4 }
 0x6b1   :  { %vm5095_vm8 = vcmp.lt.s32.totalorder %v11444_v54, 2  ;;  %vm4898_vm11 = vcmp.lt.s32.totalorder %v11000_v35, 0  ;;  %v5180_v5 = vsub.s32 4294967266, %v11587_v44  ;;  %v5264_v57 = vadd.s32 %v11364_v61, %v11371_v34 }
 0x6b2   :  { %v5286_v16 = vshll.u32 %v5285_v49, 23  ;;  %v6442_v25 = vadd.s32 4294967169, %v5524_v11  ;;  %v4895_v18 = vsel %vm4884_vm2, nan, %v4894_v15  ;;  %v4979_v13 = vmul.f32 %v4978_v53, %v4976_v38 }
 0x6b3   :  { %v5160_v30 = vadd.s32 %v11315_v0, %v11323_v3  ;;  %v4322_v63 = vsub.f32 1.0, %v11355_v21  ;;  %v5282_v51 = vshrl.u32 %v5264_v57, %v5280_v37  ;;  %v6439_v24 = vmin.u32 %v5482_v20, %v11589_v19 }
 0x6b4   :  { %v5349_v10 = vsel %vm5347_vm1, %v5337_v55, 2102212464  ;;  %v5530_v50 = vadd.s32 1, %v6442_v25  ;;  %v5098_v61 = vsel %vm5096_vm5, %v11526_v60, %v5097_v58  ;;  %v5101_v45 = vsel %vm5099_vm6, %v5100_v22, %v6812_v62 }
 0x6b5   :  { %v5176_v34 = vsub.s32 32, %v11587_v44  ;;  %v5328_v0 = vshrl.u32 %v12684_v28, %v11510_v23  ;;  %v5181_v3 = vadd.s32 127, %v5180_v5  ;;  %v5281_v15 = vshll.u32 %v11442_v6, %v11506_v47 }
 0x6b6   :  { %v5287_v53 = vor.u32 4788187, %v5286_v16  ;;  %vm5531_vm7 = vcmp.gt.s32.totalorder %v5530_v50, 0  ;;  %v4980_v55 = vxor.u32 2147483648, %v4979_v13  ;;  %v5350_v60 = vsel %vm5346_vm12, %v11537_v46, %v5349_v10 }
 0x6b7   :  { %v5348_v38 = vsel %vm5344_vm9, %v5328_v0, %v11535_v32  ;;  %v5532_v62 = vsel %vm5531_vm7, %v5530_v50, 0  ;;  %v5283_v49 = vor.u32 %v5282_v51, %v5281_v15  ;;  %v5484_v22 = vclz %v6439_v24  ;;  %v4202_v15 = vpop.f32.mrf.mxu0 }
 0x6b8   :  { %v5370_v23 = vadd.s32 1, %v11596_v12  ;;  %v5534_v37 = vand.u32 31, %v5532_v62  ;;  %v11635_v11 = vmul.f32 %v4895_v18, %v11087_v29  ;;  %v5178_v6 = vshrl.u32 %v5160_v30, %v5176_v34 }
 0x6b9   :  { %v4306_v47 = vmax.f32 %v11355_v21, 0.0  ;;  %vm5369_vm10 = vc.u32 %v11602_v26, %v11595_v40  ;;  %v5182_v32 = vshll.u32 %v5181_v3, 23  ;;  %v5288_v58 = vand.u32 2147483647, %v5287_v53 }
 0x6ba   :  { %13025 = vst [vmem:[#allocation42_spill] sm:$0xff] %v11635_v11  ;;  %v5351_v46 = vsel %vm5345_vm3, %v5348_v38, %v5350_v60  ;;  %v11642_v20 = vsub.s32 32, %v5534_v37  ;;  %v11646_v4 = vsel %vm5095_vm8, %v5098_v61, %v5101_v45  ;;  %v11650_v29 = vsel %vm4898_vm11, %v4980_v55, %v4979_v13 }
 0x6bb   :  { %13026 = vst [vmem:[#allocation24_spill] sm:$0xff] %v11646_v4  ;;  %v11652_v5 = vmax.f32 %v4322_v63, 0.0  ;;  %v12643_v57 = vand.u32 2147483647, %v11554_v42  ;;  %v5177_v16 = vshll.u32 %v11455_v56, %v11587_v44  ;;  %v5290_v25 = vcvt.s32.f32 %v5283_v49 }
 0x6bc   :  { %v6440_v14 = vadd.s32 4294967294, %v5484_v22  ;;  %v5371_v18 = vsel %vm5369_vm10, %v5370_v23, %v11596_v12  ;;  %vm5210_vm15 = vcmp.lt.s32.totalorder %v11202_v52, 0  ;;  %v4305_v54 = vmax.f32 %v11388_v27, 0.0 }
 0x6bd   :  { %v4321_v30 = vsub.f32 1.0, %v11388_v27  ;;  %v5367_v13 = vmul.u32 %v11583_v2, %v5351_v46  ;;  %v5538_v63 = vshrl.u32 %v12685_v36, %v11642_v20  ;;  %v11664_v51 = vor.u32 %v5178_v6, %v5177_v16 }
 0x6be   :  { %v11666_v24 = vor.u32 4788187, %v5182_v32  ;;  %v5291_v56 = vmul.f32 %v5290_v25, %v5288_v58  ;;  %v5541_v44 = vshrl.u32 %v12686_v31, %v11642_v20  ;;  %v5527_v10 = vand.u32 8388607, %v12643_v57 }
 0x6bf   :  { %v11670_v12 = vadd.s32 %v5371_v18, %v5367_v13  ;;  %v5537_v50 = vshll.u32 %v12684_v28, %v5534_v37  ;;  %v5540_v2 = vshll.u32 %v12685_v36, %v5534_v37  ;;  %v13027_v61 = vand.u32 2147483647, %v11202_v52 }
 0x6c0   :  { %vm6441_vm1 = vcmp.lt.s32.totalorder %v6440_v14, 0  ;;  %v11682_v34 = vshrl.u32 %v5532_v62, 5  ;;  %v5543_v0 = vshll.u32 %v12686_v31, %v5534_v37  ;;  %v5544_v3 = vshrl.u32 %v12687_v59, %v11642_v20 }
 0x6c1   :  { %vm11678_vm9 = vcmp.le.f32.partialorder %v13027_v61, 0.7853982  ;;  %v11687_v53 = vor.u32 %v5538_v63, %v5537_v50  ;;  %v11689_v55 = vor.u32 %v5541_v44, %v5540_v2  ;;  %v5546_v38 = vshll.u32 %v12687_v59, %v5534_v37 }
 0x6c2   :  { %v5547_v60 = vshrl.u32 %v12688_v8, %v11642_v20  ;;  %v5292_v49 = vxor.u32 2147483648, %v5291_v56  ;;  %v5545_v22 = vor.u32 %v5544_v3, %v5543_v0  ;;  %v5549_v62 = vshll.u32 %v12688_v8, %v5534_v37 }
 0x6c3   :  { %v5550_v23 = vshrl.u32 %v12689_v48, %v11642_v20  ;;  %v11697_v6 = vsel %vm6441_vm1, 0, %v6440_v14  ;;  %v5373_v32 = vadd.s32 536870912, %v11670_v12  ;;  %v11701_v46 = vadd.f32 %v4202_v15, %v10790_v9 }
 0x6c4   :  { %v5548_v58 = vor.u32 %v5547_v60, %v5546_v38  ;;  %v5294_v16 = vsub.s32 4, %v11427_v41  ;;  %vm5552_vm2 = vcmp.lt.s32.totalorder %v11682_v34, 1  ;;  %vm5555_vm12 = vcmp.lt.s32.totalorder %v11682_v34, 4 }
 0x6c5   :  { %v5551_v25 = vor.u32 %v5550_v23, %v5549_v62  ;;  %vm5418_vm5 = vcmp.lt.s32.totalorder %v11374_v43, 0  ;;  %v5528_v37 = vor.u32 8388608, %v5527_v10  ;;  %vm5554_vm6 = vcmp.lt.s32.totalorder %v11682_v34, 3 }
 0x6c6   :  { %v5560_v14 = vsel %vm5552_vm2, %v11687_v53, %v11689_v55  ;;  %v5561_v18 = vsel %vm5555_vm12, %v5548_v58, 920167782  ;;  %v5293_v13 = vsel %vm5210_vm15, %v5292_v49, %v5291_v56  ;;  %v5492_v63 = vsub.s32 4294967266, %v11697_v6 }
 0x6c7   :  { %v5562_v44 = vsel %vm5554_vm6, %v5545_v22, %v5561_v18  ;;  %v5564_v10 = vsel %vm5552_vm2, %v11689_v55, %v5545_v22  ;;  %v11722_v50 = vshrl.u32 %v5373_v32, 30  ;;  %vm5553_vm0 = vcmp.lt.s32.totalorder %v11682_v34, 2 }
 0x6c8   :  { %v5565_v2 = vsel %vm5555_vm12, %v5551_v25, 1326507024  ;;  %v11728_v61 = vmul.f32 6.2831855, %v11701_v46  ;;  %v5186_v56 = vcvt.s32.f32 %v11664_v51  ;;  %v4337_v0 = vmax.f32 %v4321_v30, 0.0 }
 0x6c9   :  { %v5563_v3 = vsel %vm5553_vm0, %v5560_v14, %v5562_v44  ;;  %v5566_v15 = vsel %vm5554_vm6, %v5548_v58, %v5565_v2  ;;  %v5184_v38 = vand.u32 2147483647, %v11666_v24  ;;  %v5296_v60 = vsel %vm11678_vm9, %v11202_v52, %v5293_v13 }
 0x6ca   :  { %v13030_v49 = vand.u32 2147483647, %v11374_v43  ;;  %v5567_v30 = vsel %vm5553_vm0, %v5564_v10, %v5566_v15  ;;  %v11747_v51 = vshll.u32 %v5528_v37, 8  ;;  %v5295_v23 = vsel %vm5210_vm15, %v5294_v16, %v11427_v41 }
 0x6cb   :  { %v5488_v24 = vsub.s32 32, %v11697_v6  ;;  %v5493_v32 = vadd.s32 127, %v5492_v63  ;;  %v5502_v58 = vsub.s32 4, %v11565_v39  ;;  %v5375_v25 = vshll.u32 %v11722_v50, 30  ;;  %v13033_v63 = vld [vmem:[#allocation54_spill] sm:$0xff] }
 0x6cc   :  { %vm11741_vm3 = vcmp.le.f32.partialorder %v13030_v49, 0.7853982  ;;  %v11756_v14 = vmul.u32.u64.low %v11747_v51, %v5563_v3  ;;  %v11757_v18 = vmul.u32.u64.high %v11747_v51, %v5563_v3, %v11756_v14  ;;  %v5627_v13 = vand.u32 2139095040, %v11728_v61  ;;  %v4291_v3 = vpop.f32.mrf.mxu1 }
 0x6cd   :  { %6813 = vcosq.f32 %v5296_v60  ;;  %v5472_v37 = vadd.s32 %v11497_v1, %v11494_v7  ;;  %v11764_v41 = vmul.u32.u64.low %v11747_v51, %v5567_v30  ;;  %v11765_v16 = vmul.u32.u64.high %v11747_v51, %v5567_v30, %v11764_v41 }
 0x6ce   :  { %vm5106_vm8 = vcmp.lt.s32.totalorder %v13033_v63, 0  ;;  %v5187_v44 = vmul.f32 %v5186_v56, %v5184_v38  ;;  %6815 = vsinq.f32 %v5296_v60  ;;  %v4323_v10 = vsub.f32 1.0, %v11513_v33 }
 0x6cf   :  { %v5628_v2 = vshrl.u32 %v5627_v13, 23  ;;  %v5297_v15 = vsel %vm11678_vm9, 0, %v5295_v23  ;;  %v5490_v49 = vshrl.u32 %v5472_v37, %v5488_v24  ;;  %v5503_v7 = vsel %vm5418_vm5, %v5502_v58, %v11565_v39 }
 0x6d0   :  { %v4307_v1 = vmax.f32 %v11513_v33, 0.0  ;;  %v5494_v30 = vshll.u32 %v5493_v32, 23  ;;  %v11776_v41 = vsub.s32 %v11670_v12, %v5375_v25  ;;  %v5557_v56 = vsel %vm5555_vm12, %v5545_v22, 2102212464 }
 0x6d1   :  { %v6446_v38 = vadd.s32 4294967169, %v5628_v2  ;;  %v5489_v60 = vshll.u32 %v11589_v19, %v11697_v6  ;;  %v5536_v45 = vshrl.u32 %v12684_v28, %v11642_v20  ;;  %v12644_v23 = vand.u32 2147483647, %v11728_v61 }
 0x6d2   :  { %v11786_v39 = vadd.f32 %v4291_v3, %v10790_v9  ;;  %v5188_v33 = vxor.u32 2147483648, %v5187_v44  ;;  %v5301_v24 = vadd.s32 3, %v5297_v15  ;;  %v4339_v32 = vmax.f32 %v4323_v10, 0.0 }
 0x6d3   :  { %v5634_v12 = vadd.s32 1, %v6446_v38  ;;  %v5491_v58 = vor.u32 %v5490_v49, %v5489_v60  ;;  %v5505_v22 = vsel %vm11741_vm3, 0, %v5503_v7  ;;  %v5556_v19 = vsel %vm5552_vm2, %v5536_v45, %v11687_v53 }
 0x6d4   :  { %v5558_v20 = vsel %vm5554_vm6, %v11689_v55, %v5557_v56  ;;  %v5495_v6 = vor.u32 4788187, %v5494_v30  ;;  %v5378_v25 = vsub.s32 0, %v11776_v41  ;;  %v5578_v13 = vadd.s32 1, %v11757_v18 }
 0x6d5   :  { %vm5635_vm7 = vcmp.gt.s32.totalorder %v5634_v12, 0  ;;  %vm5577_vm10 = vc.u32 %v11765_v16, %v11756_v14  ;;  %v5631_v37 = vand.u32 8388607, %v12644_v23  ;;  %v11803_v2 = vmul.f32 6.2831855, %v11786_v39 }
 0x6d6   :  { %v5636_v10 = vsel %vm5635_vm7, %v5634_v12, 0  ;;  %v11808_v53 = vmul.f32 %v11652_v5, %v4306_v47  ;;  %v11812_v55 = vmul.f32 %v4337_v0, %v4305_v54  ;;  %v5559_v3 = vsel %vm5553_vm0, %v5556_v19, %v5558_v20 }
 0x6d7   :  { %v5638_v15 = vand.u32 31, %v5636_v10  ;;  %v11818_v49 = vsel %vm5106_vm8, %v5188_v33, %v5187_v44  ;;  %v11820_v7 = vand.u32 3, %v5301_v24  ;;  %v5509_v30 = vadd.s32 3, %v5505_v22 }
 0x6d8   :  { %13034 = vst [vmem:[#allocation47_spill] sm:$0xff] %v11808_v53  ;;  %13035 = vst [vmem:[#allocation23_spill] sm:$0xff] %v11812_v55  ;;  %v11822_v56 = vmul.f32 %v4339_v32, %v4307_v1  ;;  %v5496_v21 = vand.u32 2147483647, %v5495_v6  ;;  %v5498_v47 = vcvt.s32.f32 %v5491_v58  ;;  %v5579_v5 = vsel %vm5577_vm10, %v5578_v13, %v11757_v18 }
 0x6d9   :  { %13036 = vst [vmem:[#allocation29_spill] sm:$0xff] %v11818_v49  ;;  %v5639_v27 = vsub.s32 32, %v5638_v15  ;;  %v6435_v54 = vmin.u32 %v5378_v25, %v11776_v41  ;;  %v5575_v34 = vmul.u32 %v11747_v51, %v5559_v3  ;;  %v5632_v0 = vor.u32 8388608, %v5631_v37 }
 0x6da   :  { %13037 = vst [vmem:[#allocation9_spill] sm:$0xff] %v11822_v56  ;;  %v5835_v38 = vand.u32 2139095040, %v11803_v2  ;;  %v6814_v60 = vpop.eup %6813  ;;  %v5641_v44 = vshll.u32 %v12684_v28, %v5638_v15  ;;  %v5644_v1 = vshll.u32 %v12685_v36, %v5638_v15  ;;  %v5637_v18 = vshrl.u32 %v5636_v10, 5 }
 0x6db   :  { %v5642_v45 = vshrl.u32 %v12685_v36, %v5639_v27  ;;  %v5645_v33 = vshrl.u32 %v12686_v31, %v5639_v27  ;;  %v6816_v24 = vpop.eup %6815  ;;  %v11832_v32 = vadd.s32 %v5579_v5, %v5575_v34  ;;  %v5647_v12 = vshll.u32 %v12686_v31, %v5638_v15 }
 0x6dc   :  { %v5648_v51 = vshrl.u32 %v12687_v59, %v5639_v27  ;;  %v5650_v19 = vshll.u32 %v12687_v59, %v5638_v15  ;;  %v5651_v20 = vshrl.u32 %v12688_v8, %v5639_v27  ;;  %v5308_v6 = vxor.u32 2147483648, %v6814_v60 }
 0x6dd   :  { %v5643_v58 = vor.u32 %v5642_v45, %v5641_v44  ;;  %v5646_v22 = vor.u32 %v5645_v33, %v5644_v1  ;;  %v5653_v13 = vshll.u32 %v12688_v8, %v5638_v15  ;;  %v5654_v37 = vshrl.u32 %v12689_v48, %v5639_v27 }
 0x6de   :  { %v5649_v25 = vor.u32 %v5648_v51, %v5647_v12  ;;  %v5305_v3 = vxor.u32 2147483648, %v6816_v24  ;;  %v5499_v5 = vmul.f32 %v5498_v47, %v5496_v21  ;;  %v5652_v34 = vor.u32 %v5651_v20, %v5650_v19  ;;  %v4204_v19 = vpop.f32.mrf.mxu0 }
 0x6df   :  { %v5836_v10 = vshrl.u32 %v5835_v38, 23  ;;  %vm5304_vm15 = vcmp.eq.s32.totalorder %v11820_v7, 0  ;;  %v5380_v57 = vclz %v6435_v54  ;;  %v5581_v44 = vadd.s32 536870912, %v11832_v32 }
 0x6e0   :  { %v5655_v45 = vor.u32 %v5654_v37, %v5653_v13  ;;  %vm5656_vm9 = vcmp.lt.s32.totalorder %v5637_v18, 1  ;;  %v5640_v1 = vshrl.u32 %v12684_v28, %v5639_v27  ;;  %vm5659_vm1 = vcmp.lt.s32.totalorder %v5637_v18, 4 }
 0x6e1   :  { %v5664_v33 = vsel %vm5656_vm9, %v5643_v58, %v5646_v22  ;;  %v5672_v12 = vshll.u32 %v5632_v0, 8  ;;  %vm5658_vm2 = vcmp.lt.s32.totalorder %v5637_v18, 3  ;;  %v5661_v15 = vsel %vm5659_vm1, %v5649_v25, 2102212464 }
 0x6e2   :  { %v5665_v51 = vsel %vm5659_vm1, %v5652_v34, 920167782  ;;  %v5668_v21 = vsel %vm5656_vm9, %v5646_v22, %v5649_v25  ;;  %vm5303_vm12 = vcmp.lt.s32.totalorder %v11820_v7, 2  ;;  %vm5657_vm6 = vcmp.lt.s32.totalorder %v5637_v18, 2 }
 0x6e3   :  { %v5666_v47 = vsel %vm5658_vm2, %v5649_v25, %v5665_v51  ;;  %v5669_v54 = vsel %vm5659_vm1, %v5655_v45, 1326507024  ;;  %v6454_v38 = vadd.s32 4294967169, %v5836_v10  ;;  %v11846_v20 = vshrl.u32 %v5581_v44, 30 }
 0x6e4   :  { %v5660_v27 = vsel %vm5656_vm9, %v5640_v1, %v5643_v58  ;;  %v5667_v13 = vsel %vm5657_vm6, %v5664_v33, %v5666_v47  ;;  %v5670_v37 = vsel %vm5658_vm2, %v5652_v34, %v5669_v54  ;;  %v5662_v0 = vsel %vm5658_vm2, %v5646_v22, %v5661_v15 }
 0x6e5   :  { %v5671_v23 = vsel %vm5657_vm6, %v5668_v21, %v5670_v37  ;;  %v11851_v53 = vmul.u32.u64.low %v5672_v12, %v5667_v13  ;;  %v11852_v56 = vmul.u32.u64.high %v5672_v12, %v5667_v13, %v11851_v53  ;;  %vm5307_vm0 = vcmp.eq.s32.totalorder %v11820_v7, 2 }
 0x6e6   :  { %v11856_v25 = vand.u32 3, %v5509_v30  ;;  %v6436_v10 = vadd.s32 4294967294, %v5380_v57  ;;  %v11859_v44 = vadd.f32 %v4204_v19, %v10790_v9  ;;  %v4324_v58 = vsub.f32 1.0, %v11701_v46 }
 0x6e7   :  { %v11862_v45 = vmul.u32.u64.low %v5672_v12, %v5671_v23  ;;  %v11863_v1 = vmul.u32.u64.high %v5672_v12, %v5671_v23, %v11862_v45  ;;  %v5842_v22 = vadd.s32 1, %v6454_v38  ;;  %v5309_v34 = vsel %vm5307_vm0, %v5308_v6, %v6816_v24 }
 0x6e8   :  { %v5500_v33 = vxor.u32 2147483648, %v5499_v5  ;;  %v5663_v51 = vsel %vm5657_vm6, %v5660_v27, %v5662_v0  ;;  %v5306_v30 = vsel %vm5304_vm15, %v6814_v60, %v5305_v3  ;;  %v5583_v57 = vshll.u32 %v11846_v20, 30 }
 0x6e9   :  { %v5682_v21 = vadd.s32 1, %v11852_v56  ;;  %vm5843_vm7 = vcmp.gt.s32.totalorder %v5842_v22, 0  ;;  %vm5300_vm10 = vweird.f32 %v11202_v52  ;;  %v11874_v23 = vadd.s32 %v11595_v40, %v11602_v26 }
 0x6ea   :  { %vm6437_vm9 = vcmp.lt.s32.totalorder %v6436_v10, 0  ;;  %v12645_v24 = vand.u32 2147483647, %v11803_v2  ;;  %v5844_v6 = vsel %vm5843_vm7, %v5842_v22, 0  ;;  %v11877_v18 = vmax.f32 %v4324_v58, 0.0 }
 0x6eb   :  { %v5679_v47 = vmul.u32 %v5672_v12, %v5663_v51  ;;  %vm5681_vm15 = vc.u32 %v11863_v1, %v11851_v53  ;;  %v5846_v60 = vand.u32 31, %v5844_v6  ;;  %v5310_v3 = vsel %vm5303_vm12, %v5306_v30, %v5309_v34 }
 0x6ec   :  { %v5501_v54 = vsel %vm5418_vm5, %v5500_v33, %v5499_v5  ;;  %v5683_v40 = vsel %vm5681_vm15, %v5682_v21, %v11852_v56  ;;  %v11887_v38 = vsel %vm6437_vm9, 0, %v6436_v10  ;;  %v11890_v19 = vsub.s32 %v11832_v32, %v5583_v57 }
 0x6ed   :  { %v5684_v12 = vadd.s32 %v5683_v40, %v5679_v47  ;;  %v5847_v27 = vsub.s32 32, %v5846_v60  ;;  %v5839_v13 = vand.u32 8388607, %v12645_v24  ;;  %v11894_v37 = vshrl.u32 %v5844_v6, 5 }
 0x6ee   :  { %v5849_v7 = vshll.u32 %v12684_v28, %v5846_v60  ;;  %v5852_v5 = vshll.u32 %v12685_v36, %v5846_v60  ;;  %v5855_v58 = vshll.u32 %v12686_v31, %v5846_v60  ;;  %v5858_v45 = vshll.u32 %v12687_v59, %v5846_v60 }
 0x6ef   :  { %v5685_v0 = vadd.s32 536870912, %v5684_v12  ;;  %v5850_v56 = vshrl.u32 %v12685_v36, %v5847_v27  ;;  %v5853_v10 = vshrl.u32 %v12686_v31, %v5847_v27  ;;  %v5856_v32 = vshrl.u32 %v12687_v59, %v5847_v27 }
 0x6f0   :  { %v5859_v22 = vshrl.u32 %v12688_v8, %v5847_v27  ;;  %v5862_v34 = vshrl.u32 %v12689_v48, %v5847_v27  ;;  %v5586_v33 = vsub.s32 0, %v11890_v19  ;;  %v5840_v21 = vor.u32 8388608, %v5839_v13 }
 0x6f1   :  { %v11906_v51 = vshrl.u32 %v5685_v0, 30  ;;  %v5851_v30 = vor.u32 %v5850_v56, %v5849_v7  ;;  %v5854_v57 = vor.u32 %v5853_v10, %v5852_v5  ;;  %v5857_v6 = vor.u32 %v5856_v32, %v5855_v58 }
 0x6f2   :  { %v5860_v47 = vor.u32 %v5859_v22, %v5858_v45  ;;  %v5861_v40 = vshll.u32 %v12688_v8, %v5846_v60  ;;  %v5311_v24 = vsel %vm5300_vm10, nan, %v5310_v3  ;;  %v5504_v26 = vsel %vm11741_vm3, %v11374_v43, %v5501_v54 }
 0x6f3   :  { %v5687_v15 = vshll.u32 %v11906_v51, 30  ;;  %vm5864_vm5 = vcmp.lt.s32.totalorder %v11894_v37, 1  ;;  %v5388_v0 = vsub.s32 4294967266, %v11887_v38  ;;  %vm5867_vm1 = vcmp.lt.s32.totalorder %v11894_v37, 4 }
 0x6f4   :  { %v5863_v7 = vor.u32 %v5862_v34, %v5861_v40  ;;  %v5872_v13 = vsel %vm5864_vm5, %v5851_v30, %v5854_v57  ;;  %vm5866_vm2 = vcmp.lt.s32.totalorder %v11894_v37, 3  ;;  %v5873_v52 = vsel %vm5867_vm1, %v5860_v47, 920167782 }
 0x6f5   :  { %v11920_v60 = vsub.s32 %v5684_v12, %v5687_v15  ;;  %v11924_v62 = vmul.f32 6.2831855, %v11859_v44  ;;  %v6443_v3 = vmin.u32 %v5586_v33, %v11890_v19  ;;  %vm5865_vm3 = vcmp.lt.s32.totalorder %v11894_v37, 2 }
 0x6f6   :  { %v5874_v54 = vsel %vm5866_vm2, %v5857_v6, %v5873_v52  ;;  %v5880_v5 = vshll.u32 %v5840_v21, 8  ;;  %v5869_v10 = vsel %vm5867_vm1, %v5857_v6, 2102212464  ;;  %v5876_v12 = vsel %vm5864_vm5, %v5854_v57, %v5857_v6 }
 0x6f7   :  { %v5690_v56 = vsub.s32 0, %v11920_v60  ;;  %v5875_v15 = vsel %vm5865_vm3, %v5872_v13, %v5874_v54  ;;  %v5848_v58 = vshrl.u32 %v12684_v28, %v5847_v27  ;;  %v5877_v32 = vsel %vm5867_vm1, %v5863_v7, 1326507024 }
 0x6f8   :  { %v11936_v45 = vmul.u32.u64.low %v5880_v5, %v5875_v15  ;;  %v11937_v22 = vmul.u32.u64.high %v5880_v5, %v5875_v15, %v11936_v45  ;;  %v5384_v34 = vsub.s32 32, %v11887_v38  ;;  %v5878_v21 = vsel %vm5866_vm2, %v5860_v47, %v5877_v32 }
 0x6f9   :  { %v6447_v33 = vmin.u32 %v5690_v56, %v11920_v60  ;;  %v5731_v40 = vand.u32 2139095040, %v11924_v62  ;;  %v5389_v13 = vadd.s32 127, %v5388_v0  ;;  %v5868_v6 = vsel %vm5864_vm5, %v5848_v58, %v5851_v30  ;;  %v4293_v58 = vpop.f32.mrf.mxu1 }
 0x6fa   :  { %v5870_v27 = vsel %vm5866_vm2, %v5854_v57, %v5869_v10  ;;  %v5879_v7 = vsel %vm5865_vm3, %v5876_v12, %v5878_v21  ;;  %v11952_v52 = vmul.f32 %v5311_v24, %v11563_v17  ;;  %v5588_v54 = vclz %v6443_v3 }
 0x6fb   :  { %v13039_v56 = vmax.f32 %v11701_v46, 0.0  ;;  %v5692_v15 = vclz %v6447_v33  ;;  %6817 = vcosq.f32 %v5504_v26  ;;  %v5732_v30 = vshrl.u32 %v5731_v40, 23 }
 0x6fc   :  { %13038 = vst [vmem:[#allocation40_spill] sm:$0xff] %v11952_v52  ;;  %v11959_v0 = vmul.u32.u64.low %v5880_v5, %v5879_v7  ;;  %v11960_v32 = vmul.u32.u64.high %v5880_v5, %v5879_v7, %v11959_v0  ;;  %6819 = vsinq.f32 %v5504_v26  ;;  %v5871_v10 = vsel %vm5865_vm3, %v5868_v6, %v5870_v27 }
 0x6fd   :  { %v11957_v47 = vmul.f32 %v11877_v18, %v13039_v56  ;;  %v6448_v57 = vadd.s32 4294967294, %v5692_v15  ;;  %v5890_v17 = vadd.s32 1, %v11937_v22  ;;  %v5385_v46 = vshll.u32 %v11776_v41, %v11887_v38 }
 0x6fe   :  { %v5386_v24 = vshrl.u32 %v11874_v23, %v5384_v34  ;;  %v5390_v18 = vshll.u32 %v5389_v13, 23  ;;  %v6450_v3 = vadd.s32 4294967169, %v5732_v30  ;;  %v6444_v12 = vadd.s32 4294967294, %v5588_v54 }
 0x6ff   :  { %vm6449_vm12 = vcmp.lt.s32.totalorder %v6448_v57, 0  ;;  %v12646_v33 = vand.u32 2147483647, %v11924_v62  ;;  %v11970_v21 = vadd.f32 %v4293_v58, %v10790_v9  ;;  %v5887_v40 = vmul.u32 %v5880_v5, %v5871_v10 }
 0x700   :  { %v5695_v26 = vsel %vm6449_vm12, 0, %v6448_v57  ;;  %vm5889_vm6 = vc.u32 %v11960_v32, %v11936_v45  ;;  %v5738_v37 = vadd.s32 1, %v6450_v3  ;;  %v5680_v41 = vadd.s32 %v11851_v53, %v11863_v1 }
 0x701   :  { %v5696_v38 = vsub.s32 32, %v5695_v26  ;;  %v5700_v23 = vsub.s32 4294967266, %v5695_v26  ;;  %v5891_v34 = vsel %vm5889_vm6, %v5890_v17, %v11937_v22  ;;  %v5387_v13 = vor.u32 %v5386_v24, %v5385_v46 }
 0x702   :  { %v4326_v6 = vsub.f32 1.0, %v11786_v39  ;;  %v5892_v27 = vadd.s32 %v5891_v34, %v5887_v40  ;;  %vm5739_vm0 = vcmp.gt.s32.totalorder %v5738_v37, 0  ;;  %v5391_v9 = vor.u32 4788187, %v5390_v18 }
 0x703   :  { %v5698_v7 = vshrl.u32 %v5680_v41, %v5696_v38  ;;  %v5701_v54 = vadd.s32 127, %v5700_v23  ;;  %v5740_v5 = vsel %vm5739_vm0, %v5738_v37, 0  ;;  %v11980_v56 = vadd.s32 %v11756_v14, %v11765_v16 }
 0x704   :  { %v5893_v15 = vadd.s32 536870912, %v5892_v27  ;;  %v5735_v53 = vand.u32 8388607, %v12646_v33  ;;  %v5742_v1 = vand.u32 31, %v5740_v5  ;;  %vm6445_vm7 = vcmp.lt.s32.totalorder %v6444_v12, 0 }
 0x705   :  { %v5697_v22 = vshll.u32 %v11920_v60, %v5695_v26  ;;  %v5702_v0 = vshll.u32 %v5701_v54, 23  ;;  %v11986_v30 = vmul.f32 6.2831855, %v11970_v21  ;;  %v11988_v58 = vmax.f32 %v4326_v6, 0.0 }
 0x706   :  { %v11990_v57 = vshrl.u32 %v5893_v15, 30  ;;  %v5743_v14 = vsub.s32 32, %v5742_v1  ;;  %v5392_v16 = vand.u32 2147483647, %v5391_v9  ;;  %v5394_v17 = vcvt.s32.f32 %v5387_v13 }
 0x707   :  { %v5699_v46 = vor.u32 %v5698_v7, %v5697_v22  ;;  %v5703_v24 = vor.u32 4788187, %v5702_v0  ;;  %v11993_v18 = vsel %vm6445_vm7, 0, %v6444_v12  ;;  %v5736_v60 = vor.u32 8388608, %v5735_v53 }
 0x708   :  { %v5895_v3 = vshll.u32 %v11990_v57, 30  ;;  %v5746_v26 = vshrl.u32 %v12685_v36, %v5743_v14  ;;  %v11997_v40 = vpop.eup %6817  ;;  %v5749_v41 = vshrl.u32 %v12686_v31, %v5743_v14  ;;  %v5755_v38 = vshrl.u32 %v12688_v8, %v5743_v14 }
 0x709   :  { %v5704_v37 = vand.u32 2147483647, %v5703_v24  ;;  %v5939_v23 = vand.u32 2139095040, %v11986_v30  ;;  %v12002_v34 = vpop.eup %6819  ;;  %v5745_v12 = vshll.u32 %v12684_v28, %v5742_v1  ;;  %v5748_v6 = vshll.u32 %v12685_v36, %v5742_v1 }
 0x70a   :  { %v12004_v13 = vsub.s32 %v5892_v27, %v5895_v3  ;;  %v5752_v9 = vshrl.u32 %v12687_v59, %v5743_v14  ;;  %v5706_v7 = vcvt.s32.f32 %v5699_v46  ;;  %v5741_v54 = vshrl.u32 %v5740_v5, 5 }
 0x70b   :  { %v5751_v15 = vshll.u32 %v12686_v31, %v5742_v1  ;;  %v5754_v53 = vshll.u32 %v12687_v59, %v5742_v1  ;;  %v5747_v0 = vor.u32 %v5746_v26, %v5745_v12  ;;  %v5750_v24 = vor.u32 %v5749_v41, %v5748_v6 }
 0x70c   :  { %v5898_v22 = vsub.s32 0, %v12004_v13  ;;  %v5758_v33 = vshrl.u32 %v12689_v48, %v5743_v14  ;;  %v12013_v27 = vmul.f32 %v5394_v17, %v5392_v16  ;;  %v5707_v3 = vmul.f32 %v5706_v7, %v5704_v37 }
 0x70d   :  { %v5756_v10 = vor.u32 %v5755_v38, %v5754_v53  ;;  %v5757_v4 = vshll.u32 %v12688_v8, %v5742_v1  ;;  %v5513_v11 = vxor.u32 2147483648, %v12002_v34  ;;  %v5516_v5 = vxor.u32 2147483648, %v11997_v40 }
 0x70e   :  { %v6455_v46 = vmin.u32 %v5898_v22, %v12004_v13  ;;  %v5753_v52 = vor.u32 %v5752_v9, %v5751_v15  ;;  %vm5515_vm10 = vcmp.eq.s32.totalorder %v11856_v25, 2  ;;  %v5596_v26 = vsub.s32 4294967266, %v11993_v18 }
 0x70f   :  { %v5759_v41 = vor.u32 %v5758_v33, %v5757_v4  ;;  %vm5760_vm9 = vcmp.lt.s32.totalorder %v5741_v54, 1  ;;  %v5776_v12 = vshll.u32 %v5736_v60, 8  ;;  %vm5512_vm15 = vcmp.eq.s32.totalorder %v11856_v25, 0  ;;  %v13040_v60 = vld [vmem:[#allocation20_spill] sm:$0xff] }
 0x710   :  { %vm5626_vm5 = vcmp.lt.s32.totalorder %v11728_v61, 0  ;;  %v5900_v16 = vclz %v6455_v46  ;;  %vm5763_vm1 = vcmp.lt.s32.totalorder %v5741_v54, 4  ;;  %v5768_v1 = vsel %vm5760_vm9, %v5747_v0, %v5750_v24 }
 0x711   :  { %v5940_v17 = vshrl.u32 %v5939_v23, 23  ;;  %v5708_v37 = vxor.u32 2147483648, %v5707_v3  ;;  %v5744_v38 = vshrl.u32 %v12684_v28, %v5743_v14  ;;  %vm5762_vm2 = vcmp.lt.s32.totalorder %v5741_v54, 3 }
 0x712   :  { %v5769_v6 = vsel %vm5763_vm1, %v5756_v10, 920167782  ;;  %v6456_v9 = vadd.s32 4294967294, %v5900_v16  ;;  %vm5761_vm3 = vcmp.lt.s32.totalorder %v5741_v54, 2  ;;  %v5765_v4 = vsel %vm5763_vm1, %v5753_v52, 2102212464 }
 0x713   :  { %v5770_v33 = vsel %vm5762_vm2, %v5753_v52, %v5769_v6  ;;  %vm5314_vm12 = vcmp.lt.s32.totalorder %v13040_v60, 0  ;;  %v13041_v7 = vand.u32 2147483647, %v11728_v61  ;;  %v5764_v23 = vsel %vm5760_vm9, %v5744_v38, %v5747_v0 }
 0x714   :  { %v5771_v14 = vsel %vm5761_vm3, %v5768_v1, %v5770_v33  ;;  %v5772_v53 = vsel %vm5760_vm9, %v5750_v24, %v5753_v52  ;;  %v5773_v22 = vsel %vm5763_vm1, %v5759_v41, 1326507024  ;;  %vm5511_vm0 = vcmp.lt.s32.totalorder %v11856_v25, 2 }
 0x715   :  { %vm12031_vm6 = vcmp.le.f32.partialorder %v13041_v7, 0.7853982  ;;  %vm6457_vm7 = vcmp.lt.s32.totalorder %v6456_v9, 0  ;;  %v5774_v46 = vsel %vm5762_vm2, %v5756_v10, %v5773_v22  ;;  %v5766_v55 = vsel %vm5762_vm2, %v5750_v24, %v5765_v4 }
 0x716   :  { %v12041_v16 = vmul.u32.u64.low %v5776_v12, %v5771_v14  ;;  %v12042_v6 = vmul.u32.u64.high %v5776_v12, %v5771_v14, %v12041_v16  ;;  %v5903_v7 = vsel %vm6457_vm7, 0, %v6456_v9  ;;  %v5775_v0 = vsel %vm5761_vm3, %v5772_v53, %v5774_v46 }
 0x717   :  { %v6458_v38 = vadd.s32 4294967169, %v5940_v17  ;;  %v5396_v1 = vxor.u32 2147483648, %v12013_v27  ;;  %v13044_v52 = vmax.f32 %v11786_v39, 0.0  ;;  %v5908_v33 = vsub.s32 4294967266, %v5903_v7 }
 0x718   :  { %v4325_v10 = vsub.f32 1.0, %v11859_v44  ;;  %v12054_v22 = vmul.u32.u64.low %v5776_v12, %v5775_v0  ;;  %v12055_v14 = vmul.u32.u64.high %v5776_v12, %v5775_v0, %v12054_v22  ;;  %v5936_v9 = vand.u32 2147483647, %v11986_v30 }
 0x719   :  { %v12051_v41 = vmul.f32 %v11988_v58, %v13044_v52  ;;  %v5946_v49 = vadd.s32 1, %v6458_v38  ;;  %v5517_v24 = vsel %vm5515_vm10, %v5516_v5, %v12002_v34  ;;  %v5904_v17 = vsub.s32 32, %v5903_v7 }
 0x71a   :  { %v5767_v4 = vsel %vm5761_vm3, %v5764_v23, %v5766_v55  ;;  %v5786_v39 = vadd.s32 1, %v12042_v6  ;;  %v5514_v58 = vsel %vm5512_vm15, %v11997_v40, %v5513_v11  ;;  %v12066_v53 = vadd.s32 127, %v5596_v26 }
 0x71b   :  { %v5709_v46 = vsel %vm5626_vm5, %v5708_v37, %v5707_v3  ;;  %vm5947_vm9 = vcmp.gt.s32.totalorder %v5946_v49, 0  ;;  %v5710_v0 = vsub.s32 4, %v11906_v51  ;;  %v5888_v34 = vadd.s32 %v11936_v45, %v11960_v32 }
 0x71c   :  { %v5909_v5 = vadd.s32 127, %v5908_v33  ;;  %v5948_v54 = vsel %vm5947_vm9, %v5946_v49, 0  ;;  %v5783_v55 = vmul.u32 %v5776_v12, %v5767_v4  ;;  %vm5785_vm10 = vc.u32 %v12055_v14, %v12041_v16 }
 0x71d   :  { %v5943_v11 = vand.u32 8388607, %v5936_v9  ;;  %v5950_v40 = vand.u32 31, %v5948_v54  ;;  %v5397_v3 = vsel %vm5314_vm12, %v5396_v1, %v12013_v27  ;;  %v5712_v26 = vsel %vm12031_vm6, %v11728_v61, %v5709_v46 }
 0x71e   :  { %v5906_v37 = vshrl.u32 %v5888_v34, %v5904_v17  ;;  %v5787_v45 = vsel %vm5785_vm10, %v5786_v39, %v12042_v6  ;;  %v12086_v49 = vsel %vm5511_vm0, %v5514_v58, %v5517_v24  ;;  %v5592_v32 = vsub.s32 32, %v11993_v18 }
 0x71f   :  { %v5788_v12 = vadd.s32 %v5787_v45, %v5783_v55  ;;  %v5951_v23 = vsub.s32 32, %v5950_v40  ;;  %v5598_v38 = vshll.u32 %v12066_v53, 23  ;;  %v12093_v27 = vsel %vm5626_vm5, %v5710_v0, %v11906_v51 }
 0x720   :  { %v5905_v1 = vshll.u32 %v12004_v13, %v5903_v7  ;;  %v5910_v52 = vshll.u32 %v5909_v5, 23  ;;  %6821 = vcosq.f32 %v5712_v26  ;;  %v5944_v33 = vor.u32 8388608, %v5943_v11 }
 0x721   :  { %v5789_v6 = vadd.s32 536870912, %v5788_v12  ;;  %v5954_v25 = vshrl.u32 %v12685_v36, %v5951_v23  ;;  %v5949_v24 = vshrl.u32 %v5948_v54, 5  ;;  %v5957_v17 = vshrl.u32 %v12686_v31, %v5951_v23 }
 0x722   :  { %v5907_v22 = vor.u32 %v5906_v37, %v5905_v1  ;;  %v5960_v4 = vshrl.u32 %v12687_v59, %v5951_v23  ;;  %v5953_v58 = vshll.u32 %v12684_v28, %v5950_v40  ;;  %v5956_v51 = vshll.u32 %v12685_v36, %v5950_v40 }
 0x723   :  { %v12099_v39 = vshrl.u32 %v5789_v6, 30  ;;  %v5963_v13 = vshrl.u32 %v12688_v8, %v5951_v23  ;;  %v5911_v7 = vor.u32 4788187, %v5910_v52  ;;  %v5959_v46 = vshll.u32 %v12686_v31, %v5950_v40 }
 0x724   :  { %v5962_v0 = vshll.u32 %v12687_v59, %v5950_v40  ;;  %v5965_v34 = vshll.u32 %v12688_v8, %v5950_v40  ;;  %v5955_v54 = vor.u32 %v5954_v25, %v5953_v58  ;;  %v5958_v55 = vor.u32 %v5957_v17, %v5956_v51 }
 0x725   :  { %v5791_v5 = vshll.u32 %v12099_v39, 30  ;;  %v5966_v11 = vshrl.u32 %v12689_v48, %v5951_v23  ;;  %vm5508_vm15 = vweird.f32 %v11374_v43  ;;  %6823 = vsinq.f32 %v5712_v26 }
 0x726   :  { %v5961_v37 = vor.u32 %v5960_v4, %v5959_v46  ;;  %v5964_v36 = vor.u32 %v5963_v13, %v5962_v0  ;;  %v13045_v45 = vand.u32 2147483647, %v13040_v60  ;;  %v5984_v59 = vshll.u32 %v5944_v33, 8 }
 0x727   :  { %v12116_v31 = vsub.s32 %v5788_v12, %v5791_v5  ;;  %v5967_v8 = vor.u32 %v5966_v11, %v5965_v34  ;;  %v5912_v48 = vand.u32 2147483647, %v5911_v7  ;;  %v5914_v52 = vcvt.s32.f32 %v5907_v22 }
 0x728   :  { %vm12112_vm5 = vcmp.le.f32.partialorder %v13045_v45, 0.7853982  ;;  %v5952_v26 = vshrl.u32 %v12684_v28, %v5951_v23  ;;  %vm5968_vm1 = vcmp.lt.s32.totalorder %v5949_v24, 1  ;;  %vm5970_vm2 = vcmp.lt.s32.totalorder %v5949_v24, 3 }
 0x729   :  { %v5400_v40 = vsel %vm12112_vm5, %v13040_v60, %v5397_v3  ;;  %v5794_v6 = vsub.s32 0, %v12116_v31  ;;  %vm5971_vm3 = vcmp.lt.s32.totalorder %v5949_v24, 4  ;;  %v5976_v25 = vsel %vm5968_vm1, %v5955_v54, %v5958_v55 }
 0x72a   :  { %v5973_v17 = vsel %vm5971_vm3, %v5961_v37, 2102212464  ;;  %v5977_v4 = vsel %vm5971_vm3, %v5964_v36, 920167782  ;;  %v5980_v12 = vsel %vm5968_vm1, %v5958_v55, %v5961_v37  ;;  %v5981_v58 = vsel %vm5971_vm3, %v5967_v8, 1326507024 }
 0x72b   :  { %vm5834_vm0 = vcmp.lt.s32.totalorder %v11803_v2, 0  ;;  %v6451_v33 = vmin.u32 %v5794_v6, %v12116_v31  ;;  %vm5969_vm7 = vcmp.lt.s32.totalorder %v5949_v24, 2  ;;  %v5978_v3 = vsel %vm5970_vm2, %v5961_v37, %v5977_v4 }
 0x72c   :  { %v5982_v22 = vsel %vm5970_vm2, %v5964_v36, %v5981_v58  ;;  %v5915_v28 = vmul.f32 %v5914_v52, %v5912_v48  ;;  %v5972_v23 = vsel %vm5968_vm1, %v5952_v26, %v5955_v54  ;;  %v5979_v51 = vsel %vm5969_vm7, %v5976_v25, %v5978_v3 }
 0x72d   :  { %v5983_v13 = vsel %vm5969_vm7, %v5980_v12, %v5982_v22  ;;  %v5796_v7 = vclz %v6451_v33  ;;  %v5974_v46 = vsel %vm5970_vm2, %v5958_v55, %v5973_v17  ;;  %v12133_v5 = vpop.eup %6821  ;;  %v5713_v11 = vsel %vm12031_vm6, 0, %v12093_v27 }
 0x72e   :  { %v12130_v0 = vmul.u32.u64.low %v5984_v59, %v5983_v13  ;;  %v12131_v34 = vmul.u32.u64.high %v5984_v59, %v5983_v13, %v12130_v0  ;;  %v13048_v37 = vand.u32 2147483647, %v11803_v2  ;;  %v12151_v55 = vsel %vm5508_vm15, nan, %v12086_v49 }
 0x72f   :  { %v12144_v36 = vmul.u32.u64.low %v5984_v59, %v5979_v51  ;;  %v12145_v45 = vmul.u32.u64.high %v5984_v59, %v5979_v51, %v12144_v36  ;;  %v5593_v8 = vshll.u32 %v11890_v19, %v11993_v18  ;;  %v4341_v15 = vmax.f32 %v4325_v10, 0.0 }
 0x730   :  { %vm12140_vm9 = vcmp.le.f32.partialorder %v13048_v37, 0.7853982  ;;  %v6452_v27 = vadd.s32 4294967294, %v5796_v7  ;;  %v5594_v48 = vshrl.u32 %v11980_v56, %v5592_v32  ;;  %v5916_v52 = vxor.u32 2147483648, %v5915_v28 }
 0x731   :  { %v5975_v26 = vsel %vm5969_vm7, %v5972_v23, %v5974_v46  ;;  %6825 = vsinq.f32 %v5400_v40  ;;  %v5599_v43 = vor.u32 4788187, %v5598_v38  ;;  %v5717_v49 = vadd.s32 3, %v5713_v11 }
 0x732   :  { %vm6453_vm6 = vcmp.lt.s32.totalorder %v6452_v27, 0  ;;  %vm5993_vm10 = vc.u32 %v12131_v34, %v12144_v36  ;;  %v5994_v10 = vadd.s32 1, %v12145_v45  ;;  %v5398_v6 = vsub.s32 4, %v11722_v50  ;;  %v6824_v18 = vpop.eup %6823 }
 0x733   :  { %v5799_v19 = vsel %vm6453_vm6, 0, %v6452_v27  ;;  %6827 = vcosq.f32 %v5400_v40  ;;  %v5784_v56 = vadd.s32 %v12041_v16, %v12055_v14  ;;  %v5991_v25 = vmul.u32 %v5984_v59, %v5975_v26 }
 0x734   :  { %v5800_v32 = vsub.s32 32, %v5799_v19  ;;  %v5804_v24 = vsub.s32 4294967266, %v5799_v19  ;;  %v5595_v53 = vor.u32 %v5594_v48, %v5593_v8  ;;  %v5917_v38 = vsel %vm5834_vm0, %v5916_v52, %v5915_v28 }
 0x735   :  { %v5918_v17 = vsub.s32 4, %v11990_v57  ;;  %v5995_v4 = vsel %vm5993_vm10, %v5994_v10, %v12145_v45  ;;  %v5801_v12 = vshll.u32 %v12116_v31, %v5799_v19  ;;  %v5600_v3 = vand.u32 2147483647, %v5599_v43 }
 0x736   :  { %v5802_v58 = vshrl.u32 %v5784_v56, %v5800_v32  ;;  %v5805_v33 = vadd.s32 127, %v5804_v24  ;;  %v5996_v40 = vadd.s32 %v5995_v4, %v5991_v25  ;;  %v5718_v22 = vand.u32 3, %v5717_v49 }
 0x737   :  { %v13051_v16 = vmax.f32 %v11859_v44, 0.0  ;;  %v5399_v59 = vsel %vm5314_vm12, %v5398_v6, %v11722_v50  ;;  %v5920_v28 = vsel %vm12140_vm9, %v11803_v2, %v5917_v38  ;;  %v5602_v13 = vcvt.s32.f32 %v5595_v53  ;;  %v13068_v38 = vld [vmem:[#allocation53_spill] sm:$0xff] }
 0x738   :  { %v5803_v23 = vor.u32 %v5802_v58, %v5801_v12  ;;  %v5806_v51 = vshll.u32 %v5805_v33, 23  ;;  %v5997_v31 = vadd.s32 536870912, %v5996_v40  ;;  %v5724_v7 = vxor.u32 2147483648, %v12133_v5 }
 0x739   :  { %v12176_v14 = vmul.f32 %v4341_v15, %v13051_v16  ;;  %vm5730_vm15 = vcmp.lt.s32.totalorder %v11924_v62, 0  ;;  %v5814_v44 = vsub.s32 4, %v12099_v39  ;;  %v5721_v46 = vxor.u32 2147483648, %v6824_v18 }
 0x73a   :  { %v5919_v0 = vsel %vm5834_vm0, %v5918_v17, %v11990_v57  ;;  %v5807_v50 = vor.u32 4788187, %v5806_v51  ;;  %v12190_v11 = vshrl.u32 %v5997_v31, 30  ;;  %vm5522_vm12 = vcmp.lt.s32.totalorder %v11554_v42, 0  ;;  %v13056_v17 = vld [vmem:[#allocation43_spill] sm:$0xff] }
 0x73b   :  { %v5603_v37 = vmul.f32 %v5602_v13, %v5600_v3  ;;  %vm5720_vm1 = vcmp.eq.s32.totalorder %v5718_v22, 0  ;;  %6829 = vcosq.f32 %v5920_v28  ;;  %v5401_v45 = vsel %vm12112_vm5, 0, %v5399_v59 }
 0x73c   :  { %vm5716_vm2 = vweird.f32 %v11728_v61  ;;  %vm5723_vm3 = vcmp.eq.s32.totalorder %v5718_v22, 2  ;;  %v5808_v8 = vand.u32 2147483647, %v5807_v50  ;;  %v5810_v15 = vcvt.s32.f32 %v5803_v23 }
 0x73d   :  { %v5999_v27 = vshll.u32 %v12190_v11, 30  ;;  %v5725_v48 = vsel %vm5723_vm3, %v5724_v7, %v6824_v18  ;;  %v5921_v57 = vsel %vm12140_vm9, 0, %v5919_v0  ;;  %6831 = vsinq.f32 %v5920_v28 }
 0x73e   :  { %v5815_v52 = vsel %vm5730_vm15, %v5814_v44, %v12099_v39  ;;  %v6826_v26 = vpop.eup %6825  ;;  %v5722_v1 = vsel %vm5720_vm1, %v12133_v5, %v5721_v46  ;;  %v5811_v43 = vmul.f32 %v5810_v15, %v5808_v8  ;;  %v5405_v19 = vadd.s32 3, %v5401_v45 }
 0x73f   :  { %v12203_v49 = vsub.s32 %v5996_v40, %v5999_v27  ;;  %v5604_v10 = vxor.u32 2147483648, %v5603_v37  ;;  %vm5719_vm5 = vcmp.lt.s32.totalorder %v5718_v22, 2  ;;  %v4327_v6 = vsub.f32 1.0, %v11970_v21 }
 0x740   :  { %v13052_v18 = vand.u32 2147483647, %v11924_v62  ;;  %v6828_v54 = vpop.eup %6827  ;;  %v5925_v56 = vadd.s32 3, %v5921_v57  ;;  %v5812_v32 = vxor.u32 2147483648, %v5811_v43  ;;  %v5726_v25 = vsel %vm5719_vm5, %v5722_v1, %v5725_v48 }
 0x741   :  { %v6002_v24 = vsub.s32 0, %v12203_v49  ;;  %v5409_v53 = vxor.u32 2147483648, %v6826_v26  ;;  %v13053_v5 = vand.u32 2147483647, %v11000_v35  ;;  %v4982_v4 = vsub.s32 4, %v13056_v17 }
 0x742   :  { %vm5729_vm0 = vcmp.le.f32.partialorder %v13052_v18, 0.7853982  ;;  %v5813_v12 = vsel %vm5730_vm15, %v5812_v32, %v5811_v43  ;;  %v5406_v33 = vand.u32 3, %v5405_v19  ;;  %v5412_v16 = vxor.u32 2147483648, %v6828_v54 }
 0x743   :  { %v5817_v39 = vsel %vm5729_vm0, 0, %v5815_v52  ;;  %vm12211_vm7 = vcmp.le.f32.partialorder %v13053_v5, 0.7853982  ;;  %v6459_v58 = vmin.u32 %v6002_v24, %v12203_v49  ;;  %v5816_v3 = vsel %vm5729_vm0, %v11924_v62, %v5813_v12 }
 0x744   :  { %v4984_v40 = vsel %vm12211_vm7, %v11000_v35, %v11650_v29  ;;  %v5821_v22 = vadd.s32 3, %v5817_v39  ;;  %v5605_v59 = vsel %vm5522_vm12, %v5604_v10, %v5603_v37  ;;  %v12226_v28 = vmax.f32 %v4327_v6, 0.0 }
 0x745   :  { %6833 = vcosq.f32 %v4984_v40  ;;  %v6004_v23 = vclz %v6459_v58  ;;  %v5727_v51 = vsel %vm5716_vm2, nan, %v5726_v25  ;;  %v12230_v31 = vand.u32 3, %v5925_v56  ;;  %v13064_v25 = vld [vmem:[#allocation12_spill] sm:$0xff] }
 0x746   :  { %6835 = vcosq.f32 %v5816_v3  ;;  %v4983_v29 = vsel %vm4898_vm11, %v4982_v4, %v13056_v17  ;;  %vm5408_vm9 = vcmp.eq.s32.totalorder %v5406_v33, 0  ;;  %vm5411_vm6 = vcmp.eq.s32.totalorder %v5406_v33, 2 }
 0x747   :  { %6837 = vsinq.f32 %v5816_v3  ;;  %v6460_v13 = vadd.s32 4294967294, %v6004_v23  ;;  %v12235_v7 = vand.u32 3, %v5821_v22  ;;  %v5410_v44 = vsel %vm5408_vm9, %v6828_v54, %v5409_v53  ;;  %v13072_v3 = vld [vmem:[#allocation23_spill] sm:$0xff] }
 0x748   :  { %6839 = vsinq.f32 %v4984_v40  ;;  %v5413_v46 = vsel %vm5411_vm6, %v5412_v16, %v6826_v26  ;;  %v13057_v0 = vand.u32 2147483647, %v11554_v42  ;;  %v12243_v50 = vpop.eup %6829  ;;  %vm5404_vm1 = vweird.f32 %v13040_v60  ;;  %v13089_v40 = vld [vmem:[#allocation8_spill] sm:$0xff] }
 0x749   :  { %vm6461_vm15 = vcmp.lt.s32.totalorder %v6460_v13, 0  ;;  %v4985_v45 = vsel %vm12211_vm7, 0, %v4983_v29  ;;  %v12252_v8 = vmul.f32 %v5727_v51, %v11957_v47  ;;  %vm5407_vm11 = vcmp.lt.s32.totalorder %v5406_v33, 2  ;;  %v13073_v51 = vld [vmem:[#allocation36_spill] sm:$0xff] }
 0x74a   :  { %vm12239_vm10 = vcmp.le.f32.partialorder %v13057_v0, 0.7853982  ;;  %v6007_v15 = vsel %vm6461_vm15, 0, %v6460_v13  ;;  %v5606_v27 = vsub.s32 4, %v11846_v20  ;;  %v12255_v48 = vpop.eup %6831  ;;  %v5992_v57 = vadd.s32 %v12144_v36, %v12131_v34  ;;  %v13063_v34 = vld [vmem:[#allocation29_spill] sm:$0xff]  ;;  %v13074_v13 = vld [vmem:[#allocation52_spill] sm:$0xff] }
 0x74b   :  { %v5608_v37 = vsel %vm12239_vm10, %v11554_v42, %v5605_v59  ;;  %v6008_v52 = vsub.s32 32, %v6007_v15  ;;  %v6012_v26 = vsub.s32 4294967266, %v6007_v15  ;;  %v5414_v1 = vsel %vm5407_vm11, %v5410_v44, %v5413_v46 }
 0x74c   :  { %v5932_v43 = vxor.u32 2147483648, %v12243_v50  ;;  %vm5827_vm2 = vcmp.eq.s32.totalorder %v12235_v7, 2  ;;  %6841 = vcosq.f32 %v5608_v37  ;;  %v4989_v19 = vadd.s32 3, %v4985_v45 }
 0x74d   :  { %v13060_v47 = vand.u32 2147483647, %v13033_v63  ;;  %v6009_v6 = vshll.u32 %v12203_v49, %v6007_v15  ;;  %v6010_v18 = vshrl.u32 %v5992_v57, %v6008_v52  ;;  %v6013_v54 = vadd.s32 127, %v6012_v26  ;;  %v13078_v52 = vld [vmem:[#allocation17_spill] sm:$0xff] }
 0x74e   :  { %vm5824_vm5 = vcmp.eq.s32.totalorder %v12235_v7, 0  ;;  %v5929_v56 = vxor.u32 2147483648, %v12255_v48  ;;  %vm5823_vm0 = vcmp.lt.s32.totalorder %v12235_v7, 2  ;;  %v5415_v32 = vsel %vm5404_vm1, nan, %v5414_v1 }
 0x74f   :  { %vm12263_vm3 = vcmp.le.f32.partialorder %v13060_v47, 0.7853982  ;;  %v12280_v49 = vsel %vm5522_vm12, %v5606_v27, %v11846_v20  ;;  %6843 = vsinq.f32 %v5608_v37  ;;  %v6011_v24 = vor.u32 %v6010_v18, %v6009_v6  ;;  %v13069_v20 = vld [vmem:[#allocation32_spill] sm:$0xff] }
 0x750   :  { %v5192_v36 = vsel %vm12263_vm3, %v13033_v63, %v13063_v34  ;;  %v6014_v39 = vshll.u32 %v6013_v54, 23  ;;  %vm5820_vm7 = vweird.f32 %v11924_v62  ;;  %v13065_v53 = vand.u32 2147483647, %v13064_v25 }
 0x751   :  { %v4566_v17 = vsub.s32 4, %v13068_v38  ;;  %vm5938_vm6 = vcmp.lt.s32.totalorder %v11986_v30, 0  ;;  %v6022_v60 = vsub.s32 4, %v12190_v11  ;;  %v4990_v4 = vand.u32 3, %v4989_v19 }
 0x752   :  { %vm12285_vm9 = vcmp.le.f32.partialorder %v13065_v53, 0.7853982  ;;  %6845 = vcosq.f32 %v5192_v36  ;;  %v6834_v58 = vpop.eup %6833  ;;  %vm5931_vm12 = vcmp.eq.s32.totalorder %v12230_v31, 2  ;;  %v6015_v33 = vor.u32 4788187, %v6014_v39  ;;  %v13079_v53 = vld [vmem:[#allocation51_spill] sm:$0xff] }
 0x753   :  { %v4568_v12 = vsel %vm12285_vm9, %v13064_v25, %v13069_v20  ;;  %vm12299_vm15 = vcmp.le.f32.partialorder %v5936_v9, 0.7853982  ;;  %v6049_v22 = vmul.f32 %v5415_v32, %v13072_v3  ;;  %v4567_v16 = vsel %vm4482_vm4, %v4566_v17, %v13068_v38  ;;  %v6836_v59 = vpop.eup %6835  ;;  %v13081_v3 = vld [vmem:[#allocation27_spill] sm:$0xff] }
 0x754   :  { %6847 = vcosq.f32 %v4568_v12  ;;  %v4996_v23 = vxor.u32 2147483648, %v6834_v58  ;;  %v5190_v29 = vsub.s32 4, %v13073_v51  ;;  %v13075_v44 = vand.u32 2147483647, %v13074_v13  ;;  %v6838_v9 = vpop.eup %6837 }
 0x755   :  { %6849 = vsinq.f32 %v5192_v36  ;;  %v6016_v0 = vand.u32 2147483647, %v6015_v33  ;;  %v6018_v37 = vcvt.s32.f32 %v6011_v24  ;;  %v5828_v45 = vxor.u32 2147483648, %v6836_v59  ;;  %v6840_v15 = vpop.eup %6839 }
 0x756   :  { %vm12310_vm1 = vcmp.le.f32.partialorder %v13075_v44, 0.7853982  ;;  %6851 = vsinq.f32 %v4568_v12  ;;  %v5825_v27 = vxor.u32 2147483648, %v6838_v9  ;;  %vm4995_vm11 = vcmp.eq.s32.totalorder %v4990_v4, 2  ;;  %v13080_v12 = vld [vmem:[#allocation33_spill] sm:$0xff] }
 0x757   :  { %v4569_v57 = vsel %vm12285_vm9, 0, %v4567_v16  ;;  %v4776_v26 = vsel %vm12310_vm1, %v13074_v13, %v13078_v52  ;;  %v6019_v1 = vmul.f32 %v6018_v37, %v6016_v0  ;;  %v5829_v19 = vsel %vm5827_vm2, %v5828_v45, %v6838_v9  ;;  %v13087_v37 = vld [vmem:[#allocation40_spill] sm:$0xff] }
 0x758   :  { %v4993_v47 = vxor.u32 2147483648, %v6840_v15  ;;  %v4997_v6 = vsel %vm4995_vm11, %v4996_v23, %v6840_v15  ;;  %v5826_v18 = vsel %vm5824_vm5, %v6836_v59, %v5825_v27  ;;  %vm4988_vm14 = vweird.f32 %v11000_v35 }
 0x759   :  { %vm4991_vm4 = vcmp.lt.s32.totalorder %v4990_v4, 2  ;;  %vm4992_vm13 = vcmp.eq.s32.totalorder %v4990_v4, 0  ;;  %v6020_v54 = vxor.u32 2147483648, %v6019_v1  ;;  %v5830_v34 = vsel %vm5823_vm0, %v5826_v18, %v5829_v19  ;;  %v12331_v38 = vpop.eup %6841 }
 0x75a   :  { %v4994_v36 = vsel %vm4992_vm13, %v6834_v58, %v4993_v47  ;;  %6853 = vcosq.f32 %v4776_v26  ;;  %v5831_v32 = vsel %vm5820_vm7, nan, %v5830_v34  ;;  %v4573_v39 = vadd.s32 3, %v4569_v57 }
 0x75b   :  { %v4998_v24 = vsel %vm4991_vm4, %v4994_v36, %v4997_v6  ;;  %v4774_v5 = vsub.s32 4, %v13079_v53  ;;  %v6021_v35 = vsel %vm5938_vm6, %v6020_v54, %v6019_v1  ;;  %v6053_v17 = vmul.f32 %v5831_v32, %v12176_v14 }
 0x75c   :  { %v4999_v4 = vsel %vm4988_vm14, nan, %v4998_v24  ;;  %v5191_v7 = vsel %vm5106_vm8, %v5190_v29, %v13073_v51  ;;  %v5933_v62 = vsel %vm5931_vm12, %v5932_v43, %v12255_v48  ;;  %v6024_v20 = vsel %vm12299_vm15, %v11986_v30, %v6021_v35  ;;  %v6844_v33 = vpop.eup %6843  ;;  %v13082_v43 = vld [vmem:[#allocation15_spill] sm:$0xff]  ;;  %v13086_v48 = vld [vmem:[#allocation22_spill] sm:$0xff] }
 0x75d   :  { %v6068_v58 = vadd.f32 %v12252_v8, %v13080_v12  ;;  %v5609_v14 = vsel %vm12239_vm10, 0, %v12280_v49  ;;  %v6069_v16 = vadd.f32 %v6053_v17, %v13081_v3  ;;  %v6023_v59 = vsel %vm5938_vm6, %v6022_v60, %v12190_v11  ;;  %v13085_v49 = vld [vmem:[#allocation7_spill] sm:$0xff]  ;;  %v13091_v17 = vld [vmem:[#allocation34_spill] sm:$0xff] }
 0x75e   :  { %6855 = vcosq.f32 %v6024_v20  ;;  %v6045_v23 = vmul.f32 %v4999_v4, %v13082_v43  ;;  %v5193_v51 = vsel %vm12263_vm3, 0, %v5191_v7  ;;  %v4574_v29 = vand.u32 3, %v4573_v39 }
 0x75f   :  { %6857 = vsinq.f32 %v6024_v20  ;;  %vm13083_vm14 = vcmp.lt.s32.totalorder %v13074_v13, 0  ;;  %v12362_v8 = vpop.eup %6845  ;;  %vm13084_vm13 = vcmp.eq.s32.totalorder %v12230_v31, 0  ;;  %6106 = vmatprep.subr.mxu0 %v6069_v16  ;;  %v6065_v60 = vadd.f32 %v6049_v22, %v13085_v49 }
 0x760   :  { %v4775_v61 = vsel %vm13083_vm14, %v4774_v5, %v13079_v53  ;;  %v5930_v11 = vsel %vm13084_vm13, %v12243_v50, %v5929_v56  ;;  %v5613_v44 = vadd.s32 3, %v5609_v14  ;;  %6859 = vsinq.f32 %v4776_v26  ;;  %6107 = vmatpush1.msra.mxu0 %v6068_v58  ;;  %v13088_v56 = vld [vmem:[#allocation11_spill] sm:$0xff]  ;;  %v13090_v26 = vld [vmem:[#allocation42_spill] sm:$0xff] }
 0x761   :  { %v6848_v10 = vpop.eup %6847  ;;  %vm5924_vm8 = vweird.f32 %v11803_v2  ;;  %vm5927_vm10 = vcmp.lt.s32.totalorder %v12230_v31, 2  ;;  %v4311_v9 = vmax.f32 %v11970_v21, 0.0  ;;  %v6025_v0 = vsel %vm12299_vm15, 0, %v6023_v59  ;;  %6108 = vmatprep.subr.mxu0 %v6065_v60  ;;  %v13093_v59 = vld [vmem:[#allocation10_spill] sm:$0xff]  ;;  %v6072_v2 = vld [vmem:[%s12450_s8] sm:$0xff]  ;;  %s6892_s8 = smov [#allocation2]  }
 0x762   :  { %v6064_v45 = vadd.f32 %v13087_v37, %v13086_v48  ;;  %v6850_v50 = vpop.eup %6849  ;;  %v6061_v22 = vadd.f32 %v6045_v23, %v13088_v56  ;;  %v5197_v15 = vadd.s32 3, %v5193_v51  ;;  %v4580_v27 = vxor.u32 2147483648, %v6848_v10  ;;  %v13094_v51 = vld [vmem:[#allocation5_spill] sm:$0xff]  ;;  %s6234_s22 = sshll.u32 %s6892_s8, 4  ;;  %s6235_s22 = int_to_ptr.vmem [resolvable:$true] %s6234_s22 }
 0x763   :  { %v4777_v57 = vsel %vm12310_vm1, 0, %v4775_v61  ;;  %v6852_v52 = vpop.eup %6851  ;;  %v5934_v31 = vsel %vm5927_vm10, %v5930_v11, %v5933_v62  ;;  %v12381_v21 = vmul.f32 %v12226_v28, %v4311_v9  ;;  %v6060_v1 = vadd.f32 %v13090_v26, %v13089_v40  ;;  %v13092_v62 = vld [vmem:[#allocation28_spill] sm:$0xff]  ;;  %s6861_s2 = scalar_lea.vmem %s6235_s22, 512  ;;  %p6866_p1 = scmp.lt.s32.totalorder %s6235_s22, %s6235_s22 }
 0x764   :  { %6109 = vmatpush1.msra.mxu0 %v6064_v45  ;;  %vm4579_vm2 = vcmp.eq.s32.totalorder %v4574_v29, 2  ;;  %v6029_v19 = vadd.s32 3, %v6025_v0  ;;  %v5614_v47 = vand.u32 3, %v5613_v44  ;;  %v4577_v6 = vxor.u32 2147483648, %v6852_v52  ;;  %p6862_p0 = scmp.ne.s32.totalorder %s6235_s22, %s6861_s2  ;;  %p6867_p2 = scmp.lt.s32.totalorder %s6861_s2, %s6861_s2 }
 0x765   :  { %6110 = vmatprep.subr.mxu0 %v6061_v22  ;;  %v4581_v18 = vsel %vm4579_vm2, %v4580_v27, %v6852_v52  ;;  %v5617_v54 = vxor.u32 2147483648, %v6844_v33  ;;  %v5620_v34 = vxor.u32 2147483648, %v12331_v38  ;;  %vm4576_vm3 = vcmp.eq.s32.totalorder %v4574_v29, 0 }
 0x766   :  { %6111 = vmatpush1.msra.mxu0 %v6060_v1  ;;  %v4781_v46 = vadd.s32 3, %v4777_v57  ;;  %vm5612_vm5 = vweird.f32 %v11554_v42  ;;  %v5198_v28 = vand.u32 3, %v5197_v15  ;;  %vm4575_vm0 = vcmp.lt.s32.totalorder %v4574_v29, 2  ;;  %v13095_v29 = vld [vmem:[#allocation13_spill] sm:$0xff]  ;;  %v13097_v15 = vld [vmem:[#allocation24_spill] sm:$0xff]  ;;  %p6868_p3 = por %p6867_p2, %p6866_p1 }
 0x767   :  { %v4578_v36 = vsel %vm4576_vm3, %v6848_v10, %v4577_v6  ;;  %v6854_v32 = vpop.eup %6853  ;;  %v5201_v24 = vxor.u32 2147483648, %v6850_v50  ;;  %v5204_v39 = vxor.u32 2147483648, %v12362_v8  ;;  %vm4572_vm7 = vweird.f32 %v13064_v25  ;;  %v13098_v57 = vld [vmem:[#allocation9_spill] sm:$0xff] }
 0x768   :  { %v4582_v53 = vsel %vm4575_vm0, %v4578_v36, %v4581_v18  ;;  %vm6028_vm9 = vweird.f32 %v11986_v30  ;;  %v6030_v5 = vand.u32 3, %v6029_v19  ;;  %vm5616_vm6 = vcmp.eq.s32.totalorder %v5614_v47, 0  ;;  %v13103_v30 = vld [vmem:[#allocation47_spill] sm:$0xff]  ;;  %v13109_v36 = vld [vmem:[#allocation30_spill] sm:$0xff]  ;;  %p6869_p4 = pnand %p6868_p3, %p6862_p0 }
 0x769   :  { %vm5619_vm12 = vcmp.eq.s32.totalorder %v5614_v47, 2  ;;  %v4583_v35 = vsel %vm4572_vm7, nan, %v4582_v53  ;;  %vm5092_vm15 = vweird.f32 %v13091_v17  ;;  %v5618_v4 = vsel %vm5616_vm6, %v12331_v38, %v5617_v54  ;;  %v13105_v18 = vld [vmem:[#allocation55_spill] sm:$0xff] }
 0x76a   :  { %v5621_v7 = vsel %vm5619_vm12, %v5620_v34, %v6844_v33  ;;  %v6041_v20 = vmul.f32 %v4583_v35, %v13092_v62  ;;  %v4782_v12 = vand.u32 3, %v4781_v46  ;;  %v5935_v58 = vsel %vm5924_vm8, nan, %v5934_v31  ;;  %v13100_v31 = vld [vmem:[#allocation35_spill] sm:$0xff]  ;;  %v13107_v34 = vld [vmem:[#allocation26_spill] sm:$0xff] }
 0x76b   :  { %vm5200_vm1 = vcmp.eq.s32.totalorder %v5198_v28, 0  ;;  %vm5203_vm4 = vcmp.eq.s32.totalorder %v5198_v28, 2  ;;  %v4788_v25 = vxor.u32 2147483648, %v6854_v32  ;;  %v6856_v14 = vpop.eup %6855  ;;  %vm5615_vm11 = vcmp.lt.s32.totalorder %v5614_v47, 2  ;;  %v13104_v47 = vld [vmem:[#allocation16_spill] sm:$0xff]  ;;  %v13108_v46 = vld [vmem:[#allocation18_spill] sm:$0xff] }
 0x76c   :  { %v5202_v3 = vsel %vm5200_vm1, %v12362_v8, %v5201_v24  ;;  %v5205_v16 = vsel %vm5203_vm4, %v5204_v39, %v6850_v50  ;;  %v6057_v43 = vadd.f32 %v6041_v20, %v13093_v59  ;;  %v6858_v23 = vpop.eup %6857  ;;  %vm6032_vm14 = vcmp.eq.s32.totalorder %v6030_v5, 0  ;;  %v13112_v39 = vld [vmem:[#allocation44_spill] sm:$0xff]  ;;  %v13113_v35 = vld [vmem:[#allocation14_spill] sm:$0xff] }
 0x76d   :  { %v6036_v38 = vxor.u32 2147483648, %v6856_v14  ;;  %v5622_v33 = vsel %vm5615_vm11, %v5618_v4, %v5621_v7  ;;  %v6056_v61 = vadd.f32 %v13095_v29, %v13094_v51  ;;  %v6860_v11 = vpop.eup %6859  ;;  %v6033_v49 = vxor.u32 2147483648, %v6858_v23  ;;  %v13115_v20 = vld [vmem:[#allocation56_spill] sm:$0xff] }
 0x76e   :  { %vm6035_vm13 = vcmp.eq.s32.totalorder %v6030_v5, 2  ;;  %vm5199_vm8 = vcmp.lt.s32.totalorder %v5198_v28, 2  ;;  %6112 = vmatprep.subr.mxu0 %v6057_v43  ;;  %vm4787_vm10 = vcmp.eq.s32.totalorder %v4782_v12, 2  ;;  %v4785_v44 = vxor.u32 2147483648, %v6860_v11  ;;  %v13119_v43 = vld [vmem:[#allocation39_spill] sm:$0xff] }
 0x76f   :  { %v6037_v8 = vsel %vm6035_vm13, %v6036_v38, %v6858_v23  ;;  %v5206_v60 = vsel %vm5199_vm8, %v5202_v3, %v5205_v16  ;;  %v4789_v10 = vsel %vm4787_vm10, %v4788_v25, %v6860_v11  ;;  %6113 = vmatpush1.msra.mxu0 %v6056_v61  ;;  %vm6031_vm2 = vcmp.lt.s32.totalorder %v6030_v5, 2  ;;  %v13118_v16 = vld [vmem:[#allocation46_spill] sm:$0xff]  ;;  %v6077_v38 = vpop.permute.xlu0 %6076 }
 0x770   :  { %v6034_v9 = vsel %vm6032_vm14, %v6856_v14, %v6033_v49  ;;  %v5623_v0 = vsel %vm5612_vm5, nan, %v5622_v33  ;;  %vm4784_vm3 = vcmp.eq.s32.totalorder %v4782_v12, 0  ;;  %vm13096_vm0 = vcmask 261120   ;;  %v13117_v14 = vld [vmem:[#allocation25_spill] sm:$0xff] }
 0x771   :  { %6462 = vmatmul.mubr.msk.f32.vlgmr.msra.gmra.mxu0 %vm13096_vm0, %v6072_v2  ;;  %v6038_v48 = vsel %vm6031_vm2, %v6034_v9, %v6037_v8  ;;  %vm5196_vm7 = vweird.f32 %v13033_v63  ;;  %vm4783_vm6 = vcmp.lt.s32.totalorder %v4782_v12, 2  ;;  %v4786_v37 = vsel %vm4784_vm3, %v6854_v32, %v4785_v44  ;;  %v13099_v63 = vld [vmem:[#allocation19_spill] sm:$0xff]  ;;  %v13110_v32 = vld [vmem:[#allocation49_spill] sm:$0xff] }
 0x772   :  { %v6054_v45 = vmul.f32 %v5935_v58, %v12051_v41  ;;  %v6039_v50 = vsel %vm6028_vm9, nan, %v6038_v48  ;;  %v5207_v56 = vsel %vm5196_vm7, nan, %v5206_v60  ;;  %v4790_v22 = vsel %vm4783_vm6, %v4786_v37, %v4789_v10  ;;  %v13102_v41 = vld [vmem:[#allocation45_spill] sm:$0xff]  ;;  %v13116_v58 = vld [vmem:[#allocation38_spill] sm:$0xff]  ;;  %vm13120_vm9 = vmmov %vm13096_vm0 }
 0x773   :  { %v5103_v42 = vsel %vm5092_vm15, nan, %v13097_v15  ;;  %v6055_v27 = vmul.f32 %v6039_v50, %v12381_v21  ;;  %v6051_v52 = vmul.f32 %v5623_v0, %v13098_v57  ;;  %vm4780_vm5 = vweird.f32 %v13074_v13 }
 0x774   :  { %vm4676_vm12 = vweird.f32 %v13099_v63  ;;  %v13101_v40 = vmax.f32 %v13100_v31, 0.0  ;;  %v6050_v1 = vmul.f32 %v12151_v55, %v13103_v30  ;;  %v4791_v19 = vsel %vm4780_vm5, nan, %v4790_v22  ;;  %v13114_v55 = vld [vmem:[#allocation6_spill] sm:$0xff] }
 0x775   :  { %v4687_v6 = vsel %vm4676_vm12, nan, %v13104_v47  ;;  %v13106_v54 = vmax.f32 %v13105_v18, 0.0  ;;  %v6071_v28 = vadd.f32 %v6055_v27, %v13108_v46  ;;  %v6047_v13 = vmul.f32 %v5207_v56, %v13109_v36 }
 0x776   :  { %v4350_v26 = vmul.f32 %v13102_v41, %v13101_v40  ;;  %v13111_v24 = vmax.f32 %v13110_v32, 0.0  ;;  %v6070_v17 = vadd.f32 %v6054_v45, %v13113_v35  ;;  %v6067_v4 = vadd.f32 %v6051_v52, %v13114_v55 }
 0x777   :  { %v4347_v21 = vmul.f32 %v13107_v34, %v13106_v54  ;;  %6177 = vmatprep.subr.mxu1 %v6071_v28  ;;  %v6066_v12 = vadd.f32 %v6050_v1, %v13115_v20  ;;  %v6063_v25 = vadd.f32 %v6047_v13, %v13116_v58 }
 0x778   :  { %v4346_v53 = vmul.f32 %v13112_v39, %v13111_v24  ;;  %v6046_v5 = vmul.f32 %v5103_v42, %v4350_v26  ;;  %6178 = vmatpush1.msra.mxu1 %v6070_v17 }
 0x779   :  { %v6043_v7 = vmul.f32 %v4791_v19, %v4347_v21  ;;  %6179 = vmatprep.subr.mxu1 %v6067_v4 }
 0x77a   :  { %v6042_v62 = vmul.f32 %v4687_v6, %v4346_v53  ;;  %6180 = vmatpush1.msra.mxu1 %v6066_v12  ;;  %v6062_v3 = vadd.f32 %v6046_v5, %v13117_v14 }
 0x77b   :  { %6181 = vmatprep.subr.mxu1 %v6063_v25  ;;  %v6059_v59 = vadd.f32 %v6043_v7, %v13118_v16 }
 0x77c   :  { %6182 = vmatpush1.msra.mxu1 %v6062_v3  ;;  %v6058_v23 = vadd.f32 %v6042_v62, %v13119_v43 }
 0x77d   :  { %6183 = vmatprep.subr.mxu1 %v6059_v59 }
 0x77e   :  { %6184 = vmatpush1.msra.mxu1 %v6058_v23 }
 0x77f   :  { %6463 = vmatmul.mubr.msk.f32.vlgmr.msra.gmra.mxu1 %vm13120_vm9, %v6072_v2 }
 0x831   :  { %v6148_v33 = vpop.f32.mrf.mxu0 }
 0x832   :  { %v6149_v51 = vadd.f32 %v6148_v33, %v6077_v38 }
 0x833   :  { %v6150_v29 = vpop.f32.mrf.mxu0 }
 0x834   :  { %6224 = vst [vmem:[#allocation2] sm:$0xff] %v6149_v51  ;;  %v6151_v61 = vadd.f32 %v6150_v29, %v6077_v38 }
 0x836   :  { %6225 = vst [vmem:[#allocation2 + $0x8] sm:$0xff] %v6151_v61 }
 0x83f   :  { %v6219_v11 = vpop.f32.mrf.mxu1 }
 0x840   :  { %v6220_v49 = vadd.f32 %v6219_v11, %v6077_v38 }
 0x841   :  { %v6221_v8 = vpop.f32.mrf.mxu1 }
 0x842   :  { %6226 = vst [vmem:[#allocation2 + $0x10] sm:$0xff] %v6220_v49  ;;  %v6222_v60 = vadd.f32 %v6221_v8, %v6077_v38 }
 0x844   :  { %6227 = vst [vmem:[#allocation2 + $0x18] sm:$0xff] %v6222_v60 }
 0x845   :  { %6872 = shalt.err (!%p6869_p4)
}
 0x846   :  { %6237 = dma.vmem_to_hbm [thread:$0]  %s6235_s22, 512, %s12452_s10, [#allocation3]  }
 0x847   :  { %6881 = dma.done.wait [#allocation3], 512  }
 0x848   :  { %6882 = vsyncadd [#allocation3], 4294966784 }
 0x849   :  { %6241 = vsyncpa [#allocation3], 1 }

</bundles_post_ra>
